<compile_context>
chip_gen: v6e
topology: v6e:2x2x1
jax: 0.10.0
libtpu: 0.0.40
codegen_flags: <defaults>
</compile_context>

<pallas_src>
import numpy as np
import jax
import jax.numpy as jnp
from jax.experimental import pallas as pl
from jax.experimental.pallas import tpu as pltpu

B = 2
LATENT_DIM = 512
EMBEDDING_DIM = 64
NUM_EMBEDDINGS = 32
COMMITMENT_COST = 0.25
BN_EPS = 1e-5


# ------------------------------ fused kernel --------------------------------


def _vq_ae_kernel(x_ref, r1_ref, m1_ref, cb1_ref, bn1_ref, a8_ref,
                  r2_ref, m2_ref, cb2_ref,
                  w1p_ref, lb1_ref, bnl1_ref,
                  emb_ref, embt_ref,
                  w2p_ref, lb2_ref, bnl2_ref,
                  efwd_ref, ebwd_ref,
                  rt1_ref, mt1_ref, db1_ref, bnd1_ref,
                  rt2_ref, mt2_ref, db2_ref,
                  dec_ref, loss_ref):
    f32 = jnp.float32

    def conv3(x, r_ref, m_ref, bias_row):
        # (transposed) conv on a (B*H, W*C) slab: 3 row-tap matmul pairs.
        out = None
        for ky in range(3):
            t = jnp.dot(x, m_ref[ky], preferred_element_type=f32)
            t = jnp.dot(r_ref[ky], t, preferred_element_type=f32)
            out = t if out is None else out + t
        return out + bias_row

    def bn2d(h, pool, gamma, beta, relu):
        # training-mode BN over (rows, width) per channel; channel reduction of
        # the column stats is a matmul with the constant pooling matrix.
        n = h.shape[0]
        colmean = jnp.sum(h, axis=0, keepdims=True) * (1.0 / n)
        mean = jnp.dot(colmean, pool, preferred_element_type=f32)
        xc = h - mean
        colvar = jnp.sum(xc * xc, axis=0, keepdims=True) * (1.0 / n)
        var = jnp.dot(colvar, pool, preferred_element_type=f32)
        y = xc * jax.lax.rsqrt(var + BN_EPS) * gamma + beta
        return jnp.maximum(y, 0.0) if relu else y

    def bn1d(h, gamma, beta):
        n = h.shape[0]
        mean = jnp.sum(h, axis=0, keepdims=True) * (1.0 / n)
        xc = h - mean
        var = jnp.sum(xc * xc, axis=0, keepdims=True) * (1.0 / n)
        return xc * jax.lax.rsqrt(var + BN_EPS) * gamma + beta

    pool8 = a8_ref[...]                                            # (128, 128)

    # ------------------------------ encoder --------------------------------
    h1 = conv3(x_ref[...], r1_ref, m1_ref, cb1_ref[...])           # (32, 128)
    h1 = bn2d(h1, pool8, bn1_ref[0:1, :], bn1_ref[1:2, :], relu=True)
    h2 = conv3(h1, r2_ref, m2_ref, cb2_ref[...])                   # (16, 128)

    # --------------------------- lin1 + BN1d -------------------------------
    z = None
    for h in range(8):
        rows = jnp.dot(ebwd_ref[h], h2, preferred_element_type=f32)      # (2, 128)
        t = jnp.dot(rows, w1p_ref[h], preferred_element_type=f32)        # (2, 512)
        z = t if z is None else z + t
    z = z + lb1_ref[...]
    z = bn1d(z, bnl1_ref[0:1, :], bnl1_ref[1:2, :])                      # (2, 512)

    # --------------------------- vector quantizer --------------------------
    fz = None                                                            # (16, 64)
    for j in range(8):
        blk = jnp.dot(efwd_ref[j], z[:, j * EMBEDDING_DIM:(j + 1) * EMBEDDING_DIM],
                      preferred_element_type=f32)
        fz = blk if fz is None else fz + blk
    embt = embt_ref[...]                                                 # (64, 32)
    term1 = jnp.sum(fz * fz, axis=1, keepdims=True)                      # (16, 1)
    term2 = jnp.sum(embt * embt, axis=0, keepdims=True)                  # (1, 32)
    term3 = jnp.dot(fz, embt, preferred_element_type=f32)                # (16, 32)
    dist = term1 + term2 - 2.0 * term3
    col = jax.lax.broadcasted_iota(jnp.int32, dist.shape, 1)
    dmin = jnp.min(dist, axis=1, keepdims=True)
    idx = jnp.min(jnp.where(dist <= dmin, col, NUM_EMBEDDINGS), axis=1, keepdims=True)
    enc = (col == idx).astype(f32)                                       # (16, 32)
    q = jnp.dot(enc, emb_ref[...], preferred_element_type=f32)           # (16, 64)
    diff = q - fz
    sq = jnp.sum(diff * diff, axis=1, keepdims=True)
    tot = jnp.sum(sq, axis=0, keepdims=True)                             # (1, 1)
    # q_latent_loss + cc * e_latent_loss == (1 + cc) * MSE in the forward pass.
    loss_ref[...] = tot * ((1.0 + COMMITMENT_COST) / float(fz.shape[0] * fz.shape[1]))

    # --------------------------- lin2 + BN1d -------------------------------
    yp = None
    for j in range(8):
        rows = jnp.dot(ebwd_ref[j], q, preferred_element_type=f32)       # (2, 64)
        t = jnp.dot(rows, w2p_ref[j], preferred_element_type=f32)        # (2, 1024)
        yp = t if yp is None else yp + t
    yp = yp + lb2_ref[...]
    yp = bn1d(yp, bnl2_ref[0:1, :], bnl2_ref[1:2, :])                    # (2, 1024)

    # regroup (B, 1024) -> decoder slab (B*8, 8*16), columns already permuted.
    y2d = None
    for ih in range(8):
        blk = jnp.dot(efwd_ref[ih], yp[:, ih * 128:(ih + 1) * 128],
                      preferred_element_type=f32)
        y2d = blk if y2d is None else y2d + blk                          # (16, 128)

    # ------------------------------ decoder --------------------------------
    d1 = conv3(y2d, rt1_ref, mt1_ref, db1_ref[...])                      # (32, 128)
    d1 = bn2d(d1, pool8, bnd1_ref[0:1, :], bnd1_ref[1:2, :], relu=True)
    d2 = conv3(d1, rt2_ref, mt2_ref, db2_ref[...])                       # (64, 64)
    dec_ref[...] = jax.nn.sigmoid(d2)


# ------------------------ parameter / operand prep ---------------------------


def init_params(key, latent_dim, embedding_dim, num_embeddings):
    ks = jax.random.split(key, 16)

    def u(k, shape, bound):
        return jax.random.uniform(k, shape, jnp.float32, -bound, bound)

    p = {}
    p["conv1_w"] = u(ks[0], (8, 2, 3, 3), (2 * 9) ** -0.5)
    p["conv1_b"] = u(ks[1], (8,), (2 * 9) ** -0.5)
    p["bn1_g"] = jnp.ones((8,), jnp.float32)
    p["bn1_b"] = jnp.zeros((8,), jnp.float32)
    p["conv2_w"] = u(ks[2], (16, 8, 3, 3), (8 * 9) ** -0.5)
    p["conv2_b"] = u(ks[3], (16,), (8 * 9) ** -0.5)
    p["lin1_w"] = u(ks[4], (1024, latent_dim), 1024 ** -0.5)     # stored (in, out)
    p["lin1_b"] = u(ks[5], (latent_dim,), 1024 ** -0.5)
    p["bn_lin1_g"] = jnp.ones((latent_dim,), jnp.float32)
    p["bn_lin1_b"] = jnp.zeros((latent_dim,), jnp.float32)
    p["emb_w"] = u(ks[6], (num_embeddings, embedding_dim), 1.0 / num_embeddings)
    p["lin2_w"] = u(ks[7], (latent_dim, 1024), latent_dim ** -0.5)
    p["lin2_b"] = u(ks[8], (1024,), latent_dim ** -0.5)
    p["bn_lin2_g"] = jnp.ones((1024,), jnp.float32)
    p["bn_lin2_b"] = jnp.zeros((1024,), jnp.float32)
    p["dec1_w"] = u(ks[9], (16, 8, 3, 3), (16 * 9) ** -0.5)      # (Cin, Cout, kh, kw)
    p["dec1_b"] = u(ks[10], (8,), (16 * 9) ** -0.5)
    p["bn_d1_g"] = jnp.ones((8,), jnp.float32)
    p["bn_d1_b"] = jnp.zeros((8,), jnp.float32)
    p["dec2_w"] = u(ks[11], (8, 2, 3, 3), (8 * 9) ** -0.5)
    p["dec2_b"] = u(ks[12], (2,), (8 * 9) ** -0.5)
    return p


def prepare_operands(params):
    """Precompute all weight-derived slab matrices (runs once, outside the hot path)."""
    f32 = np.float32
    c1w = np.asarray(params["conv1_w"], f32)
    c1b = np.asarray(params["conv1_b"], f32)
    c2w = np.asarray(params["conv2_w"], f32)
    c2b = np.asarray(params["conv2_b"], f32)
    l1w = np.asarray(params["lin1_w"], f32)
    l1b = np.asarray(params["lin1_b"], f32)
    l2w = np.asarray(params["lin2_w"], f32)
    l2b = np.asarray(params["lin2_b"], f32)
    d1w = np.asarray(params["dec1_w"], f32)
    d1b = np.asarray(params["dec1_b"], f32)
    d2w = np.asarray(params["dec2_w"], f32)
    d2b = np.asarray(params["dec2_b"], f32)
    emb = np.asarray(params["emb_w"], f32)

    # conv1: x slab (B*32, 32*2) -> (B*16, 16*8);   h_in = 2*oh+ky-1, w_in = 2*ow+kx-1
    r1 = np.zeros((3, B * 16, B * 32), f32)
    m1 = np.zeros((3, 32 * 2, 16 * 8), f32)
    for ky in range(3):
        for b in range(B):
            for oh in range(16):
                h = 2 * oh + ky - 1
                if 0 <= h < 32:
                    r1[ky, b * 16 + oh, b * 32 + h] = 1.0
        for ow in range(16):
            for kx in range(3):
                w = 2 * ow + kx - 1
                if 0 <= w < 32:
                    m1[ky, w * 2:w * 2 + 2, ow * 8:ow * 8 + 8] = c1w[:, :, ky, kx].T
    cb1 = np.tile(c1b, 16)[None, :]
    bn1 = np.stack([np.tile(np.asarray(params["bn1_g"], f32), 16),
                    np.tile(np.asarray(params["bn1_b"], f32), 16)])

    # channel-pooling matrix for (C=8, W=16) slabs (used by conv1-BN and dec1-BN)
    a8 = np.zeros((128, 128), f32)
    for c in range(8):
        for wa in range(16):
            for wb in range(16):
                a8[wa * 8 + c, wb * 8 + c] = 1.0 / 16.0

    # conv2: (B*16, 16*8) -> (B*8, 8*16)
    r2 = np.zeros((3, B * 8, B * 16), f32)
    m2 = np.zeros((3, 16 * 8, 8 * 16), f32)
    for ky in range(3):
        for b in range(B):
            for oh in range(8):
                ih = 2 * oh + ky - 1
                if 0 <= ih < 16:
                    r2[ky, b * 8 + oh, b * 16 + ih] = 1.0
        for ow in range(8):
            for kx in range(3):
                iw = 2 * ow + kx - 1
                if 0 <= iw < 16:
                    m2[ky, iw * 8:iw * 8 + 8, ow * 16:ow * 16 + 16] = c2w[:, :, ky, kx].T
    cb2 = np.tile(c2b, 8)[None, :]

    # lin1: rows permuted from NCHW flatten (c*64+h*8+w) to slab order h -> (w*16+c)
    w1p = l1w.reshape(16, 8, 8, LATENT_DIM).transpose(1, 2, 0, 3).reshape(8, 128, LATENT_DIM)
    lb1 = l1b[None, :]
    bnl1 = np.stack([np.asarray(params["bn_lin1_g"], f32),
                     np.asarray(params["bn_lin1_b"], f32)])

    embt = np.ascontiguousarray(emb.T)                      # pre-transposed codebook (64, 32)

    # lin2: columns permuted (ci*64+ih*8+iw) -> (ih*128+iw*16+ci); rows split per VQ slot.
    perm = np.empty((1024,), np.int64)
    for ih in range(8):
        for iw in range(8):
            for ci in range(16):
                perm[ih * 128 + iw * 16 + ci] = ci * 64 + ih * 8 + iw
    w2p = np.ascontiguousarray(l2w[:, perm]).reshape(8, 64, 1024)
    lb2 = l2b[perm][None, :]
    bnl2 = np.stack([np.asarray(params["bn_lin2_g"], f32)[perm],
                     np.asarray(params["bn_lin2_b"], f32)[perm]])

    # batch-row regrouping matrices: row b of a (B, .) slab <-> row b*8+j of a (B*8, .) slab
    efwd = np.zeros((8, B * 8, B), f32)
    for j in range(8):
        for b in range(B):
            efwd[j, b * 8 + j, b] = 1.0
    ebwd = np.ascontiguousarray(efwd.transpose(0, 2, 1))

    # dec1 (ConvTranspose2d 16->8, s=2, p=1, op=1): (B*8, 8*16) -> (B*16, 16*8)
    rt1 = np.zeros((3, B * 16, B * 8), f32)
    mt1 = np.zeros((3, 8 * 16, 16 * 8), f32)
    for ky in range(3):
        for b in range(B):
            for oh in range(16):
                num = oh + 1 - ky
                if num >= 0 and num % 2 == 0 and num // 2 < 8:
                    rt1[ky, b * 16 + oh, b * 8 + num // 2] = 1.0
        for ow in range(16):
            for iw in range(8):
                kx = ow + 1 - 2 * iw
                if 0 <= kx < 3:
                    mt1[ky, iw * 16:iw * 16 + 16, ow * 8:ow * 8 + 8] = d1w[:, :, ky, kx]
    db1 = np.tile(d1b, 16)[None, :]
    bnd1 = np.stack([np.tile(np.asarray(params["bn_d1_g"], f32), 16),
                     np.tile(np.asarray(params["bn_d1_b"], f32), 16)])

    # dec2 (ConvTranspose2d 8->2, s=2, p=1, op=1): (B*16, 16*8) -> (B*32, 32*2)
    rt2 = np.zeros((3, B * 32, B * 16), f32)
    mt2 = np.zeros((3, 16 * 8, 32 * 2), f32)
    for ky in range(3):
        for b in range(B):
            for oh in range(32):
                num = oh + 1 - ky
                if num >= 0 and num % 2 == 0 and num // 2 < 16:
                    rt2[ky, b * 32 + oh, b * 16 + num // 2] = 1.0
        for ow in range(32):
            for iw in range(16):
                kx = ow + 1 - 2 * iw
                if 0 <= kx < 3:
                    mt2[ky, iw * 8:iw * 8 + 8, ow * 2:ow * 2 + 2] = d2w[:, :, ky, kx]
    db2 = np.tile(d2b, 32)[None, :]

    ops = (r1, m1, cb1, bn1, a8, r2, m2, cb2,
           w1p, lb1, bnl1, emb, embt, w2p, lb2, bnl2,
           efwd, ebwd, rt1, mt1, db1, bnd1, rt2, mt2, db2)
    return tuple(jnp.asarray(o) for o in ops)


# ------------------------------- forward -------------------------------------


def vq_ae_forward(x_nchw, ops):
    # only per-call XLA work: input/output layout plumbing (tiny).
    x2d = jnp.transpose(x_nchw, (0, 2, 3, 1)).reshape(B * 32, 32 * 2)
    n_in = 1 + len(ops)
    dec2d, loss2d = pl.pallas_call(
        _vq_ae_kernel,
        out_shape=(jax.ShapeDtypeStruct((B * 32, 32 * 2), jnp.float32),
                   jax.ShapeDtypeStruct((1, 1), jnp.float32)),
        in_specs=[pl.BlockSpec(memory_space=pltpu.MemorySpace.VMEM)] * n_in,
        out_specs=(pl.BlockSpec(memory_space=pltpu.MemorySpace.VMEM),
                   pl.BlockSpec(memory_space=pltpu.MemorySpace.VMEM)),
        compiler_params=pltpu.CompilerParams(vmem_limit_bytes=32 * 1024 * 1024),
    )(x2d, *ops)
    decoded = jnp.transpose(dec2d.reshape(B, 32, 32, 2), (0, 3, 1, 2))
    return loss2d[0, 0], decoded


# --------------------------------- main ---------------------------------------


if __name__ == "__main__":
    key = jax.random.PRNGKey(0)
    kx, kp = jax.random.split(key)
    # Linear(1024, latent_dim) after two stride-2 convs forces a 2x32x32 input.
    x = jax.random.uniform(kx, (B, 2, 32, 32), jnp.float32)
    params = init_params(kp, LATENT_DIM, EMBEDDING_DIM, NUM_EMBEDDINGS)
    ops = prepare_operands(params)

    fwd = jax.jit(vq_ae_forward)
    vq_loss, decoded = fwd(x, ops)
    jax.block_until_ready((vq_loss, decoded))

    assert decoded.shape == (B, 2, 32, 32)
    assert decoded.dtype == jnp.float32
    assert vq_loss.shape == ()
    assert bool(jnp.isfinite(vq_loss))
    assert bool(jnp.all((decoded >= 0.0) & (decoded <= 1.0)))
    print("KERNEL_OK")
</pallas_src>

<mosaic_0001>
module attributes {stable_mosaic.version = 11 : i64} {
  func.func @_vq_ae_kernel(%arg0: memref<64x64xf32, #tpu.memory_space<vmem>>, %arg1: memref<3x32x64xf32, #tpu.memory_space<vmem>>, %arg2: memref<3x64x128xf32, #tpu.memory_space<vmem>>, %arg3: memref<1x128xf32, #tpu.memory_space<vmem>>, %arg4: memref<2x128xf32, #tpu.memory_space<vmem>>, %arg5: memref<128x128xf32, #tpu.memory_space<vmem>>, %arg6: memref<3x16x32xf32, #tpu.memory_space<vmem>>, %arg7: memref<3x128x128xf32, #tpu.memory_space<vmem>>, %arg8: memref<1x128xf32, #tpu.memory_space<vmem>>, %arg9: memref<8x128x512xf32, #tpu.memory_space<vmem>>, %arg10: memref<1x512xf32, #tpu.memory_space<vmem>>, %arg11: memref<2x512xf32, #tpu.memory_space<vmem>>, %arg12: memref<32x64xf32, #tpu.memory_space<vmem>>, %arg13: memref<64x32xf32, #tpu.memory_space<vmem>>, %arg14: memref<8x64x1024xf32, #tpu.memory_space<vmem>>, %arg15: memref<1x1024xf32, #tpu.memory_space<vmem>>, %arg16: memref<2x1024xf32, #tpu.memory_space<vmem>>, %arg17: memref<8x16x2xf32, #tpu.memory_space<vmem>>, %arg18: memref<8x2x16xf32, #tpu.memory_space<vmem>>, %arg19: memref<3x32x16xf32, #tpu.memory_space<vmem>>, %arg20: memref<3x128x128xf32, #tpu.memory_space<vmem>>, %arg21: memref<1x128xf32, #tpu.memory_space<vmem>>, %arg22: memref<2x128xf32, #tpu.memory_space<vmem>>, %arg23: memref<3x64x32xf32, #tpu.memory_space<vmem>>, %arg24: memref<3x128x64xf32, #tpu.memory_space<vmem>>, %arg25: memref<1x64xf32, #tpu.memory_space<vmem>>, %arg26: memref<64x64xf32, #tpu.memory_space<vmem>>, %arg27: memref<1x1xf32, #tpu.memory_space<vmem>>) attributes {dimension_semantics = [], scalar_prefetch = 0 : i64, scratch_operands = 0 : i64, tpu.core_type = #tpu.core_type<tc>} {
    %c0 = arith.constant 0 : index
    %c0_0 = arith.constant 0 : index
    %0 = vector.load %arg5[%c0, %c0_0] : memref<128x128xf32, #tpu.memory_space<vmem>>, vector<128x128xf32>
    %c0_1 = arith.constant 0 : index
    %c0_2 = arith.constant 0 : index
    %1 = vector.load %arg0[%c0_1, %c0_2] : memref<64x64xf32, #tpu.memory_space<vmem>>, vector<64x64xf32>
    %c0_3 = arith.constant 0 : index
    %c0_4 = arith.constant 0 : index
    %2 = vector.load %arg3[%c0_3, %c0_4] : memref<1x128xf32, #tpu.memory_space<vmem>>, vector<1x128xf32>
    %c0_5 = arith.constant 0 : index
    %c0_6 = arith.constant 0 : index
    %c0_7 = arith.constant 0 : index
    %3 = vector.load %arg2[%c0_5, %c0_6, %c0_7] : memref<3x64x128xf32, #tpu.memory_space<vmem>>, vector<1x64x128xf32>
    %4 = vector.shape_cast %3 : vector<1x64x128xf32> to vector<64x128xf32>
    %cst = arith.constant dense<0.000000e+00> : vector<64x128xf32>
    %5 = tpu.matmul %1, %4, %cst {dimension_numbers = #tpu.dot_dimension_numbers<[1], [0], [0], [1], [0, 0, 1, 1], [], []>} : vector<64x64xf32>, vector<64x128xf32>, vector<64x128xf32> -> vector<64x128xf32>
    %c0_8 = arith.constant 0 : index
    %c0_9 = arith.constant 0 : index
    %c0_10 = arith.constant 0 : index
    %6 = vector.load %arg1[%c0_8, %c0_9, %c0_10] : memref<3x32x64xf32, #tpu.memory_space<vmem>>, vector<1x32x64xf32>
    %7 = vector.shape_cast %6 : vector<1x32x64xf32> to vector<32x64xf32>
    %cst_11 = arith.constant dense<0.000000e+00> : vector<32x128xf32>
    %8 = tpu.matmul %7, %5, %cst_11 {dimension_numbers = #tpu.dot_dimension_numbers<[1], [0], [0], [1], [0, 0, 1, 1], [], []>} : vector<32x64xf32>, vector<64x128xf32>, vector<32x128xf32> -> vector<32x128xf32>
    %c1 = arith.constant 1 : index
    %c0_12 = arith.constant 0 : index
    %c0_13 = arith.constant 0 : index
    %9 = vector.load %arg2[%c1, %c0_12, %c0_13] : memref<3x64x128xf32, #tpu.memory_space<vmem>>, vector<1x64x128xf32>
    %10 = vector.shape_cast %9 : vector<1x64x128xf32> to vector<64x128xf32>
    %cst_14 = arith.constant dense<0.000000e+00> : vector<64x128xf32>
    %11 = tpu.matmul %1, %10, %cst_14 {dimension_numbers = #tpu.dot_dimension_numbers<[1], [0], [0], [1], [0, 0, 1, 1], [], []>} : vector<64x64xf32>, vector<64x128xf32>, vector<64x128xf32> -> vector<64x128xf32>
    %c1_15 = arith.constant 1 : index
    %c0_16 = arith.constant 0 : index
    %c0_17 = arith.constant 0 : index
    %12 = vector.load %arg1[%c1_15, %c0_16, %c0_17] : memref<3x32x64xf32, #tpu.memory_space<vmem>>, vector<1x32x64xf32>
    %13 = vector.shape_cast %12 : vector<1x32x64xf32> to vector<32x64xf32>
    %cst_18 = arith.constant dense<0.000000e+00> : vector<32x128xf32>
    %14 = tpu.matmul %13, %11, %cst_18 {dimension_numbers = #tpu.dot_dimension_numbers<[1], [0], [0], [1], [0, 0, 1, 1], [], []>} : vector<32x64xf32>, vector<64x128xf32>, vector<32x128xf32> -> vector<32x128xf32>
    %15 = arith.addf %8, %14 : vector<32x128xf32>
    %c2 = arith.constant 2 : index
    %c0_19 = arith.constant 0 : index
    %c0_20 = arith.constant 0 : index
    %16 = vector.load %arg2[%c2, %c0_19, %c0_20] : memref<3x64x128xf32, #tpu.memory_space<vmem>>, vector<1x64x128xf32>
    %17 = vector.shape_cast %16 : vector<1x64x128xf32> to vector<64x128xf32>
    %cst_21 = arith.constant dense<0.000000e+00> : vector<64x128xf32>
    %18 = tpu.matmul %1, %17, %cst_21 {dimension_numbers = #tpu.dot_dimension_numbers<[1], [0], [0], [1], [0, 0, 1, 1], [], []>} : vector<64x64xf32>, vector<64x128xf32>, vector<64x128xf32> -> vector<64x128xf32>
    %c2_22 = arith.constant 2 : index
    %c0_23 = arith.constant 0 : index
    %c0_24 = arith.constant 0 : index
    %19 = vector.load %arg1[%c2_22, %c0_23, %c0_24] : memref<3x32x64xf32, #tpu.memory_space<vmem>>, vector<1x32x64xf32>
    %20 = vector.shape_cast %19 : vector<1x32x64xf32> to vector<32x64xf32>
    %cst_25 = arith.constant dense<0.000000e+00> : vector<32x128xf32>
    %21 = tpu.matmul %20, %18, %cst_25 {dimension_numbers = #tpu.dot_dimension_numbers<[1], [0], [0], [1], [0, 0, 1, 1], [], []>} : vector<32x64xf32>, vector<64x128xf32>, vector<32x128xf32> -> vector<32x128xf32>
    %22 = arith.addf %15, %21 : vector<32x128xf32>
    %23 = vector.broadcast %2 : vector<1x128xf32> to vector<32x128xf32>
    %24 = arith.addf %22, %23 : vector<32x128xf32>
    %c0_26 = arith.constant 0 : index
    %c0_27 = arith.constant 0 : index
    %25 = vector.load %arg4[%c0_26, %c0_27] : memref<2x128xf32, #tpu.memory_space<vmem>>, vector<1x128xf32>
    %c1_28 = arith.constant 1 : index
    %c0_29 = arith.constant 0 : index
    %26 = vector.load %arg4[%c1_28, %c0_29] : memref<2x128xf32, #tpu.memory_space<vmem>>, vector<1x128xf32>
    %cst_30 = arith.constant dense<0.000000e+00> : vector<128xf32>
    %27 = vector.multi_reduction <add>, %24, %cst_30 [0] : vector<32x128xf32> to vector<128xf32>
    %28 = vector.shape_cast %27 : vector<128xf32> to vector<1x128xf32>
    %cst_31 = arith.constant 3.125000e-02 : f32
    %29 = vector.broadcast %cst_31 : f32 to vector<1x128xf32>
    %30 = arith.mulf %28, %29 : vector<1x128xf32>
    %cst_32 = arith.constant dense<0.000000e+00> : vector<1x128xf32>
    %31 = tpu.matmul %30, %0, %cst_32 {dimension_numbers = #tpu.dot_dimension_numbers<[1], [0], [0], [1], [0, 0, 1, 1], [], []>} : vector<1x128xf32>, vector<128x128xf32>, vector<1x128xf32> -> vector<1x128xf32>
    %32 = vector.broadcast %31 : vector<1x128xf32> to vector<32x128xf32>
    %33 = arith.subf %24, %32 : vector<32x128xf32>
    %34 = arith.mulf %33, %33 : vector<32x128xf32>
    %cst_33 = arith.constant dense<0.000000e+00> : vector<128xf32>
    %35 = vector.multi_reduction <add>, %34, %cst_33 [0] : vector<32x128xf32> to vector<128xf32>
    %36 = vector.shape_cast %35 : vector<128xf32> to vector<1x128xf32>
    %cst_34 = arith.constant 3.125000e-02 : f32
    %37 = vector.broadcast %cst_34 : f32 to vector<1x128xf32>
    %38 = arith.mulf %36, %37 : vector<1x128xf32>
    %cst_35 = arith.constant dense<0.000000e+00> : vector<1x128xf32>
    %39 = tpu.matmul %38, %0, %cst_35 {dimension_numbers = #tpu.dot_dimension_numbers<[1], [0], [0], [1], [0, 0, 1, 1], [], []>} : vector<1x128xf32>, vector<128x128xf32>, vector<1x128xf32> -> vector<1x128xf32>
    %cst_36 = arith.constant 9.99999974E-6 : f32
    %40 = vector.broadcast %cst_36 : f32 to vector<1x128xf32>
    %41 = arith.addf %39, %40 : vector<1x128xf32>
    %42 = math.rsqrt %41 : vector<1x128xf32>
    %43 = vector.broadcast %42 : vector<1x128xf32> to vector<32x128xf32>
    %44 = arith.mulf %33, %43 : vector<32x128xf32>
    %45 = vector.broadcast %25 : vector<1x128xf32> to vector<32x128xf32>
    %46 = arith.mulf %44, %45 : vector<32x128xf32>
    %47 = vector.broadcast %26 : vector<1x128xf32> to vector<32x128xf32>
    %48 = arith.addf %46, %47 : vector<32x128xf32>
    %cst_37 = arith.constant 0.000000e+00 : f32
    %49 = vector.broadcast %cst_37 : f32 to vector<32x128xf32>
    %50 = arith.maximumf %48, %49 : vector<32x128xf32>
    %c0_38 = arith.constant 0 : index
    %c0_39 = arith.constant 0 : index
    %51 = vector.load %arg8[%c0_38, %c0_39] : memref<1x128xf32, #tpu.memory_space<vmem>>, vector<1x128xf32>
    %c0_40 = arith.constant 0 : index
    %c0_41 = arith.constant 0 : index
    %c0_42 = arith.constant 0 : index
    %52 = vector.load %arg7[%c0_40, %c0_41, %c0_42] : memref<3x128x128xf32, #tpu.memory_space<vmem>>, vector<1x128x128xf32>
    %53 = vector.shape_cast %52 : vector<1x128x128xf32> to vector<128x128xf32>
    %cst_43 = arith.constant dense<0.000000e+00> : vector<32x128xf32>
    %54 = tpu.matmul %50, %53, %cst_43 {dimension_numbers = #tpu.dot_dimension_numbers<[1], [0], [0], [1], [0, 0, 1, 1], [], []>} : vector<32x128xf32>, vector<128x128xf32>, vector<32x128xf32> -> vector<32x128xf32>
    %c0_44 = arith.constant 0 : index
    %c0_45 = arith.constant 0 : index
    %c0_46 = arith.constant 0 : index
    %55 = vector.load %arg6[%c0_44, %c0_45, %c0_46] : memref<3x16x32xf32, #tpu.memory_space<vmem>>, vector<1x16x32xf32>
    %56 = vector.shape_cast %55 : vector<1x16x32xf32> to vector<16x32xf32>
    %cst_47 = arith.constant dense<0.000000e+00> : vector<16x128xf32>
    %57 = tpu.matmul %56, %54, %cst_47 {dimension_numbers = #tpu.dot_dimension_numbers<[1], [0], [0], [1], [0, 0, 1, 1], [], []>} : vector<16x32xf32>, vector<32x128xf32>, vector<16x128xf32> -> vector<16x128xf32>
    %c1_48 = arith.constant 1 : index
    %c0_49 = arith.constant 0 : index
    %c0_50 = arith.constant 0 : index
    %58 = vector.load %arg7[%c1_48, %c0_49, %c0_50] : memref<3x128x128xf32, #tpu.memory_space<vmem>>, vector<1x128x128xf32>
    %59 = vector.shape_cast %58 : vector<1x128x128xf32> to vector<128x128xf32>
    %cst_51 = arith.constant dense<0.000000e+00> : vector<32x128xf32>
    %60 = tpu.matmul %50, %59, %cst_51 {dimension_numbers = #tpu.dot_dimension_numbers<[1], [0], [0], [1], [0, 0, 1, 1], [], []>} : vector<32x128xf32>, vector<128x128xf32>, vector<32x128xf32> -> vector<32x128xf32>
    %c1_52 = arith.constant 1 : index
    %c0_53 = arith.constant 0 : index
    %c0_54 = arith.constant 0 : index
    %61 = vector.load %arg6[%c1_52, %c0_53, %c0_54] : memref<3x16x32xf32, #tpu.memory_space<vmem>>, vector<1x16x32xf32>
    %62 = vector.shape_cast %61 : vector<1x16x32xf32> to vector<16x32xf32>
    %cst_55 = arith.constant dense<0.000000e+00> : vector<16x128xf32>
    %63 = tpu.matmul %62, %60, %cst_55 {dimension_numbers = #tpu.dot_dimension_numbers<[1], [0], [0], [1], [0, 0, 1, 1], [], []>} : vector<16x32xf32>, vector<32x128xf32>, vector<16x128xf32> -> vector<16x128xf32>
    %64 = arith.addf %57, %63 : vector<16x128xf32>
    %c2_56 = arith.constant 2 : index
    %c0_57 = arith.constant 0 : index
    %c0_58 = arith.constant 0 : index
    %65 = vector.load %arg7[%c2_56, %c0_57, %c0_58] : memref<3x128x128xf32, #tpu.memory_space<vmem>>, vector<1x128x128xf32>
    %66 = vector.shape_cast %65 : vector<1x128x128xf32> to vector<128x128xf32>
    %cst_59 = arith.constant dense<0.000000e+00> : vector<32x128xf32>
    %67 = tpu.matmul %50, %66, %cst_59 {dimension_numbers = #tpu.dot_dimension_numbers<[1], [0], [0], [1], [0, 0, 1, 1], [], []>} : vector<32x128xf32>, vector<128x128xf32>, vector<32x128xf32> -> vector<32x128xf32>
    %c2_60 = arith.constant 2 : index
    %c0_61 = arith.constant 0 : index
    %c0_62 = arith.constant 0 : index
    %68 = vector.load %arg6[%c2_60, %c0_61, %c0_62] : memref<3x16x32xf32, #tpu.memory_space<vmem>>, vector<1x16x32xf32>
    %69 = vector.shape_cast %68 : vector<1x16x32xf32> to vector<16x32xf32>
    %cst_63 = arith.constant dense<0.000000e+00> : vector<16x128xf32>
    %70 = tpu.matmul %69, %67, %cst_63 {dimension_numbers = #tpu.dot_dimension_numbers<[1], [0], [0], [1], [0, 0, 1, 1], [], []>} : vector<16x32xf32>, vector<32x128xf32>, vector<16x128xf32> -> vector<16x128xf32>
    %71 = arith.addf %64, %70 : vector<16x128xf32>
    %72 = vector.broadcast %51 : vector<1x128xf32> to vector<16x128xf32>
    %73 = arith.addf %71, %72 : vector<16x128xf32>
    %c0_64 = arith.constant 0 : index
    %c0_65 = arith.constant 0 : index
    %c0_66 = arith.constant 0 : index
    %74 = vector.load %arg18[%c0_64, %c0_65, %c0_66] : memref<8x2x16xf32, #tpu.memory_space<vmem>>, vector<1x2x16xf32>
    %75 = vector.shape_cast %74 : vector<1x2x16xf32> to vector<2x16xf32>
    %cst_67 = arith.constant dense<0.000000e+00> : vector<2x128xf32>
    %76 = tpu.matmul %75, %73, %cst_67 {dimension_numbers = #tpu.dot_dimension_numbers<[1], [0], [0], [1], [0, 0, 1, 1], [], []>} : vector<2x16xf32>, vector<16x128xf32>, vector<2x128xf32> -> vector<2x128xf32>
    %c0_68 = arith.constant 0 : index
    %c0_69 = arith.constant 0 : index
    %c0_70 = arith.constant 0 : index
    %77 = vector.load %arg9[%c0_68, %c0_69, %c0_70] : memref<8x128x512xf32, #tpu.memory_space<vmem>>, vector<1x128x512xf32>
    %78 = vector.shape_cast %77 : vector<1x128x512xf32> to vector<128x512xf32>
    %cst_71 = arith.constant dense<0.000000e+00> : vector<2x512xf32>
    %79 = tpu.matmul %76, %78, %cst_71 {dimension_numbers = #tpu.dot_dimension_numbers<[1], [0], [0], [1], [0, 0, 1, 1], [], []>} : vector<2x128xf32>, vector<128x512xf32>, vector<2x512xf32> -> vector<2x512xf32>
    %c1_72 = arith.constant 1 : index
    %c0_73 = arith.constant 0 : index
    %c0_74 = arith.constant 0 : index
    %80 = vector.load %arg18[%c1_72, %c0_73, %c0_74] : memref<8x2x16xf32, #tpu.memory_space<vmem>>, vector<1x2x16xf32>
    %81 = vector.shape_cast %80 : vector<1x2x16xf32> to vector<2x16xf32>
    %cst_75 = arith.constant dense<0.000000e+00> : vector<2x128xf32>
    %82 = tpu.matmul %81, %73, %cst_75 {dimension_numbers = #tpu.dot_dimension_numbers<[1], [0], [0], [1], [0, 0, 1, 1], [], []>} : vector<2x16xf32>, vector<16x128xf32>, vector<2x128xf32> -> vector<2x128xf32>
    %c1_76 = arith.constant 1 : index
    %c0_77 = arith.constant 0 : index
    %c0_78 = arith.constant 0 : index
    %83 = vector.load %arg9[%c1_76, %c0_77, %c0_78] : memref<8x128x512xf32, #tpu.memory_space<vmem>>, vector<1x128x512xf32>
    %84 = vector.shape_cast %83 : vector<1x128x512xf32> to vector<128x512xf32>
    %cst_79 = arith.constant dense<0.000000e+00> : vector<2x512xf32>
    %85 = tpu.matmul %82, %84, %cst_79 {dimension_numbers = #tpu.dot_dimension_numbers<[1], [0], [0], [1], [0, 0, 1, 1], [], []>} : vector<2x128xf32>, vector<128x512xf32>, vector<2x512xf32> -> vector<2x512xf32>
    %86 = arith.addf %79, %85 : vector<2x512xf32>
    %c2_80 = arith.constant 2 : index
    %c0_81 = arith.constant 0 : index
    %c0_82 = arith.constant 0 : index
    %87 = vector.load %arg18[%c2_80, %c0_81, %c0_82] : memref<8x2x16xf32, #tpu.memory_space<vmem>>, vector<1x2x16xf32>
    %88 = vector.shape_cast %87 : vector<1x2x16xf32> to vector<2x16xf32>
    %cst_83 = arith.constant dense<0.000000e+00> : vector<2x128xf32>
    %89 = tpu.matmul %88, %73, %cst_83 {dimension_numbers = #tpu.dot_dimension_numbers<[1], [0], [0], [1], [0, 0, 1, 1], [], []>} : vector<2x16xf32>, vector<16x128xf32>, vector<2x128xf32> -> vector<2x128xf32>
    %c2_84 = arith.constant 2 : index
    %c0_85 = arith.constant 0 : index
    %c0_86 = arith.constant 0 : index
    %90 = vector.load %arg9[%c2_84, %c0_85, %c0_86] : memref<8x128x512xf32, #tpu.memory_space<vmem>>, vector<1x128x512xf32>
    %91 = vector.shape_cast %90 : vector<1x128x512xf32> to vector<128x512xf32>
    %cst_87 = arith.constant dense<0.000000e+00> : vector<2x512xf32>
    %92 = tpu.matmul %89, %91, %cst_87 {dimension_numbers = #tpu.dot_dimension_numbers<[1], [0], [0], [1], [0, 0, 1, 1], [], []>} : vector<2x128xf32>, vector<128x512xf32>, vector<2x512xf32> -> vector<2x512xf32>
    %93 = arith.addf %86, %92 : vector<2x512xf32>
    %c3 = arith.constant 3 : index
    %c0_88 = arith.constant 0 : index
    %c0_89 = arith.constant 0 : index
    %94 = vector.load %arg18[%c3, %c0_88, %c0_89] : memref<8x2x16xf32, #tpu.memory_space<vmem>>, vector<1x2x16xf32>
    %95 = vector.shape_cast %94 : vector<1x2x16xf32> to vector<2x16xf32>
    %cst_90 = arith.constant dense<0.000000e+00> : vector<2x128xf32>
    %96 = tpu.matmul %95, %73, %cst_90 {dimension_numbers = #tpu.dot_dimension_numbers<[1], [0], [0], [1], [0, 0, 1, 1], [], []>} : vector<2x16xf32>, vector<16x128xf32>, vector<2x128xf32> -> vector<2x128xf32>
    %c3_91 = arith.constant 3 : index
    %c0_92 = arith.constant 0 : index
    %c0_93 = arith.constant 0 : index
    %97 = vector.load %arg9[%c3_91, %c0_92, %c0_93] : memref<8x128x512xf32, #tpu.memory_space<vmem>>, vector<1x128x512xf32>
    %98 = vector.shape_cast %97 : vector<1x128x512xf32> to vector<128x512xf32>
    %cst_94 = arith.constant dense<0.000000e+00> : vector<2x512xf32>
    %99 = tpu.matmul %96, %98, %cst_94 {dimension_numbers = #tpu.dot_dimension_numbers<[1], [0], [0], [1], [0, 0, 1, 1], [], []>} : vector<2x128xf32>, vector<128x512xf32>, vector<2x512xf32> -> vector<2x512xf32>
    %100 = arith.addf %93, %99 : vector<2x512xf32>
    %c4 = arith.constant 4 : index
    %c0_95 = arith.constant 0 : index
    %c0_96 = arith.constant 0 : index
    %101 = vector.load %arg18[%c4, %c0_95, %c0_96] : memref<8x2x16xf32, #tpu.memory_space<vmem>>, vector<1x2x16xf32>
    %102 = vector.shape_cast %101 : vector<1x2x16xf32> to vector<2x16xf32>
    %cst_97 = arith.constant dense<0.000000e+00> : vector<2x128xf32>
    %103 = tpu.matmul %102, %73, %cst_97 {dimension_numbers = #tpu.dot_dimension_numbers<[1], [0], [0], [1], [0, 0, 1, 1], [], []>} : vector<2x16xf32>, vector<16x128xf32>, vector<2x128xf32> -> vector<2x128xf32>
    %c4_98 = arith.constant 4 : index
    %c0_99 = arith.constant 0 : index
    %c0_100 = arith.constant 0 : index
    %104 = vector.load %arg9[%c4_98, %c0_99, %c0_100] : memref<8x128x512xf32, #tpu.memory_space<vmem>>, vector<1x128x512xf32>
    %105 = vector.shape_cast %104 : vector<1x128x512xf32> to vector<128x512xf32>
    %cst_101 = arith.constant dense<0.000000e+00> : vector<2x512xf32>
    %106 = tpu.matmul %103, %105, %cst_101 {dimension_numbers = #tpu.dot_dimension_numbers<[1], [0], [0], [1], [0, 0, 1, 1], [], []>} : vector<2x128xf32>, vector<128x512xf32>, vector<2x512xf32> -> vector<2x512xf32>
    %107 = arith.addf %100, %106 : vector<2x512xf32>
    %c5 = arith.constant 5 : index
    %c0_102 = arith.constant 0 : index
    %c0_103 = arith.constant 0 : index
    %108 = vector.load %arg18[%c5, %c0_102, %c0_103] : memref<8x2x16xf32, #tpu.memory_space<vmem>>, vector<1x2x16xf32>
    %109 = vector.shape_cast %108 : vector<1x2x16xf32> to vector<2x16xf32>
    %cst_104 = arith.constant dense<0.000000e+00> : vector<2x128xf32>
    %110 = tpu.matmul %109, %73, %cst_104 {dimension_numbers = #tpu.dot_dimension_numbers<[1], [0], [0], [1], [0, 0, 1, 1], [], []>} : vector<2x16xf32>, vector<16x128xf32>, vector<2x128xf32> -> vector<2x128xf32>
    %c5_105 = arith.constant 5 : index
    %c0_106 = arith.constant 0 : index
    %c0_107 = arith.constant 0 : index
    %111 = vector.load %arg9[%c5_105, %c0_106, %c0_107] : memref<8x128x512xf32, #tpu.memory_space<vmem>>, vector<1x128x512xf32>
    %112 = vector.shape_cast %111 : vector<1x128x512xf32> to vector<128x512xf32>
    %cst_108 = arith.constant dense<0.000000e+00> : vector<2x512xf32>
    %113 = tpu.matmul %110, %112, %cst_108 {dimension_numbers = #tpu.dot_dimension_numbers<[1], [0], [0], [1], [0, 0, 1, 1], [], []>} : vector<2x128xf32>, vector<128x512xf32>, vector<2x512xf32> -> vector<2x512xf32>
    %114 = arith.addf %107, %113 : vector<2x512xf32>
    %c6 = arith.constant 6 : index
    %c0_109 = arith.constant 0 : index
    %c0_110 = arith.constant 0 : index
    %115 = vector.load %arg18[%c6, %c0_109, %c0_110] : memref<8x2x16xf32, #tpu.memory_space<vmem>>, vector<1x2x16xf32>
    %116 = vector.shape_cast %115 : vector<1x2x16xf32> to vector<2x16xf32>
    %cst_111 = arith.constant dense<0.000000e+00> : vector<2x128xf32>
    %117 = tpu.matmul %116, %73, %cst_111 {dimension_numbers = #tpu.dot_dimension_numbers<[1], [0], [0], [1], [0, 0, 1, 1], [], []>} : vector<2x16xf32>, vector<16x128xf32>, vector<2x128xf32> -> vector<2x128xf32>
    %c6_112 = arith.constant 6 : index
    %c0_113 = arith.constant 0 : index
    %c0_114 = arith.constant 0 : index
    %118 = vector.load %arg9[%c6_112, %c0_113, %c0_114] : memref<8x128x512xf32, #tpu.memory_space<vmem>>, vector<1x128x512xf32>
    %119 = vector.shape_cast %118 : vector<1x128x512xf32> to vector<128x512xf32>
    %cst_115 = arith.constant dense<0.000000e+00> : vector<2x512xf32>
    %120 = tpu.matmul %117, %119, %cst_115 {dimension_numbers = #tpu.dot_dimension_numbers<[1], [0], [0], [1], [0, 0, 1, 1], [], []>} : vector<2x128xf32>, vector<128x512xf32>, vector<2x512xf32> -> vector<2x512xf32>
    %121 = arith.addf %114, %120 : vector<2x512xf32>
    %c7 = arith.constant 7 : index
    %c0_116 = arith.constant 0 : index
    %c0_117 = arith.constant 0 : index
    %122 = vector.load %arg18[%c7, %c0_116, %c0_117] : memref<8x2x16xf32, #tpu.memory_space<vmem>>, vector<1x2x16xf32>
    %123 = vector.shape_cast %122 : vector<1x2x16xf32> to vector<2x16xf32>
    %cst_118 = arith.constant dense<0.000000e+00> : vector<2x128xf32>
    %124 = tpu.matmul %123, %73, %cst_118 {dimension_numbers = #tpu.dot_dimension_numbers<[1], [0], [0], [1], [0, 0, 1, 1], [], []>} : vector<2x16xf32>, vector<16x128xf32>, vector<2x128xf32> -> vector<2x128xf32>
    %c7_119 = arith.constant 7 : index
    %c0_120 = arith.constant 0 : index
    %c0_121 = arith.constant 0 : index
    %125 = vector.load %arg9[%c7_119, %c0_120, %c0_121] : memref<8x128x512xf32, #tpu.memory_space<vmem>>, vector<1x128x512xf32>
    %126 = vector.shape_cast %125 : vector<1x128x512xf32> to vector<128x512xf32>
    %cst_122 = arith.constant dense<0.000000e+00> : vector<2x512xf32>
    %127 = tpu.matmul %124, %126, %cst_122 {dimension_numbers = #tpu.dot_dimension_numbers<[1], [0], [0], [1], [0, 0, 1, 1], [], []>} : vector<2x128xf32>, vector<128x512xf32>, vector<2x512xf32> -> vector<2x512xf32>
    %128 = arith.addf %121, %127 : vector<2x512xf32>
    %c0_123 = arith.constant 0 : index
    %c0_124 = arith.constant 0 : index
    %129 = vector.load %arg10[%c0_123, %c0_124] : memref<1x512xf32, #tpu.memory_space<vmem>>, vector<1x512xf32>
    %130 = vector.broadcast %129 : vector<1x512xf32> to vector<2x512xf32>
    %131 = arith.addf %128, %130 : vector<2x512xf32>
    %c0_125 = arith.constant 0 : index
    %c0_126 = arith.constant 0 : index
    %132 = vector.load %arg11[%c0_125, %c0_126] : memref<2x512xf32, #tpu.memory_space<vmem>>, vector<1x512xf32>
    %c1_127 = arith.constant 1 : index
    %c0_128 = arith.constant 0 : index
    %133 = vector.load %arg11[%c1_127, %c0_128] : memref<2x512xf32, #tpu.memory_space<vmem>>, vector<1x512xf32>
    %cst_129 = arith.constant dense<0.000000e+00> : vector<512xf32>
    %134 = vector.multi_reduction <add>, %131, %cst_129 [0] : vector<2x512xf32> to vector<512xf32>
    %135 = vector.shape_cast %134 : vector<512xf32> to vector<1x512xf32>
    %cst_130 = arith.constant 5.000000e-01 : f32
    %136 = vector.broadcast %cst_130 : f32 to vector<1x512xf32>
    %137 = arith.mulf %135, %136 : vector<1x512xf32>
    %138 = vector.broadcast %137 : vector<1x512xf32> to vector<2x512xf32>
    %139 = arith.subf %131, %138 : vector<2x512xf32>
    %140 = arith.mulf %139, %139 : vector<2x512xf32>
    %cst_131 = arith.constant dense<0.000000e+00> : vector<512xf32>
    %141 = vector.multi_reduction <add>, %140, %cst_131 [0] : vector<2x512xf32> to vector<512xf32>
    %142 = vector.shape_cast %141 : vector<512xf32> to vector<1x512xf32>
    %cst_132 = arith.constant 5.000000e-01 : f32
    %143 = vector.broadcast %cst_132 : f32 to vector<1x512xf32>
    %144 = arith.mulf %142, %143 : vector<1x512xf32>
    %cst_133 = arith.constant 9.99999974E-6 : f32
    %145 = vector.broadcast %cst_133 : f32 to vector<1x512xf32>
    %146 = arith.addf %144, %145 : vector<1x512xf32>
    %147 = math.rsqrt %146 : vector<1x512xf32>
    %148 = vector.broadcast %147 : vector<1x512xf32> to vector<2x512xf32>
    %149 = arith.mulf %139, %148 : vector<2x512xf32>
    %150 = vector.broadcast %132 : vector<1x512xf32> to vector<2x512xf32>
    %151 = arith.mulf %149, %150 : vector<2x512xf32>
    %152 = vector.broadcast %133 : vector<1x512xf32> to vector<2x512xf32>
    %153 = arith.addf %151, %152 : vector<2x512xf32>
    %c0_134 = arith.constant 0 : index
    %c0_135 = arith.constant 0 : index
    %c0_136 = arith.constant 0 : index
    %154 = vector.load %arg17[%c0_134, %c0_135, %c0_136] : memref<8x16x2xf32, #tpu.memory_space<vmem>>, vector<1x16x2xf32>
    %155 = vector.shape_cast %154 : vector<1x16x2xf32> to vector<16x2xf32>
    %156 = vector.extract_strided_slice %153 {offsets = [0, 0], sizes = [2, 64], strides = [1, 1]} : vector<2x512xf32> to vector<2x64xf32>
    %cst_137 = arith.constant dense<0.000000e+00> : vector<16x64xf32>
    %157 = tpu.matmul %155, %156, %cst_137 {dimension_numbers = #tpu.dot_dimension_numbers<[1], [0], [0], [1], [0, 0, 1, 1], [], []>} : vector<16x2xf32>, vector<2x64xf32>, vector<16x64xf32> -> vector<16x64xf32>
    %c1_138 = arith.constant 1 : index
    %c0_139 = arith.constant 0 : index
    %c0_140 = arith.constant 0 : index
    %158 = vector.load %arg17[%c1_138, %c0_139, %c0_140] : memref<8x16x2xf32, #tpu.memory_space<vmem>>, vector<1x16x2xf32>
    %159 = vector.shape_cast %158 : vector<1x16x2xf32> to vector<16x2xf32>
    %160 = vector.extract_strided_slice %153 {offsets = [0, 64], sizes = [2, 64], strides = [1, 1]} : vector<2x512xf32> to vector<2x64xf32>
    %cst_141 = arith.constant dense<0.000000e+00> : vector<16x64xf32>
    %161 = tpu.matmul %159, %160, %cst_141 {dimension_numbers = #tpu.dot_dimension_numbers<[1], [0], [0], [1], [0, 0, 1, 1], [], []>} : vector<16x2xf32>, vector<2x64xf32>, vector<16x64xf32> -> vector<16x64xf32>
    %162 = arith.addf %157, %161 : vector<16x64xf32>
    %c2_142 = arith.constant 2 : index
    %c0_143 = arith.constant 0 : index
    %c0_144 = arith.constant 0 : index
    %163 = vector.load %arg17[%c2_142, %c0_143, %c0_144] : memref<8x16x2xf32, #tpu.memory_space<vmem>>, vector<1x16x2xf32>
    %164 = vector.shape_cast %163 : vector<1x16x2xf32> to vector<16x2xf32>
    %165 = vector.extract_strided_slice %153 {offsets = [0, 128], sizes = [2, 64], strides = [1, 1]} : vector<2x512xf32> to vector<2x64xf32>
    %cst_145 = arith.constant dense<0.000000e+00> : vector<16x64xf32>
    %166 = tpu.matmul %164, %165, %cst_145 {dimension_numbers = #tpu.dot_dimension_numbers<[1], [0], [0], [1], [0, 0, 1, 1], [], []>} : vector<16x2xf32>, vector<2x64xf32>, vector<16x64xf32> -> vector<16x64xf32>
    %167 = arith.addf %162, %166 : vector<16x64xf32>
    %c3_146 = arith.constant 3 : index
    %c0_147 = arith.constant 0 : index
    %c0_148 = arith.constant 0 : index
    %168 = vector.load %arg17[%c3_146, %c0_147, %c0_148] : memref<8x16x2xf32, #tpu.memory_space<vmem>>, vector<1x16x2xf32>
    %169 = vector.shape_cast %168 : vector<1x16x2xf32> to vector<16x2xf32>
    %170 = vector.extract_strided_slice %153 {offsets = [0, 192], sizes = [2, 64], strides = [1, 1]} : vector<2x512xf32> to vector<2x64xf32>
    %cst_149 = arith.constant dense<0.000000e+00> : vector<16x64xf32>
    %171 = tpu.matmul %169, %170, %cst_149 {dimension_numbers = #tpu.dot_dimension_numbers<[1], [0], [0], [1], [0, 0, 1, 1], [], []>} : vector<16x2xf32>, vector<2x64xf32>, vector<16x64xf32> -> vector<16x64xf32>
    %172 = arith.addf %167, %171 : vector<16x64xf32>
    %c4_150 = arith.constant 4 : index
    %c0_151 = arith.constant 0 : index
    %c0_152 = arith.constant 0 : index
    %173 = vector.load %arg17[%c4_150, %c0_151, %c0_152] : memref<8x16x2xf32, #tpu.memory_space<vmem>>, vector<1x16x2xf32>
    %174 = vector.shape_cast %173 : vector<1x16x2xf32> to vector<16x2xf32>
    %175 = vector.extract_strided_slice %153 {offsets = [0, 256], sizes = [2, 64], strides = [1, 1]} : vector<2x512xf32> to vector<2x64xf32>
    %cst_153 = arith.constant dense<0.000000e+00> : vector<16x64xf32>
    %176 = tpu.matmul %174, %175, %cst_153 {dimension_numbers = #tpu.dot_dimension_numbers<[1], [0], [0], [1], [0, 0, 1, 1], [], []>} : vector<16x2xf32>, vector<2x64xf32>, vector<16x64xf32> -> vector<16x64xf32>
    %177 = arith.addf %172, %176 : vector<16x64xf32>
    %c5_154 = arith.constant 5 : index
    %c0_155 = arith.constant 0 : index
    %c0_156 = arith.constant 0 : index
    %178 = vector.load %arg17[%c5_154, %c0_155, %c0_156] : memref<8x16x2xf32, #tpu.memory_space<vmem>>, vector<1x16x2xf32>
    %179 = vector.shape_cast %178 : vector<1x16x2xf32> to vector<16x2xf32>
    %180 = vector.extract_strided_slice %153 {offsets = [0, 320], sizes = [2, 64], strides = [1, 1]} : vector<2x512xf32> to vector<2x64xf32>
    %cst_157 = arith.constant dense<0.000000e+00> : vector<16x64xf32>
    %181 = tpu.matmul %179, %180, %cst_157 {dimension_numbers = #tpu.dot_dimension_numbers<[1], [0], [0], [1], [0, 0, 1, 1], [], []>} : vector<16x2xf32>, vector<2x64xf32>, vector<16x64xf32> -> vector<16x64xf32>
    %182 = arith.addf %177, %181 : vector<16x64xf32>
    %c6_158 = arith.constant 6 : index
    %c0_159 = arith.constant 0 : index
    %c0_160 = arith.constant 0 : index
    %183 = vector.load %arg17[%c6_158, %c0_159, %c0_160] : memref<8x16x2xf32, #tpu.memory_space<vmem>>, vector<1x16x2xf32>
    %184 = vector.shape_cast %183 : vector<1x16x2xf32> to vector<16x2xf32>
    %185 = vector.extract_strided_slice %153 {offsets = [0, 384], sizes = [2, 64], strides = [1, 1]} : vector<2x512xf32> to vector<2x64xf32>
    %cst_161 = arith.constant dense<0.000000e+00> : vector<16x64xf32>
    %186 = tpu.matmul %184, %185, %cst_161 {dimension_numbers = #tpu.dot_dimension_numbers<[1], [0], [0], [1], [0, 0, 1, 1], [], []>} : vector<16x2xf32>, vector<2x64xf32>, vector<16x64xf32> -> vector<16x64xf32>
    %187 = arith.addf %182, %186 : vector<16x64xf32>
    %c7_162 = arith.constant 7 : index
    %c0_163 = arith.constant 0 : index
    %c0_164 = arith.constant 0 : index
    %188 = vector.load %arg17[%c7_162, %c0_163, %c0_164] : memref<8x16x2xf32, #tpu.memory_space<vmem>>, vector<1x16x2xf32>
    %189 = vector.shape_cast %188 : vector<1x16x2xf32> to vector<16x2xf32>
    %190 = vector.extract_strided_slice %153 {offsets = [0, 448], sizes = [2, 64], strides = [1, 1]} : vector<2x512xf32> to vector<2x64xf32>
    %cst_165 = arith.constant dense<0.000000e+00> : vector<16x64xf32>
    %191 = tpu.matmul %189, %190, %cst_165 {dimension_numbers = #tpu.dot_dimension_numbers<[1], [0], [0], [1], [0, 0, 1, 1], [], []>} : vector<16x2xf32>, vector<2x64xf32>, vector<16x64xf32> -> vector<16x64xf32>
    %192 = arith.addf %187, %191 : vector<16x64xf32>
    %c0_166 = arith.constant 0 : index
    %c0_167 = arith.constant 0 : index
    %193 = vector.load %arg13[%c0_166, %c0_167] : memref<64x32xf32, #tpu.memory_space<vmem>>, vector<64x32xf32>
    %194 = arith.mulf %192, %192 : vector<16x64xf32>
    %cst_168 = arith.constant dense<0.000000e+00> : vector<16xf32>
    %195 = vector.multi_reduction <add>, %194, %cst_168 [1] : vector<16x64xf32> to vector<16xf32>
    %196 = vector.shape_cast %195 : vector<16xf32> to vector<16x1xf32>
    %197 = arith.mulf %193, %193 : vector<64x32xf32>
    %cst_169 = arith.constant dense<0.000000e+00> : vector<32xf32>
    %198 = vector.multi_reduction <add>, %197, %cst_169 [0] : vector<64x32xf32> to vector<32xf32>
    %199 = vector.shape_cast %198 : vector<32xf32> to vector<1x32xf32>
    %cst_170 = arith.constant dense<0.000000e+00> : vector<16x32xf32>
    %200 = tpu.matmul %192, %193, %cst_170 {dimension_numbers = #tpu.dot_dimension_numbers<[1], [0], [0], [1], [0, 0, 1, 1], [], []>} : vector<16x64xf32>, vector<64x32xf32>, vector<16x32xf32> -> vector<16x32xf32>
    %201 = vector.broadcast %196 : vector<16x1xf32> to vector<16x32xf32>
    %202 = vector.broadcast %199 : vector<1x32xf32> to vector<16x32xf32>
    %203 = arith.addf %201, %202 : vector<16x32xf32>
    %cst_171 = arith.constant 2.000000e+00 : f32
    %204 = vector.broadcast %cst_171 : f32 to vector<16x32xf32>
    %205 = arith.mulf %204, %200 : vector<16x32xf32>
    %206 = arith.subf %203, %205 : vector<16x32xf32>
    %207 = tpu.iota {dimensions = array<i32: 1>} : vector<16x32xi32>
    %cst_172 = arith.constant dense<0x7F800000> : vector<16xf32>
    %208 = vector.multi_reduction <minimumf>, %206, %cst_172 [1] : vector<16x32xf32> to vector<16xf32>
    %209 = vector.shape_cast %208 : vector<16xf32> to vector<16x1xf32>
    %210 = vector.broadcast %209 : vector<16x1xf32> to vector<16x32xf32>
    %211 = arith.cmpf ole, %206, %210 : vector<16x32xf32>
    %c32_i32 = arith.constant 32 : i32
    %212 = vector.broadcast %c32_i32 : i32 to vector<16x32xi32>
    %213 = arith.select %211, %207, %212 : vector<16x32xi1>, vector<16x32xi32>
    %cst_173 = arith.constant dense<2147483647> : vector<16xi32>
    %214 = vector.multi_reduction <minsi>, %213, %cst_173 [1] : vector<16x32xi32> to vector<16xi32>
    %215 = vector.shape_cast %214 : vector<16xi32> to vector<16x1xi32>
    %216 = vector.broadcast %215 : vector<16x1xi32> to vector<16x32xi32>
    %217 = arith.cmpi eq, %207, %216 : vector<16x32xi32>
    %218 = arith.extui %217 : vector<16x32xi1> to vector<16x32xi32>
    %219 = arith.sitofp %218 : vector<16x32xi32> to vector<16x32xf32>
    %c0_174 = arith.constant 0 : index
    %c0_175 = arith.constant 0 : index
    %220 = vector.load %arg12[%c0_174, %c0_175] : memref<32x64xf32, #tpu.memory_space<vmem>>, vector<32x64xf32>
    %cst_176 = arith.constant dense<0.000000e+00> : vector<16x64xf32>
    %221 = tpu.matmul %219, %220, %cst_176 {dimension_numbers = #tpu.dot_dimension_numbers<[1], [0], [0], [1], [0, 0, 1, 1], [], []>} : vector<16x32xf32>, vector<32x64xf32>, vector<16x64xf32> -> vector<16x64xf32>
    %222 = arith.subf %221, %192 : vector<16x64xf32>
    %223 = arith.mulf %222, %222 : vector<16x64xf32>
    %cst_177 = arith.constant dense<0.000000e+00> : vector<16xf32>
    %224 = vector.multi_reduction <add>, %223, %cst_177 [1] : vector<16x64xf32> to vector<16xf32>
    %225 = vector.shape_cast %224 : vector<16xf32> to vector<16x1xf32>
    %cst_178 = arith.constant dense<0.000000e+00> : vector<1xf32>
    %226 = vector.multi_reduction <add>, %225, %cst_178 [0] : vector<16x1xf32> to vector<1xf32>
    %227 = vector.shape_cast %226 : vector<1xf32> to vector<1x1xf32>
    %cst_179 = arith.constant 0.00122070313 : f32
    %228 = vector.broadcast %cst_179 : f32 to vector<1x1xf32>
    %229 = arith.mulf %227, %228 : vector<1x1xf32>
    %c0_180 = arith.constant 0 : index
    %c0_181 = arith.constant 0 : index
    %230 = vector.load %arg27[%c0_180, %c0_181] : memref<1x1xf32, #tpu.memory_space<vmem>>, vector<1x1xf32>
    tpu.vector_store %arg27[%c0_180, %c0_181], %229 {strides = array<i32>} : memref<1x1xf32, #tpu.memory_space<vmem>>, vector<1x1xf32>,
    %c0_182 = arith.constant 0 : index
    %c0_183 = arith.constant 0 : index
    %c0_184 = arith.constant 0 : index
    %231 = vector.load %arg18[%c0_182, %c0_183, %c0_184] : memref<8x2x16xf32, #tpu.memory_space<vmem>>, vector<1x2x16xf32>
    %232 = vector.shape_cast %231 : vector<1x2x16xf32> to vector<2x16xf32>
    %cst_185 = arith.constant dense<0.000000e+00> : vector<2x64xf32>
    %233 = tpu.matmul %232, %221, %cst_185 {dimension_numbers = #tpu.dot_dimension_numbers<[1], [0], [0], [1], [0, 0, 1, 1], [], []>} : vector<2x16xf32>, vector<16x64xf32>, vector<2x64xf32> -> vector<2x64xf32>
    %c0_186 = arith.constant 0 : index
    %c0_187 = arith.constant 0 : index
    %c0_188 = arith.constant 0 : index
    %234 = vector.load %arg14[%c0_186, %c0_187, %c0_188] : memref<8x64x1024xf32, #tpu.memory_space<vmem>>, vector<1x64x1024xf32>
    %235 = vector.shape_cast %234 : vector<1x64x1024xf32> to vector<64x1024xf32>
    %cst_189 = arith.constant dense<0.000000e+00> : vector<2x1024xf32>
    %236 = tpu.matmul %233, %235, %cst_189 {dimension_numbers = #tpu.dot_dimension_numbers<[1], [0], [0], [1], [0, 0, 1, 1], [], []>} : vector<2x64xf32>, vector<64x1024xf32>, vector<2x1024xf32> -> vector<2x1024xf32>
    %c1_190 = arith.constant 1 : index
    %c0_191 = arith.constant 0 : index
    %c0_192 = arith.constant 0 : index
    %237 = vector.load %arg18[%c1_190, %c0_191, %c0_192] : memref<8x2x16xf32, #tpu.memory_space<vmem>>, vector<1x2x16xf32>
    %238 = vector.shape_cast %237 : vector<1x2x16xf32> to vector<2x16xf32>
    %cst_193 = arith.constant dense<0.000000e+00> : vector<2x64xf32>
    %239 = tpu.matmul %238, %221, %cst_193 {dimension_numbers = #tpu.dot_dimension_numbers<[1], [0], [0], [1], [0, 0, 1, 1], [], []>} : vector<2x16xf32>, vector<16x64xf32>, vector<2x64xf32> -> vector<2x64xf32>
    %c1_194 = arith.constant 1 : index
    %c0_195 = arith.constant 0 : index
    %c0_196 = arith.constant 0 : index
    %240 = vector.load %arg14[%c1_194, %c0_195, %c0_196] : memref<8x64x1024xf32, #tpu.memory_space<vmem>>, vector<1x64x1024xf32>
    %241 = vector.shape_cast %240 : vector<1x64x1024xf32> to vector<64x1024xf32>
    %cst_197 = arith.constant dense<0.000000e+00> : vector<2x1024xf32>
    %242 = tpu.matmul %239, %241, %cst_197 {dimension_numbers = #tpu.dot_dimension_numbers<[1], [0], [0], [1], [0, 0, 1, 1], [], []>} : vector<2x64xf32>, vector<64x1024xf32>, vector<2x1024xf32> -> vector<2x1024xf32>
    %243 = arith.addf %236, %242 : vector<2x1024xf32>
    %c2_198 = arith.constant 2 : index
    %c0_199 = arith.constant 0 : index
    %c0_200 = arith.constant 0 : index
    %244 = vector.load %arg18[%c2_198, %c0_199, %c0_200] : memref<8x2x16xf32, #tpu.memory_space<vmem>>, vector<1x2x16xf32>
    %245 = vector.shape_cast %244 : vector<1x2x16xf32> to vector<2x16xf32>
    %cst_201 = arith.constant dense<0.000000e+00> : vector<2x64xf32>
    %246 = tpu.matmul %245, %221, %cst_201 {dimension_numbers = #tpu.dot_dimension_numbers<[1], [0], [0], [1], [0, 0, 1, 1], [], []>} : vector<2x16xf32>, vector<16x64xf32>, vector<2x64xf32> -> vector<2x64xf32>
    %c2_202 = arith.constant 2 : index
    %c0_203 = arith.constant 0 : index
    %c0_204 = arith.constant 0 : index
    %247 = vector.load %arg14[%c2_202, %c0_203, %c0_204] : memref<8x64x1024xf32, #tpu.memory_space<vmem>>, vector<1x64x1024xf32>
    %248 = vector.shape_cast %247 : vector<1x64x1024xf32> to vector<64x1024xf32>
    %cst_205 = arith.constant dense<0.000000e+00> : vector<2x1024xf32>
    %249 = tpu.matmul %246, %248, %cst_205 {dimension_numbers = #tpu.dot_dimension_numbers<[1], [0], [0], [1], [0, 0, 1, 1], [], []>} : vector<2x64xf32>, vector<64x1024xf32>, vector<2x1024xf32> -> vector<2x1024xf32>
    %250 = arith.addf %243, %249 : vector<2x1024xf32>
    %c3_206 = arith.constant 3 : index
    %c0_207 = arith.constant 0 : index
    %c0_208 = arith.constant 0 : index
    %251 = vector.load %arg18[%c3_206, %c0_207, %c0_208] : memref<8x2x16xf32, #tpu.memory_space<vmem>>, vector<1x2x16xf32>
    %252 = vector.shape_cast %251 : vector<1x2x16xf32> to vector<2x16xf32>
    %cst_209 = arith.constant dense<0.000000e+00> : vector<2x64xf32>
    %253 = tpu.matmul %252, %221, %cst_209 {dimension_numbers = #tpu.dot_dimension_numbers<[1], [0], [0], [1], [0, 0, 1, 1], [], []>} : vector<2x16xf32>, vector<16x64xf32>, vector<2x64xf32> -> vector<2x64xf32>
    %c3_210 = arith.constant 3 : index
    %c0_211 = arith.constant 0 : index
    %c0_212 = arith.constant 0 : index
    %254 = vector.load %arg14[%c3_210, %c0_211, %c0_212] : memref<8x64x1024xf32, #tpu.memory_space<vmem>>, vector<1x64x1024xf32>
    %255 = vector.shape_cast %254 : vector<1x64x1024xf32> to vector<64x1024xf32>
    %cst_213 = arith.constant dense<0.000000e+00> : vector<2x1024xf32>
    %256 = tpu.matmul %253, %255, %cst_213 {dimension_numbers = #tpu.dot_dimension_numbers<[1], [0], [0], [1], [0, 0, 1, 1], [], []>} : vector<2x64xf32>, vector<64x1024xf32>, vector<2x1024xf32> -> vector<2x1024xf32>
    %257 = arith.addf %250, %256 : vector<2x1024xf32>
    %c4_214 = arith.constant 4 : index
    %c0_215 = arith.constant 0 : index
    %c0_216 = arith.constant 0 : index
    %258 = vector.load %arg18[%c4_214, %c0_215, %c0_216] : memref<8x2x16xf32, #tpu.memory_space<vmem>>, vector<1x2x16xf32>
    %259 = vector.shape_cast %258 : vector<1x2x16xf32> to vector<2x16xf32>
    %cst_217 = arith.constant dense<0.000000e+00> : vector<2x64xf32>
    %260 = tpu.matmul %259, %221, %cst_217 {dimension_numbers = #tpu.dot_dimension_numbers<[1], [0], [0], [1], [0, 0, 1, 1], [], []>} : vector<2x16xf32>, vector<16x64xf32>, vector<2x64xf32> -> vector<2x64xf32>
    %c4_218 = arith.constant 4 : index
    %c0_219 = arith.constant 0 : index
    %c0_220 = arith.constant 0 : index
    %261 = vector.load %arg14[%c4_218, %c0_219, %c0_220] : memref<8x64x1024xf32, #tpu.memory_space<vmem>>, vector<1x64x1024xf32>
    %262 = vector.shape_cast %261 : vector<1x64x1024xf32> to vector<64x1024xf32>
    %cst_221 = arith.constant dense<0.000000e+00> : vector<2x1024xf32>
    %263 = tpu.matmul %260, %262, %cst_221 {dimension_numbers = #tpu.dot_dimension_numbers<[1], [0], [0], [1], [0, 0, 1, 1], [], []>} : vector<2x64xf32>, vector<64x1024xf32>, vector<2x1024xf32> -> vector<2x1024xf32>
    %264 = arith.addf %257, %263 : vector<2x1024xf32>
    %c5_222 = arith.constant 5 : index
    %c0_223 = arith.constant 0 : index
    %c0_224 = arith.constant 0 : index
    %265 = vector.load %arg18[%c5_222, %c0_223, %c0_224] : memref<8x2x16xf32, #tpu.memory_space<vmem>>, vector<1x2x16xf32>
    %266 = vector.shape_cast %265 : vector<1x2x16xf32> to vector<2x16xf32>
    %cst_225 = arith.constant dense<0.000000e+00> : vector<2x64xf32>
    %267 = tpu.matmul %266, %221, %cst_225 {dimension_numbers = #tpu.dot_dimension_numbers<[1], [0], [0], [1], [0, 0, 1, 1], [], []>} : vector<2x16xf32>, vector<16x64xf32>, vector<2x64xf32> -> vector<2x64xf32>
    %c5_226 = arith.constant 5 : index
    %c0_227 = arith.constant 0 : index
    %c0_228 = arith.constant 0 : index
    %268 = vector.load %arg14[%c5_226, %c0_227, %c0_228] : memref<8x64x1024xf32, #tpu.memory_space<vmem>>, vector<1x64x1024xf32>
    %269 = vector.shape_cast %268 : vector<1x64x1024xf32> to vector<64x1024xf32>
    %cst_229 = arith.constant dense<0.000000e+00> : vector<2x1024xf32>
    %270 = tpu.matmul %267, %269, %cst_229 {dimension_numbers = #tpu.dot_dimension_numbers<[1], [0], [0], [1], [0, 0, 1, 1], [], []>} : vector<2x64xf32>, vector<64x1024xf32>, vector<2x1024xf32> -> vector<2x1024xf32>
    %271 = arith.addf %264, %270 : vector<2x1024xf32>
    %c6_230 = arith.constant 6 : index
    %c0_231 = arith.constant 0 : index
    %c0_232 = arith.constant 0 : index
    %272 = vector.load %arg18[%c6_230, %c0_231, %c0_232] : memref<8x2x16xf32, #tpu.memory_space<vmem>>, vector<1x2x16xf32>
    %273 = vector.shape_cast %272 : vector<1x2x16xf32> to vector<2x16xf32>
    %cst_233 = arith.constant dense<0.000000e+00> : vector<2x64xf32>
    %274 = tpu.matmul %273, %221, %cst_233 {dimension_numbers = #tpu.dot_dimension_numbers<[1], [0], [0], [1], [0, 0, 1, 1], [], []>} : vector<2x16xf32>, vector<16x64xf32>, vector<2x64xf32> -> vector<2x64xf32>
    %c6_234 = arith.constant 6 : index
    %c0_235 = arith.constant 0 : index
    %c0_236 = arith.constant 0 : index
    %275 = vector.load %arg14[%c6_234, %c0_235, %c0_236] : memref<8x64x1024xf32, #tpu.memory_space<vmem>>, vector<1x64x1024xf32>
    %276 = vector.shape_cast %275 : vector<1x64x1024xf32> to vector<64x1024xf32>
    %cst_237 = arith.constant dense<0.000000e+00> : vector<2x1024xf32>
    %277 = tpu.matmul %274, %276, %cst_237 {dimension_numbers = #tpu.dot_dimension_numbers<[1], [0], [0], [1], [0, 0, 1, 1], [], []>} : vector<2x64xf32>, vector<64x1024xf32>, vector<2x1024xf32> -> vector<2x1024xf32>
    %278 = arith.addf %271, %277 : vector<2x1024xf32>
    %c7_238 = arith.constant 7 : index
    %c0_239 = arith.constant 0 : index
    %c0_240 = arith.constant 0 : index
    %279 = vector.load %arg18[%c7_238, %c0_239, %c0_240] : memref<8x2x16xf32, #tpu.memory_space<vmem>>, vector<1x2x16xf32>
    %280 = vector.shape_cast %279 : vector<1x2x16xf32> to vector<2x16xf32>
    %cst_241 = arith.constant dense<0.000000e+00> : vector<2x64xf32>
    %281 = tpu.matmul %280, %221, %cst_241 {dimension_numbers = #tpu.dot_dimension_numbers<[1], [0], [0], [1], [0, 0, 1, 1], [], []>} : vector<2x16xf32>, vector<16x64xf32>, vector<2x64xf32> -> vector<2x64xf32>
    %c7_242 = arith.constant 7 : index
    %c0_243 = arith.constant 0 : index
    %c0_244 = arith.constant 0 : index
    %282 = vector.load %arg14[%c7_242, %c0_243, %c0_244] : memref<8x64x1024xf32, #tpu.memory_space<vmem>>, vector<1x64x1024xf32>
    %283 = vector.shape_cast %282 : vector<1x64x1024xf32> to vector<64x1024xf32>
    %cst_245 = arith.constant dense<0.000000e+00> : vector<2x1024xf32>
    %284 = tpu.matmul %281, %283, %cst_245 {dimension_numbers = #tpu.dot_dimension_numbers<[1], [0], [0], [1], [0, 0, 1, 1], [], []>} : vector<2x64xf32>, vector<64x1024xf32>, vector<2x1024xf32> -> vector<2x1024xf32>
    %285 = arith.addf %278, %284 : vector<2x1024xf32>
    %c0_246 = arith.constant 0 : index
    %c0_247 = arith.constant 0 : index
    %286 = vector.load %arg15[%c0_246, %c0_247] : memref<1x1024xf32, #tpu.memory_space<vmem>>, vector<1x1024xf32>
    %287 = vector.broadcast %286 : vector<1x1024xf32> to vector<2x1024xf32>
    %288 = arith.addf %285, %287 : vector<2x1024xf32>
    %c0_248 = arith.constant 0 : index
    %c0_249 = arith.constant 0 : index
    %289 = vector.load %arg16[%c0_248, %c0_249] : memref<2x1024xf32, #tpu.memory_space<vmem>>, vector<1x1024xf32>
    %c1_250 = arith.constant 1 : index
    %c0_251 = arith.constant 0 : index
    %290 = vector.load %arg16[%c1_250, %c0_251] : memref<2x1024xf32, #tpu.memory_space<vmem>>, vector<1x1024xf32>
    %cst_252 = arith.constant dense<0.000000e+00> : vector<1024xf32>
    %291 = vector.multi_reduction <add>, %288, %cst_252 [0] : vector<2x1024xf32> to vector<1024xf32>
    %292 = vector.shape_cast %291 : vector<1024xf32> to vector<1x1024xf32>
    %cst_253 = arith.constant 5.000000e-01 : f32
    %293 = vector.broadcast %cst_253 : f32 to vector<1x1024xf32>
    %294 = arith.mulf %292, %293 : vector<1x1024xf32>
    %295 = vector.broadcast %294 : vector<1x1024xf32> to vector<2x1024xf32>
    %296 = arith.subf %288, %295 : vector<2x1024xf32>
    %297 = arith.mulf %296, %296 : vector<2x1024xf32>
    %cst_254 = arith.constant dense<0.000000e+00> : vector<1024xf32>
    %298 = vector.multi_reduction <add>, %297, %cst_254 [0] : vector<2x1024xf32> to vector<1024xf32>
    %299 = vector.shape_cast %298 : vector<1024xf32> to vector<1x1024xf32>
    %cst_255 = arith.constant 5.000000e-01 : f32
    %300 = vector.broadcast %cst_255 : f32 to vector<1x1024xf32>
    %301 = arith.mulf %299, %300 : vector<1x1024xf32>
    %cst_256 = arith.constant 9.99999974E-6 : f32
    %302 = vector.broadcast %cst_256 : f32 to vector<1x1024xf32>
    %303 = arith.addf %301, %302 : vector<1x1024xf32>
    %304 = math.rsqrt %303 : vector<1x1024xf32>
    %305 = vector.broadcast %304 : vector<1x1024xf32> to vector<2x1024xf32>
    %306 = arith.mulf %296, %305 : vector<2x1024xf32>
    %307 = vector.broadcast %289 : vector<1x1024xf32> to vector<2x1024xf32>
    %308 = arith.mulf %306, %307 : vector<2x1024xf32>
    %309 = vector.broadcast %290 : vector<1x1024xf32> to vector<2x1024xf32>
    %310 = arith.addf %308, %309 : vector<2x1024xf32>
    %c0_257 = arith.constant 0 : index
    %c0_258 = arith.constant 0 : index
    %c0_259 = arith.constant 0 : index
    %311 = vector.load %arg17[%c0_257, %c0_258, %c0_259] : memref<8x16x2xf32, #tpu.memory_space<vmem>>, vector<1x16x2xf32>
    %312 = vector.shape_cast %311 : vector<1x16x2xf32> to vector<16x2xf32>
    %313 = vector.extract_strided_slice %310 {offsets = [0, 0], sizes = [2, 128], strides = [1, 1]} : vector<2x1024xf32> to vector<2x128xf32>
    %cst_260 = arith.constant dense<0.000000e+00> : vector<16x128xf32>
    %314 = tpu.matmul %312, %313, %cst_260 {dimension_numbers = #tpu.dot_dimension_numbers<[1], [0], [0], [1], [0, 0, 1, 1], [], []>} : vector<16x2xf32>, vector<2x128xf32>, vector<16x128xf32> -> vector<16x128xf32>
    %c1_261 = arith.constant 1 : index
    %c0_262 = arith.constant 0 : index
    %c0_263 = arith.constant 0 : index
    %315 = vector.load %arg17[%c1_261, %c0_262, %c0_263] : memref<8x16x2xf32, #tpu.memory_space<vmem>>, vector<1x16x2xf32>
    %316 = vector.shape_cast %315 : vector<1x16x2xf32> to vector<16x2xf32>
    %317 = vector.extract_strided_slice %310 {offsets = [0, 128], sizes = [2, 128], strides = [1, 1]} : vector<2x1024xf32> to vector<2x128xf32>
    %cst_264 = arith.constant dense<0.000000e+00> : vector<16x128xf32>
    %318 = tpu.matmul %316, %317, %cst_264 {dimension_numbers = #tpu.dot_dimension_numbers<[1], [0], [0], [1], [0, 0, 1, 1], [], []>} : vector<16x2xf32>, vector<2x128xf32>, vector<16x128xf32> -> vector<16x128xf32>
    %319 = arith.addf %314, %318 : vector<16x128xf32>
    %c2_265 = arith.constant 2 : index
    %c0_266 = arith.constant 0 : index
    %c0_267 = arith.constant 0 : index
    %320 = vector.load %arg17[%c2_265, %c0_266, %c0_267] : memref<8x16x2xf32, #tpu.memory_space<vmem>>, vector<1x16x2xf32>
    %321 = vector.shape_cast %320 : vector<1x16x2xf32> to vector<16x2xf32>
    %322 = vector.extract_strided_slice %310 {offsets = [0, 256], sizes = [2, 128], strides = [1, 1]} : vector<2x1024xf32> to vector<2x128xf32>
    %cst_268 = arith.constant dense<0.000000e+00> : vector<16x128xf32>
    %323 = tpu.matmul %321, %322, %cst_268 {dimension_numbers = #tpu.dot_dimension_numbers<[1], [0], [0], [1], [0, 0, 1, 1], [], []>} : vector<16x2xf32>, vector<2x128xf32>, vector<16x128xf32> -> vector<16x128xf32>
    %324 = arith.addf %319, %323 : vector<16x128xf32>
    %c3_269 = arith.constant 3 : index
    %c0_270 = arith.constant 0 : index
    %c0_271 = arith.constant 0 : index
    %325 = vector.load %arg17[%c3_269, %c0_270, %c0_271] : memref<8x16x2xf32, #tpu.memory_space<vmem>>, vector<1x16x2xf32>
    %326 = vector.shape_cast %325 : vector<1x16x2xf32> to vector<16x2xf32>
    %327 = vector.extract_strided_slice %310 {offsets = [0, 384], sizes = [2, 128], strides = [1, 1]} : vector<2x1024xf32> to vector<2x128xf32>
    %cst_272 = arith.constant dense<0.000000e+00> : vector<16x128xf32>
    %328 = tpu.matmul %326, %327, %cst_272 {dimension_numbers = #tpu.dot_dimension_numbers<[1], [0], [0], [1], [0, 0, 1, 1], [], []>} : vector<16x2xf32>, vector<2x128xf32>, vector<16x128xf32> -> vector<16x128xf32>
    %329 = arith.addf %324, %328 : vector<16x128xf32>
    %c4_273 = arith.constant 4 : index
    %c0_274 = arith.constant 0 : index
    %c0_275 = arith.constant 0 : index
    %330 = vector.load %arg17[%c4_273, %c0_274, %c0_275] : memref<8x16x2xf32, #tpu.memory_space<vmem>>, vector<1x16x2xf32>
    %331 = vector.shape_cast %330 : vector<1x16x2xf32> to vector<16x2xf32>
    %332 = vector.extract_strided_slice %310 {offsets = [0, 512], sizes = [2, 128], strides = [1, 1]} : vector<2x1024xf32> to vector<2x128xf32>
    %cst_276 = arith.constant dense<0.000000e+00> : vector<16x128xf32>
    %333 = tpu.matmul %331, %332, %cst_276 {dimension_numbers = #tpu.dot_dimension_numbers<[1], [0], [0], [1], [0, 0, 1, 1], [], []>} : vector<16x2xf32>, vector<2x128xf32>, vector<16x128xf32> -> vector<16x128xf32>
    %334 = arith.addf %329, %333 : vector<16x128xf32>
    %c5_277 = arith.constant 5 : index
    %c0_278 = arith.constant 0 : index
    %c0_279 = arith.constant 0 : index
    %335 = vector.load %arg17[%c5_277, %c0_278, %c0_279] : memref<8x16x2xf32, #tpu.memory_space<vmem>>, vector<1x16x2xf32>
    %336 = vector.shape_cast %335 : vector<1x16x2xf32> to vector<16x2xf32>
    %337 = vector.extract_strided_slice %310 {offsets = [0, 640], sizes = [2, 128], strides = [1, 1]} : vector<2x1024xf32> to vector<2x128xf32>
    %cst_280 = arith.constant dense<0.000000e+00> : vector<16x128xf32>
    %338 = tpu.matmul %336, %337, %cst_280 {dimension_numbers = #tpu.dot_dimension_numbers<[1], [0], [0], [1], [0, 0, 1, 1], [], []>} : vector<16x2xf32>, vector<2x128xf32>, vector<16x128xf32> -> vector<16x128xf32>
    %339 = arith.addf %334, %338 : vector<16x128xf32>
    %c6_281 = arith.constant 6 : index
    %c0_282 = arith.constant 0 : index
    %c0_283 = arith.constant 0 : index
    %340 = vector.load %arg17[%c6_281, %c0_282, %c0_283] : memref<8x16x2xf32, #tpu.memory_space<vmem>>, vector<1x16x2xf32>
    %341 = vector.shape_cast %340 : vector<1x16x2xf32> to vector<16x2xf32>
    %342 = vector.extract_strided_slice %310 {offsets = [0, 768], sizes = [2, 128], strides = [1, 1]} : vector<2x1024xf32> to vector<2x128xf32>
    %cst_284 = arith.constant dense<0.000000e+00> : vector<16x128xf32>
    %343 = tpu.matmul %341, %342, %cst_284 {dimension_numbers = #tpu.dot_dimension_numbers<[1], [0], [0], [1], [0, 0, 1, 1], [], []>} : vector<16x2xf32>, vector<2x128xf32>, vector<16x128xf32> -> vector<16x128xf32>
    %344 = arith.addf %339, %343 : vector<16x128xf32>
    %c7_285 = arith.constant 7 : index
    %c0_286 = arith.constant 0 : index
    %c0_287 = arith.constant 0 : index
    %345 = vector.load %arg17[%c7_285, %c0_286, %c0_287] : memref<8x16x2xf32, #tpu.memory_space<vmem>>, vector<1x16x2xf32>
    %346 = vector.shape_cast %345 : vector<1x16x2xf32> to vector<16x2xf32>
    %347 = vector.extract_strided_slice %310 {offsets = [0, 896], sizes = [2, 128], strides = [1, 1]} : vector<2x1024xf32> to vector<2x128xf32>
    %cst_288 = arith.constant dense<0.000000e+00> : vector<16x128xf32>
    %348 = tpu.matmul %346, %347, %cst_288 {dimension_numbers = #tpu.dot_dimension_numbers<[1], [0], [0], [1], [0, 0, 1, 1], [], []>} : vector<16x2xf32>, vector<2x128xf32>, vector<16x128xf32> -> vector<16x128xf32>
    %349 = arith.addf %344, %348 : vector<16x128xf32>
    %c0_289 = arith.constant 0 : index
    %c0_290 = arith.constant 0 : index
    %350 = vector.load %arg21[%c0_289, %c0_290] : memref<1x128xf32, #tpu.memory_space<vmem>>, vector<1x128xf32>
    %c0_291 = arith.constant 0 : index
    %c0_292 = arith.constant 0 : index
    %c0_293 = arith.constant 0 : index
    %351 = vector.load %arg20[%c0_291, %c0_292, %c0_293] : memref<3x128x128xf32, #tpu.memory_space<vmem>>, vector<1x128x128xf32>
    %352 = vector.shape_cast %351 : vector<1x128x128xf32> to vector<128x128xf32>
    %cst_294 = arith.constant dense<0.000000e+00> : vector<16x128xf32>
    %353 = tpu.matmul %349, %352, %cst_294 {dimension_numbers = #tpu.dot_dimension_numbers<[1], [0], [0], [1], [0, 0, 1, 1], [], []>} : vector<16x128xf32>, vector<128x128xf32>, vector<16x128xf32> -> vector<16x128xf32>
    %c0_295 = arith.constant 0 : index
    %c0_296 = arith.constant 0 : index
    %c0_297 = arith.constant 0 : index
    %354 = vector.load %arg19[%c0_295, %c0_296, %c0_297] : memref<3x32x16xf32, #tpu.memory_space<vmem>>, vector<1x32x16xf32>
    %355 = vector.shape_cast %354 : vector<1x32x16xf32> to vector<32x16xf32>
    %cst_298 = arith.constant dense<0.000000e+00> : vector<32x128xf32>
    %356 = tpu.matmul %355, %353, %cst_298 {dimension_numbers = #tpu.dot_dimension_numbers<[1], [0], [0], [1], [0, 0, 1, 1], [], []>} : vector<32x16xf32>, vector<16x128xf32>, vector<32x128xf32> -> vector<32x128xf32>
    %c1_299 = arith.constant 1 : index
    %c0_300 = arith.constant 0 : index
    %c0_301 = arith.constant 0 : index
    %357 = vector.load %arg20[%c1_299, %c0_300, %c0_301] : memref<3x128x128xf32, #tpu.memory_space<vmem>>, vector<1x128x128xf32>
    %358 = vector.shape_cast %357 : vector<1x128x128xf32> to vector<128x128xf32>
    %cst_302 = arith.constant dense<0.000000e+00> : vector<16x128xf32>
    %359 = tpu.matmul %349, %358, %cst_302 {dimension_numbers = #tpu.dot_dimension_numbers<[1], [0], [0], [1], [0, 0, 1, 1], [], []>} : vector<16x128xf32>, vector<128x128xf32>, vector<16x128xf32> -> vector<16x128xf32>
    %c1_303 = arith.constant 1 : index
    %c0_304 = arith.constant 0 : index
    %c0_305 = arith.constant 0 : index
    %360 = vector.load %arg19[%c1_303, %c0_304, %c0_305] : memref<3x32x16xf32, #tpu.memory_space<vmem>>, vector<1x32x16xf32>
    %361 = vector.shape_cast %360 : vector<1x32x16xf32> to vector<32x16xf32>
    %cst_306 = arith.constant dense<0.000000e+00> : vector<32x128xf32>
    %362 = tpu.matmul %361, %359, %cst_306 {dimension_numbers = #tpu.dot_dimension_numbers<[1], [0], [0], [1], [0, 0, 1, 1], [], []>} : vector<32x16xf32>, vector<16x128xf32>, vector<32x128xf32> -> vector<32x128xf32>
    %363 = arith.addf %356, %362 : vector<32x128xf32>
    %c2_307 = arith.constant 2 : index
    %c0_308 = arith.constant 0 : index
    %c0_309 = arith.constant 0 : index
    %364 = vector.load %arg20[%c2_307, %c0_308, %c0_309] : memref<3x128x128xf32, #tpu.memory_space<vmem>>, vector<1x128x128xf32>
    %365 = vector.shape_cast %364 : vector<1x128x128xf32> to vector<128x128xf32>
    %cst_310 = arith.constant dense<0.000000e+00> : vector<16x128xf32>
    %366 = tpu.matmul %349, %365, %cst_310 {dimension_numbers = #tpu.dot_dimension_numbers<[1], [0], [0], [1], [0, 0, 1, 1], [], []>} : vector<16x128xf32>, vector<128x128xf32>, vector<16x128xf32> -> vector<16x128xf32>
    %c2_311 = arith.constant 2 : index
    %c0_312 = arith.constant 0 : index
    %c0_313 = arith.constant 0 : index
    %367 = vector.load %arg19[%c2_311, %c0_312, %c0_313] : memref<3x32x16xf32, #tpu.memory_space<vmem>>, vector<1x32x16xf32>
    %368 = vector.shape_cast %367 : vector<1x32x16xf32> to vector<32x16xf32>
    %cst_314 = arith.constant dense<0.000000e+00> : vector<32x128xf32>
    %369 = tpu.matmul %368, %366, %cst_314 {dimension_numbers = #tpu.dot_dimension_numbers<[1], [0], [0], [1], [0, 0, 1, 1], [], []>} : vector<32x16xf32>, vector<16x128xf32>, vector<32x128xf32> -> vector<32x128xf32>
    %370 = arith.addf %363, %369 : vector<32x128xf32>
    %371 = vector.broadcast %350 : vector<1x128xf32> to vector<32x128xf32>
    %372 = arith.addf %370, %371 : vector<32x128xf32>
    %c0_315 = arith.constant 0 : index
    %c0_316 = arith.constant 0 : index
    %373 = vector.load %arg22[%c0_315, %c0_316] : memref<2x128xf32, #tpu.memory_space<vmem>>, vector<1x128xf32>
    %c1_317 = arith.constant 1 : index
    %c0_318 = arith.constant 0 : index
    %374 = vector.load %arg22[%c1_317, %c0_318] : memref<2x128xf32, #tpu.memory_space<vmem>>, vector<1x128xf32>
    %cst_319 = arith.constant dense<0.000000e+00> : vector<128xf32>
    %375 = vector.multi_reduction <add>, %372, %cst_319 [0] : vector<32x128xf32> to vector<128xf32>
    %376 = vector.shape_cast %375 : vector<128xf32> to vector<1x128xf32>
    %cst_320 = arith.constant 3.125000e-02 : f32
    %377 = vector.broadcast %cst_320 : f32 to vector<1x128xf32>
    %378 = arith.mulf %376, %377 : vector<1x128xf32>
    %cst_321 = arith.constant dense<0.000000e+00> : vector<1x128xf32>
    %379 = tpu.matmul %378, %0, %cst_321 {dimension_numbers = #tpu.dot_dimension_numbers<[1], [0], [0], [1], [0, 0, 1, 1], [], []>} : vector<1x128xf32>, vector<128x128xf32>, vector<1x128xf32> -> vector<1x128xf32>
    %380 = vector.broadcast %379 : vector<1x128xf32> to vector<32x128xf32>
    %381 = arith.subf %372, %380 : vector<32x128xf32>
    %382 = arith.mulf %381, %381 : vector<32x128xf32>
    %cst_322 = arith.constant dense<0.000000e+00> : vector<128xf32>
    %383 = vector.multi_reduction <add>, %382, %cst_322 [0] : vector<32x128xf32> to vector<128xf32>
    %384 = vector.shape_cast %383 : vector<128xf32> to vector<1x128xf32>
    %cst_323 = arith.constant 3.125000e-02 : f32
    %385 = vector.broadcast %cst_323 : f32 to vector<1x128xf32>
    %386 = arith.mulf %384, %385 : vector<1x128xf32>
    %cst_324 = arith.constant dense<0.000000e+00> : vector<1x128xf32>
    %387 = tpu.matmul %386, %0, %cst_324 {dimension_numbers = #tpu.dot_dimension_numbers<[1], [0], [0], [1], [0, 0, 1, 1], [], []>} : vector<1x128xf32>, vector<128x128xf32>, vector<1x128xf32> -> vector<1x128xf32>
    %cst_325 = arith.constant 9.99999974E-6 : f32
    %388 = vector.broadcast %cst_325 : f32 to vector<1x128xf32>
    %389 = arith.addf %387, %388 : vector<1x128xf32>
    %390 = math.rsqrt %389 : vector<1x128xf32>
    %391 = vector.broadcast %390 : vector<1x128xf32> to vector<32x128xf32>
    %392 = arith.mulf %381, %391 : vector<32x128xf32>
    %393 = vector.broadcast %373 : vector<1x128xf32> to vector<32x128xf32>
    %394 = arith.mulf %392, %393 : vector<32x128xf32>
    %395 = vector.broadcast %374 : vector<1x128xf32> to vector<32x128xf32>
    %396 = arith.addf %394, %395 : vector<32x128xf32>
    %cst_326 = arith.constant 0.000000e+00 : f32
    %397 = vector.broadcast %cst_326 : f32 to vector<32x128xf32>
    %398 = arith.maximumf %396, %397 : vector<32x128xf32>
    %c0_327 = arith.constant 0 : index
    %c0_328 = arith.constant 0 : index
    %399 = vector.load %arg25[%c0_327, %c0_328] : memref<1x64xf32, #tpu.memory_space<vmem>>, vector<1x64xf32>
    %c0_329 = arith.constant 0 : index
    %c0_330 = arith.constant 0 : index
    %c0_331 = arith.constant 0 : index
    %400 = vector.load %arg24[%c0_329, %c0_330, %c0_331] : memref<3x128x64xf32, #tpu.memory_space<vmem>>, vector<1x128x64xf32>
    %401 = vector.shape_cast %400 : vector<1x128x64xf32> to vector<128x64xf32>
    %cst_332 = arith.constant dense<0.000000e+00> : vector<32x64xf32>
    %402 = tpu.matmul %398, %401, %cst_332 {dimension_numbers = #tpu.dot_dimension_numbers<[1], [0], [0], [1], [0, 0, 1, 1], [], []>} : vector<32x128xf32>, vector<128x64xf32>, vector<32x64xf32> -> vector<32x64xf32>
    %c0_333 = arith.constant 0 : index
    %c0_334 = arith.constant 0 : index
    %c0_335 = arith.constant 0 : index
    %403 = vector.load %arg23[%c0_333, %c0_334, %c0_335] : memref<3x64x32xf32, #tpu.memory_space<vmem>>, vector<1x64x32xf32>
    %404 = vector.shape_cast %403 : vector<1x64x32xf32> to vector<64x32xf32>
    %cst_336 = arith.constant dense<0.000000e+00> : vector<64x64xf32>
    %405 = tpu.matmul %404, %402, %cst_336 {dimension_numbers = #tpu.dot_dimension_numbers<[1], [0], [0], [1], [0, 0, 1, 1], [], []>} : vector<64x32xf32>, vector<32x64xf32>, vector<64x64xf32> -> vector<64x64xf32>
    %c1_337 = arith.constant 1 : index
    %c0_338 = arith.constant 0 : index
    %c0_339 = arith.constant 0 : index
    %406 = vector.load %arg24[%c1_337, %c0_338, %c0_339] : memref<3x128x64xf32, #tpu.memory_space<vmem>>, vector<1x128x64xf32>
    %407 = vector.shape_cast %406 : vector<1x128x64xf32> to vector<128x64xf32>
    %cst_340 = arith.constant dense<0.000000e+00> : vector<32x64xf32>
    %408 = tpu.matmul %398, %407, %cst_340 {dimension_numbers = #tpu.dot_dimension_numbers<[1], [0], [0], [1], [0, 0, 1, 1], [], []>} : vector<32x128xf32>, vector<128x64xf32>, vector<32x64xf32> -> vector<32x64xf32>
    %c1_341 = arith.constant 1 : index
    %c0_342 = arith.constant 0 : index
    %c0_343 = arith.constant 0 : index
    %409 = vector.load %arg23[%c1_341, %c0_342, %c0_343] : memref<3x64x32xf32, #tpu.memory_space<vmem>>, vector<1x64x32xf32>
    %410 = vector.shape_cast %409 : vector<1x64x32xf32> to vector<64x32xf32>
    %cst_344 = arith.constant dense<0.000000e+00> : vector<64x64xf32>
    %411 = tpu.matmul %410, %408, %cst_344 {dimension_numbers = #tpu.dot_dimension_numbers<[1], [0], [0], [1], [0, 0, 1, 1], [], []>} : vector<64x32xf32>, vector<32x64xf32>, vector<64x64xf32> -> vector<64x64xf32>
    %412 = arith.addf %405, %411 : vector<64x64xf32>
    %c2_345 = arith.constant 2 : index
    %c0_346 = arith.constant 0 : index
    %c0_347 = arith.constant 0 : index
    %413 = vector.load %arg24[%c2_345, %c0_346, %c0_347] : memref<3x128x64xf32, #tpu.memory_space<vmem>>, vector<1x128x64xf32>
    %414 = vector.shape_cast %413 : vector<1x128x64xf32> to vector<128x64xf32>
    %cst_348 = arith.constant dense<0.000000e+00> : vector<32x64xf32>
    %415 = tpu.matmul %398, %414, %cst_348 {dimension_numbers = #tpu.dot_dimension_numbers<[1], [0], [0], [1], [0, 0, 1, 1], [], []>} : vector<32x128xf32>, vector<128x64xf32>, vector<32x64xf32> -> vector<32x64xf32>
    %c2_349 = arith.constant 2 : index
    %c0_350 = arith.constant 0 : index
    %c0_351 = arith.constant 0 : index
    %416 = vector.load %arg23[%c2_349, %c0_350, %c0_351] : memref<3x64x32xf32, #tpu.memory_space<vmem>>, vector<1x64x32xf32>
    %417 = vector.shape_cast %416 : vector<1x64x32xf32> to vector<64x32xf32>
    %cst_352 = arith.constant dense<0.000000e+00> : vector<64x64xf32>
    %418 = tpu.matmul %417, %415, %cst_352 {dimension_numbers = #tpu.dot_dimension_numbers<[1], [0], [0], [1], [0, 0, 1, 1], [], []>} : vector<64x32xf32>, vector<32x64xf32>, vector<64x64xf32> -> vector<64x64xf32>
    %419 = arith.addf %412, %418 : vector<64x64xf32>
    %420 = vector.broadcast %399 : vector<1x64xf32> to vector<64x64xf32>
    %421 = arith.addf %419, %420 : vector<64x64xf32>
    %422 = arith.negf %421 : vector<64x64xf32>
    %423 = math.exp %422 : vector<64x64xf32>
    %cst_353 = arith.constant 1.000000e+00 : f32
    %424 = vector.broadcast %cst_353 : f32 to vector<64x64xf32>
    %425 = arith.addf %424, %423 : vector<64x64xf32>
    %426 = arith.divf %424, %425 : vector<64x64xf32>
    %c0_354 = arith.constant 0 : index
    %c0_355 = arith.constant 0 : index
    %427 = vector.load %arg26[%c0_354, %c0_355] : memref<64x64xf32, #tpu.memory_space<vmem>>, vector<64x64xf32>
    tpu.vector_store %arg26[%c0_354, %c0_355], %426 {strides = array<i32>} : memref<64x64xf32, #tpu.memory_space<vmem>>, vector<64x64xf32>,
    return
  }
}

</mosaic_0001>

<bundles_post_ra>
// kernel: vq_ae_forward.1
= control target key start
LH: loop header
LB: loop body
LE: loop exit
PB: predicated region body
PF: predicated region fallthrough
CT: control target
= control target key end

     0   :  { %s15351_s0 = inlined_call_operand.vmem [shape: f32[64,64], index: 0, kind: input, shape index: {}]   ;;  %s15352_s1 = inlined_call_operand.hbm [shape: f32[3,32,64], index: 1, kind: input, shape index: {}]   ;;  %s15353_s2 = inlined_call_operand.hbm [shape: f32[3,64,128], index: 2, kind: input, shape index: {}]   ;;  %s15354_s3 = inlined_call_operand.hbm [shape: f32[1,128], index: 3, kind: input, shape index: {}]   ;;  %s15355_s4 = inlined_call_operand.hbm [shape: f32[2,128], index: 4, kind: input, shape index: {}]   ;;  %s15356_s5 = inlined_call_operand.hbm [shape: f32[128,128], index: 5, kind: input, shape index: {}]   ;;  %s15357_s6 = inlined_call_operand.hbm [shape: f32[3,16,32], index: 6, kind: input, shape index: {}]   ;;  %s15358_s7 = inlined_call_operand.hbm [shape: f32[3,128,128], index: 7, kind: input, shape index: {}]   ;;  %s15359_s8 = inlined_call_operand.hbm [shape: f32[1,128], index: 8, kind: input, shape index: {}]   ;;  %s15360_s9 = inlined_call_operand.hbm [shape: f32[8,128,512], index: 9, kind: input, shape index: {}]   ;;  %s15361_s10 = inlined_call_operand.hbm [shape: f32[1,512], index: 10, kind: input, shape index: {}]   ;;  %s15362_s11 = inlined_call_operand.hbm [shape: f32[2,512], index: 11, kind: input, shape index: {}]   ;;  %s15363_s12 = inlined_call_operand.hbm [shape: f32[32,64], index: 12, kind: input, shape index: {}]   ;;  %s15364_s13 = inlined_call_operand.vmem [shape: f32[64,32], index: 13, kind: input, shape index: {}]   ;;  %s15365_s14 = inlined_call_operand.hbm [shape: f32[8,64,1024], index: 14, kind: input, shape index: {}]   ;;  %s15366_s15 = inlined_call_operand.hbm [shape: f32[1,1024], index: 15, kind: input, shape index: {}]   ;;  %s15367_s16 = inlined_call_operand.hbm [shape: f32[2,1024], index: 16, kind: input, shape index: {}]   ;;  %s15368_s17 = inlined_call_operand.vmem [shape: f32[8,16,2], index: 17, kind: input, shape index: {}]   ;;  %s15369_s18 = inlined_call_operand.hbm [shape: f32[8,2,16], index: 18, kind: input, shape index: {}]   ;;  %s15370_s19 = inlined_call_operand.vmem [shape: f32[3,32,16], index: 19, kind: input, shape index: {}]   ;;  %s15371_s20 = inlined_call_operand.hbm [shape: f32[3,128,128], index: 20, kind: input, shape index: {}]   ;;  %s15372_s21 = inlined_call_operand.hbm [shape: f32[1,128], index: 21, kind: input, shape index: {}]   ;;  %s15373_s22 = inlined_call_operand.hbm [shape: f32[2,128], index: 22, kind: input, shape index: {}]   ;;  %s15374_s23 = inlined_call_operand.vmem [shape: f32[3,64,32], index: 23, kind: input, shape index: {}]   ;;  %s15375_s24 = inlined_call_operand.vmem [shape: f32[3,128,64], index: 24, kind: input, shape index: {}]   ;;  %s15376_s25 = inlined_call_operand.hbm [shape: f32[1,64], index: 25, kind: input, shape index: {}]   ;;  %s15377_s26 = inlined_call_operand.vmem [shape: f32[64,64], index: 26, kind: output, shape index: {0}]   ;;  %s15378_s27 = inlined_call_operand.hbm [shape: f32[1,1], index: 27, kind: output, shape index: {1}]  }
   0x1   :  { %15381 = sst [smem:[#allocation47_spill]] %s15351_s0 }
   0x2   :  { %15382 = sst [smem:[#allocation48_spill]] %s15352_s1 }
   0x3   :  { %15383 = sst [smem:[#allocation49_spill]] %s15353_s2 }
   0x4   :  { %15384 = sst [smem:[#allocation50_spill]] %s15354_s3 }
   0x5   :  { %15385 = sst [smem:[#allocation51_spill]] %s15355_s4 }
   0x6   :  { %15386 = sst [smem:[#allocation52_spill]] %s15356_s5 }
   0x7   :  { %15387 = sst [smem:[#allocation53_spill]] %s15357_s6 }
   0x8   :  { %15388 = sst [smem:[#allocation54_spill]] %s15358_s7 }
   0x9   :  { %15389 = sst [smem:[#allocation55_spill]] %s15359_s8 }
   0xa   :  { %15390 = sst [smem:[#allocation56_spill]] %s15360_s9 }
   0xb   :  { %15391 = sst [smem:[#allocation57_spill]] %s15361_s10 }
   0xc   :  { %15392 = sst [smem:[#allocation58_spill]] %s15362_s11 }
   0xd   :  { %15393 = sst [smem:[#allocation59_spill]] %s15377_s26 }
   0xe   :  { %33 = vsyncpa [#allocation3], 0 }
   0xf   :  { %34 = vsyncpa [#allocation6], 0 }
  0x10   :  { %35 = vsyncpa [#allocation9], 0 }
  0x11   :  { %36 = vsyncpa [#allocation12], 0 }
  0x12   :  { %37 = vsyncpa [#allocation15], 0 }
  0x13   :  { %38 = vsyncpa [#allocation18], 0 }
  0x14   :  { %39 = vsyncpa [#allocation21], 0 }
  0x15   :  { %40 = vsyncpa [#allocation24], 0 }
  0x16   :  { %41 = vsyncpa [#allocation27], 0 }
  0x17   :  { %42 = vsyncpa [#allocation30], 0 }
  0x18   :  { %43 = vsyncpa [#allocation33], 0 }
  0x19   :  { %44 = vsyncpa [#allocation4], 0  ;;  %s13664_s7 = smov [#allocation5]   ;;  %s13665_s8 = smov [#allocation8]  }
  0x1a   :  { %s64_s4 = sshll.u32 %s13664_s7, 4  ;;  %s87_s30 = sshll.u32 %s13665_s8, 4  ;;  %s65_s4 = int_to_ptr.vmem [resolvable:$true] %s64_s4  ;;  %s88_s30 = int_to_ptr.vmem [resolvable:$true] %s87_s30 }
  0x1b   :  { %s13228_s9 = scalar_lea.vmem %s65_s4, 3072  ;;  %p13233_p1 = scmp.lt.s32.totalorder %s65_s4, %s65_s4 }
  0x1c   :  { %p13229_p0 = scmp.ne.s32.totalorder %s65_s4, %s13228_s9  ;;  %p13234_p2 = scmp.lt.s32.totalorder %s13228_s9, %s13228_s9 }
  0x1e   :  { %p13235_p3 = por %p13234_p2, %p13233_p1 }
  0x20   :  { %p13236_p4 = pnand %p13235_p3, %p13229_p0 }
  0x22   :  { %13239 = shalt.err (!%p13236_p4)
}
  0x23   :  { %s13666_s5 = smov 128   ;;  %s13667_s28 = smov 8  }
  0x24   :  { %s15394_s29 = sld [smem:[#allocation49_spill]]  ;;  %s13248_s1 = scalar_lea.vmem %s88_s30, 32 }
  0x25   :  { %p13249_p5 = scmp.ne.s32.totalorder %s88_s30, %s13248_s1  ;;  %p13253_p6 = scmp.lt.s32.totalorder %s88_s30, %s88_s30 }
  0x26   :  { %p13254_p7 = scmp.lt.s32.totalorder %s13248_s1, %s13248_s1 }
  0x28   :  { %p13255_p8 = por %p13254_p7, %p13253_p6 }
  0x2a   :  { %70 = dma.hbm_to_vmem [thread:$0]  %s15394_s29, 3072, %s65_s4, [#allocation6], %s13666_s5, %s13666_s5, %s13667_s28  }
  0x2b   :  { %p13256_p9 = pnand %p13255_p8, %p13249_p5 }
  0x2d   :  { %13259 = shalt.err (!%p13256_p9)
}
  0x2e   :  { %s15395_s2 = sld [smem:[#allocation51_spill]]  ;;  %s13668_s3 = smov [#allocation11]  }
  0x2f   :  { %s108_s7 = sshll.u32 %s13668_s3, 4  ;;  %s13669_s8 = smov [#allocation14]   ;;  %s109_s7 = int_to_ptr.vmem [resolvable:$true] %s108_s7 }
  0x30   :  { %s133_s9 = sshll.u32 %s13669_s8, 4  ;;  %s13268_s26 = scalar_lea.vmem %s109_s7, 768  ;;  %s134_s9 = int_to_ptr.vmem [resolvable:$true] %s133_s9 }
  0x31   :  { %p13269_p10 = scmp.ne.s32.totalorder %s109_s7, %s13268_s26  ;;  %p13273_p11 = scmp.lt.s32.totalorder %s109_s7, %s109_s7 }
  0x32   :  { %p13274_p12 = scmp.lt.s32.totalorder %s13268_s26, %s13268_s26 }
  0x34   :  { %90 = dma.hbm_to_vmem [thread:$0]  %s15395_s2, 32, %s88_s30, [#allocation9]  }
  0x35   :  { %p13275_p13 = por %p13274_p12, %p13273_p11 }
  0x37   :  { %p13276_p0 = pnand %p13275_p13, %p13269_p10 }
  0x39   :  { %13279 = shalt.err (!%p13276_p0)
}
  0x3a   :  { %s15396_s10 = sld [smem:[#allocation53_spill]]  ;;  %s13288_s30 = scalar_lea.vmem %s134_s9, 16 }
  0x3b   :  { %p13289_p1 = scmp.ne.s32.totalorder %s134_s9, %s13288_s30  ;;  %s13292_s29 = scalar_lea.vmem %s134_s9, 32 }
  0x3c   :  { %p13293_p2 = scmp.lt.s32.totalorder %s134_s9, %s134_s9  ;;  %p13294_p3 = scmp.lt.s32.totalorder %s13292_s29, %s13288_s30 }
  0x3e   :  { %p13295_p4 = por %p13294_p3, %p13293_p2 }
  0x40   :  { %114 = dma.hbm_to_vmem [thread:$0]  %s15396_s10, 768, %s109_s7, [#allocation12], %s13666_s5, %s13666_s5, %s13667_s28  }
  0x41   :  { %p13296_p5 = pnand %p13295_p4, %p13289_p1 }
  0x43   :  { %13299 = shalt.err (!%p13296_p5)
}
  0x44   :  { %s15397_s6 = sld [smem:[#allocation55_spill]]  ;;  %s13670_s11 = smov [#allocation17]  }
  0x45   :  { %s155_s2 = sshll.u32 %s13670_s11, 4  ;;  %s13671_s3 = smov [#allocation20]   ;;  %s156_s2 = int_to_ptr.vmem [resolvable:$true] %s155_s2 }
  0x46   :  { %s174_s8 = sshll.u32 %s13671_s3, 4  ;;  %s13308_s4 = scalar_lea.vmem %s156_s2, 64  ;;  %s175_s8 = int_to_ptr.vmem [resolvable:$true] %s174_s8 }
  0x47   :  { %p13309_p6 = scmp.ne.s32.totalorder %s156_s2, %s13308_s4  ;;  %p13313_p7 = scmp.lt.s32.totalorder %s156_s2, %s156_s2 }
  0x48   :  { %p13314_p8 = scmp.lt.s32.totalorder %s13308_s4, %s13308_s4 }
  0x4a   :  { %136 = dma.hbm_to_vmem [thread:$0]  %s15397_s6, 16, %s134_s9, [#allocation15]  }
  0x4b   :  { %p13315_p9 = por %p13314_p8, %p13313_p7 }
  0x4d   :  { %p13316_p10 = pnand %p13315_p9, %p13309_p6 }
  0x4f   :  { %13319 = shalt.err (!%p13316_p10)
}
  0x50   :  { %s15398_s10 = sld [smem:[#allocation57_spill]]  ;;  %s13328_s30 = scalar_lea.vmem %s175_s8, 512 }
  0x51   :  { %p13329_p11 = scmp.ne.s32.totalorder %s175_s8, %s13328_s30  ;;  %p13333_p12 = scmp.lt.s32.totalorder %s175_s8, %s175_s8 }
  0x52   :  { %p13334_p13 = scmp.lt.s32.totalorder %s13328_s30, %s13328_s30 }
  0x54   :  { %p13335_p0 = por %p13334_p13, %p13333_p12 }
  0x56   :  { %158 = dma.hbm_to_vmem [thread:$0]  %s15398_s10, 64, %s156_s2, [#allocation18]  }
  0x57   :  { %p13336_p1 = pnand %p13335_p0, %p13329_p11 }
  0x59   :  { %13339 = shalt.err (!%p13336_p1)
}
  0x5a   :  { %180 = dma.hbm_to_vmem [thread:$0]  %s15363_s12, 512, %s175_s8, [#allocation21], %s13666_s5, %s13666_s5, %s13667_s28  }
  0x5b   :  { %s13672_s1 = smov [#allocation23]   ;;  %s13673_s6 = smov [#allocation26]  }
  0x5c   :  { %s201_s26 = sshll.u32 %s13672_s1, 4  ;;  %s222_s11 = sshll.u32 %s13673_s6, 4  ;;  %s202_s26 = int_to_ptr.vmem [resolvable:$true] %s201_s26  ;;  %s223_s11 = int_to_ptr.vmem [resolvable:$true] %s222_s11 }
  0x5d   :  { %s13348_s2 = scalar_lea.vmem %s202_s26, 128  ;;  %p13353_p3 = scmp.lt.s32.totalorder %s202_s26, %s202_s26 }
  0x5e   :  { %p13349_p2 = scmp.ne.s32.totalorder %s202_s26, %s13348_s2  ;;  %p13354_p4 = scmp.lt.s32.totalorder %s13348_s2, %s13348_s2 }
  0x60   :  { %p13355_p5 = por %p13354_p4, %p13353_p3 }
  0x62   :  { %p13356_p6 = pnand %p13355_p5, %p13349_p2 }
  0x64   :  { %13359 = shalt.err (!%p13356_p6)
}
  0x65   :  { %204 = dma.hbm_to_vmem [thread:$0]  %s15366_s15, 128, %s202_s26, [#allocation24]  }
  0x66   :  { %s13368_s7 = scalar_lea.vmem %s223_s11, 256  ;;  %p13373_p8 = scmp.lt.s32.totalorder %s223_s11, %s223_s11 }
  0x67   :  { %p13369_p7 = scmp.ne.s32.totalorder %s223_s11, %s13368_s7  ;;  %p13374_p9 = scmp.lt.s32.totalorder %s13368_s7, %s13368_s7 }
  0x69   :  { %p13375_p10 = por %p13374_p9, %p13373_p8 }
  0x6b   :  { %p13376_p11 = pnand %p13375_p10, %p13369_p7 }
  0x6d   :  { %13379 = shalt.err (!%p13376_p11)
}
  0x6e   :  { %s13674_s12 = smov 32   ;;  %s13675_s8 = smov 2  }
  0x6f   :  { %228 = dma.hbm_to_vmem [thread:$0]  %s15369_s18, 256, %s223_s11, [#allocation27], %s13674_s12, %s13674_s12, %s13675_s8  }
  0x70   :  { %s13676_s30 = smov [#allocation29]   ;;  %s13677_s29 = smov [#allocation2]  }
  0x71   :  { %s249_s9 = sshll.u32 %s13676_s30, 4  ;;  %s52_s15 = sshll.u32 %s13677_s29, 4  ;;  %s250_s9 = int_to_ptr.vmem [resolvable:$true] %s249_s9  ;;  %s53_s15 = int_to_ptr.vmem [resolvable:$true] %s52_s15 }
  0x72   :  { %s13388_s1 = scalar_lea.vmem %s250_s9, 16  ;;  %s13392_s26 = scalar_lea.vmem %s250_s9, 32 }
  0x73   :  { %p13389_p12 = scmp.ne.s32.totalorder %s250_s9, %s13388_s1  ;;  %p13393_p13 = scmp.lt.s32.totalorder %s250_s9, %s250_s9 }
  0x74   :  { %p13394_p0 = scmp.lt.s32.totalorder %s13392_s26, %s13388_s1 }
  0x76   :  { %p13395_p1 = por %p13394_p0, %p13393_p13 }
  0x78   :  { %p13396_p2 = pnand %p13395_p1, %p13389_p12 }
  0x7a   :  { %13399 = shalt.err (!%p13396_p2)
}
  0x7b   :  { %252 = dma.hbm_to_vmem [thread:$0]  %s15372_s21, 16, %s250_s9, [#allocation30]  }
  0x7c   :  { %s13408_s3 = scalar_lea.vmem %s53_s15, 1536  ;;  %p13413_p4 = scmp.lt.s32.totalorder %s53_s15, %s53_s15 }
  0x7d   :  { %p13409_p3 = scmp.ne.s32.totalorder %s53_s15, %s13408_s3  ;;  %p13414_p5 = scmp.lt.s32.totalorder %s13408_s3, %s13408_s3 }
  0x7f   :  { %p13415_p6 = por %p13414_p5, %p13413_p4 }
  0x81   :  { %p13416_p7 = pnand %p13415_p6, %p13409_p3 }
  0x83   :  { %13419 = shalt.err (!%p13416_p7)
}
  0x84   :  { %s15399_s4 = sld [smem:[#allocation48_spill]]  ;;  %s13678_s7 = smov [#allocation7]  }
  0x85   :  { %s77_s8 = sshll.u32 %s13678_s7, 4  ;;  %s13679_s0 = smov [#allocation10]   ;;  %s78_s8 = int_to_ptr.vmem [resolvable:$true] %s77_s8 }
  0x86   :  { %s96_s10 = sshll.u32 %s13679_s0, 4  ;;  %s13428_s21 = scalar_lea.vmem %s78_s8, 16  ;;  %s97_s10 = int_to_ptr.vmem [resolvable:$true] %s96_s10 }
  0x87   :  { %p13429_p8 = scmp.ne.s32.totalorder %s78_s8, %s13428_s21  ;;  %s13432_s30 = scalar_lea.vmem %s78_s8, 32 }
  0x88   :  { %p13433_p9 = scmp.lt.s32.totalorder %s78_s8, %s78_s8  ;;  %p13434_p10 = scmp.lt.s32.totalorder %s13432_s30, %s13428_s21 }
  0x8a   :  { %58 = dma.hbm_to_vmem [thread:$0]  %s15399_s4, 1536, %s53_s15, [#allocation3], %s13666_s5, %s13666_s5, %s13667_s28  }
  0x8b   :  { %p13435_p11 = por %p13434_p10, %p13433_p9 }
  0x8d   :  { %p13436_p12 = pnand %p13435_p11, %p13429_p8 }
  0x8f   :  { %13439 = shalt.err (!%p13436_p12)
}
  0x90   :  { %s15400_s1 = sld [smem:[#allocation50_spill]]  ;;  %s13448_s26 = scalar_lea.vmem %s97_s10, 2048 }
  0x91   :  { %p13449_p13 = scmp.ne.s32.totalorder %s97_s10, %s13448_s26  ;;  %p13453_p0 = scmp.lt.s32.totalorder %s97_s10, %s97_s10 }
  0x92   :  { %p13454_p1 = scmp.lt.s32.totalorder %s13448_s26, %s13448_s26 }
  0x94   :  { %p13455_p2 = por %p13454_p1, %p13453_p0 }
  0x96   :  { %80 = dma.hbm_to_vmem [thread:$0]  %s15400_s1, 16, %s78_s8, [#allocation6]  }
  0x97   :  { %p13456_p3 = pnand %p13455_p2, %p13449_p13 }
  0x99   :  { %13459 = shalt.err (!%p13456_p3)
}
  0x9a   :  { %s15401_s2 = sld [smem:[#allocation52_spill]]  ;;  %s13680_s3 = smov [#allocation13]  }
  0x9b   :  { %s120_s18 = sshll.u32 %s13680_s3, 4  ;;  %s13681_s11 = smov [#allocation16]   ;;  %s121_s18 = int_to_ptr.vmem [resolvable:$true] %s120_s18 }
  0x9c   :  { %s142_s4 = sshll.u32 %s13681_s11, 4  ;;  %s13468_s7 = scalar_lea.vmem %s121_s18, 6144  ;;  %s143_s4 = int_to_ptr.vmem [resolvable:$true] %s142_s4 }
  0x9d   :  { %p13469_p4 = scmp.ne.s32.totalorder %s121_s18, %s13468_s7  ;;  %p13473_p5 = scmp.lt.s32.totalorder %s121_s18, %s121_s18 }
  0x9e   :  { %p13474_p6 = scmp.lt.s32.totalorder %s13468_s7, %s13468_s7 }
  0xa0   :  { %102 = dma.hbm_to_vmem [thread:$0]  %s15401_s2, 2048, %s97_s10, [#allocation9], %s13666_s5, %s13666_s5, %s13667_s28  }
  0xa1   :  { %p13475_p7 = por %p13474_p6, %p13473_p5 }
  0xa3   :  { %p13476_p8 = pnand %p13475_p7, %p13469_p4 }
  0xa5   :  { %13479 = shalt.err (!%p13476_p8)
}
  0xa6   :  { %s15402_s21 = sld [smem:[#allocation54_spill]]  ;;  %s13488_s10 = scalar_lea.vmem %s143_s4, 65536 }
  0xa7   :  { %p13489_p9 = scmp.ne.s32.totalorder %s143_s4, %s13488_s10  ;;  %p13493_p10 = scmp.lt.s32.totalorder %s143_s4, %s143_s4 }
  0xa8   :  { %p13494_p11 = scmp.lt.s32.totalorder %s13488_s10, %s13488_s10 }
  0xaa   :  { %p13495_p12 = por %p13494_p11, %p13493_p10 }
  0xac   :  { %126 = dma.hbm_to_vmem [thread:$0]  %s15402_s21, 6144, %s121_s18, [#allocation12], %s13666_s5, %s13666_s5, %s13667_s28  }
  0xad   :  { %p13496_p13 = pnand %p13495_p12, %p13489_p9 }
  0xaf   :  { %13499 = shalt.err (!%p13496_p13)
}
  0xb0   :  { %s13682_s30 = smov 512   ;;  %s15403_s1 = sld [smem:[#allocation56_spill]] }
  0xb1   :  { %s13683_s26 = smov [#allocation19]   ;;  %s13684_s6 = smov [#allocation22]  }
  0xb2   :  { %s165_s15 = sshll.u32 %s13683_s26, 4  ;;  %s188_s2 = sshll.u32 %s13684_s6, 4  ;;  %s166_s15 = int_to_ptr.vmem [resolvable:$true] %s165_s15  ;;  %s189_s2 = int_to_ptr.vmem [resolvable:$true] %s188_s2 }
  0xb3   :  { %s13508_s3 = scalar_lea.vmem %s166_s15, 128  ;;  %p13513_p1 = scmp.lt.s32.totalorder %s166_s15, %s166_s15 }
  0xb4   :  { %p13509_p0 = scmp.ne.s32.totalorder %s166_s15, %s13508_s3  ;;  %p13514_p2 = scmp.lt.s32.totalorder %s13508_s3, %s13508_s3 }
  0xb6   :  { %148 = dma.hbm_to_vmem [thread:$0]  %s15403_s1, 65536, %s143_s4, [#allocation15], %s13682_s30, %s13682_s30, %s13674_s12  }
  0xb7   :  { %p13515_p3 = por %p13514_p2, %p13513_p1 }
  0xb9   :  { %p13516_p4 = pnand %p13515_p3, %p13509_p0 }
  0xbb   :  { %13519 = shalt.err (!%p13516_p4)
}
  0xbc   :  { %s15404_s7 = sld [smem:[#allocation58_spill]]  ;;  %s13528_s8 = scalar_lea.vmem %s189_s2, 65536 }
  0xbd   :  { %p13529_p5 = scmp.ne.s32.totalorder %s189_s2, %s13528_s8  ;;  %p13533_p6 = scmp.lt.s32.totalorder %s189_s2, %s189_s2 }
  0xbe   :  { %p13534_p7 = scmp.lt.s32.totalorder %s13528_s8, %s13528_s8 }
  0xc0   :  { %p13535_p8 = por %p13534_p7, %p13533_p6 }
  0xc2   :  { %168 = dma.hbm_to_vmem [thread:$0]  %s15404_s7, 128, %s166_s15, [#allocation18]  }
  0xc3   :  { %p13536_p9 = pnand %p13535_p8, %p13529_p5 }
  0xc5   :  { %13539 = shalt.err (!%p13536_p9)
}
  0xc6   :  { %s13685_s12 = smov 1024   ;;  %s13686_s4 = smov 64  }
  0xc7   :  { %194 = dma.hbm_to_vmem [thread:$0]  %s15365_s14, 65536, %s189_s2, [#allocation21], %s13685_s12, %s13685_s12, %s13686_s4  }
  0xc8   :  { %s13687_s10 = smov [#allocation25]   ;;  %s13688_s9 = smov [#allocation28]  }
  0xc9   :  { %s211_s30 = sshll.u32 %s13687_s10, 4  ;;  %s236_s29 = sshll.u32 %s13688_s9, 4  ;;  %s212_s30 = int_to_ptr.vmem [resolvable:$true] %s211_s30  ;;  %s237_s29 = int_to_ptr.vmem [resolvable:$true] %s236_s29 }
  0xca   :  { %s13548_s1 = scalar_lea.vmem %s212_s30, 256  ;;  %p13553_p11 = scmp.lt.s32.totalorder %s212_s30, %s212_s30 }
  0xcb   :  { %p13549_p10 = scmp.ne.s32.totalorder %s212_s30, %s13548_s1  ;;  %p13554_p12 = scmp.lt.s32.totalorder %s13548_s1, %s13548_s1 }
  0xcd   :  { %p13555_p13 = por %p13554_p12, %p13553_p11 }
  0xcf   :  { %p13556_p0 = pnand %p13555_p13, %p13549_p10 }
  0xd1   :  { %13559 = shalt.err (!%p13556_p0)
}
  0xd2   :  { %214 = dma.hbm_to_vmem [thread:$0]  %s15367_s16, 256, %s212_s30, [#allocation24]  }
  0xd3   :  { %s13568_s6 = scalar_lea.vmem %s237_s29, 6144  ;;  %p13573_p2 = scmp.lt.s32.totalorder %s237_s29, %s237_s29 }
  0xd4   :  { %p13569_p1 = scmp.ne.s32.totalorder %s237_s29, %s13568_s6  ;;  %p13574_p3 = scmp.lt.s32.totalorder %s13568_s6, %s13568_s6 }
  0xd6   :  { %p13575_p4 = por %p13574_p3, %p13573_p2 }
  0xd8   :  { %p13576_p5 = pnand %p13575_p4, %p13569_p1 }
  0xda   :  { %13579 = shalt.err (!%p13576_p5)
}
  0xdb   :  { %242 = dma.hbm_to_vmem [thread:$0]  %s15371_s20, 6144, %s237_s29, [#allocation27], %s13666_s5, %s13666_s5, %s13667_s28  }
  0xdc   :  { %s13689_s3 = smov [#allocation31]   ;;  %s13690_s11 = smov [#allocation32]  }
  0xdd   :  { %s259_s18 = sshll.u32 %s13689_s3, 4  ;;  %s273_s16 = sshll.u32 %s13690_s11, 4  ;;  %s260_s18 = int_to_ptr.vmem [resolvable:$true] %s259_s18  ;;  %s274_s16 = int_to_ptr.vmem [resolvable:$true] %s273_s16 }
  0xde   :  { %s13588_s7 = scalar_lea.vmem %s260_s18, 32  ;;  %p13593_p7 = scmp.lt.s32.totalorder %s260_s18, %s260_s18 }
  0xdf   :  { %p13589_p6 = scmp.ne.s32.totalorder %s260_s18, %s13588_s7  ;;  %p13594_p8 = scmp.lt.s32.totalorder %s13588_s7, %s13588_s7 }
  0xe1   :  { %p13595_p9 = por %p13594_p8, %p13593_p7 }
  0xe3   :  { %p13596_p10 = pnand %p13595_p9, %p13589_p6 }
  0xe5   :  { %13599 = shalt.err (!%p13596_p10)
}
  0xe6   :  { %262 = dma.hbm_to_vmem [thread:$0]  %s15373_s22, 32, %s260_s18, [#allocation30]  }
  0xe7   :  { %s13608_s0 = scalar_lea.vmem %s274_s16, 16  ;;  %s13612_s20 = scalar_lea.vmem %s274_s16, 32 }
  0xe8   :  { %p13609_p11 = scmp.ne.s32.totalorder %s274_s16, %s13608_s0  ;;  %p13613_p12 = scmp.lt.s32.totalorder %s274_s16, %s274_s16 }
  0xe9   :  { %p13614_p13 = scmp.lt.s32.totalorder %s13612_s20, %s13608_s0 }
  0xeb   :  { %p13615_p0 = por %p13614_p13, %p13613_p12 }
  0xed   :  { %p13616_p1 = pnand %p13615_p0, %p13609_p11 }
  0xef   :  { %13619 = shalt.err (!%p13616_p1)
}
  0xf0   :  { %276 = dma.hbm_to_vmem [thread:$0]  %s15376_s25, 16, %s274_s16, [#allocation33]  }
  0xf1   :  { %13640 = dma.done.wait [#allocation3], 1536  }
  0xf2   :  { %13641 = vsyncadd [#allocation3], 4294965760 }
  0xf3   :  { %13642 = dma.done.wait [#allocation6], 3088  }
  0xf4   :  { %13643 = vsyncadd [#allocation6], 4294964208 }
  0xf5   :  { %13644 = dma.done.wait [#allocation9], 2080  }
  0xf6   :  { %13645 = vsyncadd [#allocation9], 4294965216 }
  0xf7   :  { %13646 = dma.done.wait [#allocation12], 6912  }
  0xf8   :  { %13647 = vsyncadd [#allocation12], 4294960384 }
  0xf9   :  { %13648 = dma.done.wait [#allocation15], 65552  }
  0xfa   :  { %13649 = vsyncadd [#allocation15], 4294901744 }
  0xfb   :  { %13650 = dma.done.wait [#allocation18], 192  }
  0xfc   :  { %13651 = vsyncadd [#allocation18], 4294967104 }
  0xfd   :  { %13652 = dma.done.wait [#allocation21], 66048  }
  0xfe   :  { %13653 = vsyncadd [#allocation21], 4294901248 }
  0xff   :  { %13654 = dma.done.wait [#allocation24], 384  }
 0x100   :  { %13655 = vsyncadd [#allocation24], 4294966912 }
 0x101   :  { %13656 = dma.done.wait [#allocation27], 6400  }
 0x102   :  { %13657 = vsyncadd [#allocation27], 4294960896 }
 0x103   :  { %13658 = dma.done.wait [#allocation30], 48  }
 0x104   :  { %13659 = vsyncadd [#allocation30], 4294967248 }
 0x105   :  { %13660 = dma.done.wait [#allocation33], 16  }
 0x106   :  { %13661 = vsyncadd [#allocation33], 4294967280  ;;  %v369_v0 = vld [vmem:[#allocation5 + $0x38] sm:$0xff]  ;;  %v368_v2 = vld [vmem:[#allocation5 + $0x30] sm:$0xff]  ;;  %s15405_s21 = sld [smem:[#allocation47_spill]]  ;;  %vm370_vm0 = vcmask 523264  }
 0x107   :  { %v512_v1 = vld [vmem:[#allocation5 + $0x78] sm:$0xff]  ;;  %12146 = vmatprep.subr.mxu0 %v369_v0  ;;  %v511_v3 = vld [vmem:[#allocation5 + $0x70] sm:$0xff]  ;;  %v367_v4 = vld [vmem:[#allocation5 + $0x28] sm:$0xff]  ;;  %v13691_v58 = vmov 0.0   ;;  %vm13692_vm1 = vmmov 0   ;;  %vm1459_vm2 = vcmask 261120  }
 0x108   :  { %12174 = vmatprep.subr.mxu1 %v512_v1  ;;  %12147 = vmatpush3.msra.mxu0 %v369_v0  ;;  %v510_v5 = vld [vmem:[#allocation5 + $0x68] sm:$0xff]  ;;  %v366_v6 = vld [vmem:[#allocation5 + $0x20] sm:$0xff]  ;;  %v365_v8 = vld [vmem:[#allocation5 + $0x18] sm:$0xff]  ;;  %vm1819_vm3 = vcmask 130048   ;;  %vm4126_vm4 = vcmask 1041408   ;;  %vm4269_vm5 = vcmask 15360  }
 0x109   :  { %12175 = vmatpush3.msra.mxu1 %v512_v1  ;;  %12148 = vmatprep.subr.mxu0 %v368_v2  ;;  %v509_v7 = vld [vmem:[#allocation5 + $0x60] sm:$0xff]  ;;  %v508_v9 = vld [vmem:[#allocation5 + $0x58] sm:$0xff]  ;;  %v364_v10 = vld [vmem:[#allocation5 + $0x10] sm:$0xff]  ;;  %vm5256_vm12 = vcmask 0   ;;  %s13693_s8 = smov [#allocation34]  }
 0x10a   :  { %12176 = vmatprep.subr.mxu1 %v511_v3  ;;  %12149 = vmatpush3.msra.mxu0 %v368_v2  ;;  %v507_v11 = vld [vmem:[#allocation5 + $0x50] sm:$0xff]  ;;  %v363_v12 = vld [vmem:[#allocation5 + $0x8] sm:$0xff]  ;;  %v362_v14 = vld [vmem:[#allocation5] sm:$0xff]  ;;  %s11335_s12 = sshll.u32 %s13693_s8, 4  ;;  %s11336_s12 = int_to_ptr.vmem [resolvable:$true] %s11335_s12 }
 0x10b   :  { %12177 = vmatpush3.msra.mxu1 %v511_v3  ;;  %12150 = vmatprep.subr.mxu0 %v367_v4  ;;  %v506_v13 = vld [vmem:[#allocation5 + $0x48] sm:$0xff]  ;;  %v505_v15 = vld [vmem:[#allocation5 + $0x40] sm:$0xff]  ;;  %v825_v44 = vld [vmem:[#allocation5 + $0xb8] sm:$0xff]  ;;  %s13624_s0 = scalar_lea.vmem %s11336_s12, 32  ;;  %p13625_p3 = scmp.lt.s32.totalorder %s11336_s12, %s11336_s12 }
 0x10c   :  { %12178 = vmatprep.subr.mxu1 %v510_v5  ;;  %12151 = vmatpush3.msra.mxu0 %v367_v4  ;;  %v13922_v16 = vld [vmem:[%s15405_s21] sm:$0xff]  ;;  %v13927_v17 = vld [vmem:[%s15405_s21 + $0x8] sm:$0xff]  ;;  %v13934_v18 = vld [vmem:[%s15405_s21 + $0x10] sm:$0xff] }
 0x10d   :  { %12179 = vmatpush3.msra.mxu1 %v510_v5  ;;  %12152 = vmatprep.subr.mxu0 %v366_v6  ;;  %v13949_v19 = vld [vmem:[%s15405_s21 + $0x18] sm:$0xff]  ;;  %v13954_v20 = vld [vmem:[%s15405_s21 + $0x20] sm:$0xff]  ;;  %v13967_v21 = vld [vmem:[%s15405_s21 + $0x28] sm:$0xff] }
 0x10e   :  { %12180 = vmatprep.subr.mxu1 %v509_v7  ;;  %12153 = vmatpush3.msra.mxu0 %v366_v6  ;;  %v13972_v22 = vld [vmem:[%s15405_s21 + $0x30] sm:$0xff]  ;;  %v13985_v23 = vld [vmem:[%s15405_s21 + $0x38] sm:$0xff]  ;;  %v619_v24 = vld [vmem:[#allocation2 + $0x20] sm:$0xff] }
 0x10f   :  { %12181 = vmatpush3.msra.mxu1 %v509_v7  ;;  %12154 = vmatprep.subr.mxu0 %v365_v8  ;;  %v500_v25 = vld [vmem:[#allocation2] sm:$0xff]  ;;  %v620_v42 = vld [vmem:[#allocation2 + $0x28] sm:$0xff]  ;;  %v621_v45 = vld [vmem:[#allocation2 + $0x30] sm:$0xff] }
 0x110   :  { %12182 = vmatprep.subr.mxu1 %v508_v9  ;;  %12155 = vmatpush3.msra.mxu0 %v365_v8  ;;  %v501_v43 = vld [vmem:[#allocation2 + $0x8] sm:$0xff]  ;;  %v502_v46 = vld [vmem:[#allocation2 + $0x10] sm:$0xff]  ;;  %v503_v48 = vld [vmem:[#allocation2 + $0x18] sm:$0xff] }
 0x111   :  { %12183 = vmatpush3.msra.mxu1 %v508_v9  ;;  %12156 = vmatprep.subr.mxu0 %v364_v10  ;;  %v824_v47 = vld [vmem:[#allocation5 + $0xb0] sm:$0xff]  ;;  %v823_v49 = vld [vmem:[#allocation5 + $0xa8] sm:$0xff]  ;;  %v622_v50 = vld [vmem:[#allocation2 + $0x38] sm:$0xff] }
 0x112   :  { %12184 = vmatprep.subr.mxu1 %v507_v11  ;;  %12157 = vmatpush3.msra.mxu0 %v364_v10  ;;  %v822_v51 = vld [vmem:[#allocation5 + $0xa0] sm:$0xff]  ;;  %v821_v52 = vld [vmem:[#allocation5 + $0x98] sm:$0xff]  ;;  %v820_v53 = vld [vmem:[#allocation5 + $0x90] sm:$0xff] }
 0x113   :  { %12185 = vmatpush3.msra.mxu1 %v507_v11  ;;  %12158 = vmatprep.subr.mxu0 %v363_v12  ;;  %v819_v54 = vld [vmem:[#allocation5 + $0x88] sm:$0xff]  ;;  %v818_v55 = vld [vmem:[#allocation5 + $0x80] sm:$0xff]  ;;  %v934_v8 = vld [vmem:[#allocation2 + $0x50] sm:$0xff] }
 0x114   :  { %12186 = vmatprep.subr.mxu1 %v506_v13  ;;  %12159 = vmatpush3.msra.mxu0 %v363_v12  ;;  %v932_v56 = vld [vmem:[#allocation2 + $0x40] sm:$0xff]  ;;  %v933_v7 = vld [vmem:[#allocation2 + $0x48] sm:$0xff]  ;;  %v935_v9 = vld [vmem:[#allocation2 + $0x58] sm:$0xff] }
 0x115   :  { %12187 = vmatpush3.msra.mxu1 %v506_v13  ;;  %12160 = vmatprep.subr.mxu0 %v362_v14  ;;  %v352_v57 = vld [vmem:[#allocation10 + $0x78] sm:$0xff]  ;;  %v351_v10 = vld [vmem:[#allocation10 + $0x70] sm:$0xff]  ;;  %v350_v11 = vld [vmem:[#allocation10 + $0x68] sm:$0xff] }
 0x116   :  { %12188 = vmatprep.subr.mxu1 %v505_v15  ;;  %12161 = vmatpush3.msra.mxu0 %v362_v14  ;;  %v349_v12 = vld [vmem:[#allocation10 + $0x60] sm:$0xff]  ;;  %v348_v13 = vld [vmem:[#allocation10 + $0x58] sm:$0xff]  ;;  %v347_v14 = vld [vmem:[#allocation10 + $0x50] sm:$0xff] }
 0x117   :  { %12162 = vmatprep.mubr.msk.f32.mxu0 %vm370_vm0, %v13922_v16  ;;  %12189 = vmatpush3.msra.mxu1 %v505_v15  ;;  %v346_v15 = vld [vmem:[#allocation10 + $0x48] sm:$0xff] }
 0x118   :  { %12190 = vmatprep.mubr.msk.f32.mxu1 %vm370_vm0, %v13922_v16  ;;  %12163 = vmatmul.mubr.msk.f32.vlgmr.msra.gmra.mxu0 %vm370_vm0, %v13927_v17 }
 0x119   :  { %12191 = vmatmul.mubr.msk.f32.vlgmr.msra.gmra.mxu1 %vm370_vm0, %v13927_v17  ;;  %12165 = vmatprep.mubr.msk.f32.mxu0 %vm370_vm0, %v13934_v18 }
 0x11a   :  { %12193 = vmatprep.mubr.msk.f32.mxu1 %vm370_vm0, %v13934_v18 }
 0x11c   :  { %12166 = vmatmul.mubr.msk.f32.gmra.mxu0 %vm370_vm0, %v13949_v19 }
 0x11d   :  { %12194 = vmatmul.mubr.msk.f32.gmra.mxu1 %vm370_vm0, %v13949_v19  ;;  %12168 = vmatprep.mubr.msk.f32.mxu0 %vm370_vm0, %v13954_v20 }
 0x11e   :  { %12196 = vmatprep.mubr.msk.f32.mxu1 %vm370_vm0, %v13954_v20 }
 0x120   :  { %12169 = vmatmul.mubr.msk.f32.gmra.mxu0 %vm370_vm0, %v13967_v21 }
 0x121   :  { %12197 = vmatmul.mubr.msk.f32.gmra.mxu1 %vm370_vm0, %v13967_v21  ;;  %12171 = vmatprep.mubr.msk.f32.mxu0 %vm370_vm0, %v13972_v22 }
 0x122   :  { %12199 = vmatprep.mubr.msk.f32.mxu1 %vm370_vm0, %v13972_v22 }
 0x124   :  { %12172 = vmatmul.mubr.msk.f32.gmra.mxu0 %vm370_vm0, %v13985_v23 }
 0x125   :  { %12200 = vmatmul.mubr.msk.f32.gmra.mxu1 %vm370_vm0, %v13985_v23  ;;  %12218 = vmatprep.mubr.msk.f32.mxu0 %vm370_vm0, %v619_v24  ;;  %v337_v24 = vld [vmem:[#allocation10] sm:$0xff] }
 0x126   :  { %12240 = vmatprep.mubr.msk.f32.mxu1 %vm370_vm0, %v500_v25 }
 0x1d8   :  { %v12164_v26 = vpop.f32.mrf.mxu0 }
 0x1d9   :  { %v12192_v27 = vpop.f32.mrf.mxu1 }
 0x1da   :  { %v461_v28 = vpop.f32.mrf.mxu0 }
 0x1db   :  { %v579_v29 = vpop.f32.mrf.mxu1 }
 0x1dc   :  { %v12167_v30 = vpop.f32.mrf.mxu0 }
 0x1dd   :  { %v12195_v31 = vpop.f32.mrf.mxu1 }
 0x1de   :  { %v471_v32 = vpop.f32.mrf.mxu0 }
 0x1df   :  { %v589_v33 = vpop.f32.mrf.mxu1 }
 0x1e0   :  { %v12170_v34 = vpop.f32.mrf.mxu0 }
 0x1e1   :  { %v12198_v35 = vpop.f32.mrf.mxu1 }
 0x1e2   :  { %v481_v36 = vpop.f32.mrf.mxu0 }
 0x1e3   :  { %v599_v37 = vpop.f32.mrf.mxu1 }
 0x1e4   :  { %v12173_v38 = vpop.f32.mrf.mxu0 }
 0x1e5   :  { %v12201_v39 = vpop.f32.mrf.mxu1  ;;  %12224 = vmatprep.subr.mxu1 %v12173_v38 }
 0x1e6   :  { %12202 = vmatprep.subr.mxu0 %v12201_v39  ;;  %v491_v40 = vpop.f32.mrf.mxu0  ;;  %12225 = vmatpush3.msra.mxu1 %v12173_v38 }
 0x1e7   :  { %v609_v41 = vpop.f32.mrf.mxu1  ;;  %12203 = vmatpush3.msra.mxu0 %v12201_v39  ;;  %12226 = vmatprep.subr.mxu1 %v491_v40 }
 0x1e8   :  { %12204 = vmatprep.subr.mxu0 %v609_v41  ;;  %12227 = vmatpush3.msra.mxu1 %v491_v40 }
 0x1e9   :  { %12205 = vmatpush3.msra.mxu0 %v609_v41  ;;  %12228 = vmatprep.subr.mxu1 %v12170_v34 }
 0x1ea   :  { %12206 = vmatprep.subr.mxu0 %v12198_v35  ;;  %12229 = vmatpush3.msra.mxu1 %v12170_v34 }
 0x1eb   :  { %12207 = vmatpush3.msra.mxu0 %v12198_v35  ;;  %12230 = vmatprep.subr.mxu1 %v481_v36  ;;  %v11392_v35 = vld [vmem:[#allocation7] ss:$0 sm:$0xff] }
 0x1ec   :  { %12208 = vmatprep.subr.mxu0 %v599_v37  ;;  %12231 = vmatpush3.msra.mxu1 %v481_v36 }
 0x1ed   :  { %12209 = vmatpush3.msra.mxu0 %v599_v37  ;;  %12232 = vmatprep.subr.mxu1 %v12167_v30 }
 0x1ee   :  { %12210 = vmatprep.subr.mxu0 %v12195_v31  ;;  %12233 = vmatpush3.msra.mxu1 %v12167_v30 }
 0x1ef   :  { %12211 = vmatpush3.msra.mxu0 %v12195_v31  ;;  %12234 = vmatprep.subr.mxu1 %v471_v32 }
 0x1f0   :  { %12212 = vmatprep.subr.mxu0 %v589_v33  ;;  %12235 = vmatpush3.msra.mxu1 %v471_v32 }
 0x1f1   :  { %12213 = vmatpush3.msra.mxu0 %v589_v33  ;;  %12236 = vmatprep.subr.mxu1 %v12164_v26 }
 0x1f2   :  { %12214 = vmatprep.subr.mxu0 %v12192_v27  ;;  %12237 = vmatpush3.msra.mxu1 %v12164_v26 }
 0x1f3   :  { %12215 = vmatpush3.msra.mxu0 %v12192_v27  ;;  %12238 = vmatprep.subr.mxu1 %v461_v28 }
 0x1f4   :  { %12216 = vmatprep.subr.mxu0 %v579_v29  ;;  %12239 = vmatpush3.msra.mxu1 %v461_v28 }
 0x1f5   :  { %12217 = vmatpush3.msra.mxu0 %v579_v29  ;;  %12241 = vmatmul.mubr.msk.f32.vlgmr.msra.gmra.mxu1 %vm370_vm0, %v501_v43 }
 0x1f6   :  { %12219 = vmatmul.mubr.msk.f32.vlgmr.msra.gmra.mxu0 %vm370_vm0, %v620_v42  ;;  %12246 = vmatprep.subr.mxu0 %v825_v44 }
 0x1f7   :  { %12221 = vmatprep.mubr.msk.f32.mxu0 %vm370_vm0, %v621_v45  ;;  %12247 = vmatpush3.msra.mxu0 %v825_v44 }
 0x1f8   :  { %12243 = vmatprep.mubr.msk.f32.mxu1 %vm370_vm0, %v502_v46  ;;  %12248 = vmatprep.subr.mxu0 %v824_v47 }
 0x1f9   :  { %12249 = vmatpush3.msra.mxu0 %v824_v47  ;;  %12244 = vmatmul.mubr.msk.f32.gmra.mxu1 %vm370_vm0, %v503_v48 }
 0x1fa   :  { %12250 = vmatprep.subr.mxu0 %v823_v49  ;;  %12222 = vmatmul.mubr.msk.f32.gmra.mxu0 %vm370_vm0, %v622_v50 }
 0x1fb   :  { %12251 = vmatpush3.msra.mxu0 %v823_v49  ;;  %12262 = vmatprep.mubr.msk.f32.mxu0 %vm370_vm0, %v13922_v16  ;;  %v345_v16 = vld [vmem:[#allocation10 + $0x40] sm:$0xff] }
 0x1fc   :  { %12252 = vmatprep.subr.mxu0 %v822_v51  ;;  %12290 = vmatprep.mubr.msk.f32.mxu1 %vm370_vm0, %v932_v56  ;;  %v1266_v56 = vld [vmem:[#allocation13 + $0x78] sm:$0xff] }
 0x1fd   :  { %12253 = vmatpush3.msra.mxu0 %v822_v51 }
 0x1fe   :  { %12254 = vmatprep.subr.mxu0 %v821_v52 }
 0x1ff   :  { %12255 = vmatpush3.msra.mxu0 %v821_v52 }
 0x200   :  { %12256 = vmatprep.subr.mxu0 %v820_v53 }
 0x201   :  { %12257 = vmatpush3.msra.mxu0 %v820_v53 }
 0x202   :  { %12258 = vmatprep.subr.mxu0 %v819_v54 }
 0x203   :  { %12259 = vmatpush3.msra.mxu0 %v819_v54 }
 0x204   :  { %12260 = vmatprep.subr.mxu0 %v818_v55 }
 0x205   :  { %12261 = vmatpush3.msra.mxu0 %v818_v55 }
 0x206   :  { %12263 = vmatmul.mubr.msk.f32.vlgmr.msra.gmra.mxu0 %vm370_vm0, %v13927_v17  ;;  %12296 = vmatprep.subr.mxu0 %v13691_v58  ;;  %v344_v17 = vld [vmem:[#allocation10 + $0x38] sm:$0xff] }
 0x207   :  { %12265 = vmatprep.mubr.msk.f32.mxu0 %vm370_vm0, %v13934_v18  ;;  %12297 = vmatpush3.msra.mxu0 %v352_v57  ;;  %v343_v18 = vld [vmem:[#allocation10 + $0x30] sm:$0xff] }
 0x208   :  { %12298 = vmatprep.subr.mxu0 %v13691_v58 }
 0x209   :  { %12299 = vmatpush3.msra.mxu0 %v351_v10 }
 0x20a   :  { %12266 = vmatmul.mubr.msk.f32.gmra.mxu0 %vm370_vm0, %v13949_v19  ;;  %12300 = vmatprep.subr.mxu0 %v13691_v58  ;;  %v342_v19 = vld [vmem:[#allocation10 + $0x28] sm:$0xff] }
 0x20b   :  { %12268 = vmatprep.mubr.msk.f32.mxu0 %vm370_vm0, %v13954_v20  ;;  %12301 = vmatpush3.msra.mxu0 %v350_v11  ;;  %v341_v20 = vld [vmem:[#allocation10 + $0x20] sm:$0xff] }
 0x20c   :  { %12302 = vmatprep.subr.mxu0 %v13691_v58 }
 0x20d   :  { %12303 = vmatpush3.msra.mxu0 %v349_v12 }
 0x20e   :  { %12269 = vmatmul.mubr.msk.f32.gmra.mxu0 %vm370_vm0, %v13967_v21  ;;  %12304 = vmatprep.subr.mxu0 %v13691_v58  ;;  %v340_v21 = vld [vmem:[#allocation10 + $0x18] sm:$0xff] }
 0x20f   :  { %12271 = vmatprep.mubr.msk.f32.mxu0 %vm370_vm0, %v13972_v22  ;;  %12305 = vmatpush3.msra.mxu0 %v348_v13  ;;  %v339_v22 = vld [vmem:[#allocation10 + $0x10] sm:$0xff] }
 0x210   :  { %12306 = vmatprep.subr.mxu0 %v13691_v58 }
 0x211   :  { %12307 = vmatpush3.msra.mxu0 %v347_v14 }
 0x212   :  { %12272 = vmatmul.mubr.msk.f32.gmra.mxu0 %vm370_vm0, %v13985_v23  ;;  %12308 = vmatprep.subr.mxu0 %v13691_v58  ;;  %v338_v23 = vld [vmem:[#allocation10 + $0x8] sm:$0xff] }
 0x213   :  { %12309 = vmatpush3.msra.mxu0 %v346_v15  ;;  %12328 = vmatprep.mubr.msk.f32.mxu0 %vm13692_vm1, %v13691_v58 }
 0x214   :  { %12310 = vmatprep.subr.mxu0 %v13691_v58 }
 0x215   :  { %12311 = vmatpush3.msra.mxu0 %v345_v16 }
 0x216   :  { %12312 = vmatprep.subr.mxu0 %v13691_v58 }
 0x217   :  { %12313 = vmatpush3.msra.mxu0 %v344_v17 }
 0x218   :  { %12314 = vmatprep.subr.mxu0 %v13691_v58 }
 0x219   :  { %12315 = vmatpush3.msra.mxu0 %v343_v18 }
 0x21a   :  { %12316 = vmatprep.subr.mxu0 %v13691_v58 }
 0x21b   :  { %12317 = vmatpush3.msra.mxu0 %v342_v19 }
 0x21c   :  { %12318 = vmatprep.subr.mxu0 %v13691_v58 }
 0x21d   :  { %12319 = vmatpush3.msra.mxu0 %v341_v20 }
 0x21e   :  { %12320 = vmatprep.subr.mxu0 %v13691_v58 }
 0x21f   :  { %12321 = vmatpush3.msra.mxu0 %v340_v21 }
 0x220   :  { %12322 = vmatprep.subr.mxu0 %v13691_v58 }
 0x221   :  { %12323 = vmatpush3.msra.mxu0 %v339_v22 }
 0x222   :  { %12324 = vmatprep.subr.mxu0 %v13691_v58 }
 0x223   :  { %12325 = vmatpush3.msra.mxu0 %v338_v23 }
 0x224   :  { %12326 = vmatprep.subr.mxu0 %v13691_v58 }
 0x225   :  { %12327 = vmatpush3.msra.mxu0 %v337_v24 }
 0x226   :  { %12366 = vmatprep.subr.mxu0 %v1266_v56 }
 0x2b5   :  { %v12242_v25 = vpop.f32.mrf.mxu1 }
 0x2b6   :  { %v14018_v59 = vpop.f32.mrf.mxu0 }
 0x2b7   :  { %v798_v26 = vpop.f32.mrf.mxu1  ;;  %v804_v30 = vadd.f32 %v12242_v25, %v14018_v59  ;;  %v1265_v59 = vld [vmem:[#allocation13 + $0x70] sm:$0xff]  ;;  %v1262_v25 = vld [vmem:[#allocation13 + $0x58] sm:$0xff] }
 0x2b8   :  { %v14020_v60 = vpop.f32.mrf.mxu0 }
 0x2b9   :  { %v12245_v27 = vpop.f32.mrf.mxu1  ;;  %v799_v31 = vadd.f32 %v798_v26, %v14020_v60  ;;  %v1129_v60 = vlaneseq  ;;  %v1366_v26 = vld [vmem:[#allocation13 + $0xd8] sm:$0xff] }
 0x2ba   :  { %v14022_v61 = vpop.f32.mrf.mxu0 }
 0x2bb   :  { %v808_v28 = vpop.f32.mrf.mxu1  ;;  %v814_v37 = vadd.f32 %v12245_v27, %v14022_v61  ;;  %v14068_v61 = vshrl.u32 %v1129_v60, 7  ;;  %v1261_v27 = vld [vmem:[#allocation13 + $0x50] sm:$0xff] }
 0x2bc   :  { %v14024_v62 = vpop.f32.mrf.mxu0 }
 0x2bd   :  { %v809_v38 = vadd.f32 %v808_v28, %v14024_v62  ;;  %v14071_v62 = vsub.s32 0, %v14068_v61  ;;  %v1365_v28 = vld [vmem:[#allocation13 + $0xd0] sm:$0xff] }
 0x2c6   :  { %v12264_v63 = vpop.f32.mrf.mxu0 }
 0x2c8   :  { %v892_v0 = vpop.f32.mrf.mxu0 }
 0x2ca   :  { %v12267_v1 = vpop.f32.mrf.mxu0 }
 0x2cc   :  { %v902_v2 = vpop.f32.mrf.mxu0 }
 0x2ce   :  { %v12270_v3 = vpop.f32.mrf.mxu0 }
 0x2d0   :  { %v912_v4 = vpop.f32.mrf.mxu0 }
 0x2d2   :  { %v12273_v5 = vpop.f32.mrf.mxu0 }
 0x2d3   :  { %12274 = vmatprep.subr.mxu1 %v12273_v5 }
 0x2d4   :  { %v922_v6 = vpop.f32.mrf.mxu0  ;;  %12275 = vmatpush3.msra.mxu1 %v12273_v5 }
 0x2d5   :  { %12276 = vmatprep.subr.mxu1 %v922_v6 }
 0x2d6   :  { %12277 = vmatpush3.msra.mxu1 %v922_v6 }
 0x2d7   :  { %12278 = vmatprep.subr.mxu1 %v12270_v3 }
 0x2d8   :  { %12279 = vmatpush3.msra.mxu1 %v12270_v3 }
 0x2d9   :  { %12280 = vmatprep.subr.mxu1 %v912_v4 }
 0x2da   :  { %12281 = vmatpush3.msra.mxu1 %v912_v4 }
 0x2db   :  { %12282 = vmatprep.subr.mxu1 %v12267_v1 }
 0x2dc   :  { %12283 = vmatpush3.msra.mxu1 %v12267_v1 }
 0x2dd   :  { %12284 = vmatprep.subr.mxu1 %v902_v2 }
 0x2de   :  { %12285 = vmatpush3.msra.mxu1 %v902_v2 }
 0x2df   :  { %12286 = vmatprep.subr.mxu1 %v12264_v63 }
 0x2e0   :  { %12287 = vmatpush3.msra.mxu1 %v12264_v63 }
 0x2e1   :  { %12288 = vmatprep.subr.mxu1 %v892_v0 }
 0x2e2   :  { %12289 = vmatpush3.msra.mxu1 %v892_v0 }
 0x2e3   :  { %12291 = vmatmul.mubr.msk.f32.vlgmr.msra.gmra.mxu1 %vm370_vm0, %v933_v7  ;;  %12331 = vmatprep.subr.mxu1 %v13691_v58 }
 0x2e4   :  { %12293 = vmatprep.mubr.msk.f32.mxu1 %vm370_vm0, %v934_v8  ;;  %12332 = vmatpush3.msra.mxu1 %v352_v57  ;;  %v1370_v57 = vld [vmem:[#allocation13 + $0xf8] sm:$0xff] }
 0x2e5   :  { %12333 = vmatprep.subr.mxu1 %v13691_v58 }
 0x2e6   :  { %12334 = vmatpush3.msra.mxu1 %v351_v10 }
 0x2e7   :  { %12294 = vmatmul.mubr.msk.f32.gmra.mxu1 %vm370_vm0, %v935_v9  ;;  %12335 = vmatprep.subr.mxu1 %v13691_v58 }
 0x2e8   :  { %12336 = vmatpush3.msra.mxu1 %v350_v11  ;;  %12363 = vmatprep.mubr.msk.f32.mxu1 %vm13692_vm1, %v13691_v58 }
 0x2e9   :  { %12337 = vmatprep.subr.mxu1 %v13691_v58 }
 0x2ea   :  { %12338 = vmatpush3.msra.mxu1 %v349_v12 }
 0x2eb   :  { %12339 = vmatprep.subr.mxu1 %v13691_v58 }
 0x2ec   :  { %12340 = vmatpush3.msra.mxu1 %v348_v13 }
 0x2ed   :  { %12341 = vmatprep.subr.mxu1 %v13691_v58 }
 0x2ee   :  { %12342 = vmatpush3.msra.mxu1 %v347_v14 }
 0x2ef   :  { %12343 = vmatprep.subr.mxu1 %v13691_v58 }
 0x2f0   :  { %12344 = vmatpush3.msra.mxu1 %v346_v15 }
 0x2f1   :  { %12345 = vmatprep.subr.mxu1 %v13691_v58 }
 0x2f2   :  { %12346 = vmatpush3.msra.mxu1 %v345_v16 }
 0x2f3   :  { %12347 = vmatprep.subr.mxu1 %v13691_v58 }
 0x2f4   :  { %12348 = vmatpush3.msra.mxu1 %v344_v17 }
 0x2f5   :  { %12349 = vmatprep.subr.mxu1 %v13691_v58 }
 0x2f6   :  { %12350 = vmatpush3.msra.mxu1 %v343_v18 }
 0x2f7   :  { %12351 = vmatprep.subr.mxu1 %v13691_v58 }
 0x2f8   :  { %12352 = vmatpush3.msra.mxu1 %v342_v19 }
 0x2f9   :  { %12353 = vmatprep.subr.mxu1 %v13691_v58 }
 0x2fa   :  { %12354 = vmatpush3.msra.mxu1 %v341_v20  ;;  %v1369_v20 = vld [vmem:[#allocation13 + $0xf0] sm:$0xff] }
 0x2fb   :  { %12355 = vmatprep.subr.mxu1 %v13691_v58 }
 0x2fc   :  { %12356 = vmatpush3.msra.mxu1 %v340_v21  ;;  %v1264_v21 = vld [vmem:[#allocation13 + $0x68] sm:$0xff] }
 0x2fd   :  { %12357 = vmatprep.subr.mxu1 %v13691_v58 }
 0x2fe   :  { %12358 = vmatpush3.msra.mxu1 %v339_v22  ;;  %v1368_v22 = vld [vmem:[#allocation13 + $0xe8] sm:$0xff] }
 0x2ff   :  { %12359 = vmatprep.subr.mxu1 %v13691_v58 }
 0x300   :  { %12360 = vmatpush3.msra.mxu1 %v338_v23  ;;  %v1263_v23 = vld [vmem:[#allocation13 + $0x60] sm:$0xff] }
 0x301   :  { %12361 = vmatprep.subr.mxu1 %v13691_v58 }
 0x302   :  { %12362 = vmatpush3.msra.mxu1 %v337_v24  ;;  %v1367_v24 = vld [vmem:[#allocation13 + $0xe0] sm:$0xff] }
 0x303   :  { %12404 = vmatprep.subr.mxu1 %v1370_v57 }
 0x3a3   :  { %v12292_v29 = vpop.f32.mrf.mxu1 }
 0x3a4   :  { %v1034_v33 = vadd.f32 %v12292_v29, %v804_v30  ;;  %v1260_v29 = vld [vmem:[#allocation13 + $0x48] sm:$0xff] }
 0x3a5   :  { %v1014_v32 = vpop.f32.mrf.mxu1  ;;  %v1364_v30 = vld [vmem:[#allocation13 + $0xc8] sm:$0xff] }
 0x3a6   :  { %v1033_v34 = vadd.f32 %v1014_v32, %v799_v31  ;;  %v1044_v41 = vadd.f32 %v11392_v35, %v1034_v33  ;;  %v1259_v31 = vld [vmem:[#allocation13 + $0x40] sm:$0xff]  ;;  %v1258_v33 = vld [vmem:[#allocation13 + $0x38] sm:$0xff] }
 0x3a7   :  { %v12295_v36 = vpop.f32.mrf.mxu1  ;;  %v1363_v32 = vld [vmem:[#allocation13 + $0xc0] sm:$0xff] }
 0x3a8   :  { %v1043_v39 = vadd.f32 %v11392_v35, %v1033_v34  ;;  %v1036_v42 = vadd.f32 %v12295_v36, %v814_v37  ;;  %v1362_v34 = vld [vmem:[#allocation13 + $0xb8] sm:$0xff]  ;;  %v1361_v36 = vld [vmem:[#allocation13 + $0xb0] sm:$0xff]  ;;  %v1256_v37 = vld [vmem:[#allocation13 + $0x28] sm:$0xff] }
 0x3a9   :  { %v1024_v40 = vpop.f32.mrf.mxu1 }
 0x3aa   :  { %v1035_v43 = vadd.f32 %v1024_v40, %v809_v38  ;;  %v1049_v44 = vadd.f32 %v1044_v41, %v1043_v39  ;;  %v1046_v46 = vadd.f32 %v11392_v35, %v1036_v42  ;;  %v1360_v38 = vld [vmem:[#allocation13 + $0xa8] sm:$0xff]  ;;  %v1359_v40 = vld [vmem:[#allocation13 + $0xa0] sm:$0xff]  ;;  %v1358_v42 = vld [vmem:[#allocation13 + $0x98] sm:$0xff] }
 0x3ac   :  { %v1045_v45 = vadd.f32 %v11392_v35, %v1035_v43  ;;  %v1257_v35 = vld [vmem:[#allocation13 + $0x30] sm:$0xff] }
 0x3ad   :  { %v1253_v43 = vld [vmem:[#allocation13 + $0x10] sm:$0xff] }
 0x3ae   :  { %v1050_v47 = vadd.f32 %v1049_v44, %v1045_v45  ;;  %v1357_v44 = vld [vmem:[#allocation13 + $0x90] sm:$0xff] }
 0x3b0   :  { %v1051_v48 = vadd.f32 %v1050_v47, %v1046_v46  ;;  %v1251_v47 = vld [vmem:[#allocation13] sm:$0xff] }
 0x3b2   :  { %v1052_v49 = vrot.slane %v1051_v48, 4 }
 0x3b4   :  { %v1053_v50 = vadd.f32 %v1052_v49, %v1051_v48  ;;  %v1355_v48 = vld [vmem:[#allocation13 + $0x80] sm:$0xff] }
 0x3b6   :  { %v1054_v51 = vrot.slane %v1053_v50, 2 }
 0x3b8   :  { %v1055_v52 = vadd.f32 %v1054_v51, %v1053_v50 }
 0x3ba   :  { %v1056_v53 = vrot.slane %v1055_v52, 1 }
 0x3bc   :  { %v1057_v54 = vadd.f32 %v1056_v53, %v1055_v52 }
 0x3be   :  { %v1058_v55 = vmul.f32 0.03125, %v1057_v54  ;;  %v11393_v54 = vld [vmem:[#allocation8] ss:$0 sm:$0xff] }
 0x3c0   :  { %12329 = vmatmul.mubr.f32.vlgmr.msra.gmra.mxu0 %v1058_v55 }
 0x3c1   :  { %12367 = vmatpush3.msra.mxu0 %v1266_v56 }
 0x3c2   :  { %12368 = vmatprep.subr.mxu0 %v1265_v59 }
 0x3c3   :  { %12369 = vmatpush3.msra.mxu0 %v1265_v59 }
 0x3c4   :  { %12370 = vmatprep.subr.mxu0 %v1264_v21 }
 0x3c5   :  { %12371 = vmatpush3.msra.mxu0 %v1264_v21 }
 0x3c6   :  { %12372 = vmatprep.subr.mxu0 %v1263_v23 }
 0x3c7   :  { %12373 = vmatpush3.msra.mxu0 %v1263_v23  ;;  %v1353_v23 = vld [vmem:[#allocation11 + $0x8] sm:$0xff] }
 0x3c8   :  { %12374 = vmatprep.subr.mxu0 %v1262_v25 }
 0x3c9   :  { %12375 = vmatpush3.msra.mxu0 %v1262_v25  ;;  %v1637_v25 = vld [vmem:[#allocation13 + $0x170] sm:$0xff] }
 0x3ca   :  { %12376 = vmatprep.subr.mxu0 %v1261_v27 }
 0x3cb   :  { %12377 = vmatpush3.msra.mxu0 %v1261_v27  ;;  %v1635_v27 = vld [vmem:[#allocation13 + $0x160] sm:$0xff] }
 0x3cc   :  { %12378 = vmatprep.subr.mxu0 %v1260_v29 }
 0x3cd   :  { %12379 = vmatpush3.msra.mxu0 %v1260_v29  ;;  %v1633_v29 = vld [vmem:[#allocation13 + $0x150] sm:$0xff] }
 0x3ce   :  { %12380 = vmatprep.subr.mxu0 %v1259_v31 }
 0x3cf   :  { %12381 = vmatpush3.msra.mxu0 %v1259_v31  ;;  %v1631_v31 = vld [vmem:[#allocation13 + $0x140] sm:$0xff] }
 0x3d0   :  { %12382 = vmatprep.subr.mxu0 %v1258_v33 }
 0x3d1   :  { %12383 = vmatpush3.msra.mxu0 %v1258_v33  ;;  %v1629_v33 = vld [vmem:[#allocation13 + $0x130] sm:$0xff] }
 0x3d2   :  { %12384 = vmatprep.subr.mxu0 %v1257_v35 }
 0x3d3   :  { %12385 = vmatpush3.msra.mxu0 %v1257_v35  ;;  %v1627_v35 = vld [vmem:[#allocation13 + $0x120] sm:$0xff] }
 0x3d4   :  { %12386 = vmatprep.subr.mxu0 %v1256_v37 }
 0x3d5   :  { %12387 = vmatpush3.msra.mxu0 %v1256_v37  ;;  %v1625_v37 = vld [vmem:[#allocation13 + $0x110] sm:$0xff] }
 0x480   :  { %v1125_v63 = vpop.f32.mrf.mxu0 }
 0x481   :  { %v1132_v0 = vrot.slane %v1125_v63, %v14071_v62  ;;  %v11394_v63 = vld [vmem:[#allocation8 + $0x1] ss:$0 sm:$0xff] }
 0x482   :  { %v12330_v1 = vpop.f32.mrf.mxu0 }
 0x483   :  { %v14074_v2 = vsub.f32 %v1043_v39, %v1132_v0  ;;  %v14076_v3 = vsub.f32 %v1044_v41, %v1132_v0  ;;  %v14078_v4 = vsub.f32 %v1045_v45, %v1132_v0  ;;  %v14080_v5 = vsub.f32 %v1046_v46, %v1132_v0  ;;  %v1255_v39 = vld [vmem:[#allocation13 + $0x20] sm:$0xff]  ;;  %v1254_v41 = vld [vmem:[#allocation13 + $0x18] sm:$0xff]  ;;  %v1252_v45 = vld [vmem:[#allocation13 + $0x8] sm:$0xff] }
 0x484   :  { %12388 = vmatprep.subr.mxu0 %v1255_v39  ;;  %v1356_v46 = vld [vmem:[#allocation13 + $0x88] sm:$0xff] }
 0x485   :  { %v1137_v6 = vmul.f32 %v14074_v2, %v14074_v2  ;;  %v1138_v7 = vmul.f32 %v14076_v3, %v14076_v3  ;;  %v1139_v8 = vmul.f32 %v14078_v4, %v14078_v4  ;;  %v1140_v10 = vmul.f32 %v14080_v5, %v14080_v5  ;;  %12389 = vmatpush3.msra.mxu0 %v1255_v39  ;;  %v1623_v39 = vld [vmem:[#allocation13 + $0x100] sm:$0xff] }
 0x486   :  { %12390 = vmatprep.subr.mxu0 %v1254_v41 }
 0x487   :  { %v1141_v9 = vadd.f32 %v1138_v7, %v1137_v6  ;;  %12391 = vmatpush3.msra.mxu0 %v1254_v41 }
 0x488   :  { %12392 = vmatprep.subr.mxu0 %v1253_v43 }
 0x489   :  { %v1142_v11 = vadd.f32 %v1141_v9, %v1139_v8  ;;  %12393 = vmatpush3.msra.mxu0 %v1253_v43 }
 0x48a   :  { %12394 = vmatprep.subr.mxu0 %v1252_v45 }
 0x48b   :  { %v1143_v12 = vadd.f32 %v1142_v11, %v1140_v10  ;;  %12395 = vmatpush3.msra.mxu0 %v1252_v45 }
 0x48c   :  { %12396 = vmatprep.subr.mxu0 %v1251_v47 }
 0x48d   :  { %v1144_v13 = vrot.slane %v1143_v12, 4  ;;  %12397 = vmatpush3.msra.mxu0 %v1251_v47  ;;  %v1726_v47 = vld [vmem:[#allocation11 + $0x28] sm:$0xff] }
 0x48f   :  { %v1145_v14 = vadd.f32 %v1144_v13, %v1143_v12 }
 0x491   :  { %v1146_v15 = vrot.slane %v1145_v14, 2 }
 0x493   :  { %v1147_v16 = vadd.f32 %v1146_v15, %v1145_v14 }
 0x495   :  { %v1148_v17 = vrot.slane %v1147_v16, 1 }
 0x497   :  { %v1149_v18 = vadd.f32 %v1148_v17, %v1147_v16 }
 0x499   :  { %v1150_v19 = vmul.f32 0.03125, %v1149_v18 }
 0x49b   :  { %12364 = vmatmul.mubr.f32.vlgmr.msra.gmra.mxu1 %v1150_v19 }
 0x49c   :  { %12405 = vmatpush3.msra.mxu1 %v1370_v57 }
 0x49d   :  { %12406 = vmatprep.subr.mxu1 %v1369_v20 }
 0x49e   :  { %12407 = vmatpush3.msra.mxu1 %v1369_v20 }
 0x49f   :  { %12408 = vmatprep.subr.mxu1 %v1368_v22 }
 0x4a0   :  { %12409 = vmatpush3.msra.mxu1 %v1368_v22  ;;  %v1458_v22 = vld [vmem:[#allocation11 + $0x18] sm:$0xff] }
 0x4a1   :  { %12410 = vmatprep.subr.mxu1 %v1367_v24 }
 0x4a2   :  { %12411 = vmatpush3.msra.mxu1 %v1367_v24  ;;  %v1638_v24 = vld [vmem:[#allocation13 + $0x178] sm:$0xff] }
 0x4a3   :  { %12412 = vmatprep.subr.mxu1 %v1366_v26 }
 0x4a4   :  { %12413 = vmatpush3.msra.mxu1 %v1366_v26  ;;  %v1636_v26 = vld [vmem:[#allocation13 + $0x168] sm:$0xff] }
 0x4a5   :  { %12414 = vmatprep.subr.mxu1 %v1365_v28 }
 0x4a6   :  { %12415 = vmatpush3.msra.mxu1 %v1365_v28  ;;  %v1634_v28 = vld [vmem:[#allocation13 + $0x158] sm:$0xff] }
 0x4a7   :  { %12416 = vmatprep.subr.mxu1 %v1364_v30 }
 0x4a8   :  { %12417 = vmatpush3.msra.mxu1 %v1364_v30  ;;  %v1632_v30 = vld [vmem:[#allocation13 + $0x148] sm:$0xff] }
 0x4a9   :  { %12418 = vmatprep.subr.mxu1 %v1363_v32 }
 0x4aa   :  { %12419 = vmatpush3.msra.mxu1 %v1363_v32  ;;  %v1630_v32 = vld [vmem:[#allocation13 + $0x138] sm:$0xff] }
 0x4ab   :  { %12420 = vmatprep.subr.mxu1 %v1362_v34 }
 0x4ac   :  { %12421 = vmatpush3.msra.mxu1 %v1362_v34  ;;  %v1628_v34 = vld [vmem:[#allocation13 + $0x128] sm:$0xff] }
 0x4ad   :  { %12422 = vmatprep.subr.mxu1 %v1361_v36 }
 0x4ae   :  { %12423 = vmatpush3.msra.mxu1 %v1361_v36  ;;  %v1626_v36 = vld [vmem:[#allocation13 + $0x118] sm:$0xff] }
 0x4af   :  { %12424 = vmatprep.subr.mxu1 %v1360_v38 }
 0x4b0   :  { %12425 = vmatpush3.msra.mxu1 %v1360_v38  ;;  %v1624_v38 = vld [vmem:[#allocation13 + $0x108] sm:$0xff] }
 0x4b1   :  { %12426 = vmatprep.subr.mxu1 %v1359_v40 }
 0x4b2   :  { %12427 = vmatpush3.msra.mxu1 %v1359_v40  ;;  %v1725_v40 = vld [vmem:[#allocation11 + $0x20] sm:$0xff] }
 0x4b3   :  { %12428 = vmatprep.subr.mxu1 %v1358_v42 }
 0x4b4   :  { %12429 = vmatpush3.msra.mxu1 %v1358_v42 }
 0x4b5   :  { %12430 = vmatprep.subr.mxu1 %v1357_v44 }
 0x4b6   :  { %12431 = vmatpush3.msra.mxu1 %v1357_v44 }
 0x4b7   :  { %12432 = vmatprep.subr.mxu1 %v1356_v46 }
 0x4b8   :  { %12433 = vmatpush3.msra.mxu1 %v1356_v46 }
 0x4b9   :  { %12434 = vmatprep.subr.mxu1 %v1355_v48 }
 0x4ba   :  { %12435 = vmatpush3.msra.mxu1 %v1355_v48  ;;  %v2096_v48 = vld [vmem:[#allocation16 + $0x3f8] sm:$0xff] }
 0x55b   :  { %v1217_v49 = vpop.f32.mrf.mxu1 }
 0x55c   :  { %v1218_v50 = vadd.f32 1e-05, %v1217_v49  ;;  %v2095_v49 = vld [vmem:[#allocation16 + $0x3f0] sm:$0xff] }
 0x55d   :  { %v12365_v51 = vpop.f32.mrf.mxu1 }
 0x55e   :  { %13144 = vrsqrt.f32 %v1218_v50  ;;  %v2092_v50 = vld [vmem:[#allocation16 + $0x3d8] sm:$0xff]  ;;  %v2091_v51 = vld [vmem:[#allocation16 + $0x3d0] sm:$0xff] }
 0x56b   :  { %v13145_v52 = vpop.eup %13144 }
 0x56c   :  { %v1225_v53 = vrot.slane %v13145_v52, %v14071_v62  ;;  %v2088_v52 = vld [vmem:[#allocation16 + $0x3b8] sm:$0xff] }
 0x56e   :  { %v1226_v55 = vmul.f32 %v1225_v53, %v14074_v2  ;;  %v1227_v56 = vmul.f32 %v1225_v53, %v14076_v3  ;;  %v1228_v57 = vmul.f32 %v1225_v53, %v14078_v4  ;;  %v1229_v59 = vmul.f32 %v1225_v53, %v14080_v5  ;;  %v1457_v4 = vld [vmem:[#allocation11 + $0x10] sm:$0xff]  ;;  %v1352_v5 = vld [vmem:[#allocation11] sm:$0xff] }
 0x56f   :  { %v2087_v53 = vld [vmem:[#allocation16 + $0x3b0] sm:$0xff] }
 0x570   :  { %v1234_v0 = vmul.f32 %v11393_v54, %v1226_v55  ;;  %v1235_v1 = vmul.f32 %v11393_v54, %v1227_v56  ;;  %v1236_v6 = vmul.f32 %v11393_v54, %v1228_v57  ;;  %v1237_v7 = vmul.f32 %v11393_v54, %v1229_v59  ;;  %v2084_v54 = vld [vmem:[#allocation16 + $0x398] sm:$0xff]  ;;  %v2083_v55 = vld [vmem:[#allocation16 + $0x390] sm:$0xff] }
 0x571   :  { %v2080_v56 = vld [vmem:[#allocation16 + $0x378] sm:$0xff]  ;;  %v2079_v57 = vld [vmem:[#allocation16 + $0x370] sm:$0xff] }
 0x572   :  { %v1242_v8 = vadd.f32 %v11394_v63, %v1234_v0  ;;  %v1243_v9 = vadd.f32 %v11394_v63, %v1235_v1  ;;  %v1244_v10 = vadd.f32 %v11394_v63, %v1236_v6  ;;  %v1245_v13 = vadd.f32 %v11394_v63, %v1237_v7  ;;  %v2076_v59 = vld [vmem:[#allocation16 + $0x358] sm:$0xff]  ;;  %v2075_v63 = vld [vmem:[#allocation16 + $0x350] sm:$0xff] }
 0x573   :  { %v2072_v0 = vld [vmem:[#allocation16 + $0x338] sm:$0xff]  ;;  %v2071_v1 = vld [vmem:[#allocation16 + $0x330] sm:$0xff] }
 0x574   :  { %v1246_v11 = vmax.f32 %v1242_v8, 0.0  ;;  %v14095_v12 = vmax.f32 %v1243_v9, 0.0  ;;  %v14097_v2 = vmax.f32 %v1244_v10, 0.0  ;;  %v14103_v3 = vmax.f32 %v1245_v13, 0.0  ;;  %v2068_v6 = vld [vmem:[#allocation16 + $0x318] sm:$0xff]  ;;  %v2067_v7 = vld [vmem:[#allocation16 + $0x310] sm:$0xff] }
 0x575   :  { %v2064_v8 = vld [vmem:[#allocation16 + $0x2f8] sm:$0xff]  ;;  %v2063_v9 = vld [vmem:[#allocation16 + $0x2f0] sm:$0xff] }
 0x576   :  { %12398 = vmatprep.mubr.f32.mxu0 %v1246_v11  ;;  %12436 = vmatprep.mubr.f32.mxu1 %v1246_v11  ;;  %v2060_v10 = vld [vmem:[#allocation16 + $0x2d8] sm:$0xff]  ;;  %v2055_v13 = vld [vmem:[#allocation16 + $0x2b0] sm:$0xff] }
 0x577   :  { %12399 = vmatmul.mubr.f32.vlgmr.msra.gmra.mxu0 %v14095_v12  ;;  %12437 = vmatmul.mubr.f32.vlgmr.msra.gmra.mxu1 %v14095_v12 }
 0x578   :  { %12401 = vmatprep.mubr.f32.mxu0 %v14097_v2  ;;  %12439 = vmatprep.mubr.f32.mxu1 %v14097_v2 }
 0x57b   :  { %12402 = vmatmul.mubr.f32.gmra.mxu0 %v14103_v3  ;;  %12440 = vmatmul.mubr.f32.gmra.mxu1 %v14103_v3 }
 0x57c   :  { %12450 = vmatprep.mubr.msk.f32.mxu0 %vm1459_vm2, %v1457_v4  ;;  %12461 = vmatprep.mubr.msk.f32.mxu1 %vm1459_vm2, %v1352_v5  ;;  %v2048_v4 = vld [vmem:[#allocation16 + $0x278] sm:$0xff]  ;;  %v2047_v5 = vld [vmem:[#allocation16 + $0x270] sm:$0xff] }
 0x637   :  { %v12400_v14 = vpop.f32.mrf.mxu0  ;;  %v12438_v15 = vpop.f32.mrf.mxu1 }
 0x639   :  { %v1333_v16 = vpop.f32.mrf.mxu0  ;;  %v1437_v17 = vpop.f32.mrf.mxu1 }
 0x63b   :  { %v12403_v18 = vpop.f32.mrf.mxu0  ;;  %v12441_v19 = vpop.f32.mrf.mxu1 }
 0x63c   :  { %12442 = vmatprep.subr.mxu0 %v12441_v19  ;;  %12453 = vmatprep.subr.mxu1 %v12403_v18 }
 0x63d   :  { %v1343_v20 = vpop.f32.mrf.mxu0  ;;  %v1447_v21 = vpop.f32.mrf.mxu1  ;;  %12443 = vmatpush3.msra.mxu0 %v12441_v19  ;;  %12454 = vmatpush3.msra.mxu1 %v12403_v18  ;;  %v11401_v19 = vld [vmem:[#allocation14] ss:$0 sm:$0xff] }
 0x63e   :  { %12444 = vmatprep.subr.mxu0 %v1447_v21  ;;  %12455 = vmatprep.subr.mxu1 %v1343_v20 }
 0x63f   :  { %12445 = vmatpush3.msra.mxu0 %v1447_v21  ;;  %12456 = vmatpush3.msra.mxu1 %v1343_v20 }
 0x640   :  { %12446 = vmatprep.subr.mxu0 %v12438_v15  ;;  %12457 = vmatprep.subr.mxu1 %v12400_v14 }
 0x641   :  { %12447 = vmatpush3.msra.mxu0 %v12438_v15  ;;  %12458 = vmatpush3.msra.mxu1 %v12400_v14  ;;  %v2044_v14 = vld [vmem:[#allocation16 + $0x258] sm:$0xff]  ;;  %v2043_v15 = vld [vmem:[#allocation16 + $0x250] sm:$0xff] }
 0x642   :  { %12448 = vmatprep.subr.mxu0 %v1437_v17  ;;  %12459 = vmatprep.subr.mxu1 %v1333_v16 }
 0x643   :  { %12449 = vmatpush3.msra.mxu0 %v1437_v17  ;;  %12460 = vmatpush3.msra.mxu1 %v1333_v16 }
 0x644   :  { %12451 = vmatmul.mubr.msk.f32.vlgmr.msra.gmra.mxu0 %vm1459_vm2, %v1458_v22  ;;  %12462 = vmatmul.mubr.msk.f32.vlgmr.msra.gmra.mxu1 %vm1459_vm2, %v1353_v23 }
 0x645   :  { %12464 = vmatprep.subr.mxu0 %v1638_v24  ;;  %12496 = vmatprep.mubr.f32.mxu0 %v1246_v11  ;;  %v2059_v11 = vld [vmem:[#allocation16 + $0x2d0] sm:$0xff] }
 0x646   :  { %12465 = vmatpush3.msra.mxu0 %v1638_v24  ;;  %12510 = vmatprep.mubr.msk.f32.mxu1 %vm1459_vm2, %v1725_v40  ;;  %v2073_v40 = vld [vmem:[#allocation16 + $0x340] sm:$0xff] }
 0x647   :  { %12466 = vmatprep.subr.mxu0 %v1637_v25 }
 0x648   :  { %12467 = vmatpush3.msra.mxu0 %v1637_v25 }
 0x649   :  { %12468 = vmatprep.subr.mxu0 %v1636_v26 }
 0x64a   :  { %12469 = vmatpush3.msra.mxu0 %v1636_v26 }
 0x64b   :  { %12470 = vmatprep.subr.mxu0 %v1635_v27 }
 0x64c   :  { %12471 = vmatpush3.msra.mxu0 %v1635_v27  ;;  %v1818_v27 = vld [vmem:[#allocation26] sm:$0x3] }
 0x64d   :  { %12472 = vmatprep.subr.mxu0 %v1634_v28 }
 0x64e   :  { %12473 = vmatpush3.msra.mxu0 %v1634_v28  ;;  %v1958_v28 = vld [vmem:[#allocation26 + $0x2] sm:$0x3] }
 0x64f   :  { %12474 = vmatprep.subr.mxu0 %v1633_v29 }
 0x650   :  { %12475 = vmatpush3.msra.mxu0 %v1633_v29  ;;  %v2094_v29 = vld [vmem:[#allocation16 + $0x3e8] sm:$0xff] }
 0x651   :  { %12476 = vmatprep.subr.mxu0 %v1632_v30 }
 0x652   :  { %12477 = vmatpush3.msra.mxu0 %v1632_v30  ;;  %v2093_v30 = vld [vmem:[#allocation16 + $0x3e0] sm:$0xff] }
 0x653   :  { %12478 = vmatprep.subr.mxu0 %v1631_v31 }
 0x654   :  { %12479 = vmatpush3.msra.mxu0 %v1631_v31  ;;  %v2090_v31 = vld [vmem:[#allocation16 + $0x3c8] sm:$0xff] }
 0x655   :  { %12480 = vmatprep.subr.mxu0 %v1630_v32 }
 0x656   :  { %12481 = vmatpush3.msra.mxu0 %v1630_v32  ;;  %v2089_v32 = vld [vmem:[#allocation16 + $0x3c0] sm:$0xff] }
 0x657   :  { %12482 = vmatprep.subr.mxu0 %v1629_v33 }
 0x658   :  { %12483 = vmatpush3.msra.mxu0 %v1629_v33  ;;  %v2086_v33 = vld [vmem:[#allocation16 + $0x3a8] sm:$0xff] }
 0x659   :  { %12484 = vmatprep.subr.mxu0 %v1628_v34 }
 0x65a   :  { %12485 = vmatpush3.msra.mxu0 %v1628_v34  ;;  %v2085_v34 = vld [vmem:[#allocation16 + $0x3a0] sm:$0xff] }
 0x65b   :  { %12486 = vmatprep.subr.mxu0 %v1627_v35 }
 0x65c   :  { %12487 = vmatpush3.msra.mxu0 %v1627_v35  ;;  %v2082_v35 = vld [vmem:[#allocation16 + $0x388] sm:$0xff] }
 0x65d   :  { %12488 = vmatprep.subr.mxu0 %v1626_v36 }
 0x65e   :  { %12489 = vmatpush3.msra.mxu0 %v1626_v36  ;;  %v2081_v36 = vld [vmem:[#allocation16 + $0x380] sm:$0xff] }
 0x65f   :  { %12490 = vmatprep.subr.mxu0 %v1625_v37 }
 0x660   :  { %12491 = vmatpush3.msra.mxu0 %v1625_v37  ;;  %v2078_v37 = vld [vmem:[#allocation16 + $0x368] sm:$0xff] }
 0x661   :  { %12492 = vmatprep.subr.mxu0 %v1624_v38 }
 0x662   :  { %12493 = vmatpush3.msra.mxu0 %v1624_v38  ;;  %v2077_v38 = vld [vmem:[#allocation16 + $0x360] sm:$0xff] }
 0x663   :  { %12494 = vmatprep.subr.mxu0 %v1623_v39 }
 0x664   :  { %12495 = vmatpush3.msra.mxu0 %v1623_v39  ;;  %v2074_v39 = vld [vmem:[#allocation16 + $0x348] sm:$0xff] }
 0x665   :  { %12497 = vmatmul.mubr.f32.vlgmr.msra.gmra.mxu0 %v14095_v12  ;;  %2168 = vmatprep.subr.mxu0 %v2096_v48  ;;  %v2056_v12 = vld [vmem:[#allocation16 + $0x2b8] sm:$0xff]  ;;  %v2057_v48 = vld [vmem:[#allocation16 + $0x2c0] sm:$0xff] }
 0x666   :  { %12499 = vmatprep.mubr.f32.mxu0 %v14097_v2  ;;  %2169 = vmatpush1.msra.mxu0 %v2095_v49  ;;  %v2052_v2 = vld [vmem:[#allocation16 + $0x298] sm:$0xff]  ;;  %v2054_v49 = vld [vmem:[#allocation16 + $0x2a8] sm:$0xff] }
 0x667   :  { %2170 = vmatprep.subr.mxu0 %v2092_v50  ;;  %v2053_v50 = vld [vmem:[#allocation16 + $0x2a0] sm:$0xff] }
 0x668   :  { %2171 = vmatpush1.msra.mxu0 %v2091_v51  ;;  %v2050_v51 = vld [vmem:[#allocation16 + $0x288] sm:$0xff] }
 0x669   :  { %12500 = vmatmul.mubr.f32.gmra.mxu0 %v14103_v3  ;;  %2172 = vmatprep.subr.mxu0 %v2088_v52  ;;  %v2051_v3 = vld [vmem:[#allocation16 + $0x290] sm:$0xff]  ;;  %v2049_v52 = vld [vmem:[#allocation16 + $0x280] sm:$0xff] }
 0x66a   :  { %2232 = vmatprep.mubr.f32.mxu0 %v13691_v58  ;;  %2173 = vmatpush1.msra.mxu0 %v2087_v53  ;;  %v2046_v53 = vld [vmem:[#allocation16 + $0x268] sm:$0xff] }
 0x66b   :  { %2174 = vmatprep.subr.mxu0 %v2084_v54  ;;  %v2045_v54 = vld [vmem:[#allocation16 + $0x260] sm:$0xff] }
 0x66c   :  { %2175 = vmatpush1.msra.mxu0 %v2083_v55  ;;  %v2042_v55 = vld [vmem:[#allocation16 + $0x248] sm:$0xff] }
 0x66d   :  { %2176 = vmatprep.subr.mxu0 %v2080_v56  ;;  %v2041_v56 = vld [vmem:[#allocation16 + $0x240] sm:$0xff] }
 0x66e   :  { %2177 = vmatpush1.msra.mxu0 %v2079_v57  ;;  %v2038_v57 = vld [vmem:[#allocation16 + $0x228] sm:$0xff] }
 0x66f   :  { %2178 = vmatprep.subr.mxu0 %v2076_v59  ;;  %v2040_v59 = vld [vmem:[#allocation16 + $0x238] sm:$0xff] }
 0x670   :  { %2179 = vmatpush1.msra.mxu0 %v2075_v63  ;;  %v2037_v63 = vld [vmem:[#allocation16 + $0x220] sm:$0xff] }
 0x671   :  { %2180 = vmatprep.subr.mxu0 %v2072_v0  ;;  %v2039_v0 = vld [vmem:[#allocation16 + $0x230] sm:$0xff] }
 0x672   :  { %2181 = vmatpush1.msra.mxu0 %v2071_v1  ;;  %v2034_v1 = vld [vmem:[#allocation16 + $0x208] sm:$0xff] }
 0x673   :  { %2182 = vmatprep.subr.mxu0 %v2068_v6  ;;  %v2036_v6 = vld [vmem:[#allocation16 + $0x218] sm:$0xff] }
 0x674   :  { %2183 = vmatpush1.msra.mxu0 %v2067_v7  ;;  %v2033_v7 = vld [vmem:[#allocation16 + $0x200] sm:$0xff] }
 0x675   :  { %2184 = vmatprep.subr.mxu0 %v2064_v8  ;;  %v2035_v8 = vld [vmem:[#allocation16 + $0x210] sm:$0xff] }
 0x676   :  { %2185 = vmatpush1.msra.mxu0 %v2063_v9  ;;  %v1954_v9 = vld [vmem:[#allocation16 + $0x1e8] sm:$0xff] }
 0x677   :  { %2186 = vmatprep.subr.mxu0 %v2060_v10  ;;  %v1956_v10 = vld [vmem:[#allocation16 + $0x1f8] sm:$0xff] }
 0x678   :  { %2187 = vmatpush1.msra.mxu0 %v2059_v11 }
 0x679   :  { %2188 = vmatprep.subr.mxu0 %v2056_v12 }
 0x67a   :  { %2189 = vmatpush1.msra.mxu0 %v2055_v13  ;;  %v1953_v13 = vld [vmem:[#allocation16 + $0x1e0] sm:$0xff] }
 0x67b   :  { %2190 = vmatprep.subr.mxu0 %v2052_v2  ;;  %v1955_v2 = vld [vmem:[#allocation16 + $0x1f0] sm:$0xff] }
 0x67c   :  { %2191 = vmatpush1.msra.mxu0 %v2051_v3 }
 0x67d   :  { %2192 = vmatprep.subr.mxu0 %v2048_v4  ;;  %v1950_v4 = vld [vmem:[#allocation16 + $0x1c8] sm:$0xff] }
 0x67e   :  { %2193 = vmatpush1.msra.mxu0 %v2047_v5  ;;  %v1952_v5 = vld [vmem:[#allocation16 + $0x1d8] sm:$0xff] }
 0x67f   :  { %2194 = vmatprep.subr.mxu0 %v2044_v14  ;;  %v1949_v14 = vld [vmem:[#allocation16 + $0x1c0] sm:$0xff] }
 0x680   :  { %2195 = vmatpush1.msra.mxu0 %v2043_v15  ;;  %v1951_v15 = vld [vmem:[#allocation16 + $0x1d0] sm:$0xff] }
 0x681   :  { %2196 = vmatprep.subr.mxu0 %v2040_v59  ;;  %v1911_v59 = vld [vmem:[#allocation16 + $0x90] sm:$0xff] }
 0x682   :  { %2197 = vmatpush1.msra.mxu0 %v2039_v0  ;;  %v1908_v0 = vld [vmem:[#allocation16 + $0x78] sm:$0xff] }
 0x683   :  { %2198 = vmatprep.subr.mxu0 %v2036_v6  ;;  %v1907_v6 = vld [vmem:[#allocation16 + $0x70] sm:$0xff] }
 0x684   :  { %2199 = vmatpush1.msra.mxu0 %v2035_v8  ;;  %v1904_v8 = vld [vmem:[#allocation16 + $0x58] sm:$0xff] }
 0x685   :  { %2310 = vmatprep.subr.mxu0 %v1956_v10  ;;  %v1903_v10 = vld [vmem:[#allocation16 + $0x50] sm:$0xff] }
 0x704   :  { %v14116_v41 = vpop.f32.mrf.mxu0  ;;  %v12463_v16 = vpop.f32.mrf.mxu1 }
 0x705   :  { %v1619_v18 = vadd.f32 %v12463_v16, %v14116_v41  ;;  %v2070_v41 = vld [vmem:[#allocation16 + $0x328] sm:$0xff] }
 0x706   :  { %v14118_v42 = vpop.f32.mrf.mxu0  ;;  %v1613_v17 = vpop.f32.mrf.mxu1 }
 0x707   :  { %v1614_v21 = vadd.f32 %v1613_v17, %v14118_v42  ;;  %v2069_v42 = vld [vmem:[#allocation16 + $0x320] sm:$0xff]  ;;  %v1946_v17 = vld [vmem:[#allocation16 + $0x1a8] sm:$0xff] }
 0x725   :  { %v12498_v43 = vpop.f32.mrf.mxu0 }
 0x727   :  { %v1705_v44 = vpop.f32.mrf.mxu0 }
 0x729   :  { %v12501_v45 = vpop.f32.mrf.mxu0 }
 0x72a   :  { %12502 = vmatprep.subr.mxu1 %v12501_v45 }
 0x72b   :  { %v1715_v46 = vpop.f32.mrf.mxu0  ;;  %12503 = vmatpush3.msra.mxu1 %v12501_v45  ;;  %v2062_v45 = vld [vmem:[#allocation16 + $0x2e8] sm:$0xff] }
 0x72c   :  { %12504 = vmatprep.subr.mxu1 %v1715_v46 }
 0x72d   :  { %12505 = vmatpush3.msra.mxu1 %v1715_v46  ;;  %v2061_v46 = vld [vmem:[#allocation16 + $0x2e0] sm:$0xff] }
 0x72e   :  { %12506 = vmatprep.subr.mxu1 %v12498_v43 }
 0x72f   :  { %12507 = vmatpush3.msra.mxu1 %v12498_v43  ;;  %v2066_v43 = vld [vmem:[#allocation16 + $0x308] sm:$0xff] }
 0x730   :  { %12508 = vmatprep.subr.mxu1 %v1705_v44 }
 0x731   :  { %12509 = vmatpush3.msra.mxu1 %v1705_v44  ;;  %v2065_v44 = vld [vmem:[#allocation16 + $0x300] sm:$0xff] }
 0x732   :  { %12511 = vmatmul.mubr.msk.f32.vlgmr.msra.gmra.mxu1 %vm1459_vm2, %v1726_v47  ;;  %12513 = vmatprep.subr.mxu1 %v13691_v58  ;;  %v2058_v47 = vld [vmem:[#allocation16 + $0x2c8] sm:$0xff] }
 0x733   :  { %12517 = vmatprep.mubr.msk.f32.mxu1 %vm13692_vm1, %v13691_v58 }
 0x7f2   :  { %v12512_v20 = vpop.f32.mrf.mxu1 }
 0x7f3   :  { %v1809_v22 = vadd.f32 %v12512_v20, %v1619_v18  ;;  %v1948_v18 = vld [vmem:[#allocation16 + $0x1b8] sm:$0xff]  ;;  %v1947_v20 = vld [vmem:[#allocation16 + $0x1b0] sm:$0xff] }
 0x7f4   :  { %v1799_v23 = vpop.f32.mrf.mxu1 }
 0x7f5   :  { %v14126_v24 = vadd.f32 %v11401_v19, %v1809_v22  ;;  %v1808_v25 = vadd.f32 %v1799_v23, %v1614_v21  ;;  %v1942_v21 = vld [vmem:[#allocation16 + $0x188] sm:$0xff]  ;;  %v1944_v22 = vld [vmem:[#allocation16 + $0x198] sm:$0xff]  ;;  %v1941_v23 = vld [vmem:[#allocation16 + $0x180] sm:$0xff] }
 0x7f7   :  { %v14128_v26 = vadd.f32 %v11401_v19, %v1808_v25  ;;  %12514 = vmatpush3.msra.mxu1 %v14126_v24  ;;  %v1945_v19 = vld [vmem:[#allocation16 + $0x1a0] sm:$0xff]  ;;  %v1943_v25 = vld [vmem:[#allocation16 + $0x190] sm:$0xff] }
 0x7f8   :  { %12515 = vmatprep.subr.mxu1 %v13691_v58 }
 0x7f9   :  { %12516 = vmatpush3.msra.mxu1 %v14128_v26 }
 0x7fa   :  { %12518 = vmatmul.mubr.msk.f32.vlgmr.msra.gmra.mxu1 %vm1819_vm3, %v1818_v27  ;;  %12520 = vmatprep.subr.mxu1 %v13691_v58  ;;  %v1938_v27 = vld [vmem:[#allocation16 + $0x168] sm:$0xff] }
 0x7fb   :  { %12521 = vmatpush3.msra.mxu1 %v14126_v24  ;;  %12524 = vmatprep.mubr.msk.f32.mxu1 %vm13692_vm1, %v13691_v58 }
 0x7fc   :  { %12522 = vmatprep.subr.mxu1 %v13691_v58 }
 0x7fd   :  { %12523 = vmatpush3.msra.mxu1 %v14128_v26 }
 0x7fe   :  { %12525 = vmatmul.mubr.msk.f32.vlgmr.msra.gmra.mxu1 %vm1819_vm3, %v1958_v28  ;;  %2097 = vmatprep.subr.mxu1 %v2094_v29  ;;  %v1940_v28 = vld [vmem:[#allocation16 + $0x178] sm:$0xff]  ;;  %v1937_v29 = vld [vmem:[#allocation16 + $0x160] sm:$0xff] }
 0x7ff   :  { %2098 = vmatpush1.msra.mxu1 %v2093_v30  ;;  %2161 = vmatprep.mubr.f32.mxu1 %v13691_v58  ;;  %v1939_v30 = vld [vmem:[#allocation16 + $0x170] sm:$0xff] }
 0x800   :  { %2099 = vmatprep.subr.mxu1 %v2090_v31  ;;  %v1934_v31 = vld [vmem:[#allocation16 + $0x148] sm:$0xff] }
 0x801   :  { %2100 = vmatpush1.msra.mxu1 %v2089_v32  ;;  %v1936_v32 = vld [vmem:[#allocation16 + $0x158] sm:$0xff] }
 0x802   :  { %2101 = vmatprep.subr.mxu1 %v2086_v33  ;;  %v1933_v33 = vld [vmem:[#allocation16 + $0x140] sm:$0xff] }
 0x803   :  { %2102 = vmatpush1.msra.mxu1 %v2085_v34  ;;  %v1935_v34 = vld [vmem:[#allocation16 + $0x150] sm:$0xff] }
 0x804   :  { %2103 = vmatprep.subr.mxu1 %v2082_v35  ;;  %v1930_v35 = vld [vmem:[#allocation16 + $0x128] sm:$0xff] }
 0x805   :  { %2104 = vmatpush1.msra.mxu1 %v2081_v36  ;;  %v1932_v36 = vld [vmem:[#allocation16 + $0x138] sm:$0xff] }
 0x806   :  { %2105 = vmatprep.subr.mxu1 %v2078_v37  ;;  %v1929_v37 = vld [vmem:[#allocation16 + $0x120] sm:$0xff] }
 0x807   :  { %2106 = vmatpush1.msra.mxu1 %v2077_v38  ;;  %v1931_v38 = vld [vmem:[#allocation16 + $0x130] sm:$0xff] }
 0x808   :  { %2107 = vmatprep.subr.mxu1 %v2074_v39  ;;  %v1926_v39 = vld [vmem:[#allocation16 + $0x108] sm:$0xff] }
 0x809   :  { %2108 = vmatpush1.msra.mxu1 %v2073_v40  ;;  %v1928_v40 = vld [vmem:[#allocation16 + $0x118] sm:$0xff] }
 0x80a   :  { %2109 = vmatprep.subr.mxu1 %v2070_v41  ;;  %v1925_v41 = vld [vmem:[#allocation16 + $0x100] sm:$0xff] }
 0x80b   :  { %2110 = vmatpush1.msra.mxu1 %v2069_v42  ;;  %v1927_v42 = vld [vmem:[#allocation16 + $0x110] sm:$0xff] }
 0x80c   :  { %2111 = vmatprep.subr.mxu1 %v2066_v43  ;;  %v1922_v43 = vld [vmem:[#allocation16 + $0xe8] sm:$0xff] }
 0x80d   :  { %2112 = vmatpush1.msra.mxu1 %v2065_v44  ;;  %v1924_v44 = vld [vmem:[#allocation16 + $0xf8] sm:$0xff] }
 0x80e   :  { %2113 = vmatprep.subr.mxu1 %v2062_v45  ;;  %v1921_v45 = vld [vmem:[#allocation16 + $0xe0] sm:$0xff] }
 0x80f   :  { %2114 = vmatpush1.msra.mxu1 %v2061_v46  ;;  %v1923_v46 = vld [vmem:[#allocation16 + $0xf0] sm:$0xff] }
 0x810   :  { %2115 = vmatprep.subr.mxu1 %v2058_v47  ;;  %v1918_v47 = vld [vmem:[#allocation16 + $0xc8] sm:$0xff] }
 0x811   :  { %2116 = vmatpush1.msra.mxu1 %v2057_v48  ;;  %v1920_v48 = vld [vmem:[#allocation16 + $0xd8] sm:$0xff] }
 0x812   :  { %2117 = vmatprep.subr.mxu1 %v2054_v49  ;;  %v1917_v49 = vld [vmem:[#allocation16 + $0xc0] sm:$0xff] }
 0x813   :  { %2118 = vmatpush1.msra.mxu1 %v2053_v50  ;;  %v1919_v50 = vld [vmem:[#allocation16 + $0xd0] sm:$0xff] }
 0x814   :  { %2119 = vmatprep.subr.mxu1 %v2050_v51  ;;  %v1914_v51 = vld [vmem:[#allocation16 + $0xa8] sm:$0xff] }
 0x815   :  { %2120 = vmatpush1.msra.mxu1 %v2049_v52  ;;  %v1916_v52 = vld [vmem:[#allocation16 + $0xb8] sm:$0xff] }
 0x816   :  { %2121 = vmatprep.subr.mxu1 %v2046_v53  ;;  %v1913_v53 = vld [vmem:[#allocation16 + $0xa0] sm:$0xff] }
 0x817   :  { %2122 = vmatpush1.msra.mxu1 %v2045_v54  ;;  %v1915_v54 = vld [vmem:[#allocation16 + $0xb0] sm:$0xff] }
 0x818   :  { %2123 = vmatprep.subr.mxu1 %v2042_v55  ;;  %v1910_v55 = vld [vmem:[#allocation16 + $0x88] sm:$0xff] }
 0x819   :  { %2124 = vmatpush1.msra.mxu1 %v2041_v56  ;;  %v1912_v56 = vld [vmem:[#allocation16 + $0x98] sm:$0xff] }
 0x81a   :  { %2125 = vmatprep.subr.mxu1 %v2038_v57  ;;  %v1909_v57 = vld [vmem:[#allocation16 + $0x80] sm:$0xff] }
 0x81b   :  { %2126 = vmatpush1.msra.mxu1 %v2037_v63  ;;  %v1906_v63 = vld [vmem:[#allocation16 + $0x68] sm:$0xff] }
 0x81c   :  { %2127 = vmatprep.subr.mxu1 %v2034_v1  ;;  %v1905_v1 = vld [vmem:[#allocation16 + $0x60] sm:$0xff] }
 0x81d   :  { %2128 = vmatpush1.msra.mxu1 %v2033_v7  ;;  %v1902_v7 = vld [vmem:[#allocation16 + $0x48] sm:$0xff] }
 0x81e   :  { %2239 = vmatprep.subr.mxu1 %v1954_v9  ;;  %v1901_v9 = vld [vmem:[#allocation16 + $0x40] sm:$0xff] }
 0x8ba   :  { %v14142_v11 = vpop.f32.mrf.mxu1 }
 0x8bc   :  { %v12519_v12 = vpop.f32.mrf.mxu1 }
 0x8bd   :  { %v1898_v12 = vld [vmem:[#allocation16 + $0x28] sm:$0xff] }
 0x8be   :  { %v2028_v3 = vpop.f32.mrf.mxu1 }
 0x8bf   :  { %2162 = vmatmul.mubr.f32.vlgmr.msra.gmra.mxu1 %v2028_v3  ;;  %2233 = vmatmul.mubr.f32.vlgmr.msra.gmra.mxu0 %v2028_v3  ;;  %v1899_v3 = vld [vmem:[#allocation16 + $0x30] sm:$0xff] }
 0x8c0   :  { %2240 = vmatpush1.msra.mxu1 %v1953_v13  ;;  %2311 = vmatpush1.msra.mxu0 %v1955_v2  ;;  %v12526_v16 = vpop.f32.mrf.mxu1  ;;  %v1900_v13 = vld [vmem:[#allocation16 + $0x38] sm:$0xff]  ;;  %v1897_v2 = vld [vmem:[#allocation16 + $0x20] sm:$0xff] }
 0x8c1   :  { %2241 = vmatprep.subr.mxu1 %v1950_v4  ;;  %2312 = vmatprep.subr.mxu0 %v1952_v5  ;;  %v1894_v4 = vld [vmem:[#allocation16 + $0x8] sm:$0xff]  ;;  %v1896_v5 = vld [vmem:[#allocation16 + $0x18] sm:$0xff] }
 0x8c2   :  { %2242 = vmatpush1.msra.mxu1 %v1949_v14  ;;  %2313 = vmatpush1.msra.mxu0 %v1951_v15  ;;  %v1893_v14 = vld [vmem:[#allocation16] sm:$0xff]  ;;  %v1895_v15 = vld [vmem:[#allocation16 + $0x10] sm:$0xff]  ;;  %v2382_v16 = vld [vmem:[#allocation26 + $0x4] sm:$0x3] }
 0x8c3   :  { %2243 = vmatprep.subr.mxu1 %v1946_v17  ;;  %2314 = vmatprep.subr.mxu0 %v1948_v18  ;;  %v2518_v17 = vld [vmem:[#allocation16 + $0x5e8] sm:$0xff]  ;;  %v2520_v18 = vld [vmem:[#allocation16 + $0x5f8] sm:$0xff] }
 0x8c4   :  { %2244 = vmatpush1.msra.mxu1 %v1945_v19  ;;  %2315 = vmatpush1.msra.mxu0 %v1947_v20  ;;  %v2514_v19 = vld [vmem:[#allocation16 + $0x5c8] sm:$0xff]  ;;  %v2519_v20 = vld [vmem:[#allocation16 + $0x5f0] sm:$0xff] }
 0x8c5   :  { %2245 = vmatprep.subr.mxu1 %v1942_v21  ;;  %2316 = vmatprep.subr.mxu0 %v1944_v22  ;;  %v2513_v21 = vld [vmem:[#allocation16 + $0x5c0] sm:$0xff]  ;;  %v2516_v22 = vld [vmem:[#allocation16 + $0x5d8] sm:$0xff] }
 0x8c6   :  { %2246 = vmatpush1.msra.mxu1 %v1941_v23  ;;  %2317 = vmatpush1.msra.mxu0 %v1943_v25  ;;  %v2510_v23 = vld [vmem:[#allocation16 + $0x5a8] sm:$0xff]  ;;  %v2515_v25 = vld [vmem:[#allocation16 + $0x5d0] sm:$0xff] }
 0x8c7   :  { %2247 = vmatprep.subr.mxu1 %v1938_v27  ;;  %2318 = vmatprep.subr.mxu0 %v1940_v28  ;;  %v2509_v27 = vld [vmem:[#allocation16 + $0x5a0] sm:$0xff]  ;;  %v2512_v28 = vld [vmem:[#allocation16 + $0x5b8] sm:$0xff] }
 0x8c8   :  { %2248 = vmatpush1.msra.mxu1 %v1937_v29  ;;  %2319 = vmatpush1.msra.mxu0 %v1939_v30  ;;  %v2506_v29 = vld [vmem:[#allocation16 + $0x588] sm:$0xff]  ;;  %v2511_v30 = vld [vmem:[#allocation16 + $0x5b0] sm:$0xff] }
 0x8c9   :  { %2249 = vmatprep.subr.mxu1 %v1934_v31  ;;  %2320 = vmatprep.subr.mxu0 %v1936_v32  ;;  %v2508_v31 = vld [vmem:[#allocation16 + $0x598] sm:$0xff]  ;;  %v2505_v32 = vld [vmem:[#allocation16 + $0x580] sm:$0xff] }
 0x8ca   :  { %2250 = vmatpush1.msra.mxu1 %v1933_v33  ;;  %2321 = vmatpush1.msra.mxu0 %v1935_v34  ;;  %v2507_v33 = vld [vmem:[#allocation16 + $0x590] sm:$0xff]  ;;  %v2502_v34 = vld [vmem:[#allocation16 + $0x568] sm:$0xff] }
 0x8cb   :  { %2251 = vmatprep.subr.mxu1 %v1930_v35  ;;  %2322 = vmatprep.subr.mxu0 %v1932_v36  ;;  %v2504_v35 = vld [vmem:[#allocation16 + $0x578] sm:$0xff]  ;;  %v2501_v36 = vld [vmem:[#allocation16 + $0x560] sm:$0xff] }
 0x8cc   :  { %2252 = vmatpush1.msra.mxu1 %v1929_v37  ;;  %2323 = vmatpush1.msra.mxu0 %v1931_v38  ;;  %v2503_v37 = vld [vmem:[#allocation16 + $0x570] sm:$0xff]  ;;  %v2498_v38 = vld [vmem:[#allocation16 + $0x548] sm:$0xff] }
 0x8cd   :  { %2253 = vmatprep.subr.mxu1 %v1926_v39  ;;  %2324 = vmatprep.subr.mxu0 %v1928_v40  ;;  %v2500_v39 = vld [vmem:[#allocation16 + $0x558] sm:$0xff]  ;;  %v2497_v40 = vld [vmem:[#allocation16 + $0x540] sm:$0xff] }
 0x8ce   :  { %2254 = vmatpush1.msra.mxu1 %v1925_v41  ;;  %2325 = vmatpush1.msra.mxu0 %v1927_v42  ;;  %v2499_v41 = vld [vmem:[#allocation16 + $0x550] sm:$0xff]  ;;  %v2494_v42 = vld [vmem:[#allocation16 + $0x528] sm:$0xff] }
 0x8cf   :  { %2255 = vmatprep.subr.mxu1 %v1922_v43  ;;  %2326 = vmatprep.subr.mxu0 %v1924_v44  ;;  %v2496_v43 = vld [vmem:[#allocation16 + $0x538] sm:$0xff]  ;;  %v2493_v44 = vld [vmem:[#allocation16 + $0x520] sm:$0xff] }
 0x8d0   :  { %2256 = vmatpush1.msra.mxu1 %v1921_v45  ;;  %2327 = vmatpush1.msra.mxu0 %v1923_v46  ;;  %v2495_v45 = vld [vmem:[#allocation16 + $0x530] sm:$0xff]  ;;  %v2490_v46 = vld [vmem:[#allocation16 + $0x508] sm:$0xff] }
 0x8d1   :  { %2257 = vmatprep.subr.mxu1 %v1918_v47  ;;  %2328 = vmatprep.subr.mxu0 %v1920_v48  ;;  %v2492_v47 = vld [vmem:[#allocation16 + $0x518] sm:$0xff]  ;;  %v2489_v48 = vld [vmem:[#allocation16 + $0x500] sm:$0xff] }
 0x8d2   :  { %2258 = vmatpush1.msra.mxu1 %v1917_v49  ;;  %2329 = vmatpush1.msra.mxu0 %v1919_v50  ;;  %v2491_v49 = vld [vmem:[#allocation16 + $0x510] sm:$0xff]  ;;  %v2486_v50 = vld [vmem:[#allocation16 + $0x4e8] sm:$0xff] }
 0x8d3   :  { %2259 = vmatprep.subr.mxu1 %v1914_v51  ;;  %2330 = vmatprep.subr.mxu0 %v1916_v52  ;;  %v2488_v51 = vld [vmem:[#allocation16 + $0x4f8] sm:$0xff]  ;;  %v2485_v52 = vld [vmem:[#allocation16 + $0x4e0] sm:$0xff] }
 0x8d4   :  { %2260 = vmatpush1.msra.mxu1 %v1913_v53  ;;  %2331 = vmatpush1.msra.mxu0 %v1915_v54  ;;  %v2487_v53 = vld [vmem:[#allocation16 + $0x4f0] sm:$0xff]  ;;  %v2482_v54 = vld [vmem:[#allocation16 + $0x4c8] sm:$0xff] }
 0x8d5   :  { %2261 = vmatprep.subr.mxu1 %v1910_v55  ;;  %2332 = vmatprep.subr.mxu0 %v1912_v56  ;;  %v2484_v55 = vld [vmem:[#allocation16 + $0x4d8] sm:$0xff]  ;;  %v2481_v56 = vld [vmem:[#allocation16 + $0x4c0] sm:$0xff] }
 0x8d6   :  { %2262 = vmatpush1.msra.mxu1 %v1909_v57  ;;  %2333 = vmatpush1.msra.mxu0 %v1911_v59  ;;  %v2483_v57 = vld [vmem:[#allocation16 + $0x4d0] sm:$0xff]  ;;  %v2478_v59 = vld [vmem:[#allocation16 + $0x4a8] sm:$0xff] }
 0x8d7   :  { %2263 = vmatprep.subr.mxu1 %v1906_v63  ;;  %2334 = vmatprep.subr.mxu0 %v1908_v0  ;;  %v2480_v63 = vld [vmem:[#allocation16 + $0x4b8] sm:$0xff]  ;;  %v2477_v0 = vld [vmem:[#allocation16 + $0x4a0] sm:$0xff] }
 0x8d8   :  { %2264 = vmatpush1.msra.mxu1 %v1905_v1  ;;  %2335 = vmatpush1.msra.mxu0 %v1907_v6  ;;  %v2479_v1 = vld [vmem:[#allocation16 + $0x4b0] sm:$0xff]  ;;  %v2474_v6 = vld [vmem:[#allocation16 + $0x488] sm:$0xff] }
 0x8d9   :  { %2265 = vmatprep.subr.mxu1 %v1902_v7  ;;  %2336 = vmatprep.subr.mxu0 %v1904_v8  ;;  %v2476_v7 = vld [vmem:[#allocation16 + $0x498] sm:$0xff]  ;;  %v2473_v8 = vld [vmem:[#allocation16 + $0x480] sm:$0xff] }
 0x8da   :  { %2266 = vmatpush1.msra.mxu1 %v1901_v9  ;;  %2337 = vmatpush1.msra.mxu0 %v1903_v10  ;;  %v2475_v9 = vld [vmem:[#allocation16 + $0x490] sm:$0xff]  ;;  %v2470_v10 = vld [vmem:[#allocation16 + $0x468] sm:$0xff] }
 0x8db   :  { %2267 = vmatprep.subr.mxu1 %v1898_v12  ;;  %2338 = vmatprep.subr.mxu0 %v1900_v13  ;;  %v2472_v12 = vld [vmem:[#allocation16 + $0x478] sm:$0xff]  ;;  %v2469_v13 = vld [vmem:[#allocation16 + $0x460] sm:$0xff] }
 0x8dc   :  { %2268 = vmatpush1.msra.mxu1 %v1897_v2  ;;  %2339 = vmatpush1.msra.mxu0 %v1899_v3  ;;  %v2471_v2 = vld [vmem:[#allocation16 + $0x470] sm:$0xff]  ;;  %v2466_v3 = vld [vmem:[#allocation16 + $0x448] sm:$0xff] }
 0x8dd   :  { %2269 = vmatprep.subr.mxu1 %v1894_v4  ;;  %2340 = vmatprep.subr.mxu0 %v1896_v5  ;;  %v2468_v4 = vld [vmem:[#allocation16 + $0x458] sm:$0xff]  ;;  %v2465_v5 = vld [vmem:[#allocation16 + $0x440] sm:$0xff] }
 0x8de   :  { %2270 = vmatpush1.msra.mxu1 %v1893_v14  ;;  %2303 = vmatprep.mubr.f32.mxu1 %v13691_v58  ;;  %v2462_v14 = vld [vmem:[#allocation16 + $0x428] sm:$0xff] }
 0x8df   :  { %2341 = vmatpush1.msra.mxu0 %v1895_v15  ;;  %2374 = vmatprep.mubr.f32.mxu0 %v13691_v58  ;;  %v2467_v15 = vld [vmem:[#allocation16 + $0x450] sm:$0xff] }
 0x8e0   :  { %2304 = vmatmul.mubr.f32.vlgmr.msra.gmra.mxu1 %v14142_v11  ;;  %2375 = vmatmul.mubr.f32.vlgmr.msra.gmra.mxu0 %v14142_v11  ;;  %v2517_v11 = vld [vmem:[#allocation16 + $0x5e0] sm:$0xff] }
 0x8e1   :  { %12527 = vmatprep.subr.mxu1 %v13691_v58  ;;  %12531 = vmatprep.mubr.msk.f32.mxu1 %vm13692_vm1, %v13691_v58 }
 0x8e2   :  { %12528 = vmatpush3.msra.mxu1 %v14126_v24  ;;  %2656 = vmatprep.mubr.f32.mxu0 %v13691_v58 }
 0x8e3   :  { %12529 = vmatprep.subr.mxu1 %v13691_v58  ;;  %2592 = vmatprep.subr.mxu0 %v2520_v18  ;;  %v2463_v18 = vld [vmem:[#allocation16 + $0x430] sm:$0xff] }
 0x8e4   :  { %12530 = vmatpush3.msra.mxu1 %v14128_v26  ;;  %2593 = vmatpush1.msra.mxu0 %v2519_v20  ;;  %v2460_v20 = vld [vmem:[#allocation16 + $0x418] sm:$0xff] }
 0x8e5   :  { %12532 = vmatmul.mubr.msk.f32.vlgmr.msra.gmra.mxu1 %vm1819_vm3, %v2382_v16  ;;  %2521 = vmatprep.subr.mxu1 %v2518_v17  ;;  %v2461_v16 = vld [vmem:[#allocation16 + $0x420] sm:$0xff]  ;;  %v2464_v17 = vld [vmem:[#allocation16 + $0x438] sm:$0xff] }
 0x8e6   :  { %2585 = vmatprep.mubr.f32.mxu1 %v13691_v58  ;;  %2522 = vmatpush1.msra.mxu1 %v2517_v11  ;;  %v2458_v11 = vld [vmem:[#allocation16 + $0x408] sm:$0xff] }
 0x8e7   :  { %2523 = vmatprep.subr.mxu1 %v2514_v19  ;;  %2594 = vmatprep.subr.mxu0 %v2516_v22  ;;  %v2457_v19 = vld [vmem:[#allocation16 + $0x400] sm:$0xff]  ;;  %v2806_v22 = vld [vmem:[#allocation16 + $0x7f8] sm:$0xff] }
 0x8e8   :  { %2524 = vmatpush1.msra.mxu1 %v2513_v21  ;;  %2595 = vmatpush1.msra.mxu0 %v2515_v25  ;;  %v2459_v21 = vld [vmem:[#allocation16 + $0x410] sm:$0xff] }
 0x8e9   :  { %2525 = vmatprep.subr.mxu1 %v2510_v23  ;;  %2596 = vmatprep.subr.mxu0 %v2512_v28 }
 0x8ea   :  { %2526 = vmatpush1.msra.mxu1 %v2509_v27  ;;  %2597 = vmatpush1.msra.mxu0 %v2511_v30 }
 0x8eb   :  { %2527 = vmatprep.subr.mxu1 %v2506_v29  ;;  %2598 = vmatprep.subr.mxu0 %v2508_v31  ;;  %v2805_v31 = vld [vmem:[#allocation16 + $0x7f0] sm:$0xff] }
 0x8ec   :  { %2528 = vmatpush1.msra.mxu1 %v2505_v32  ;;  %2599 = vmatpush1.msra.mxu0 %v2507_v33  ;;  %v2802_v32 = vld [vmem:[#allocation16 + $0x7d8] sm:$0xff] }
 0x8ed   :  { %2529 = vmatprep.subr.mxu1 %v2502_v34  ;;  %2600 = vmatprep.subr.mxu0 %v2504_v35  ;;  %v2668_v34 = vld [vmem:[#allocation26 + $0x6] sm:$0x3] }
 0x8ee   :  { %2530 = vmatpush1.msra.mxu1 %v2501_v36  ;;  %2601 = vmatpush1.msra.mxu0 %v2503_v37  ;;  %v2804_v35 = vld [vmem:[#allocation16 + $0x7e8] sm:$0xff]  ;;  %v2803_v36 = vld [vmem:[#allocation16 + $0x7e0] sm:$0xff]  ;;  %v2801_v37 = vld [vmem:[#allocation16 + $0x7d0] sm:$0xff] }
 0x8ef   :  { %2531 = vmatprep.subr.mxu1 %v2498_v38  ;;  %2602 = vmatprep.subr.mxu0 %v2500_v39  ;;  %v2800_v38 = vld [vmem:[#allocation16 + $0x7c8] sm:$0xff]  ;;  %v2798_v39 = vld [vmem:[#allocation16 + $0x7b8] sm:$0xff] }
 0x8f0   :  { %2532 = vmatpush1.msra.mxu1 %v2497_v40  ;;  %2603 = vmatpush1.msra.mxu0 %v2499_v41  ;;  %v2799_v40 = vld [vmem:[#allocation16 + $0x7c0] sm:$0xff]  ;;  %v2797_v41 = vld [vmem:[#allocation16 + $0x7b0] sm:$0xff] }
 0x8f1   :  { %2533 = vmatprep.subr.mxu1 %v2494_v42  ;;  %2604 = vmatprep.subr.mxu0 %v2496_v43  ;;  %v2796_v42 = vld [vmem:[#allocation16 + $0x7a8] sm:$0xff]  ;;  %v2794_v43 = vld [vmem:[#allocation16 + $0x798] sm:$0xff] }
 0x8f2   :  { %2534 = vmatpush1.msra.mxu1 %v2493_v44  ;;  %2605 = vmatpush1.msra.mxu0 %v2495_v45  ;;  %v2795_v44 = vld [vmem:[#allocation16 + $0x7a0] sm:$0xff]  ;;  %v2793_v45 = vld [vmem:[#allocation16 + $0x790] sm:$0xff] }
 0x8f3   :  { %2535 = vmatprep.subr.mxu1 %v2490_v46  ;;  %2606 = vmatprep.subr.mxu0 %v2492_v47  ;;  %v2792_v46 = vld [vmem:[#allocation16 + $0x788] sm:$0xff]  ;;  %v2790_v47 = vld [vmem:[#allocation16 + $0x778] sm:$0xff] }
 0x8f4   :  { %2536 = vmatpush1.msra.mxu1 %v2489_v48  ;;  %2607 = vmatpush1.msra.mxu0 %v2491_v49  ;;  %v2791_v48 = vld [vmem:[#allocation16 + $0x780] sm:$0xff]  ;;  %v2789_v49 = vld [vmem:[#allocation16 + $0x770] sm:$0xff] }
 0x8f5   :  { %2537 = vmatprep.subr.mxu1 %v2486_v50  ;;  %2608 = vmatprep.subr.mxu0 %v2488_v51  ;;  %v2788_v50 = vld [vmem:[#allocation16 + $0x768] sm:$0xff]  ;;  %v2786_v51 = vld [vmem:[#allocation16 + $0x758] sm:$0xff] }
 0x8f6   :  { %2538 = vmatpush1.msra.mxu1 %v2485_v52  ;;  %2609 = vmatpush1.msra.mxu0 %v2487_v53  ;;  %v2787_v52 = vld [vmem:[#allocation16 + $0x760] sm:$0xff]  ;;  %v2785_v53 = vld [vmem:[#allocation16 + $0x750] sm:$0xff] }
 0x8f7   :  { %2539 = vmatprep.subr.mxu1 %v2482_v54  ;;  %2610 = vmatprep.subr.mxu0 %v2484_v55  ;;  %v2784_v54 = vld [vmem:[#allocation16 + $0x748] sm:$0xff]  ;;  %v2782_v55 = vld [vmem:[#allocation16 + $0x738] sm:$0xff] }
 0x8f8   :  { %2540 = vmatpush1.msra.mxu1 %v2481_v56  ;;  %2611 = vmatpush1.msra.mxu0 %v2483_v57  ;;  %v2783_v56 = vld [vmem:[#allocation16 + $0x740] sm:$0xff]  ;;  %v2781_v57 = vld [vmem:[#allocation16 + $0x730] sm:$0xff] }
 0x8f9   :  { %2541 = vmatprep.subr.mxu1 %v2478_v59  ;;  %2612 = vmatprep.subr.mxu0 %v2480_v63  ;;  %v2780_v59 = vld [vmem:[#allocation16 + $0x728] sm:$0xff]  ;;  %v2778_v63 = vld [vmem:[#allocation16 + $0x718] sm:$0xff] }
 0x8fa   :  { %2542 = vmatpush1.msra.mxu1 %v2477_v0  ;;  %2613 = vmatpush1.msra.mxu0 %v2479_v1  ;;  %v2779_v0 = vld [vmem:[#allocation16 + $0x720] sm:$0xff]  ;;  %v2777_v1 = vld [vmem:[#allocation16 + $0x710] sm:$0xff] }
 0x8fb   :  { %2543 = vmatprep.subr.mxu1 %v2474_v6  ;;  %2614 = vmatprep.subr.mxu0 %v2476_v7  ;;  %v2776_v6 = vld [vmem:[#allocation16 + $0x708] sm:$0xff]  ;;  %v2774_v7 = vld [vmem:[#allocation16 + $0x6f8] sm:$0xff] }
 0x8fc   :  { %2544 = vmatpush1.msra.mxu1 %v2473_v8  ;;  %2615 = vmatpush1.msra.mxu0 %v2475_v9  ;;  %v2775_v8 = vld [vmem:[#allocation16 + $0x700] sm:$0xff]  ;;  %v2773_v9 = vld [vmem:[#allocation16 + $0x6f0] sm:$0xff] }
 0x8fd   :  { %2545 = vmatprep.subr.mxu1 %v2470_v10  ;;  %2616 = vmatprep.subr.mxu0 %v2472_v12  ;;  %v2772_v10 = vld [vmem:[#allocation16 + $0x6e8] sm:$0xff]  ;;  %v2770_v12 = vld [vmem:[#allocation16 + $0x6d8] sm:$0xff] }
 0x8fe   :  { %2546 = vmatpush1.msra.mxu1 %v2469_v13  ;;  %2617 = vmatpush1.msra.mxu0 %v2471_v2  ;;  %v2771_v13 = vld [vmem:[#allocation16 + $0x6e0] sm:$0xff]  ;;  %v2769_v2 = vld [vmem:[#allocation16 + $0x6d0] sm:$0xff] }
 0x8ff   :  { %2547 = vmatprep.subr.mxu1 %v2466_v3  ;;  %2618 = vmatprep.subr.mxu0 %v2468_v4  ;;  %v2768_v3 = vld [vmem:[#allocation16 + $0x6c8] sm:$0xff]  ;;  %v2766_v4 = vld [vmem:[#allocation16 + $0x6b8] sm:$0xff] }
 0x900   :  { %2548 = vmatpush1.msra.mxu1 %v2465_v5  ;;  %2619 = vmatpush1.msra.mxu0 %v2467_v15  ;;  %v2767_v5 = vld [vmem:[#allocation16 + $0x6c0] sm:$0xff]  ;;  %v2764_v15 = vld [vmem:[#allocation16 + $0x6a8] sm:$0xff] }
 0x901   :  { %2549 = vmatprep.subr.mxu1 %v2462_v14  ;;  %2620 = vmatprep.subr.mxu0 %v2464_v17  ;;  %v2765_v14 = vld [vmem:[#allocation16 + $0x6b0] sm:$0xff]  ;;  %v2763_v17 = vld [vmem:[#allocation16 + $0x6a0] sm:$0xff] }
 0x902   :  { %2550 = vmatpush1.msra.mxu1 %v2461_v16  ;;  %2621 = vmatpush1.msra.mxu0 %v2463_v18  ;;  %v2762_v16 = vld [vmem:[#allocation16 + $0x698] sm:$0xff]  ;;  %v2760_v18 = vld [vmem:[#allocation16 + $0x688] sm:$0xff] }
 0x903   :  { %2551 = vmatprep.subr.mxu1 %v2458_v11  ;;  %2622 = vmatprep.subr.mxu0 %v2460_v20  ;;  %v2761_v11 = vld [vmem:[#allocation16 + $0x690] sm:$0xff]  ;;  %v2759_v20 = vld [vmem:[#allocation16 + $0x680] sm:$0xff] }
 0x904   :  { %2552 = vmatpush1.msra.mxu1 %v2457_v19  ;;  %2623 = vmatpush1.msra.mxu0 %v2459_v21  ;;  %v2758_v19 = vld [vmem:[#allocation16 + $0x678] sm:$0xff]  ;;  %v2757_v21 = vld [vmem:[#allocation16 + $0x670] sm:$0xff] }
 0x905   :  { %12534 = vmatprep.subr.mxu1 %v13691_v58  ;;  %2878 = vmatprep.subr.mxu0 %v2806_v22  ;;  %v2756_v22 = vld [vmem:[#allocation16 + $0x668] sm:$0xff] }
 0x97f   :  { %v2163_v23 = vpop.f32.mrf.mxu1 }
 0x981   :  { %v14158_v25 = vpop.f32.mrf.mxu1 }
 0x9a0   :  { %v2305_v27 = vpop.f32.mrf.mxu1 }
 0x9a1   :  { %v14160_v28 = vadd.f32 %v2305_v27, %v2163_v23  ;;  %v2754_v23 = vld [vmem:[#allocation16 + $0x658] sm:$0xff]  ;;  %v2755_v27 = vld [vmem:[#allocation16 + $0x660] sm:$0xff] }
 0x9a2   :  { %v14162_v29 = vpop.f32.mrf.mxu1 }
 0x9a5   :  { %v2452_v30 = vpop.f32.mrf.mxu1 }
 0x9a6   :  { %2586 = vmatmul.mubr.f32.vlgmr.msra.gmra.mxu1 %v2452_v30  ;;  %2657 = vmatmul.mubr.f32.vlgmr.msra.gmra.mxu0 %v2452_v30  ;;  %v2752_v30 = vld [vmem:[#allocation16 + $0x648] sm:$0xff] }
 0x9a7   :  { %12535 = vmatpush3.msra.mxu1 %v14126_v24  ;;  %v12533_v33 = vpop.f32.mrf.mxu1  ;;  %12538 = vmatprep.mubr.msk.f32.mxu1 %vm13692_vm1, %v13691_v58 }
 0x9a8   :  { %12536 = vmatprep.subr.mxu1 %v13691_v58  ;;  %2879 = vmatpush1.msra.mxu0 %v2805_v31  ;;  %v2751_v31 = vld [vmem:[#allocation16 + $0x640] sm:$0xff]  ;;  %v2753_v33 = vld [vmem:[#allocation16 + $0x650] sm:$0xff] }
 0x9a9   :  { %12537 = vmatpush3.msra.mxu1 %v14128_v26  ;;  %2880 = vmatprep.subr.mxu0 %v2802_v32  ;;  %v2748_v32 = vld [vmem:[#allocation16 + $0x628] sm:$0xff] }
 0x9aa   :  { %12539 = vmatmul.mubr.msk.f32.vlgmr.msra.gmra.mxu1 %vm1819_vm3, %v2668_v34  ;;  %2807 = vmatprep.subr.mxu1 %v2804_v35  ;;  %v2747_v34 = vld [vmem:[#allocation16 + $0x620] sm:$0xff]  ;;  %v2750_v35 = vld [vmem:[#allocation16 + $0x638] sm:$0xff] }
 0x9ab   :  { %2808 = vmatpush1.msra.mxu1 %v2803_v36  ;;  %2881 = vmatpush1.msra.mxu0 %v2801_v37  ;;  %v2744_v36 = vld [vmem:[#allocation16 + $0x608] sm:$0xff]  ;;  %v2749_v37 = vld [vmem:[#allocation16 + $0x630] sm:$0xff] }
 0x9ac   :  { %2809 = vmatprep.subr.mxu1 %v2800_v38  ;;  %2882 = vmatprep.subr.mxu0 %v2798_v39  ;;  %v2743_v38 = vld [vmem:[#allocation16 + $0x600] sm:$0xff]  ;;  %v2746_v39 = vld [vmem:[#allocation16 + $0x618] sm:$0xff] }
 0x9ad   :  { %2810 = vmatpush1.msra.mxu1 %v2799_v40  ;;  %2883 = vmatpush1.msra.mxu0 %v2797_v41  ;;  %v2745_v40 = vld [vmem:[#allocation16 + $0x610] sm:$0xff]  ;;  %v3092_v41 = vld [vmem:[#allocation16 + $0x9f8] sm:$0xff] }
 0x9ae   :  { %2811 = vmatprep.subr.mxu1 %v2796_v42  ;;  %2884 = vmatprep.subr.mxu0 %v2794_v43 }
 0x9af   :  { %2812 = vmatpush1.msra.mxu1 %v2795_v44  ;;  %2885 = vmatpush1.msra.mxu0 %v2793_v45 }
 0x9b0   :  { %2813 = vmatprep.subr.mxu1 %v2792_v46  ;;  %2886 = vmatprep.subr.mxu0 %v2790_v47  ;;  %v3091_v46 = vld [vmem:[#allocation16 + $0x9f0] sm:$0xff]  ;;  %v3088_v47 = vld [vmem:[#allocation16 + $0x9d8] sm:$0xff] }
 0x9b1   :  { %2814 = vmatpush1.msra.mxu1 %v2791_v48  ;;  %2887 = vmatpush1.msra.mxu0 %v2789_v49  ;;  %v2954_v49 = vld [vmem:[#allocation26 + $0x8] sm:$0x3] }
 0x9b2   :  { %2815 = vmatprep.subr.mxu1 %v2788_v50  ;;  %2888 = vmatprep.subr.mxu0 %v2786_v51  ;;  %v3090_v50 = vld [vmem:[#allocation16 + $0x9e8] sm:$0xff]  ;;  %v3089_v51 = vld [vmem:[#allocation16 + $0x9e0] sm:$0xff] }
 0x9b3   :  { %2816 = vmatpush1.msra.mxu1 %v2787_v52  ;;  %2889 = vmatpush1.msra.mxu0 %v2785_v53  ;;  %v3086_v52 = vld [vmem:[#allocation16 + $0x9c8] sm:$0xff]  ;;  %v3084_v53 = vld [vmem:[#allocation16 + $0x9b8] sm:$0xff] }
 0x9b4   :  { %2817 = vmatprep.subr.mxu1 %v2784_v54  ;;  %2890 = vmatprep.subr.mxu0 %v2782_v55  ;;  %v3085_v54 = vld [vmem:[#allocation16 + $0x9c0] sm:$0xff]  ;;  %v3083_v55 = vld [vmem:[#allocation16 + $0x9b0] sm:$0xff] }
 0x9b5   :  { %2818 = vmatpush1.msra.mxu1 %v2783_v56  ;;  %2891 = vmatpush1.msra.mxu0 %v2781_v57  ;;  %v3082_v56 = vld [vmem:[#allocation16 + $0x9a8] sm:$0xff]  ;;  %v3080_v57 = vld [vmem:[#allocation16 + $0x998] sm:$0xff] }
 0x9b6   :  { %2819 = vmatprep.subr.mxu1 %v2780_v59  ;;  %2892 = vmatprep.subr.mxu0 %v2778_v63  ;;  %v3081_v59 = vld [vmem:[#allocation16 + $0x9a0] sm:$0xff]  ;;  %v3079_v63 = vld [vmem:[#allocation16 + $0x990] sm:$0xff] }
 0x9b7   :  { %2820 = vmatpush1.msra.mxu1 %v2779_v0  ;;  %2893 = vmatpush1.msra.mxu0 %v2777_v1  ;;  %v3078_v0 = vld [vmem:[#allocation16 + $0x988] sm:$0xff]  ;;  %v3076_v1 = vld [vmem:[#allocation16 + $0x978] sm:$0xff] }
 0x9b8   :  { %2821 = vmatprep.subr.mxu1 %v2776_v6  ;;  %2894 = vmatprep.subr.mxu0 %v2774_v7  ;;  %v3077_v6 = vld [vmem:[#allocation16 + $0x980] sm:$0xff]  ;;  %v3075_v7 = vld [vmem:[#allocation16 + $0x970] sm:$0xff] }
 0x9b9   :  { %2822 = vmatpush1.msra.mxu1 %v2775_v8  ;;  %2895 = vmatpush1.msra.mxu0 %v2773_v9  ;;  %v3074_v8 = vld [vmem:[#allocation16 + $0x968] sm:$0xff]  ;;  %v3072_v9 = vld [vmem:[#allocation16 + $0x958] sm:$0xff] }
 0x9ba   :  { %2823 = vmatprep.subr.mxu1 %v2772_v10  ;;  %2896 = vmatprep.subr.mxu0 %v2770_v12  ;;  %v3073_v10 = vld [vmem:[#allocation16 + $0x960] sm:$0xff]  ;;  %v3071_v12 = vld [vmem:[#allocation16 + $0x950] sm:$0xff] }
 0x9bb   :  { %2824 = vmatpush1.msra.mxu1 %v2771_v13  ;;  %2897 = vmatpush1.msra.mxu0 %v2769_v2  ;;  %v3070_v13 = vld [vmem:[#allocation16 + $0x948] sm:$0xff]  ;;  %v3068_v2 = vld [vmem:[#allocation16 + $0x938] sm:$0xff] }
 0x9bc   :  { %2825 = vmatprep.subr.mxu1 %v2768_v3  ;;  %2898 = vmatprep.subr.mxu0 %v2766_v4  ;;  %v3069_v3 = vld [vmem:[#allocation16 + $0x940] sm:$0xff]  ;;  %v3067_v4 = vld [vmem:[#allocation16 + $0x930] sm:$0xff] }
 0x9bd   :  { %2826 = vmatpush1.msra.mxu1 %v2767_v5  ;;  %2899 = vmatpush1.msra.mxu0 %v2765_v14  ;;  %v3066_v5 = vld [vmem:[#allocation16 + $0x928] sm:$0xff]  ;;  %v3064_v14 = vld [vmem:[#allocation16 + $0x918] sm:$0xff] }
 0x9be   :  { %2827 = vmatprep.subr.mxu1 %v2764_v15  ;;  %2900 = vmatprep.subr.mxu0 %v2762_v16  ;;  %v3065_v15 = vld [vmem:[#allocation16 + $0x920] sm:$0xff]  ;;  %v3063_v16 = vld [vmem:[#allocation16 + $0x910] sm:$0xff] }
 0x9bf   :  { %2828 = vmatpush1.msra.mxu1 %v2763_v17  ;;  %2901 = vmatpush1.msra.mxu0 %v2761_v11  ;;  %v3062_v17 = vld [vmem:[#allocation16 + $0x908] sm:$0xff]  ;;  %v3060_v11 = vld [vmem:[#allocation16 + $0x8f8] sm:$0xff] }
 0x9c0   :  { %2829 = vmatprep.subr.mxu1 %v2760_v18  ;;  %2902 = vmatprep.subr.mxu0 %v2758_v19  ;;  %v3061_v18 = vld [vmem:[#allocation16 + $0x900] sm:$0xff]  ;;  %v3059_v19 = vld [vmem:[#allocation16 + $0x8f0] sm:$0xff] }
 0x9c1   :  { %2830 = vmatpush1.msra.mxu1 %v2759_v20  ;;  %2903 = vmatpush1.msra.mxu0 %v2757_v21  ;;  %v3058_v20 = vld [vmem:[#allocation16 + $0x8e8] sm:$0xff]  ;;  %v3056_v21 = vld [vmem:[#allocation16 + $0x8d8] sm:$0xff] }
 0x9c2   :  { %2831 = vmatprep.subr.mxu1 %v2756_v22  ;;  %2904 = vmatprep.subr.mxu0 %v2754_v23  ;;  %v3057_v22 = vld [vmem:[#allocation16 + $0x8e0] sm:$0xff]  ;;  %v3055_v23 = vld [vmem:[#allocation16 + $0x8d0] sm:$0xff] }
 0x9c3   :  { %2832 = vmatpush1.msra.mxu1 %v2755_v27  ;;  %2871 = vmatprep.mubr.f32.mxu1 %v13691_v58  ;;  %v3054_v27 = vld [vmem:[#allocation16 + $0x8c8] sm:$0xff] }
 0x9c4   :  { %2833 = vmatprep.subr.mxu1 %v2752_v30  ;;  %2942 = vmatprep.mubr.f32.mxu0 %v13691_v58  ;;  %v3052_v30 = vld [vmem:[#allocation16 + $0x8b8] sm:$0xff] }
 0x9c5   :  { %2834 = vmatpush1.msra.mxu1 %v2751_v31  ;;  %2905 = vmatpush1.msra.mxu0 %v2753_v33  ;;  %v3053_v31 = vld [vmem:[#allocation16 + $0x8c0] sm:$0xff]  ;;  %v3050_v33 = vld [vmem:[#allocation16 + $0x8a8] sm:$0xff] }
 0x9c6   :  { %2835 = vmatprep.subr.mxu1 %v2748_v32  ;;  %2906 = vmatprep.subr.mxu0 %v2750_v35  ;;  %v3051_v32 = vld [vmem:[#allocation16 + $0x8b0] sm:$0xff]  ;;  %v3049_v35 = vld [vmem:[#allocation16 + $0x8a0] sm:$0xff] }
 0x9c7   :  { %2836 = vmatpush1.msra.mxu1 %v2747_v34  ;;  %2907 = vmatpush1.msra.mxu0 %v2749_v37  ;;  %v3048_v34 = vld [vmem:[#allocation16 + $0x898] sm:$0xff]  ;;  %v3046_v37 = vld [vmem:[#allocation16 + $0x888] sm:$0xff] }
 0x9c8   :  { %2837 = vmatprep.subr.mxu1 %v2744_v36  ;;  %2908 = vmatprep.subr.mxu0 %v2746_v39  ;;  %v3047_v36 = vld [vmem:[#allocation16 + $0x890] sm:$0xff]  ;;  %v3045_v39 = vld [vmem:[#allocation16 + $0x880] sm:$0xff] }
 0x9c9   :  { %2838 = vmatpush1.msra.mxu1 %v2743_v38  ;;  %2909 = vmatpush1.msra.mxu0 %v2745_v40  ;;  %v3044_v38 = vld [vmem:[#allocation16 + $0x878] sm:$0xff]  ;;  %v3043_v40 = vld [vmem:[#allocation16 + $0x870] sm:$0xff] }
 0x9ca   :  { %12541 = vmatprep.subr.mxu1 %v13691_v58  ;;  %3164 = vmatprep.subr.mxu0 %v3092_v41  ;;  %v3042_v41 = vld [vmem:[#allocation16 + $0x868] sm:$0xff] }
 0xa66   :  { %v2587_v42 = vpop.f32.mrf.mxu1 }
 0xa67   :  { %v14174_v43 = vadd.f32 %v2587_v42, %v14160_v28  ;;  %v3087_v28 = vld [vmem:[#allocation16 + $0x9d0] sm:$0xff]  ;;  %v3040_v42 = vld [vmem:[#allocation16 + $0x858] sm:$0xff] }
 0xa68   :  { %v14176_v44 = vpop.f32.mrf.mxu1 }
 0xa6a   :  { %v2738_v45 = vpop.f32.mrf.mxu1 }
 0xa6b   :  { %2872 = vmatmul.mubr.f32.vlgmr.msra.gmra.mxu1 %v2738_v45  ;;  %2943 = vmatmul.mubr.f32.vlgmr.msra.gmra.mxu0 %v2738_v45  ;;  %v3041_v45 = vld [vmem:[#allocation16 + $0x860] sm:$0xff] }
 0xa6c   :  { %12542 = vmatpush3.msra.mxu1 %v14126_v24  ;;  %v12540_v48 = vpop.f32.mrf.mxu1  ;;  %12545 = vmatprep.mubr.msk.f32.mxu1 %vm13692_vm1, %v13691_v58 }
 0xa6d   :  { %12543 = vmatprep.subr.mxu1 %v13691_v58  ;;  %3165 = vmatpush1.msra.mxu0 %v3091_v46  ;;  %v3038_v46 = vld [vmem:[#allocation16 + $0x848] sm:$0xff] }
 0xa6e   :  { %12544 = vmatpush3.msra.mxu1 %v14128_v26  ;;  %3166 = vmatprep.subr.mxu0 %v3088_v47  ;;  %v3037_v47 = vld [vmem:[#allocation16 + $0x840] sm:$0xff]  ;;  %v3034_v48 = vld [vmem:[#allocation16 + $0x828] sm:$0xff] }
 0xa6f   :  { %12546 = vmatmul.mubr.msk.f32.vlgmr.msra.gmra.mxu1 %vm1819_vm3, %v2954_v49  ;;  %3093 = vmatprep.subr.mxu1 %v3090_v50  ;;  %v3039_v49 = vld [vmem:[#allocation16 + $0x850] sm:$0xff]  ;;  %v3033_v50 = vld [vmem:[#allocation16 + $0x820] sm:$0xff] }
 0xa70   :  { %3094 = vmatpush1.msra.mxu1 %v3089_v51  ;;  %3167 = vmatpush1.msra.mxu0 %v3087_v28  ;;  %v3036_v51 = vld [vmem:[#allocation16 + $0x838] sm:$0xff]  ;;  %v3030_v28 = vld [vmem:[#allocation16 + $0x808] sm:$0xff] }
 0xa71   :  { %3095 = vmatprep.subr.mxu1 %v3086_v52  ;;  %3168 = vmatprep.subr.mxu0 %v3084_v53  ;;  %v3035_v52 = vld [vmem:[#allocation16 + $0x830] sm:$0xff]  ;;  %v3029_v53 = vld [vmem:[#allocation16 + $0x800] sm:$0xff] }
 0xa72   :  { %3096 = vmatpush1.msra.mxu1 %v3085_v54  ;;  %3169 = vmatpush1.msra.mxu0 %v3083_v55  ;;  %v3032_v54 = vld [vmem:[#allocation16 + $0x818] sm:$0xff]  ;;  %v3031_v55 = vld [vmem:[#allocation16 + $0x810] sm:$0xff] }
 0xa73   :  { %3097 = vmatprep.subr.mxu1 %v3082_v56  ;;  %3170 = vmatprep.subr.mxu0 %v3080_v57  ;;  %v3376_v56 = vld [vmem:[#allocation16 + $0xbe8] sm:$0xff] }
 0xa74   :  { %3098 = vmatpush1.msra.mxu1 %v3081_v59  ;;  %3171 = vmatpush1.msra.mxu0 %v3079_v63 }
 0xa75   :  { %3099 = vmatprep.subr.mxu1 %v3078_v0  ;;  %3172 = vmatprep.subr.mxu0 %v3076_v1  ;;  %v3375_v1 = vld [vmem:[#allocation16 + $0xbe0] sm:$0xff] }
 0xa76   :  { %3100 = vmatpush1.msra.mxu1 %v3077_v6  ;;  %3173 = vmatpush1.msra.mxu0 %v3075_v7  ;;  %v3372_v6 = vld [vmem:[#allocation16 + $0xbc8] sm:$0xff] }
 0xa77   :  { %3101 = vmatprep.subr.mxu1 %v3074_v8  ;;  %3174 = vmatprep.subr.mxu0 %v3072_v9  ;;  %v3240_v8 = vld [vmem:[#allocation26 + $0xa] sm:$0x3]  ;;  %v3378_v9 = vld [vmem:[#allocation16 + $0xbf8] sm:$0xff] }
 0xa78   :  { %3102 = vmatpush1.msra.mxu1 %v3073_v10  ;;  %3175 = vmatpush1.msra.mxu0 %v3071_v12  ;;  %v3377_v10 = vld [vmem:[#allocation16 + $0xbf0] sm:$0xff]  ;;  %v3374_v12 = vld [vmem:[#allocation16 + $0xbd8] sm:$0xff] }
 0xa79   :  { %3103 = vmatprep.subr.mxu1 %v3070_v13  ;;  %3176 = vmatprep.subr.mxu0 %v3068_v2  ;;  %v3368_v13 = vld [vmem:[#allocation16 + $0xba8] sm:$0xff]  ;;  %v3373_v2 = vld [vmem:[#allocation16 + $0xbd0] sm:$0xff] }
 0xa7a   :  { %3104 = vmatpush1.msra.mxu1 %v3069_v3  ;;  %3177 = vmatpush1.msra.mxu0 %v3067_v4  ;;  %v3367_v3 = vld [vmem:[#allocation16 + $0xba0] sm:$0xff]  ;;  %v3370_v4 = vld [vmem:[#allocation16 + $0xbb8] sm:$0xff] }
 0xa7b   :  { %3105 = vmatprep.subr.mxu1 %v3066_v5  ;;  %3178 = vmatprep.subr.mxu0 %v3064_v14  ;;  %v3364_v5 = vld [vmem:[#allocation16 + $0xb88] sm:$0xff]  ;;  %v3369_v14 = vld [vmem:[#allocation16 + $0xbb0] sm:$0xff] }
 0xa7c   :  { %3106 = vmatpush1.msra.mxu1 %v3065_v15  ;;  %3179 = vmatpush1.msra.mxu0 %v3063_v16  ;;  %v3363_v15 = vld [vmem:[#allocation16 + $0xb80] sm:$0xff]  ;;  %v3366_v16 = vld [vmem:[#allocation16 + $0xb98] sm:$0xff] }
 0xa7d   :  { %3107 = vmatprep.subr.mxu1 %v3062_v17  ;;  %3180 = vmatprep.subr.mxu0 %v3060_v11  ;;  %v3360_v17 = vld [vmem:[#allocation16 + $0xb68] sm:$0xff]  ;;  %v3365_v11 = vld [vmem:[#allocation16 + $0xb90] sm:$0xff] }
 0xa7e   :  { %3108 = vmatpush1.msra.mxu1 %v3061_v18  ;;  %3181 = vmatpush1.msra.mxu0 %v3059_v19  ;;  %v3359_v18 = vld [vmem:[#allocation16 + $0xb60] sm:$0xff]  ;;  %v3362_v19 = vld [vmem:[#allocation16 + $0xb78] sm:$0xff] }
 0xa7f   :  { %3109 = vmatprep.subr.mxu1 %v3058_v20  ;;  %3182 = vmatprep.subr.mxu0 %v3056_v21  ;;  %v3356_v20 = vld [vmem:[#allocation16 + $0xb48] sm:$0xff]  ;;  %v3361_v21 = vld [vmem:[#allocation16 + $0xb70] sm:$0xff] }
 0xa80   :  { %3110 = vmatpush1.msra.mxu1 %v3057_v22  ;;  %3183 = vmatpush1.msra.mxu0 %v3055_v23  ;;  %v3355_v22 = vld [vmem:[#allocation16 + $0xb40] sm:$0xff]  ;;  %v3358_v23 = vld [vmem:[#allocation16 + $0xb58] sm:$0xff] }
 0xa81   :  { %3111 = vmatprep.subr.mxu1 %v3054_v27  ;;  %3184 = vmatprep.subr.mxu0 %v3052_v30  ;;  %v3352_v27 = vld [vmem:[#allocation16 + $0xb28] sm:$0xff]  ;;  %v3357_v30 = vld [vmem:[#allocation16 + $0xb50] sm:$0xff] }
 0xa82   :  { %3112 = vmatpush1.msra.mxu1 %v3053_v31  ;;  %3185 = vmatpush1.msra.mxu0 %v3051_v32  ;;  %v3351_v31 = vld [vmem:[#allocation16 + $0xb20] sm:$0xff]  ;;  %v3354_v32 = vld [vmem:[#allocation16 + $0xb38] sm:$0xff] }
 0xa83   :  { %3113 = vmatprep.subr.mxu1 %v3050_v33  ;;  %3186 = vmatprep.subr.mxu0 %v3048_v34  ;;  %v3348_v33 = vld [vmem:[#allocation16 + $0xb08] sm:$0xff]  ;;  %v3353_v34 = vld [vmem:[#allocation16 + $0xb30] sm:$0xff] }
 0xa84   :  { %3114 = vmatpush1.msra.mxu1 %v3049_v35  ;;  %3187 = vmatpush1.msra.mxu0 %v3047_v36  ;;  %v3347_v35 = vld [vmem:[#allocation16 + $0xb00] sm:$0xff]  ;;  %v3350_v36 = vld [vmem:[#allocation16 + $0xb18] sm:$0xff] }
 0xa85   :  { %3115 = vmatprep.subr.mxu1 %v3046_v37  ;;  %3188 = vmatprep.subr.mxu0 %v3044_v38  ;;  %v3344_v37 = vld [vmem:[#allocation16 + $0xae8] sm:$0xff]  ;;  %v3349_v38 = vld [vmem:[#allocation16 + $0xb10] sm:$0xff] }
 0xa86   :  { %3116 = vmatpush1.msra.mxu1 %v3045_v39  ;;  %3189 = vmatpush1.msra.mxu0 %v3043_v40  ;;  %v3343_v39 = vld [vmem:[#allocation16 + $0xae0] sm:$0xff]  ;;  %v3346_v40 = vld [vmem:[#allocation16 + $0xaf8] sm:$0xff] }
 0xa87   :  { %3117 = vmatprep.subr.mxu1 %v3042_v41  ;;  %3190 = vmatprep.subr.mxu0 %v3040_v42  ;;  %v3340_v41 = vld [vmem:[#allocation16 + $0xac8] sm:$0xff]  ;;  %v3345_v42 = vld [vmem:[#allocation16 + $0xaf0] sm:$0xff] }
 0xa88   :  { %3118 = vmatpush1.msra.mxu1 %v3041_v45  ;;  %3157 = vmatprep.mubr.f32.mxu1 %v13691_v58  ;;  %v3339_v45 = vld [vmem:[#allocation16 + $0xac0] sm:$0xff] }
 0xa89   :  { %3119 = vmatprep.subr.mxu1 %v3038_v46  ;;  %3228 = vmatprep.mubr.f32.mxu0 %v13691_v58  ;;  %v3342_v46 = vld [vmem:[#allocation16 + $0xad8] sm:$0xff] }
 0xa8a   :  { %3120 = vmatpush1.msra.mxu1 %v3037_v47  ;;  %3191 = vmatpush1.msra.mxu0 %v3039_v49  ;;  %v3336_v47 = vld [vmem:[#allocation16 + $0xaa8] sm:$0xff]  ;;  %v3335_v49 = vld [vmem:[#allocation16 + $0xaa0] sm:$0xff] }
 0xa8b   :  { %3121 = vmatprep.subr.mxu1 %v3034_v48  ;;  %3192 = vmatprep.subr.mxu0 %v3036_v51  ;;  %v3341_v48 = vld [vmem:[#allocation16 + $0xad0] sm:$0xff]  ;;  %v3332_v51 = vld [vmem:[#allocation16 + $0xa88] sm:$0xff] }
 0xa8c   :  { %3122 = vmatpush1.msra.mxu1 %v3033_v50  ;;  %3193 = vmatpush1.msra.mxu0 %v3035_v52  ;;  %v3338_v50 = vld [vmem:[#allocation16 + $0xab8] sm:$0xff]  ;;  %v3331_v52 = vld [vmem:[#allocation16 + $0xa80] sm:$0xff] }
 0xa8d   :  { %3123 = vmatprep.subr.mxu1 %v3030_v28  ;;  %3194 = vmatprep.subr.mxu0 %v3032_v54  ;;  %v3337_v28 = vld [vmem:[#allocation16 + $0xab0] sm:$0xff]  ;;  %v3328_v54 = vld [vmem:[#allocation16 + $0xa68] sm:$0xff] }
 0xa8e   :  { %3124 = vmatpush1.msra.mxu1 %v3029_v53  ;;  %3195 = vmatpush1.msra.mxu0 %v3031_v55  ;;  %v3334_v53 = vld [vmem:[#allocation16 + $0xa98] sm:$0xff]  ;;  %v3333_v55 = vld [vmem:[#allocation16 + $0xa90] sm:$0xff] }
 0xa8f   :  { %12548 = vmatprep.subr.mxu1 %v13691_v58  ;;  %3379 = vmatprep.subr.mxu0 %v3376_v56  ;;  %v3327_v56 = vld [vmem:[#allocation16 + $0xa60] sm:$0xff] }
 0xb2b   :  { %v2873_v57 = vpop.f32.mrf.mxu1 }
 0xb2c   :  { %v14188_v59 = vadd.f32 %v2873_v57, %v14174_v43  ;;  %v3371_v43 = vld [vmem:[#allocation16 + $0xbc0] sm:$0xff]  ;;  %v3330_v57 = vld [vmem:[#allocation16 + $0xa78] sm:$0xff] }
 0xb2d   :  { %v14190_v63 = vpop.f32.mrf.mxu1 }
 0xb2f   :  { %v3024_v0 = vpop.f32.mrf.mxu1 }
 0xb30   :  { %3158 = vmatmul.mubr.f32.vlgmr.msra.gmra.mxu1 %v3024_v0  ;;  %3229 = vmatmul.mubr.f32.vlgmr.msra.gmra.mxu0 %v3024_v0  ;;  %v3324_v0 = vld [vmem:[#allocation16 + $0xa48] sm:$0xff] }
 0xb31   :  { %12549 = vmatpush3.msra.mxu1 %v14126_v24  ;;  %v12547_v7 = vpop.f32.mrf.mxu1  ;;  %12552 = vmatprep.mubr.msk.f32.mxu1 %vm13692_vm1, %v13691_v58 }
 0xb32   :  { %12550 = vmatprep.subr.mxu1 %v13691_v58  ;;  %3380 = vmatpush1.msra.mxu0 %v3375_v1  ;;  %v3329_v1 = vld [vmem:[#allocation16 + $0xa70] sm:$0xff] }
 0xb33   :  { %12551 = vmatpush3.msra.mxu1 %v14128_v26  ;;  %3381 = vmatprep.subr.mxu0 %v3372_v6  ;;  %v3326_v6 = vld [vmem:[#allocation16 + $0xa58] sm:$0xff]  ;;  %v3325_v7 = vld [vmem:[#allocation16 + $0xa50] sm:$0xff] }
 0xb34   :  { %12553 = vmatmul.mubr.msk.f32.vlgmr.msra.gmra.mxu1 %vm1819_vm3, %v3240_v8  ;;  %3450 = vmatprep.subr.mxu1 %v3378_v9  ;;  %v3323_v8 = vld [vmem:[#allocation16 + $0xa40] sm:$0xff]  ;;  %v3322_v9 = vld [vmem:[#allocation16 + $0xa38] sm:$0xff] }
 0xb35   :  { %3451 = vmatpush1.msra.mxu1 %v3377_v10  ;;  %3382 = vmatpush1.msra.mxu0 %v3371_v43  ;;  %v3320_v10 = vld [vmem:[#allocation16 + $0xa28] sm:$0xff]  ;;  %v3321_v43 = vld [vmem:[#allocation16 + $0xa30] sm:$0xff] }
 0xb36   :  { %3452 = vmatprep.subr.mxu1 %v3374_v12  ;;  %3383 = vmatprep.subr.mxu0 %v3368_v13  ;;  %v3319_v12 = vld [vmem:[#allocation16 + $0xa20] sm:$0xff]  ;;  %v3318_v13 = vld [vmem:[#allocation16 + $0xa18] sm:$0xff] }
 0xb37   :  { %3453 = vmatpush1.msra.mxu1 %v3373_v2  ;;  %3384 = vmatpush1.msra.mxu0 %v3367_v3  ;;  %v3316_v2 = vld [vmem:[#allocation16 + $0xa08] sm:$0xff]  ;;  %v3317_v3 = vld [vmem:[#allocation16 + $0xa10] sm:$0xff] }
 0xb38   :  { %3454 = vmatprep.subr.mxu1 %v3370_v4  ;;  %3385 = vmatprep.subr.mxu0 %v3364_v5  ;;  %v3315_v4 = vld [vmem:[#allocation16 + $0xa00] sm:$0xff]  ;;  %v3664_v5 = vld [vmem:[#allocation16 + $0xdf8] sm:$0xff] }
 0xb39   :  { %3455 = vmatpush1.msra.mxu1 %v3369_v14  ;;  %3386 = vmatpush1.msra.mxu0 %v3363_v15 }
 0xb3a   :  { %3456 = vmatprep.subr.mxu1 %v3366_v16  ;;  %3387 = vmatprep.subr.mxu0 %v3360_v17 }
 0xb3b   :  { %3457 = vmatpush1.msra.mxu1 %v3365_v11  ;;  %3388 = vmatpush1.msra.mxu0 %v3359_v18  ;;  %v3663_v11 = vld [vmem:[#allocation16 + $0xdf0] sm:$0xff]  ;;  %v3660_v18 = vld [vmem:[#allocation16 + $0xdd8] sm:$0xff] }
 0xb3c   :  { %3458 = vmatprep.subr.mxu1 %v3362_v19  ;;  %3389 = vmatprep.subr.mxu0 %v3356_v20  ;;  %v3526_v20 = vld [vmem:[#allocation26 + $0xc] sm:$0x3] }
 0xb3d   :  { %3459 = vmatpush1.msra.mxu1 %v3361_v21  ;;  %3390 = vmatpush1.msra.mxu0 %v3355_v22  ;;  %v3662_v21 = vld [vmem:[#allocation16 + $0xde8] sm:$0xff]  ;;  %v3661_v22 = vld [vmem:[#allocation16 + $0xde0] sm:$0xff] }
 0xb3e   :  { %3460 = vmatprep.subr.mxu1 %v3358_v23  ;;  %3391 = vmatprep.subr.mxu0 %v3352_v27  ;;  %v3658_v23 = vld [vmem:[#allocation16 + $0xdc8] sm:$0xff]  ;;  %v3656_v27 = vld [vmem:[#allocation16 + $0xdb8] sm:$0xff] }
 0xb3f   :  { %3461 = vmatpush1.msra.mxu1 %v3357_v30  ;;  %3392 = vmatpush1.msra.mxu0 %v3351_v31  ;;  %v3657_v30 = vld [vmem:[#allocation16 + $0xdc0] sm:$0xff]  ;;  %v3655_v31 = vld [vmem:[#allocation16 + $0xdb0] sm:$0xff] }
 0xb40   :  { %3462 = vmatprep.subr.mxu1 %v3354_v32  ;;  %3393 = vmatprep.subr.mxu0 %v3348_v33  ;;  %v3654_v32 = vld [vmem:[#allocation16 + $0xda8] sm:$0xff]  ;;  %v3652_v33 = vld [vmem:[#allocation16 + $0xd98] sm:$0xff] }
 0xb41   :  { %3463 = vmatpush1.msra.mxu1 %v3353_v34  ;;  %3394 = vmatpush1.msra.mxu0 %v3347_v35  ;;  %v3653_v34 = vld [vmem:[#allocation16 + $0xda0] sm:$0xff]  ;;  %v3651_v35 = vld [vmem:[#allocation16 + $0xd90] sm:$0xff] }
 0xb42   :  { %3464 = vmatprep.subr.mxu1 %v3350_v36  ;;  %3395 = vmatprep.subr.mxu0 %v3344_v37  ;;  %v3650_v36 = vld [vmem:[#allocation16 + $0xd88] sm:$0xff]  ;;  %v3648_v37 = vld [vmem:[#allocation16 + $0xd78] sm:$0xff] }
 0xb43   :  { %3465 = vmatpush1.msra.mxu1 %v3349_v38  ;;  %3396 = vmatpush1.msra.mxu0 %v3343_v39  ;;  %v3649_v38 = vld [vmem:[#allocation16 + $0xd80] sm:$0xff]  ;;  %v3647_v39 = vld [vmem:[#allocation16 + $0xd70] sm:$0xff] }
 0xb44   :  { %3466 = vmatprep.subr.mxu1 %v3346_v40  ;;  %3397 = vmatprep.subr.mxu0 %v3340_v41  ;;  %v3646_v40 = vld [vmem:[#allocation16 + $0xd68] sm:$0xff]  ;;  %v3644_v41 = vld [vmem:[#allocation16 + $0xd58] sm:$0xff] }
 0xb45   :  { %3467 = vmatpush1.msra.mxu1 %v3345_v42  ;;  %3398 = vmatpush1.msra.mxu0 %v3339_v45  ;;  %v3645_v42 = vld [vmem:[#allocation16 + $0xd60] sm:$0xff]  ;;  %v3643_v45 = vld [vmem:[#allocation16 + $0xd50] sm:$0xff] }
 0xb46   :  { %3468 = vmatprep.subr.mxu1 %v3342_v46  ;;  %3399 = vmatprep.subr.mxu0 %v3336_v47  ;;  %v3642_v46 = vld [vmem:[#allocation16 + $0xd48] sm:$0xff]  ;;  %v3640_v47 = vld [vmem:[#allocation16 + $0xd38] sm:$0xff] }
 0xb47   :  { %3469 = vmatpush1.msra.mxu1 %v3341_v48  ;;  %3400 = vmatpush1.msra.mxu0 %v3335_v49  ;;  %v3641_v48 = vld [vmem:[#allocation16 + $0xd40] sm:$0xff]  ;;  %v3639_v49 = vld [vmem:[#allocation16 + $0xd30] sm:$0xff] }
 0xb48   :  { %3470 = vmatprep.subr.mxu1 %v3338_v50  ;;  %3401 = vmatprep.subr.mxu0 %v3332_v51  ;;  %v3638_v50 = vld [vmem:[#allocation16 + $0xd28] sm:$0xff]  ;;  %v3636_v51 = vld [vmem:[#allocation16 + $0xd18] sm:$0xff] }
 0xb49   :  { %3471 = vmatpush1.msra.mxu1 %v3337_v28  ;;  %3402 = vmatpush1.msra.mxu0 %v3331_v52  ;;  %v3637_v28 = vld [vmem:[#allocation16 + $0xd20] sm:$0xff]  ;;  %v3635_v52 = vld [vmem:[#allocation16 + $0xd10] sm:$0xff] }
 0xb4a   :  { %3472 = vmatprep.subr.mxu1 %v3334_v53  ;;  %3403 = vmatprep.subr.mxu0 %v3328_v54  ;;  %v3634_v53 = vld [vmem:[#allocation16 + $0xd08] sm:$0xff]  ;;  %v3632_v54 = vld [vmem:[#allocation16 + $0xcf8] sm:$0xff] }
 0xb4b   :  { %3473 = vmatpush1.msra.mxu1 %v3333_v55  ;;  %3404 = vmatpush1.msra.mxu0 %v3327_v56  ;;  %v3633_v55 = vld [vmem:[#allocation16 + $0xd00] sm:$0xff]  ;;  %v3631_v56 = vld [vmem:[#allocation16 + $0xcf0] sm:$0xff] }
 0xb4c   :  { %3474 = vmatprep.subr.mxu1 %v3330_v57  ;;  %3405 = vmatprep.subr.mxu0 %v3324_v0  ;;  %v3630_v57 = vld [vmem:[#allocation16 + $0xce8] sm:$0xff]  ;;  %v3628_v0 = vld [vmem:[#allocation16 + $0xcd8] sm:$0xff] }
 0xb4d   :  { %3475 = vmatpush1.msra.mxu1 %v3329_v1  ;;  %3443 = vmatprep.mubr.f32.mxu0 %v13691_v58  ;;  %v3629_v1 = vld [vmem:[#allocation16 + $0xce0] sm:$0xff] }
 0xb4e   :  { %3476 = vmatprep.subr.mxu1 %v3326_v6  ;;  %3514 = vmatprep.mubr.f32.mxu1 %v13691_v58  ;;  %v3627_v6 = vld [vmem:[#allocation16 + $0xcd0] sm:$0xff] }
 0xb4f   :  { %3477 = vmatpush1.msra.mxu1 %v3325_v7  ;;  %3406 = vmatpush1.msra.mxu0 %v3323_v8  ;;  %v3626_v7 = vld [vmem:[#allocation16 + $0xcc8] sm:$0xff]  ;;  %v3624_v8 = vld [vmem:[#allocation16 + $0xcb8] sm:$0xff] }
 0xb50   :  { %3478 = vmatprep.subr.mxu1 %v3322_v9  ;;  %3407 = vmatprep.subr.mxu0 %v3320_v10  ;;  %v3625_v9 = vld [vmem:[#allocation16 + $0xcc0] sm:$0xff]  ;;  %v3623_v10 = vld [vmem:[#allocation16 + $0xcb0] sm:$0xff] }
 0xb51   :  { %3479 = vmatpush1.msra.mxu1 %v3321_v43  ;;  %3408 = vmatpush1.msra.mxu0 %v3319_v12  ;;  %v3622_v43 = vld [vmem:[#allocation16 + $0xca8] sm:$0xff]  ;;  %v3620_v12 = vld [vmem:[#allocation16 + $0xc98] sm:$0xff] }
 0xb52   :  { %3480 = vmatprep.subr.mxu1 %v3318_v13  ;;  %3409 = vmatprep.subr.mxu0 %v3316_v2  ;;  %v3621_v13 = vld [vmem:[#allocation16 + $0xca0] sm:$0xff]  ;;  %v3619_v2 = vld [vmem:[#allocation16 + $0xc90] sm:$0xff] }
 0xb53   :  { %3481 = vmatpush1.msra.mxu1 %v3317_v3  ;;  %3410 = vmatpush1.msra.mxu0 %v3315_v4  ;;  %v3618_v3 = vld [vmem:[#allocation16 + $0xc88] sm:$0xff]  ;;  %v3616_v4 = vld [vmem:[#allocation16 + $0xc78] sm:$0xff] }
 0xb54   :  { %12555 = vmatprep.subr.mxu1 %v13691_v58  ;;  %3736 = vmatprep.subr.mxu0 %v3664_v5  ;;  %v3617_v5 = vld [vmem:[#allocation16 + $0xc80] sm:$0xff] }
 0xbf0   :  { %v3159_v14 = vpop.f32.mrf.mxu1 }
 0xbf1   :  { %v14202_v15 = vadd.f32 %v3159_v14, %v14188_v59  ;;  %v3659_v59 = vld [vmem:[#allocation16 + $0xdd0] sm:$0xff] }
 0xbf2   :  { %v14204_v16 = vpop.f32.mrf.mxu1  ;;  %v3615_v14 = vld [vmem:[#allocation16 + $0xc70] sm:$0xff] }
 0xbf4   :  { %v3310_v17 = vpop.f32.mrf.mxu1 }
 0xbf5   :  { %3444 = vmatmul.mubr.f32.vlgmr.msra.gmra.mxu0 %v3310_v17  ;;  %3515 = vmatmul.mubr.f32.vlgmr.msra.gmra.mxu1 %v3310_v17  ;;  %v3614_v17 = vld [vmem:[#allocation16 + $0xc68] sm:$0xff] }
 0xbf6   :  { %12556 = vmatpush3.msra.mxu1 %v14126_v24  ;;  %v12554_v19 = vpop.f32.mrf.mxu1  ;;  %12559 = vmatprep.mubr.msk.f32.mxu1 %vm13692_vm1, %v13691_v58 }
 0xbf7   :  { %12557 = vmatprep.subr.mxu1 %v13691_v58  ;;  %3737 = vmatpush1.msra.mxu0 %v3663_v11  ;;  %v3612_v11 = vld [vmem:[#allocation16 + $0xc58] sm:$0xff]  ;;  %v3610_v19 = vld [vmem:[#allocation16 + $0xc48] sm:$0xff] }
 0xbf8   :  { %12558 = vmatpush3.msra.mxu1 %v14128_v26  ;;  %3738 = vmatprep.subr.mxu0 %v3660_v18  ;;  %v3613_v18 = vld [vmem:[#allocation16 + $0xc60] sm:$0xff] }
 0xbf9   :  { %12560 = vmatmul.mubr.msk.f32.vlgmr.msra.gmra.mxu1 %vm1819_vm3, %v3526_v20  ;;  %3665 = vmatprep.subr.mxu1 %v3662_v21  ;;  %v3609_v20 = vld [vmem:[#allocation16 + $0xc40] sm:$0xff]  ;;  %v3606_v21 = vld [vmem:[#allocation16 + $0xc28] sm:$0xff] }
 0xbfa   :  { %3666 = vmatpush1.msra.mxu1 %v3661_v22  ;;  %3739 = vmatpush1.msra.mxu0 %v3659_v59  ;;  %v3611_v22 = vld [vmem:[#allocation16 + $0xc50] sm:$0xff]  ;;  %v3605_v59 = vld [vmem:[#allocation16 + $0xc20] sm:$0xff] }
 0xbfb   :  { %3667 = vmatprep.subr.mxu1 %v3658_v23  ;;  %3740 = vmatprep.subr.mxu0 %v3656_v27  ;;  %v3608_v23 = vld [vmem:[#allocation16 + $0xc38] sm:$0xff]  ;;  %v3602_v27 = vld [vmem:[#allocation16 + $0xc08] sm:$0xff] }
 0xbfc   :  { %3668 = vmatpush1.msra.mxu1 %v3657_v30  ;;  %3741 = vmatpush1.msra.mxu0 %v3655_v31  ;;  %v3607_v30 = vld [vmem:[#allocation16 + $0xc30] sm:$0xff]  ;;  %v3601_v31 = vld [vmem:[#allocation16 + $0xc00] sm:$0xff] }
 0xbfd   :  { %3669 = vmatprep.subr.mxu1 %v3654_v32  ;;  %3742 = vmatprep.subr.mxu0 %v3652_v33  ;;  %v3604_v32 = vld [vmem:[#allocation16 + $0xc18] sm:$0xff]  ;;  %v3603_v33 = vld [vmem:[#allocation16 + $0xc10] sm:$0xff] }
 0xbfe   :  { %3670 = vmatpush1.msra.mxu1 %v3653_v34  ;;  %3743 = vmatpush1.msra.mxu0 %v3651_v35  ;;  %v3948_v34 = vld [vmem:[#allocation16 + $0xfe8] sm:$0xff] }
 0xbff   :  { %3671 = vmatprep.subr.mxu1 %v3650_v36  ;;  %3744 = vmatprep.subr.mxu0 %v3648_v37 }
 0xc00   :  { %3672 = vmatpush1.msra.mxu1 %v3649_v38  ;;  %3745 = vmatpush1.msra.mxu0 %v3647_v39  ;;  %v3947_v38 = vld [vmem:[#allocation16 + $0xfe0] sm:$0xff]  ;;  %v3944_v39 = vld [vmem:[#allocation16 + $0xfc8] sm:$0xff] }
 0xc01   :  { %3673 = vmatprep.subr.mxu1 %v3646_v40  ;;  %3746 = vmatprep.subr.mxu0 %v3644_v41  ;;  %v3812_v41 = vld [vmem:[#allocation26 + $0xe] sm:$0x3] }
 0xc02   :  { %3674 = vmatpush1.msra.mxu1 %v3645_v42  ;;  %3747 = vmatpush1.msra.mxu0 %v3643_v45  ;;  %v3950_v42 = vld [vmem:[#allocation16 + $0xff8] sm:$0xff]  ;;  %v3949_v45 = vld [vmem:[#allocation16 + $0xff0] sm:$0xff] }
 0xc03   :  { %3675 = vmatprep.subr.mxu1 %v3642_v46  ;;  %3748 = vmatprep.subr.mxu0 %v3640_v47  ;;  %v3943_v46 = vld [vmem:[#allocation16 + $0xfc0] sm:$0xff]  ;;  %v3946_v47 = vld [vmem:[#allocation16 + $0xfd8] sm:$0xff] }
 0xc04   :  { %3676 = vmatpush1.msra.mxu1 %v3641_v48  ;;  %3749 = vmatpush1.msra.mxu0 %v3639_v49  ;;  %v3940_v48 = vld [vmem:[#allocation16 + $0xfa8] sm:$0xff]  ;;  %v3939_v49 = vld [vmem:[#allocation16 + $0xfa0] sm:$0xff] }
 0xc05   :  { %3677 = vmatprep.subr.mxu1 %v3638_v50  ;;  %3750 = vmatprep.subr.mxu0 %v3636_v51  ;;  %v3942_v50 = vld [vmem:[#allocation16 + $0xfb8] sm:$0xff]  ;;  %v3936_v51 = vld [vmem:[#allocation16 + $0xf88] sm:$0xff] }
 0xc06   :  { %3678 = vmatpush1.msra.mxu1 %v3637_v28  ;;  %3751 = vmatpush1.msra.mxu0 %v3635_v52  ;;  %v3941_v28 = vld [vmem:[#allocation16 + $0xfb0] sm:$0xff]  ;;  %v3935_v52 = vld [vmem:[#allocation16 + $0xf80] sm:$0xff] }
 0xc07   :  { %3679 = vmatprep.subr.mxu1 %v3634_v53  ;;  %3752 = vmatprep.subr.mxu0 %v3632_v54  ;;  %v3938_v53 = vld [vmem:[#allocation16 + $0xf98] sm:$0xff]  ;;  %v3937_v54 = vld [vmem:[#allocation16 + $0xf90] sm:$0xff] }
 0xc08   :  { %3680 = vmatpush1.msra.mxu1 %v3633_v55  ;;  %3753 = vmatpush1.msra.mxu0 %v3631_v56  ;;  %v3931_v55 = vld [vmem:[#allocation16 + $0xf60] sm:$0xff]  ;;  %v3934_v56 = vld [vmem:[#allocation16 + $0xf78] sm:$0xff] }
 0xc09   :  { %3681 = vmatprep.subr.mxu1 %v3630_v57  ;;  %3754 = vmatprep.subr.mxu0 %v3628_v0  ;;  %v3928_v57 = vld [vmem:[#allocation16 + $0xf48] sm:$0xff]  ;;  %v3933_v0 = vld [vmem:[#allocation16 + $0xf70] sm:$0xff] }
 0xc0a   :  { %3682 = vmatpush1.msra.mxu1 %v3629_v1  ;;  %3755 = vmatpush1.msra.mxu0 %v3627_v6  ;;  %v3927_v1 = vld [vmem:[#allocation16 + $0xf40] sm:$0xff]  ;;  %v3930_v6 = vld [vmem:[#allocation16 + $0xf58] sm:$0xff] }
 0xc0b   :  { %3683 = vmatprep.subr.mxu1 %v3626_v7  ;;  %3756 = vmatprep.subr.mxu0 %v3624_v8  ;;  %v3924_v7 = vld [vmem:[#allocation16 + $0xf28] sm:$0xff]  ;;  %v3929_v8 = vld [vmem:[#allocation16 + $0xf50] sm:$0xff] }
 0xc0c   :  { %3684 = vmatpush1.msra.mxu1 %v3625_v9  ;;  %3757 = vmatpush1.msra.mxu0 %v3623_v10  ;;  %v3923_v9 = vld [vmem:[#allocation16 + $0xf20] sm:$0xff]  ;;  %v3926_v10 = vld [vmem:[#allocation16 + $0xf38] sm:$0xff] }
 0xc0d   :  { %3685 = vmatprep.subr.mxu1 %v3622_v43  ;;  %3758 = vmatprep.subr.mxu0 %v3620_v12  ;;  %v3920_v43 = vld [vmem:[#allocation16 + $0xf08] sm:$0xff]  ;;  %v3925_v12 = vld [vmem:[#allocation16 + $0xf30] sm:$0xff] }
 0xc0e   :  { %3686 = vmatpush1.msra.mxu1 %v3621_v13  ;;  %3759 = vmatpush1.msra.mxu0 %v3619_v2  ;;  %v3919_v13 = vld [vmem:[#allocation16 + $0xf00] sm:$0xff]  ;;  %v3922_v2 = vld [vmem:[#allocation16 + $0xf18] sm:$0xff] }
 0xc0f   :  { %3687 = vmatprep.subr.mxu1 %v3618_v3  ;;  %3760 = vmatprep.subr.mxu0 %v3616_v4  ;;  %v3916_v3 = vld [vmem:[#allocation16 + $0xee8] sm:$0xff]  ;;  %v3921_v4 = vld [vmem:[#allocation16 + $0xf10] sm:$0xff] }
 0xc10   :  { %3688 = vmatpush1.msra.mxu1 %v3617_v5  ;;  %3761 = vmatpush1.msra.mxu0 %v3615_v14  ;;  %v3915_v5 = vld [vmem:[#allocation16 + $0xee0] sm:$0xff]  ;;  %v3918_v14 = vld [vmem:[#allocation16 + $0xef8] sm:$0xff] }
 0xc11   :  { %3689 = vmatprep.subr.mxu1 %v3614_v17  ;;  %3762 = vmatprep.subr.mxu0 %v3612_v11  ;;  %v3912_v17 = vld [vmem:[#allocation16 + $0xec8] sm:$0xff]  ;;  %v3917_v11 = vld [vmem:[#allocation16 + $0xef0] sm:$0xff] }
 0xc12   :  { %3690 = vmatpush1.msra.mxu1 %v3613_v18  ;;  %3729 = vmatprep.mubr.f32.mxu1 %v13691_v58  ;;  %v3911_v18 = vld [vmem:[#allocation16 + $0xec0] sm:$0xff] }
 0xc13   :  { %3691 = vmatprep.subr.mxu1 %v3610_v19  ;;  %3800 = vmatprep.mubr.f32.mxu0 %v13691_v58  ;;  %v3914_v19 = vld [vmem:[#allocation16 + $0xed8] sm:$0xff] }
 0xc14   :  { %3692 = vmatpush1.msra.mxu1 %v3609_v20  ;;  %3763 = vmatpush1.msra.mxu0 %v3611_v22  ;;  %v3908_v20 = vld [vmem:[#allocation16 + $0xea8] sm:$0xff]  ;;  %v3907_v22 = vld [vmem:[#allocation16 + $0xea0] sm:$0xff] }
 0xc15   :  { %3693 = vmatprep.subr.mxu1 %v3606_v21  ;;  %3764 = vmatprep.subr.mxu0 %v3608_v23  ;;  %v3913_v21 = vld [vmem:[#allocation16 + $0xed0] sm:$0xff]  ;;  %v3904_v23 = vld [vmem:[#allocation16 + $0xe88] sm:$0xff] }
 0xc16   :  { %3694 = vmatpush1.msra.mxu1 %v3605_v59  ;;  %3765 = vmatpush1.msra.mxu0 %v3607_v30  ;;  %v3910_v59 = vld [vmem:[#allocation16 + $0xeb8] sm:$0xff]  ;;  %v3903_v30 = vld [vmem:[#allocation16 + $0xe80] sm:$0xff] }
 0xc17   :  { %3695 = vmatprep.subr.mxu1 %v3602_v27  ;;  %3766 = vmatprep.subr.mxu0 %v3604_v32  ;;  %v3909_v27 = vld [vmem:[#allocation16 + $0xeb0] sm:$0xff]  ;;  %v3900_v32 = vld [vmem:[#allocation16 + $0xe68] sm:$0xff] }
 0xc18   :  { %3696 = vmatpush1.msra.mxu1 %v3601_v31  ;;  %3767 = vmatpush1.msra.mxu0 %v3603_v33  ;;  %v3906_v31 = vld [vmem:[#allocation16 + $0xe98] sm:$0xff]  ;;  %v3905_v33 = vld [vmem:[#allocation16 + $0xe90] sm:$0xff] }
 0xc19   :  { %12562 = vmatprep.subr.mxu1 %v13691_v58  ;;  %3951 = vmatprep.subr.mxu0 %v3948_v34  ;;  %v3899_v34 = vld [vmem:[#allocation16 + $0xe60] sm:$0xff] }
 0xcb5   :  { %v14215_v35 = vpop.f32.mrf.mxu1 }
 0xcb7   :  { %v14217_v36 = vpop.f32.mrf.mxu1 }
 0xcb9   :  { %v3596_v37 = vpop.f32.mrf.mxu1 }
 0xcba   :  { %3730 = vmatmul.mubr.f32.vlgmr.msra.gmra.mxu1 %v3596_v37  ;;  %3801 = vmatmul.mubr.f32.vlgmr.msra.gmra.mxu0 %v3596_v37  ;;  %v3902_v37 = vld [vmem:[#allocation16 + $0xe78] sm:$0xff] }
 0xcbb   :  { %12563 = vmatpush3.msra.mxu1 %v14126_v24  ;;  %v12561_v40 = vpop.f32.mrf.mxu1  ;;  %12566 = vmatprep.mubr.msk.f32.mxu1 %vm13692_vm1, %v13691_v58  ;;  %v3945_v24 = vld [vmem:[#allocation16 + $0xfd0] sm:$0xff] }
 0xcbc   :  { %12564 = vmatprep.subr.mxu1 %v13691_v58  ;;  %3952 = vmatpush1.msra.mxu0 %v3947_v38  ;;  %v3896_v38 = vld [vmem:[#allocation16 + $0xe48] sm:$0xff]  ;;  %v3898_v40 = vld [vmem:[#allocation16 + $0xe58] sm:$0xff] }
 0xcbd   :  { %12565 = vmatpush3.msra.mxu1 %v14128_v26  ;;  %3953 = vmatprep.subr.mxu0 %v3944_v39  ;;  %v3932_v26 = vld [vmem:[#allocation16 + $0xf68] sm:$0xff]  ;;  %v3901_v39 = vld [vmem:[#allocation16 + $0xe70] sm:$0xff] }
 0xcbe   :  { %12567 = vmatmul.mubr.msk.f32.vlgmr.msra.gmra.mxu1 %vm1819_vm3, %v3812_v41  ;;  %4022 = vmatprep.subr.mxu1 %v3950_v42  ;;  %v3895_v41 = vld [vmem:[#allocation16 + $0xe40] sm:$0xff]  ;;  %v3897_v42 = vld [vmem:[#allocation16 + $0xe50] sm:$0xff] }
 0xcbf   :  { %4023 = vmatpush1.msra.mxu1 %v3949_v45  ;;  %3954 = vmatpush1.msra.mxu0 %v3943_v46  ;;  %v3892_v45 = vld [vmem:[#allocation16 + $0xe28] sm:$0xff]  ;;  %v3894_v46 = vld [vmem:[#allocation16 + $0xe38] sm:$0xff] }
 0xcc0   :  { %4024 = vmatprep.subr.mxu1 %v3946_v47  ;;  %3955 = vmatprep.subr.mxu0 %v3940_v48  ;;  %v3891_v47 = vld [vmem:[#allocation16 + $0xe20] sm:$0xff]  ;;  %v3893_v48 = vld [vmem:[#allocation16 + $0xe30] sm:$0xff] }
 0xcc1   :  { %4025 = vmatpush1.msra.mxu1 %v3945_v24  ;;  %3956 = vmatpush1.msra.mxu0 %v3939_v49  ;;  %v3888_v24 = vld [vmem:[#allocation16 + $0xe08] sm:$0xff]  ;;  %v3890_v49 = vld [vmem:[#allocation16 + $0xe18] sm:$0xff] }
 0xcc2   :  { %4026 = vmatprep.subr.mxu1 %v3942_v50  ;;  %3957 = vmatprep.subr.mxu0 %v3936_v51  ;;  %v3887_v50 = vld [vmem:[#allocation16 + $0xe00] sm:$0xff]  ;;  %v3889_v51 = vld [vmem:[#allocation16 + $0xe10] sm:$0xff] }
 0xcc3   :  { %4027 = vmatpush1.msra.mxu1 %v3941_v28  ;;  %3958 = vmatpush1.msra.mxu0 %v3935_v52  ;;  %v2234_v28 = vpop.f32.mrf.mxu0 }
 0xcc4   :  { %4028 = vmatprep.subr.mxu1 %v3938_v53  ;;  %3959 = vmatprep.subr.mxu0 %v3932_v26 }
 0xcc5   :  { %4029 = vmatpush1.msra.mxu1 %v3937_v54  ;;  %3960 = vmatpush1.msra.mxu0 %v3931_v55  ;;  %v2236_v52 = vpop.f32.mrf.mxu0 }
 0xcc6   :  { %4030 = vmatprep.subr.mxu1 %v3934_v56  ;;  %3961 = vmatprep.subr.mxu0 %v3928_v57 }
 0xcc7   :  { %4031 = vmatpush1.msra.mxu1 %v3933_v0  ;;  %3962 = vmatpush1.msra.mxu0 %v3927_v1  ;;  %v2376_v53 = vpop.f32.mrf.mxu0 }
 0xcc8   :  { %4032 = vmatprep.subr.mxu1 %v3930_v6  ;;  %3963 = vmatprep.subr.mxu0 %v3924_v7 }
 0xcc9   :  { %4033 = vmatpush1.msra.mxu1 %v3929_v8  ;;  %3964 = vmatpush1.msra.mxu0 %v3923_v9  ;;  %v2378_v26 = vpop.f32.mrf.mxu0 }
 0xcca   :  { %4034 = vmatprep.subr.mxu1 %v3926_v10  ;;  %3965 = vmatprep.subr.mxu0 %v3920_v43 }
 0xccb   :  { %4035 = vmatpush1.msra.mxu1 %v3925_v12  ;;  %3966 = vmatpush1.msra.mxu0 %v3919_v13  ;;  %v2658_v54 = vpop.f32.mrf.mxu0  ;;  %v2377_v13 = vadd.f32 %v2376_v53, %v2234_v28 }
 0xccc   :  { %4036 = vmatprep.subr.mxu1 %v3922_v2  ;;  %3967 = vmatprep.subr.mxu0 %v3916_v3  ;;  %v2308_v2 = vadd.f32 %v14162_v29, %v14158_v25  ;;  %v2379_v3 = vadd.f32 %v2378_v26, %v2236_v52 }
 0xccd   :  { %4037 = vmatpush1.msra.mxu1 %v3921_v4  ;;  %3968 = vmatpush1.msra.mxu0 %v3915_v5  ;;  %v2660_v55 = vpop.f32.mrf.mxu0  ;;  %v2665_v4 = vadd.f32 %v2658_v54, %v2377_v13 }
 0xcce   :  { %4038 = vmatprep.subr.mxu1 %v3918_v14  ;;  %3969 = vmatprep.subr.mxu0 %v3912_v17  ;;  %v2664_v14 = vadd.f32 %v14176_v44, %v2308_v2  ;;  %v2666_v17 = vadd.f32 %v2660_v55, %v2379_v3  ;;  %v14241_v44 = vsub.s32 3, %v14068_v61 }
 0xccf   :  { %4039 = vmatpush1.msra.mxu1 %v3917_v11  ;;  %3970 = vmatpush1.msra.mxu0 %v3911_v18  ;;  %v2944_v56 = vpop.f32.mrf.mxu0 }
 0xcd0   :  { %4040 = vmatprep.subr.mxu1 %v3914_v19  ;;  %3971 = vmatprep.subr.mxu0 %v3908_v20  ;;  %v2951_v11 = vadd.f32 %v2944_v56, %v2665_v4 }
 0xcd1   :  { %4041 = vmatpush1.msra.mxu1 %v3913_v21  ;;  %3972 = vmatpush1.msra.mxu0 %v3907_v22  ;;  %v2946_v57 = vpop.f32.mrf.mxu0  ;;  %v14233_v21 = vsub.s32 2, %v14068_v61 }
 0xcd2   :  { %4042 = vmatprep.subr.mxu1 %v3910_v59  ;;  %3973 = vmatprep.subr.mxu0 %v3904_v23  ;;  %v2952_v19 = vadd.f32 %v2946_v57, %v2666_v17  ;;  %v4097_v23 = vld [vmem:[#allocation17] sm:$0xf] }
 0xcd3   :  { %4043 = vmatpush1.msra.mxu1 %v3909_v27  ;;  %3974 = vmatpush1.msra.mxu0 %v3903_v30  ;;  %v3230_v0 = vpop.f32.mrf.mxu0  ;;  %v14238_v27 = vsub.s32 1, %v14068_v61 }
 0xcd4   :  { %4044 = vmatprep.subr.mxu1 %v3906_v31  ;;  %3975 = vmatprep.subr.mxu0 %v3900_v32  ;;  %v3237_v20 = vadd.f32 %v3230_v0, %v2951_v11  ;;  %v4102_v32 = vrot.slane %v4097_v23, %v14071_v62 }
 0xcd5   :  { %4045 = vmatpush1.msra.mxu1 %v3905_v33  ;;  %3976 = vmatpush1.msra.mxu0 %v3899_v34  ;;  %v3232_v1 = vpop.f32.mrf.mxu0  ;;  %v4110_v33 = vrot.slane %v4097_v23, %v14233_v21 }
 0xcd6   :  { %4046 = vmatprep.subr.mxu1 %v3902_v37  ;;  %3977 = vmatprep.subr.mxu0 %v3896_v38  ;;  %v3238_v59 = vadd.f32 %v3232_v1, %v2952_v19  ;;  %v3523_v25 = vadd.f32 %v14215_v35, %v3237_v20 }
 0xcd7   :  { %4047 = vmatpush1.msra.mxu1 %v3901_v39  ;;  %4015 = vmatprep.mubr.f32.mxu0 %v13691_v58  ;;  %v3445_v6 = vpop.f32.mrf.mxu0 }
 0xcd8   :  { %4048 = vmatprep.subr.mxu1 %v3898_v40  ;;  %4086 = vmatprep.mubr.f32.mxu1 %v13691_v58  ;;  %v3521_v7 = vadd.f32 %v3445_v6, %v14202_v15  ;;  %v2950_v15 = vadd.f32 %v14190_v63, %v2664_v14  ;;  %v3524_v63 = vadd.f32 %v14217_v36, %v3238_v59 }
 0xcd9   :  { %3978 = vmatpush1.msra.mxu0 %v3895_v41  ;;  %4049 = vmatpush1.msra.mxu1 %v3897_v42  ;;  %v3447_v5 = vpop.f32.mrf.mxu0  ;;  %v4106_v40 = vrot.slane %v4097_v23, %v14238_v27  ;;  %v4114_v41 = vrot.slane %v4097_v23, %v14241_v44 }
 0xcda   :  { %3979 = vmatprep.subr.mxu0 %v3892_v45  ;;  %4050 = vmatprep.subr.mxu1 %v3894_v46  ;;  %v3236_v22 = vadd.f32 %v14204_v16, %v2950_v15 }
 0xcdb   :  { %3980 = vmatpush1.msra.mxu0 %v3891_v47  ;;  %4051 = vmatpush1.msra.mxu1 %v3893_v48 }
 0xcdc   :  { %3981 = vmatprep.subr.mxu0 %v3888_v24  ;;  %4052 = vmatprep.subr.mxu1 %v3890_v49  ;;  %v3522_v30 = vadd.f32 %v3447_v5, %v3236_v22 }
 0xcdd   :  { %3982 = vmatpush1.msra.mxu0 %v3887_v50  ;;  %4053 = vmatpush1.msra.mxu1 %v3889_v51 }
 0xd7a   :  { %v3731_v8 = vpop.f32.mrf.mxu1  ;;  %v3802_v18 = vpop.f32.mrf.mxu0 }
 0xd7b   :  { %v3807_v9 = vadd.f32 %v3731_v8, %v3521_v7  ;;  %v3809_v31 = vadd.f32 %v3802_v18, %v3523_v25 }
 0xd7c   :  { %v3733_v10 = vpop.f32.mrf.mxu1  ;;  %v3804_v29 = vpop.f32.mrf.mxu0 }
 0xd7d   :  { %v3808_v16 = vadd.f32 %v3733_v10, %v3522_v30  ;;  %v3810_v34 = vadd.f32 %v3804_v29, %v3524_v63 }
 0xd7e   :  { %v3882_v43 = vpop.f32.mrf.mxu1 }
 0xd7f   :  { %4016 = vmatmul.mubr.f32.vlgmr.msra.gmra.mxu0 %v3882_v43  ;;  %4087 = vmatmul.mubr.f32.vlgmr.msra.gmra.mxu1 %v3882_v43 }
 0xd80   :  { %v12568_v12 = vpop.f32.mrf.mxu1 }
 0xe3f   :  { %v4017_v37 = vpop.f32.mrf.mxu0  ;;  %v4088_v38 = vpop.f32.mrf.mxu1 }
 0xe40   :  { %v4093_v35 = vadd.f32 %v4017_v37, %v3807_v9  ;;  %v4095_v39 = vadd.f32 %v4088_v38, %v3809_v31 }
 0xe41   :  { %v4019_v42 = vpop.f32.mrf.mxu0  ;;  %v4090_v45 = vpop.f32.mrf.mxu1 }
 0xe42   :  { %v4119_v46 = vadd.f32 %v4102_v32, %v4093_v35  ;;  %v4121_v36 = vadd.f32 %v4110_v33, %v4095_v39  ;;  %v4094_v47 = vadd.f32 %v4019_v42, %v3808_v16  ;;  %v4096_v48 = vadd.f32 %v4090_v45, %v3810_v34 }
 0xe44   :  { %v4127_v24 = vsel %vm4126_vm4, %v4119_v46, 0.0  ;;  %v4141_v49 = vsel %vm4126_vm4, %v4121_v36, 0.0  ;;  %v4120_v50 = vadd.f32 %v4106_v40, %v4094_v47  ;;  %v4122_v51 = vadd.f32 %v4114_v41, %v4096_v48 }
 0xe45   :  { %v4128_v28 = vrot.slane %v4127_v24, 4  ;;  %v4142_v52 = vrot.slane %v4141_v49, 4 }
 0xe46   :  { %v4134_v53 = vsel %vm4126_vm4, %v4120_v50, 0.0  ;;  %v4148_v26 = vsel %vm4126_vm4, %v4122_v51, 0.0 }
 0xe47   :  { %v4129_v54 = vadd.f32 %v4128_v28, %v4127_v24  ;;  %v4143_v55 = vadd.f32 %v4142_v52, %v4141_v49  ;;  %v4135_v56 = vrot.slane %v4134_v53, 4  ;;  %v4149_v57 = vrot.slane %v4148_v26, 4 }
 0xe49   :  { %v4130_v0 = vrot.slane %v4129_v54, 2  ;;  %v4144_v1 = vrot.slane %v4143_v55, 2  ;;  %v4136_v6 = vadd.f32 %v4135_v56, %v4134_v53  ;;  %v4150_v7 = vadd.f32 %v4149_v57, %v4148_v26 }
 0xe4b   :  { %v4131_v8 = vadd.f32 %v4130_v0, %v4129_v54  ;;  %v4145_v9 = vadd.f32 %v4144_v1, %v4143_v55  ;;  %v4137_v10 = vrot.slane %v4136_v6, 2  ;;  %v4151_v43 = vrot.slane %v4150_v7, 2 }
 0xe4d   :  { %v4132_v12 = vrot.slane %v4131_v8, 1  ;;  %v4146_v13 = vrot.slane %v4145_v9, 1  ;;  %v4138_v2 = vadd.f32 %v4137_v10, %v4136_v6  ;;  %v4152_v3 = vadd.f32 %v4151_v43, %v4150_v7 }
 0xe4f   :  { %v4133_v4 = vadd.f32 %v4132_v12, %v4131_v8  ;;  %v4147_v5 = vadd.f32 %v4146_v13, %v4145_v9  ;;  %v4139_v14 = vrot.slane %v4138_v2, 1  ;;  %v4153_v17 = vrot.slane %v4152_v3, 1  ;;  %v11410_v13 = vld [vmem:[%s15368_s17 + $0x10] sm:$0xff] }
 0xe50   :  { %12571 = vmatprep.mubr.msk.f32.mxu0 %vm4269_vm5, %v11410_v13 }
 0xe51   :  { %v4155_v11 = vmul.f32 0.5, %v4133_v4  ;;  %v4157_v18 = vmul.f32 0.5, %v4147_v5  ;;  %v4140_v15 = vadd.f32 %v4139_v14, %v4138_v2  ;;  %v4154_v19 = vadd.f32 %v4153_v17, %v4152_v3  ;;  %v4261_v2 = vld [vmem:[%s15368_s17] sm:$0xff] }
 0xe52   :  { %v4123_v3 = vld [vmem:[#allocation19] ss:$2 sm:$0xf]  ;;  %12576 = vmatprep.mubr.msk.f32.mxu1 %vm4269_vm5, %v4261_v2  ;;  %v4125_v4 = vld [vmem:[#allocation19 + $0x1] ss:$2 sm:$0xf] }
 0xe53   :  { %v4159_v20 = vsub.f32 %v4119_v46, %v4155_v11  ;;  %v14252_v22 = vsub.f32 %v4121_v36, %v4157_v18  ;;  %v4156_v59 = vmul.f32 0.5, %v4140_v15  ;;  %v4158_v23 = vmul.f32 0.5, %v4154_v19 }
 0xe54   :  { %v4215_v5 = vrot.slane %v4123_v3, %v14071_v62  ;;  %v4223_v17 = vrot.slane %v4123_v3, %v14233_v21  ;;  %v4240_v15 = vrot.slane %v4125_v4, %v14071_v62  ;;  %v4219_v19 = vrot.slane %v4123_v3, %v14238_v27 }
 0xe55   :  { %v4163_v25 = vmul.f32 %v4159_v20, %v4159_v20  ;;  %v4165_v29 = vmul.f32 %v14252_v22, %v14252_v22  ;;  %v14256_v30 = vsub.f32 %v4120_v50, %v4156_v59  ;;  %v14258_v63 = vsub.f32 %v4122_v51, %v4158_v23 }
 0xe57   :  { %v4167_v31 = vsel %vm4126_vm4, %v4163_v25, 0.0  ;;  %v4181_v32 = vsel %vm4126_vm4, %v4165_v29, 0.0  ;;  %v4164_v33 = vmul.f32 %v14256_v30, %v14256_v30  ;;  %v4166_v16 = vmul.f32 %v14258_v63, %v14258_v63 }
 0xe58   :  { %v4168_v34 = vrot.slane %v4167_v31, 4  ;;  %v4182_v37 = vrot.slane %v4181_v32, 4  ;;  %v4248_v25 = vrot.slane %v4125_v4, %v14233_v21  ;;  %v4227_v29 = vrot.slane %v4123_v3, %v14241_v44 }
 0xe59   :  { %v4174_v38 = vsel %vm4126_vm4, %v4164_v33, 0.0  ;;  %v4188_v35 = vsel %vm4126_vm4, %v4166_v16, 0.0 }
 0xe5a   :  { %v4169_v39 = vadd.f32 %v4168_v34, %v4167_v31  ;;  %v4183_v40 = vadd.f32 %v4182_v37, %v4181_v32  ;;  %v4175_v41 = vrot.slane %v4174_v38, 4  ;;  %v4189_v42 = vrot.slane %v4188_v35, 4 }
 0xe5c   :  { %v4170_v45 = vrot.slane %v4169_v39, 2  ;;  %v4184_v46 = vrot.slane %v4183_v40, 2  ;;  %v4176_v36 = vadd.f32 %v4175_v41, %v4174_v38  ;;  %v4190_v47 = vadd.f32 %v4189_v42, %v4188_v35 }
 0xe5d   :  { %v4244_v38 = vrot.slane %v4125_v4, %v14238_v27 }
 0xe5e   :  { %v4171_v48 = vadd.f32 %v4170_v45, %v4169_v39  ;;  %v4185_v24 = vadd.f32 %v4184_v46, %v4183_v40  ;;  %v4177_v49 = vrot.slane %v4176_v36, 2  ;;  %v4191_v50 = vrot.slane %v4190_v47, 2  ;;  %v11411_v45 = vld [vmem:[%s15368_s17 + $0x18] sm:$0xff]  ;;  %v11418_v46 = vld [vmem:[%s15368_s17 + $0x20] sm:$0xff] }
 0xe5f   :  { %v4252_v40 = vrot.slane %v4125_v4, %v14241_v44 }
 0xe60   :  { %v4172_v51 = vrot.slane %v4171_v48, 1  ;;  %v4186_v28 = vrot.slane %v4185_v24, 1  ;;  %v4178_v52 = vadd.f32 %v4177_v49, %v4176_v36  ;;  %v4192_v53 = vadd.f32 %v4191_v50, %v4190_v47  ;;  %v11428_v49 = vld [vmem:[%s15368_s17 + $0x40] sm:$0xff]  ;;  %v11433_v50 = vld [vmem:[%s15368_s17 + $0x50] sm:$0xff] }
 0xe62   :  { %v4173_v26 = vadd.f32 %v4172_v51, %v4171_v48  ;;  %v4187_v54 = vadd.f32 %v4186_v28, %v4185_v24  ;;  %v4179_v55 = vrot.slane %v4178_v52, 1  ;;  %v4193_v56 = vrot.slane %v4192_v53, 1  ;;  %v11419_v48 = vld [vmem:[%s15368_s17 + $0x28] sm:$0xff]  ;;  %v11424_v24 = vld [vmem:[%s15368_s17 + $0x38] sm:$0xff] }
 0xe63   :  { %v11429_v51 = vld [vmem:[%s15368_s17 + $0x48] sm:$0xff] }
 0xe64   :  { %v4195_v57 = vmul.f32 0.5, %v4173_v26  ;;  %v4197_v0 = vmul.f32 0.5, %v4187_v54  ;;  %v4180_v1 = vadd.f32 %v4179_v55, %v4178_v52  ;;  %v4194_v6 = vadd.f32 %v4193_v56, %v4192_v53  ;;  %v11434_v52 = vld [vmem:[%s15368_s17 + $0x58] sm:$0xff]  ;;  %v11438_v53 = vld [vmem:[%s15368_s17 + $0x60] sm:$0xff]  ;;  %v11443_v26 = vld [vmem:[%s15368_s17 + $0x70] sm:$0xff] }
 0xe65   :  { %v11439_v54 = vld [vmem:[%s15368_s17 + $0x68] sm:$0xff]  ;;  %v11444_v55 = vld [vmem:[%s15368_s17 + $0x78] sm:$0xff] }
 0xe66   :  { %v4199_v7 = vadd.f32 1e-05, %v4195_v57  ;;  %v4201_v8 = vadd.f32 1e-05, %v4197_v0  ;;  %v4196_v9 = vmul.f32 0.5, %v4180_v1  ;;  %v4198_v10 = vmul.f32 0.5, %v4194_v6 }
 0xe67   :  { %v4980_v56 = vld [vmem:[%s15364_s13 + $0x38] sm:$0xff]  ;;  %v4979_v57 = vld [vmem:[%s15364_s13 + $0x30] sm:$0xff]  ;;  %v4978_v0 = vld [vmem:[%s15364_s13 + $0x28] sm:$0xff] }
 0xe68   :  { %13146 = vrsqrt.f32 %v4199_v7  ;;  %v4200_v43 = vadd.f32 1e-05, %v4196_v9  ;;  %v4202_v12 = vadd.f32 1e-05, %v4198_v10  ;;  %v4977_v1 = vld [vmem:[%s15364_s13 + $0x20] sm:$0xff]  ;;  %v4976_v6 = vld [vmem:[%s15364_s13 + $0x18] sm:$0xff] }
 0xe69   :  { %13148 = vrsqrt.f32 %v4201_v8  ;;  %v4975_v7 = vld [vmem:[%s15364_s13 + $0x10] sm:$0xff]  ;;  %v4974_v9 = vld [vmem:[%s15364_s13 + $0x8] sm:$0xff]  ;;  %v4973_v10 = vld [vmem:[%s15364_s13] sm:$0xff]  ;;  %v4993_v2 = vmul.f32 %v4977_v1, %v4977_v1 }
 0xe6a   :  { %13150 = vrsqrt.f32 %v4200_v43  ;;  %v4991_v8 = vmul.f32 %v4975_v7, %v4975_v7  ;;  %v4992_v43 = vmul.f32 %v4976_v6, %v4976_v6  ;;  %v4989_v13 = vmul.f32 %v4973_v10, %v4973_v10 }
 0xe6b   :  { %13152 = vrsqrt.f32 %v4202_v12  ;;  %v4990_v12 = vmul.f32 %v4974_v9, %v4974_v9 }
 0xe6c   :  { %v5000_v3 = vsel %vm1459_vm2, %v4991_v8, 0.0 }
 0xe6d   :  { %v4998_v4 = vsel %vm1459_vm2, %v4990_v12, 0.0 }
 0xe75   :  { %v13147_v14 = vpop.eup %13146 }
 0xe76   :  { %v13149_v11 = vpop.eup %13148  ;;  %v4207_v18 = vmul.f32 %v13147_v14, %v4159_v20 }
 0xe77   :  { %v13151_v59 = vpop.eup %13150  ;;  %v4209_v23 = vmul.f32 %v13149_v11, %v14252_v22  ;;  %v4262_v22 = vld [vmem:[%s15368_s17 + $0x8] sm:$0xff]  ;;  %v5002_v11 = vsel %vm1459_vm2, %v4992_v43, 0.0 }
 0xe78   :  { %v13153_v31 = vpop.eup %13152  ;;  %v4208_v32 = vmul.f32 %v13151_v59, %v14256_v30  ;;  %v4232_v33 = vmul.f32 %v4215_v5, %v4207_v18  ;;  %v11423_v30 = vld [vmem:[%s15368_s17 + $0x30] sm:$0xff]  ;;  %v4997_v5 = vsel %vm1459_vm2, %v4989_v13, 0.0 }
 0xe79   :  { %v4210_v16 = vmul.f32 %v13153_v31, %v14258_v63  ;;  %v4234_v34 = vmul.f32 %v4223_v17, %v4209_v23  ;;  %v4999_v14 = vadd.f32 %v4998_v4, %v4997_v5  ;;  %v4994_v17 = vmul.f32 %v4978_v0, %v4978_v0 }
 0xe7a   :  { %v4257_v37 = vadd.f32 %v4240_v15, %v4232_v33  ;;  %v4233_v20 = vmul.f32 %v4219_v19, %v4208_v32  ;;  %v4995_v15 = vmul.f32 %v4979_v57, %v4979_v57  ;;  %v5004_v19 = vsel %vm1459_vm2, %v4993_v2, 0.0 }
 0xe7b   :  { %v4259_v35 = vadd.f32 %v4248_v25, %v4234_v34  ;;  %v4235_v39 = vmul.f32 %v4227_v29, %v4210_v16  ;;  %v5001_v18 = vadd.f32 %v5000_v3, %v4999_v14  ;;  %v4996_v23 = vmul.f32 %v4980_v56, %v4980_v56 }
 0xe7c   :  { %4267 = vrot.lane.b32.xlu0 %v4257_v37, %s13686_s4  ;;  %12574 = vmatprep.subr.msk.mxu1 %vm4126_vm4, %v4257_v37  ;;  %v4258_v63 = vadd.f32 %v4244_v38, %v4233_v20  ;;  %v5006_v25 = vsel %vm1459_vm2, %v4994_v17, 0.0  ;;  %v5008_v31 = vsel %vm1459_vm2, %v4995_v15, 0.0 }
 0xe7d   :  { %4707 = vrot.lane.b32.xlu1 %v4259_v35, %s13686_s4  ;;  %12575 = vmatpush3.msk.msra.mxu1 %vm4126_vm4, %v4257_v37  ;;  %v4260_v41 = vadd.f32 %v4252_v40, %v4235_v39  ;;  %v5003_v59 = vadd.f32 %v5002_v11, %v5001_v18  ;;  %v5010_v33 = vsel %vm1459_vm2, %v4996_v23, 0.0 }
 0xe7e   :  { %12577 = vmatmul.mubr.msk.f32.vlgmr.msra.gmra.mxu1 %vm4269_vm5, %v4262_v22 }
 0xe7f   :  { %12586 = vmatprep.mubr.msk.f32.mxu1 %vm4269_vm5, %v11423_v30  ;;  %v5005_v29 = vadd.f32 %v5004_v19, %v5003_v59 }
 0xe80   :  { %4528 = vrot.lane.b32.xlu0 %v4258_v63, %s13686_s4 }
 0xe81   :  { %4886 = vrot.lane.b32.xlu1 %v4260_v41, %s13686_s4  ;;  %v5007_v32 = vadd.f32 %v5006_v25, %v5005_v29 }
 0xe83   :  { %v5009_v16 = vadd.f32 %v5008_v31, %v5007_v32  ;;  %v5106_v31 = vand.u32 127, %v1129_v60 }
 0xe85   :  { %v5011_v34 = vadd.f32 %v5010_v33, %v5009_v16 }
 0xeee   :  { %v4268_v42 = vpop.permute.xlu0 %4267 }
 0xeef   :  { %12569 = vmatprep.subr.msk.mxu0 %vm4126_vm4, %v4268_v42  ;;  %v4708_v36 = vpop.permute.xlu1 %4707 }
 0xef0   :  { %12570 = vmatpush3.msk.msra.mxu0 %vm4126_vm4, %v4268_v42 }
 0xef1   :  { %12572 = vmatmul.mubr.msk.f32.vlgmr.msra.gmra.mxu0 %vm4269_vm5, %v11411_v45  ;;  %12579 = vmatprep.subr.msk.mxu0 %vm4126_vm4, %v4258_v63 }
 0xef2   :  { %12580 = vmatpush3.msk.msra.mxu0 %vm4126_vm4, %v4258_v63  ;;  %v4529_v47 = vpop.permute.xlu0 %4528  ;;  %12581 = vmatprep.mubr.msk.f32.mxu0 %vm4269_vm5, %v11418_v46 }
 0xef3   :  { %12584 = vmatprep.subr.msk.mxu1 %vm4126_vm4, %v4529_v47  ;;  %12589 = vmatprep.subr.msk.mxu0 %vm4126_vm4, %v4259_v35  ;;  %v4887_v28 = vpop.permute.xlu1 %4886 }
 0xef4   :  { %12585 = vmatpush3.msk.msra.mxu1 %vm4126_vm4, %v4529_v47 }
 0xef5   :  { %12582 = vmatmul.mubr.msk.f32.vlgmr.msra.gmra.mxu0 %vm4269_vm5, %v11419_v48  ;;  %12587 = vmatmul.mubr.msk.f32.vlgmr.msra.gmra.mxu1 %vm4269_vm5, %v11424_v24 }
 0xef6   :  { %12590 = vmatpush3.msk.msra.mxu0 %vm4126_vm4, %v4259_v35  ;;  %12594 = vmatprep.subr.msk.mxu1 %vm4126_vm4, %v4708_v36 }
 0xef7   :  { %12595 = vmatpush3.msk.msra.mxu1 %vm4126_vm4, %v4708_v36  ;;  %12599 = vmatprep.subr.msk.mxu0 %vm4126_vm4, %v4260_v41 }
 0xef8   :  { %12604 = vmatprep.subr.msk.mxu1 %vm4126_vm4, %v4887_v28  ;;  %12591 = vmatprep.mubr.msk.f32.mxu0 %vm4269_vm5, %v11428_v49 }
 0xef9   :  { %12596 = vmatprep.mubr.msk.f32.mxu1 %vm4269_vm5, %v11433_v50  ;;  %12592 = vmatmul.mubr.msk.f32.vlgmr.msra.gmra.mxu0 %vm4269_vm5, %v11429_v51 }
 0xefa   :  { %12597 = vmatmul.mubr.msk.f32.vlgmr.msra.gmra.mxu1 %vm4269_vm5, %v11434_v52  ;;  %12600 = vmatpush3.msk.msra.mxu0 %vm4126_vm4, %v4260_v41 }
 0xefb   :  { %12605 = vmatpush3.msk.msra.mxu1 %vm4126_vm4, %v4887_v28  ;;  %12601 = vmatprep.mubr.msk.f32.mxu0 %vm4269_vm5, %v11438_v53 }
 0xefc   :  { %12606 = vmatprep.mubr.msk.f32.mxu1 %vm4269_vm5, %v11443_v26  ;;  %12609 = vmatprep.subr.mxu0 %v4980_v56 }
 0xefd   :  { %12602 = vmatmul.mubr.msk.f32.vlgmr.msra.gmra.mxu0 %vm4269_vm5, %v11439_v54 }
 0xefe   :  { %12607 = vmatmul.mubr.msk.f32.vlgmr.msra.gmra.mxu1 %vm4269_vm5, %v11444_v55  ;;  %12610 = vmatpush3.msra.mxu0 %v4980_v56 }
 0xeff   :  { %12611 = vmatprep.subr.mxu0 %v4979_v57 }
 0xf00   :  { %12612 = vmatpush3.msra.mxu0 %v4979_v57 }
 0xf01   :  { %12613 = vmatprep.subr.mxu0 %v4978_v0 }
 0xf02   :  { %12614 = vmatpush3.msra.mxu0 %v4978_v0 }
 0xf03   :  { %12615 = vmatprep.subr.mxu0 %v4977_v1 }
 0xf04   :  { %12616 = vmatpush3.msra.mxu0 %v4977_v1 }
 0xf05   :  { %12617 = vmatprep.subr.mxu0 %v4976_v6 }
 0xf06   :  { %12618 = vmatpush3.msra.mxu0 %v4976_v6 }
 0xf07   :  { %12619 = vmatprep.subr.mxu0 %v4975_v7 }
 0xf08   :  { %12620 = vmatpush3.msra.mxu0 %v4975_v7 }
 0xf09   :  { %12621 = vmatprep.subr.mxu0 %v4974_v9 }
 0xf0a   :  { %12622 = vmatpush3.msra.mxu0 %v4974_v9 }
 0xf0b   :  { %12623 = vmatprep.subr.mxu0 %v4973_v10 }
 0xf0c   :  { %12624 = vmatpush3.msra.mxu0 %v4973_v10  ;;  %v5012_v10 = vrot.slane %v5011_v34, 4 }
 0xf0e   :  { %v5013_v43 = vadd.f32 %v5012_v10, %v5011_v34 }
 0xf10   :  { %v5014_v12 = vrot.slane %v5013_v43, 2 }
 0xf12   :  { %v5015_v13 = vadd.f32 %v5014_v12, %v5013_v43 }
 0xf14   :  { %v5016_v2 = vrot.slane %v5015_v13, 1 }
 0xf16   :  { %v5017_v5 = vadd.f32 %v5016_v2, %v5015_v13 }
 0xf3e   :  { %v12578_v37 = vpop.f32.mrf.mxu1 }
 0xf40   :  { %v4427_v38 = vpop.f32.mrf.mxu1 }
 0xfb1   :  { %v12573_v20 = vpop.f32.mrf.mxu0 }
 0xfb2   :  { %v4433_v39 = vadd.f32 %v12578_v37, %v12573_v20 }
 0xfb3   :  { %v4344_v35 = vpop.f32.mrf.mxu0 }
 0xfb4   :  { %v4428_v30 = vadd.f32 %v4427_v38, %v4344_v35 }
 0xfb5   :  { %v12583_v40 = vpop.f32.mrf.mxu0  ;;  %v12588_v22 = vpop.f32.mrf.mxu1 }
 0xfb6   :  { %v4524_v63 = vadd.f32 %v12583_v40, %v4433_v39 }
 0xfb7   :  { %v4514_v41 = vpop.f32.mrf.mxu0  ;;  %v4604_v42 = vpop.f32.mrf.mxu1 }
 0xfb8   :  { %v4614_v45 = vadd.f32 %v12588_v22, %v4524_v63  ;;  %v4523_v46 = vadd.f32 %v4514_v41, %v4428_v30 }
 0xfb9   :  { %v12593_v36 = vpop.f32.mrf.mxu0 }
 0xfba   :  { %v4613_v47 = vadd.f32 %v4604_v42, %v4523_v46  ;;  %v4703_v48 = vadd.f32 %v12593_v36, %v4614_v45  ;;  %v12598_v24 = vpop.f32.mrf.mxu1  ;;  %v5156_v36 = vld [vmem:[#allocation20 + $0x18] sm:$0xff] }
 0xfbb   :  { %v4693_v49 = vpop.f32.mrf.mxu0  ;;  %12628 = vmatprep.subr.mxu1 %v5156_v36 }
 0xfbc   :  { %v4793_v50 = vadd.f32 %v12598_v24, %v4703_v48  ;;  %v4702_v51 = vadd.f32 %v4693_v49, %v4613_v47  ;;  %v4783_v28 = vpop.f32.mrf.mxu1  ;;  %12629 = vmatpush3.msra.mxu1 %v5156_v36  ;;  %v5155_v47 = vld [vmem:[#allocation20 + $0x10] sm:$0xff]  ;;  %v5154_v48 = vld [vmem:[#allocation20 + $0x8] sm:$0xff]  ;;  %v5153_v24 = vld [vmem:[#allocation20] sm:$0xff] }
 0xfbd   :  { %v12603_v52 = vpop.f32.mrf.mxu0  ;;  %12630 = vmatprep.subr.mxu1 %v5155_v47  ;;  %v5532_v36 = vld [vmem:[#allocation22 + $0x3e8] sm:$0xff] }
 0xfbe   :  { %v4792_v53 = vadd.f32 %v4783_v28, %v4702_v51  ;;  %v4882_v26 = vadd.f32 %v12603_v52, %v4793_v50  ;;  %v12608_v54 = vpop.f32.mrf.mxu1  ;;  %12631 = vmatpush3.msra.mxu1 %v5155_v47  ;;  %v5534_v47 = vld [vmem:[#allocation22 + $0x3f8] sm:$0xff] }
 0xfbf   :  { %v4872_v55 = vpop.f32.mrf.mxu0  ;;  %12632 = vmatprep.subr.mxu1 %v5154_v48 }
 0xfc0   :  { %v14395_v56 = vadd.f32 %v12608_v54, %v4882_v26  ;;  %v4881_v57 = vadd.f32 %v4872_v55, %v4792_v53  ;;  %v4962_v0 = vpop.f32.mrf.mxu1  ;;  %12633 = vmatpush3.msra.mxu1 %v5154_v48 }
 0xfc1   :  { %12634 = vmatprep.subr.mxu1 %v5153_v24 }
 0xfc2   :  { %v14397_v1 = vadd.f32 %v4962_v0, %v4881_v57  ;;  %v4982_v6 = vmul.f32 %v14395_v56, %v14395_v56  ;;  %12635 = vmatpush3.msra.mxu1 %v5153_v24 }
 0xfc3   :  { %12639 = vmatprep.subr.mxu1 %v13691_v58 }
 0xfc4   :  { %12625 = vmatprep.mubr.msk.f32.mxu0 %vm370_vm0, %v14397_v1  ;;  %v4986_v7 = vsel %vm370_vm0, %v4982_v6, 0.0  ;;  %v4981_v8 = vmul.f32 %v14397_v1, %v14397_v1 }
 0xfc5   :  { %4987 = vadd.xlane.f32.xlu1 %v4986_v7  ;;  %12626 = vmatmul.mubr.msk.f32.vlgmr.msra.gmra.mxu0 %vm370_vm0, %v14395_v56 }
 0xfc6   :  { %v4983_v9 = vsel %vm370_vm0, %v4981_v8, 0.0  ;;  %5602 = vmatprep.mubr.f32.mxu0 %v13691_v58  ;;  %v5258_v8 = vld [vmem:[#allocation26] sm:$0x3] }
 0xfc7   :  { %4984 = vadd.xlane.f32.xlu0 %v4983_v9 }
0x104e   :  { %v4988_v14 = vpop.xlane.xlu1 %4987 }
0x104f   :  { %v5100_v19 = vadd.f32 %v5017_v5, %v4988_v14  ;;  %v5529_v14 = vld [vmem:[#allocation22 + $0x3d0] sm:$0xff] }
0x1050   :  { %v4985_v3 = vpop.xlane.xlu0 %4984 }
0x1051   :  { %v5099_v11 = vadd.f32 %v5017_v5, %v4985_v3  ;;  %v5528_v3 = vld [vmem:[#allocation22 + $0x3c8] sm:$0xff]  ;;  %v5527_v5 = vld [vmem:[#allocation22 + $0x3c0] sm:$0xff] }
0x1052   :  { %5554 = vmatprep.subr.mxu0 %v5528_v3  ;;  %v5515_v3 = vld [vmem:[#allocation22 + $0x360] sm:$0xff] }
0x1053   :  { %5555 = vmatpush1.msra.mxu0 %v5527_v5  ;;  %v5508_v5 = vld [vmem:[#allocation22 + $0x328] sm:$0xff] }
0x1085   :  { %v12627_v4 = vpop.f32.mrf.mxu0 }
0x1086   :  { %v5102_v18 = vmul.f32 2.0, %v12627_v4  ;;  %v5530_v4 = vld [vmem:[#allocation22 + $0x3d8] sm:$0xff] }
0x1087   :  { %v5090_v17 = vpop.f32.mrf.mxu0 }
0x1088   :  { %v5101_v15 = vmul.f32 2.0, %v5090_v17  ;;  %v5104_v25 = vsub.f32 %v5100_v19, %v5102_v18  ;;  %v5520_v17 = vld [vmem:[#allocation22 + $0x388] sm:$0xff]  ;;  %v5519_v18 = vld [vmem:[#allocation22 + $0x380] sm:$0xff] }
0x1089   :  { %v5512_v19 = vld [vmem:[#allocation22 + $0x348] sm:$0xff]  ;;  %5556 = vmatprep.subr.mxu0 %v5520_v17  ;;  %v5507_v17 = vld [vmem:[#allocation22 + $0x320] sm:$0xff] }
0x108a   :  { %v5103_v59 = vsub.f32 %v5099_v11, %v5101_v15  ;;  %v5110_v29 = vsel %vm1459_vm2, %v5104_v25, inf  ;;  %v5522_v11 = vld [vmem:[#allocation22 + $0x398] sm:$0xff]  ;;  %v5521_v15 = vld [vmem:[#allocation22 + $0x390] sm:$0xff]  ;;  %5557 = vmatpush1.msra.mxu0 %v5519_v18  ;;  %v5500_v18 = vld [vmem:[#allocation22 + $0x2e8] sm:$0xff] }
0x108b   :  { %5558 = vmatprep.subr.mxu0 %v5512_v19  ;;  %v5499_v19 = vld [vmem:[#allocation22 + $0x2e0] sm:$0xff] }
0x108c   :  { %v5107_v23 = vsel %vm1459_vm2, %v5103_v59, inf }
0x108d   :  { %5108 = vmin.xlane.f32.xlu0 %v5107_v23  ;;  %v5511_v23 = vld [vmem:[#allocation22 + $0x340] sm:$0xff] }
0x108e   :  { %5559 = vmatpush1.msra.mxu0 %v5511_v23  ;;  %v5492_v23 = vld [vmem:[#allocation22 + $0x2a8] sm:$0xff] }
0x1091   :  { %5111 = vmin.xlane.f32.xlu0 %v5110_v29  ;;  %v5504_v29 = vld [vmem:[#allocation22 + $0x308] sm:$0xff] }
0x1092   :  { %5560 = vmatprep.subr.mxu0 %v5504_v29  ;;  %v5491_v29 = vld [vmem:[#allocation22 + $0x2a0] sm:$0xff] }
0x1116   :  { %v5109_v32 = vpop.xlane.xlu0 %5108 }
0x1117   :  { %vm5113_vm6 = vcmp.le.f32.partialorder %v5103_v59, %v5109_v32  ;;  %v5514_v59 = vld [vmem:[#allocation22 + $0x358] sm:$0xff]  ;;  %v5503_v32 = vld [vmem:[#allocation22 + $0x300] sm:$0xff] }
0x1118   :  { %v5115_v33 = vsel %vm5113_vm6, %v5106_v31, 32  ;;  %5561 = vmatpush1.msra.mxu0 %v5503_v32  ;;  %v5484_v32 = vld [vmem:[#allocation22 + $0x268] sm:$0xff] }
0x1119   :  { %v5117_v16 = vsel %vm1459_vm2, %v5115_v33, 2147483647  ;;  %v5505_v33 = vld [vmem:[#allocation22 + $0x310] sm:$0xff] }
0x111a   :  { %v5112_v34 = vpop.xlane.xlu0 %5111  ;;  %v5119_v37 = vshra.s32 %v5117_v16, 16  ;;  %v5118_v22 = vand.u32 65535, %v5117_v16  ;;  %v5496_v16 = vld [vmem:[#allocation22 + $0x2c8] sm:$0xff] }
0x111b   :  { %vm5114_vm7 = vcmp.le.f32.partialorder %v5104_v25, %v5112_v34  ;;  %v5513_v25 = vld [vmem:[#allocation22 + $0x350] sm:$0xff]  ;;  %v5498_v34 = vld [vmem:[#allocation22 + $0x2d8] sm:$0xff]  ;;  %5562 = vmatprep.subr.mxu0 %v5496_v16  ;;  %v5483_v16 = vld [vmem:[#allocation22 + $0x260] sm:$0xff] }
0x111c   :  { %v5116_v20 = vsel %vm5114_vm7, %v5106_v31, 32  ;;  %v5121_v38 = vcvt.s32.f32 %v5119_v37  ;;  %v5120_v63 = vcvt.s32.f32 %v5118_v22  ;;  %v5495_v37 = vld [vmem:[#allocation22 + $0x2c0] sm:$0xff]  ;;  %v5480_v22 = vld [vmem:[#allocation22 + $0x248] sm:$0xff] }
0x111d   :  { %v5132_v35 = vsel %vm1459_vm2, %v5116_v20, 2147483647  ;;  %v5497_v20 = vld [vmem:[#allocation22 + $0x2d0] sm:$0xff]  ;;  %5563 = vmatpush1.msra.mxu0 %v5495_v37  ;;  %v5476_v37 = vld [vmem:[#allocation22 + $0x228] sm:$0xff] }
0x111e   :  { %5122 = vmin.xlane.f32.xlu1 %v5121_v38  ;;  %v5134_v39 = vshra.s32 %v5132_v35, 16  ;;  %v5133_v60 = vand.u32 65535, %v5132_v35  ;;  %v5490_v35 = vld [vmem:[#allocation22 + $0x298] sm:$0xff] }
0x1120   :  { %v5136_v40 = vcvt.s32.f32 %v5134_v39  ;;  %v5135_v45 = vcvt.s32.f32 %v5133_v60  ;;  %v5487_v39 = vld [vmem:[#allocation22 + $0x280] sm:$0xff]  ;;  %v5481_v60 = vld [vmem:[#allocation22 + $0x250] sm:$0xff] }
0x1122   :  { %5137 = vmin.xlane.f32.xlu0 %v5136_v40 }
0x11a7   :  { %v5123_v30 = vpop.xlane.xlu1 %5122 }
0x11a8   :  { %vm5124_vm8 = vcmp.eq.f32.partialorder %v5121_v38, %v5123_v30  ;;  %v5129_v49 = vcvt.f32.s32 %v5123_v30  ;;  %v5488_v38 = vld [vmem:[#allocation22 + $0x288] sm:$0xff]  ;;  %v5482_v30 = vld [vmem:[#allocation22 + $0x258] sm:$0xff] }
0x11a9   :  { %v5125_v41 = vsel %vm5124_vm8, %v5120_v63, inf  ;;  %5564 = vmatprep.subr.mxu0 %v5488_v38  ;;  %v5479_v63 = vld [vmem:[#allocation22 + $0x240] sm:$0xff] }
0x11aa   :  { %5126 = vmin.xlane.f32.xlu1 %v5125_v41  ;;  %v5130_v51 = vshll.u32 %v5129_v49, 16  ;;  %5565 = vmatpush1.msra.mxu0 %v5487_v39  ;;  %v5472_v41 = vld [vmem:[#allocation22 + $0x208] sm:$0xff]  ;;  %v5475_v38 = vld [vmem:[#allocation22 + $0x220] sm:$0xff] }
0x11ab   :  { %v5138_v42 = vpop.xlane.xlu0 %5137  ;;  %5566 = vmatprep.subr.mxu0 %v5480_v22  ;;  %v5389_v39 = vld [vmem:[#allocation22 + $0x1c8] sm:$0xff]  ;;  %v5388_v22 = vld [vmem:[#allocation22 + $0x1c0] sm:$0xff] }
0x11ac   :  { %vm5139_vm9 = vcmp.eq.f32.partialorder %v5136_v40, %v5138_v42  ;;  %v5144_v28 = vcvt.f32.s32 %v5138_v42  ;;  %v5489_v40 = vld [vmem:[#allocation22 + $0x290] sm:$0xff]  ;;  %5567 = vmatpush1.msra.mxu0 %v5479_v63  ;;  %v5474_v42 = vld [vmem:[#allocation22 + $0x218] sm:$0xff]  ;;  %v5381_v63 = vld [vmem:[#allocation22 + $0x188] sm:$0xff] }
0x11ad   :  { %v5140_v46 = vsel %vm5139_vm9, %v5135_v45, inf  ;;  %v5471_v45 = vld [vmem:[#allocation22 + $0x200] sm:$0xff]  ;;  %5568 = vmatprep.subr.mxu0 %v5472_v41 }
0x11ae   :  { %5141 = vmin.xlane.f32.xlu0 %v5140_v46  ;;  %v5145_v54 = vshll.u32 %v5144_v28, 16  ;;  %v5473_v46 = vld [vmem:[#allocation22 + $0x210] sm:$0xff]  ;;  %5569 = vmatpush1.msra.mxu0 %v5471_v45  ;;  %v5380_v41 = vld [vmem:[#allocation22 + $0x180] sm:$0xff]  ;;  %v5373_v45 = vld [vmem:[#allocation22 + $0x148] sm:$0xff] }
0x11af   :  { %5696 = vmatprep.subr.mxu0 %v5532_v36  ;;  %v5372_v36 = vld [vmem:[#allocation22 + $0x140] sm:$0xff] }
0x1233   :  { %v5127_v50 = vpop.xlane.xlu1 %5126 }
0x1234   :  { %v5128_v52 = vcvt.f32.s32 %v5127_v50 }
0x1236   :  { %v5131_v53 = vadd.s32 %v5130_v51, %v5128_v52 }
0x1237   :  { %v5142_v26 = vpop.xlane.xlu0 %5141 }
0x1238   :  { %v5143_v55 = vcvt.f32.s32 %v5142_v26  ;;  %vm5147_vm10 = vcmp.eq.s32.totalorder %v5106_v31, %v5131_v53 }
0x1239   :  { %v11450_v57 = vsel %vm5147_vm10, 1.0, %v13691_v58 }
0x123a   :  { %v5146_v0 = vadd.s32 %v5145_v54, %v5143_v55  ;;  %12636 = vmatprep.mubr.msk.f32.mxu1 %vm1459_vm2, %v11450_v57 }
0x123c   :  { %vm5148_vm11 = vcmp.eq.s32.totalorder %v5106_v31, %v5146_v0  ;;  %v5506_v31 = vld [vmem:[#allocation22 + $0x318] sm:$0xff]  ;;  %v5531_v0 = vld [vmem:[#allocation22 + $0x3e0] sm:$0xff] }
0x123d   :  { %v11451_v6 = vsel %vm5148_vm11, 1.0, %v13691_v58 }
0x123e   :  { %12637 = vmatmul.mubr.msk.f32.vlgmr.msra.gmra.mxu1 %vm1459_vm2, %v11451_v6  ;;  %v5533_v6 = vld [vmem:[#allocation22 + $0x3f0] sm:$0xff] }
0x123f   :  { %12643 = vmatprep.mubr.msk.f32.mxu1 %vm13692_vm1, %v13691_v58 }
0x12fe   :  { %v14422_v7 = vpop.f32.mrf.mxu1 }
0x12ff   :  { %12640 = vmatpush3.msra.mxu1 %v14422_v7  ;;  %v5239_v9 = vsub.f32 %v14422_v7, %v14395_v56  ;;  %v5396_v56 = vld [vmem:[#allocation26 + $0x2] sm:$0x3] }
0x1300   :  { %v14427_v10 = vpop.f32.mrf.mxu1  ;;  %12641 = vmatprep.subr.mxu1 %v13691_v58 }
0x1301   :  { %12642 = vmatpush3.msra.mxu1 %v14427_v10  ;;  %v5241_v43 = vmul.f32 %v5239_v9, %v5239_v9  ;;  %v5238_v12 = vsub.f32 %v14427_v10, %v14397_v1  ;;  %v5524_v9 = vld [vmem:[#allocation22 + $0x3a8] sm:$0xff] }
0x1302   :  { %12644 = vmatmul.mubr.msk.f32.vlgmr.msra.gmra.mxu1 %vm1819_vm3, %v5258_v8  ;;  %12646 = vmatprep.subr.mxu1 %v13691_v58 }
0x1303   :  { %12647 = vmatpush3.msra.mxu1 %v14422_v7  ;;  %v5245_v13 = vsel %vm370_vm0, %v5241_v43, 0.0  ;;  %12650 = vmatprep.mubr.msk.f32.mxu1 %vm13692_vm1, %v13691_v58  ;;  %v5240_v2 = vmul.f32 %v5238_v12, %v5238_v12  ;;  %v5526_v43 = vld [vmem:[#allocation22 + $0x3b8] sm:$0xff]  ;;  %v5523_v12 = vld [vmem:[#allocation22 + $0x3a0] sm:$0xff] }
0x1304   :  { %5246 = vadd.xlane.f32.xlu0 %v5245_v13  ;;  %12648 = vmatprep.subr.mxu1 %v13691_v58  ;;  %v5525_v13 = vld [vmem:[#allocation22 + $0x3b0] sm:$0xff] }
0x1305   :  { %12649 = vmatpush3.msra.mxu1 %v14427_v10  ;;  %v5242_v1 = vsel %vm370_vm0, %v5240_v2, 0.0  ;;  %v5516_v2 = vld [vmem:[#allocation22 + $0x368] sm:$0xff] }
0x1306   :  { %12651 = vmatmul.mubr.msk.f32.vlgmr.msra.gmra.mxu1 %vm1819_vm3, %v5396_v56  ;;  %5243 = vadd.xlane.f32.xlu1 %v5242_v1  ;;  %v5518_v1 = vld [vmem:[#allocation22 + $0x378] sm:$0xff] }
0x1307   :  { %5673 = vmatprep.mubr.f32.mxu1 %v13691_v58  ;;  %5625 = vmatprep.subr.mxu1 %v5530_v4  ;;  %v5517_v4 = vld [vmem:[#allocation22 + $0x370] sm:$0xff] }
0x1308   :  { %5626 = vmatpush1.msra.mxu1 %v5529_v14  ;;  %v5510_v14 = vld [vmem:[#allocation22 + $0x338] sm:$0xff] }
0x1309   :  { %5627 = vmatprep.subr.mxu1 %v5522_v11  ;;  %v5509_v11 = vld [vmem:[#allocation22 + $0x330] sm:$0xff] }
0x130a   :  { %5628 = vmatpush1.msra.mxu1 %v5521_v15  ;;  %v5502_v15 = vld [vmem:[#allocation22 + $0x2f8] sm:$0xff] }
0x130b   :  { %5629 = vmatprep.subr.mxu1 %v5514_v59  ;;  %v5501_v59 = vld [vmem:[#allocation22 + $0x2f0] sm:$0xff] }
0x130c   :  { %5630 = vmatpush1.msra.mxu1 %v5513_v25  ;;  %v5494_v25 = vld [vmem:[#allocation22 + $0x2b8] sm:$0xff] }
0x130d   :  { %5631 = vmatprep.subr.mxu1 %v5506_v31  ;;  %v5493_v31 = vld [vmem:[#allocation22 + $0x2b0] sm:$0xff] }
0x130e   :  { %5632 = vmatpush1.msra.mxu1 %v5505_v33  ;;  %v5486_v33 = vld [vmem:[#allocation22 + $0x278] sm:$0xff] }
0x130f   :  { %5633 = vmatprep.subr.mxu1 %v5498_v34  ;;  %v5485_v34 = vld [vmem:[#allocation22 + $0x270] sm:$0xff] }
0x1310   :  { %5634 = vmatpush1.msra.mxu1 %v5497_v20  ;;  %v5478_v20 = vld [vmem:[#allocation22 + $0x238] sm:$0xff] }
0x1311   :  { %5635 = vmatprep.subr.mxu1 %v5490_v35  ;;  %v5477_v35 = vld [vmem:[#allocation22 + $0x230] sm:$0xff] }
0x1312   :  { %5636 = vmatpush1.msra.mxu1 %v5489_v40  ;;  %v5391_v40 = vld [vmem:[#allocation22 + $0x1d8] sm:$0xff] }
0x1313   :  { %5637 = vmatprep.subr.mxu1 %v5482_v30  ;;  %v5390_v30 = vld [vmem:[#allocation22 + $0x1d0] sm:$0xff] }
0x1314   :  { %5638 = vmatpush1.msra.mxu1 %v5481_v60  ;;  %v5383_v60 = vld [vmem:[#allocation22 + $0x198] sm:$0xff] }
0x1315   :  { %5639 = vmatprep.subr.mxu1 %v5474_v42  ;;  %v5382_v42 = vld [vmem:[#allocation22 + $0x190] sm:$0xff] }
0x1316   :  { %5640 = vmatpush1.msra.mxu1 %v5473_v46  ;;  %v5375_v46 = vld [vmem:[#allocation22 + $0x158] sm:$0xff] }
0x1317   :  { %5767 = vmatprep.subr.mxu1 %v5534_v47  ;;  %v5374_v47 = vld [vmem:[#allocation22 + $0x150] sm:$0xff] }
0x138d   :  { %v5247_v48 = vpop.xlane.xlu0 %5246 }
0x138f   :  { %v5244_v24 = vpop.xlane.xlu1 %5243 }
0x1390   :  { %v5248_v49 = vadd.f32 %v5247_v48, %v5244_v24  ;;  %v5365_v48 = vld [vmem:[#allocation22 + $0x108] sm:$0xff]  ;;  %v5367_v24 = vld [vmem:[#allocation22 + $0x118] sm:$0xff] }
0x1392   :  { %v5249_v50 = vrot.slane %v5248_v49, 4 }
0x1394   :  { %v5250_v51 = vadd.f32 %v5249_v50, %v5248_v49  ;;  %v5364_v49 = vld [vmem:[#allocation22 + $0x100] sm:$0xff]  ;;  %v5366_v50 = vld [vmem:[#allocation22 + $0x110] sm:$0xff] }
0x1396   :  { %v5251_v28 = vrot.slane %v5250_v51, 2 }
0x1398   :  { %v5252_v52 = vadd.f32 %v5251_v28, %v5250_v51  ;;  %v5357_v51 = vld [vmem:[#allocation22 + $0xc8] sm:$0xff]  ;;  %v5359_v28 = vld [vmem:[#allocation22 + $0xd8] sm:$0xff] }
0x139a   :  { %v5253_v53 = vrot.slane %v5252_v52, 1 }
0x139c   :  { %v5254_v26 = vadd.f32 %v5253_v53, %v5252_v52  ;;  %v5356_v52 = vld [vmem:[#allocation22 + $0xc0] sm:$0xff]  ;;  %v5358_v53 = vld [vmem:[#allocation22 + $0xd0] sm:$0xff] }
0x139e   :  { %v5255_v54 = vmul.f32 0.0012207031, %v5254_v26  ;;  %v5349_v26 = vld [vmem:[#allocation22 + $0x88] sm:$0xff] }
0x13a0   :  { %5257 = vst.msk [vmem:[#allocation34] sm:$0x1] %vm5256_vm12, %v5255_v54  ;;  %v5351_v54 = vld [vmem:[#allocation22 + $0x98] sm:$0xff] }
0x13c2   :  { %v14444_v55 = vpop.f32.mrf.mxu1 }
0x13c4   :  { %v12645_v57 = vpop.f32.mrf.mxu1 }
0x13c5   :  { %v5348_v57 = vld [vmem:[#allocation22 + $0x80] sm:$0xff] }
0x13c6   :  { %v14446_v8 = vpop.f32.mrf.mxu1 }
0x13c7   :  { %11456 = vmatmul.mubr.msk.f32.vlgmr.msra.gmra.mxu0 %vm370_vm0, %v14446_v8  ;;  %11457 = vmatmul.mubr.msk.f32.vlgmr.msra.gmra.mxu1 %vm370_vm0, %v14446_v8 }
0x13c8   :  { %5697 = vmatpush1.msra.mxu0 %v5531_v0  ;;  %5768 = vmatpush1.msra.mxu1 %v5533_v6  ;;  %v12652_v56 = vpop.f32.mrf.mxu1  ;;  %v5350_v0 = vld [vmem:[#allocation22 + $0x90] sm:$0xff]  ;;  %v5341_v6 = vld [vmem:[#allocation22 + $0x48] sm:$0xff] }
0x13c9   :  { %5698 = vmatprep.subr.mxu0 %v5524_v9  ;;  %5769 = vmatprep.subr.mxu1 %v5526_v43  ;;  %v5340_v9 = vld [vmem:[#allocation22 + $0x40] sm:$0xff]  ;;  %v5342_v43 = vld [vmem:[#allocation22 + $0x50] sm:$0xff] }
0x13ca   :  { %5699 = vmatpush1.msra.mxu0 %v5523_v12  ;;  %5770 = vmatpush1.msra.mxu1 %v5525_v13  ;;  %v5333_v12 = vld [vmem:[#allocation22 + $0x8] sm:$0xff]  ;;  %v5335_v13 = vld [vmem:[#allocation22 + $0x18] sm:$0xff]  ;;  %v5332_v56 = vld [vmem:[#allocation22] sm:$0xff] }
0x13cb   :  { %5700 = vmatprep.subr.mxu0 %v5516_v2  ;;  %5771 = vmatprep.subr.mxu1 %v5518_v1  ;;  %v5334_v2 = vld [vmem:[#allocation22 + $0x10] sm:$0xff]  ;;  %v5393_v1 = vld [vmem:[#allocation22 + $0x1e8] sm:$0xff] }
0x13cc   :  { %5701 = vmatpush1.msra.mxu0 %v5515_v3  ;;  %5772 = vmatpush1.msra.mxu1 %v5517_v4  ;;  %v5395_v3 = vld [vmem:[#allocation22 + $0x1f8] sm:$0xff]  ;;  %v5392_v4 = vld [vmem:[#allocation22 + $0x1e0] sm:$0xff] }
0x13cd   :  { %5702 = vmatprep.subr.mxu0 %v5508_v5  ;;  %5773 = vmatprep.subr.mxu1 %v5510_v14  ;;  %v5394_v5 = vld [vmem:[#allocation22 + $0x1f0] sm:$0xff]  ;;  %v5385_v14 = vld [vmem:[#allocation22 + $0x1a8] sm:$0xff] }
0x13ce   :  { %5703 = vmatpush1.msra.mxu0 %v5507_v17  ;;  %5774 = vmatpush1.msra.mxu1 %v5509_v11  ;;  %v5387_v17 = vld [vmem:[#allocation22 + $0x1b8] sm:$0xff]  ;;  %v5384_v11 = vld [vmem:[#allocation22 + $0x1a0] sm:$0xff] }
0x13cf   :  { %5704 = vmatprep.subr.mxu0 %v5500_v18  ;;  %5775 = vmatprep.subr.mxu1 %v5502_v15  ;;  %v5386_v18 = vld [vmem:[#allocation22 + $0x1b0] sm:$0xff]  ;;  %v5377_v15 = vld [vmem:[#allocation22 + $0x168] sm:$0xff] }
0x13d0   :  { %5705 = vmatpush1.msra.mxu0 %v5499_v19  ;;  %5776 = vmatpush1.msra.mxu1 %v5501_v59  ;;  %v5379_v19 = vld [vmem:[#allocation22 + $0x178] sm:$0xff]  ;;  %v5376_v59 = vld [vmem:[#allocation22 + $0x160] sm:$0xff] }
0x13d1   :  { %5706 = vmatprep.subr.mxu0 %v5492_v23  ;;  %5777 = vmatprep.subr.mxu1 %v5494_v25  ;;  %v5378_v23 = vld [vmem:[#allocation22 + $0x170] sm:$0xff]  ;;  %v5369_v25 = vld [vmem:[#allocation22 + $0x128] sm:$0xff] }
0x13d2   :  { %5707 = vmatpush1.msra.mxu0 %v5491_v29  ;;  %5778 = vmatpush1.msra.mxu1 %v5493_v31  ;;  %v5371_v29 = vld [vmem:[#allocation22 + $0x138] sm:$0xff]  ;;  %v5368_v31 = vld [vmem:[#allocation22 + $0x120] sm:$0xff] }
0x13d3   :  { %5708 = vmatprep.subr.mxu0 %v5484_v32  ;;  %5779 = vmatprep.subr.mxu1 %v5486_v33  ;;  %v5370_v32 = vld [vmem:[#allocation22 + $0x130] sm:$0xff]  ;;  %v5361_v33 = vld [vmem:[#allocation22 + $0xe8] sm:$0xff] }
0x13d4   :  { %5709 = vmatpush1.msra.mxu0 %v5483_v16  ;;  %5780 = vmatpush1.msra.mxu1 %v5485_v34  ;;  %v5363_v16 = vld [vmem:[#allocation22 + $0xf8] sm:$0xff]  ;;  %v5360_v34 = vld [vmem:[#allocation22 + $0xe0] sm:$0xff] }
0x13d5   :  { %5710 = vmatprep.subr.mxu0 %v5476_v37  ;;  %5781 = vmatprep.subr.mxu1 %v5478_v20  ;;  %v5362_v37 = vld [vmem:[#allocation22 + $0xf0] sm:$0xff]  ;;  %v5353_v20 = vld [vmem:[#allocation22 + $0xa8] sm:$0xff] }
0x13d6   :  { %5711 = vmatpush1.msra.mxu0 %v5475_v38  ;;  %5744 = vmatprep.mubr.f32.mxu0 %v13691_v58  ;;  %v5355_v38 = vld [vmem:[#allocation22 + $0xb8] sm:$0xff] }
0x13d7   :  { %5782 = vmatpush1.msra.mxu1 %v5477_v35  ;;  %5815 = vmatprep.mubr.f32.mxu1 %v13691_v58  ;;  %v5352_v35 = vld [vmem:[#allocation22 + $0xa0] sm:$0xff] }
0x13d8   :  { %11458 = vmatmul.mubr.msk.f32.vlgmr.msra.gmra.mxu0 %vm370_vm0, %v14446_v8  ;;  %11459 = vmatmul.mubr.msk.f32.vlgmr.msra.gmra.mxu1 %vm370_vm0, %v14446_v8  ;;  %v5343_v8 = vld [vmem:[#allocation22 + $0x58] sm:$0xff] }
0x13d9   :  { %5841 = vmatprep.subr.mxu0 %v5389_v39  ;;  %5912 = vmatprep.subr.mxu1 %v5391_v40  ;;  %v5354_v39 = vld [vmem:[#allocation22 + $0xb0] sm:$0xff]  ;;  %v5345_v40 = vld [vmem:[#allocation22 + $0x68] sm:$0xff] }
0x13da   :  { %5842 = vmatpush1.msra.mxu0 %v5388_v22  ;;  %5913 = vmatpush1.msra.mxu1 %v5390_v30  ;;  %v5347_v22 = vld [vmem:[#allocation22 + $0x78] sm:$0xff]  ;;  %v5344_v30 = vld [vmem:[#allocation22 + $0x60] sm:$0xff] }
0x13db   :  { %5843 = vmatprep.subr.mxu0 %v5381_v63  ;;  %5914 = vmatprep.subr.mxu1 %v5383_v60  ;;  %v5346_v63 = vld [vmem:[#allocation22 + $0x70] sm:$0xff]  ;;  %v5337_v60 = vld [vmem:[#allocation22 + $0x28] sm:$0xff] }
0x13dc   :  { %5844 = vmatpush1.msra.mxu0 %v5380_v41  ;;  %5915 = vmatpush1.msra.mxu1 %v5382_v42  ;;  %v5339_v41 = vld [vmem:[#allocation22 + $0x38] sm:$0xff]  ;;  %v5336_v42 = vld [vmem:[#allocation22 + $0x20] sm:$0xff] }
0x13dd   :  { %5845 = vmatprep.subr.mxu0 %v5373_v45  ;;  %5916 = vmatprep.subr.mxu1 %v5375_v46  ;;  %v5338_v45 = vld [vmem:[#allocation22 + $0x30] sm:$0xff]  ;;  %v6109_v46 = vld [vmem:[#allocation26 + $0x4] sm:$0x3] }
0x13de   :  { %5846 = vmatpush1.msra.mxu0 %v5372_v36  ;;  %5917 = vmatpush1.msra.mxu1 %v5374_v47  ;;  %v6241_v36 = vld [vmem:[#allocation22 + $0x5c8] sm:$0xff]  ;;  %v6240_v47 = vld [vmem:[#allocation22 + $0x5c0] sm:$0xff] }
0x13df   :  { %5847 = vmatprep.subr.mxu0 %v5365_v48  ;;  %5918 = vmatprep.subr.mxu1 %v5367_v24  ;;  %v6242_v48 = vld [vmem:[#allocation22 + $0x5d0] sm:$0xff]  ;;  %v6233_v24 = vld [vmem:[#allocation22 + $0x588] sm:$0xff] }
0x13e0   :  { %5848 = vmatpush1.msra.mxu0 %v5364_v49  ;;  %5919 = vmatpush1.msra.mxu1 %v5366_v50  ;;  %v6235_v49 = vld [vmem:[#allocation22 + $0x598] sm:$0xff]  ;;  %v6232_v50 = vld [vmem:[#allocation22 + $0x580] sm:$0xff] }
0x13e1   :  { %5849 = vmatprep.subr.mxu0 %v5357_v51  ;;  %5920 = vmatprep.subr.mxu1 %v5359_v28  ;;  %v6234_v51 = vld [vmem:[#allocation22 + $0x590] sm:$0xff]  ;;  %v6225_v28 = vld [vmem:[#allocation22 + $0x548] sm:$0xff] }
0x13e2   :  { %5850 = vmatpush1.msra.mxu0 %v5356_v52  ;;  %5921 = vmatpush1.msra.mxu1 %v5358_v53  ;;  %v6227_v52 = vld [vmem:[#allocation22 + $0x558] sm:$0xff]  ;;  %v6224_v53 = vld [vmem:[#allocation22 + $0x540] sm:$0xff] }
0x13e3   :  { %5851 = vmatprep.subr.mxu0 %v5349_v26  ;;  %5922 = vmatprep.subr.mxu1 %v5351_v54  ;;  %v6226_v26 = vld [vmem:[#allocation22 + $0x550] sm:$0xff]  ;;  %v6217_v54 = vld [vmem:[#allocation22 + $0x508] sm:$0xff] }
0x13e4   :  { %5852 = vmatpush1.msra.mxu0 %v5348_v57  ;;  %5923 = vmatpush1.msra.mxu1 %v5350_v0  ;;  %v6219_v57 = vld [vmem:[#allocation22 + $0x518] sm:$0xff]  ;;  %v6216_v0 = vld [vmem:[#allocation22 + $0x500] sm:$0xff] }
0x13e5   :  { %5853 = vmatprep.subr.mxu0 %v5341_v6  ;;  %5924 = vmatprep.subr.mxu1 %v5343_v8  ;;  %v6218_v6 = vld [vmem:[#allocation22 + $0x510] sm:$0xff]  ;;  %v6209_v8 = vld [vmem:[#allocation22 + $0x4c8] sm:$0xff] }
0x13e6   :  { %5854 = vmatpush1.msra.mxu0 %v5340_v9  ;;  %5925 = vmatpush1.msra.mxu1 %v5342_v43  ;;  %v6211_v9 = vld [vmem:[#allocation22 + $0x4d8] sm:$0xff]  ;;  %v6208_v43 = vld [vmem:[#allocation22 + $0x4c0] sm:$0xff] }
0x13e7   :  { %5855 = vmatprep.subr.mxu0 %v5333_v12  ;;  %5926 = vmatprep.subr.mxu1 %v5335_v13  ;;  %v6210_v12 = vld [vmem:[#allocation22 + $0x4d0] sm:$0xff]  ;;  %v6201_v13 = vld [vmem:[#allocation22 + $0x488] sm:$0xff] }
0x13e8   :  { %5856 = vmatpush1.msra.mxu0 %v5332_v56  ;;  %5889 = vmatprep.mubr.f32.mxu0 %v13691_v58  ;;  %v6203_v56 = vld [vmem:[#allocation22 + $0x498] sm:$0xff] }
0x13e9   :  { %5927 = vmatpush1.msra.mxu1 %v5334_v2  ;;  %5960 = vmatprep.mubr.f32.mxu1 %v13691_v58  ;;  %v6200_v2 = vld [vmem:[#allocation22 + $0x480] sm:$0xff] }
0x13ea   :  { %11460 = vmatmul.mubr.msk.f32.vlgmr.msra.gmra.mxu0 %vm370_vm0, %v14444_v55  ;;  %11461 = vmatmul.mubr.msk.f32.vlgmr.msra.gmra.mxu1 %vm370_vm0, %v14444_v55 }
0x13eb   :  { %5983 = vmatprep.subr.mxu0 %v5393_v1  ;;  %6054 = vmatprep.subr.mxu1 %v5395_v3  ;;  %v6202_v1 = vld [vmem:[#allocation22 + $0x490] sm:$0xff]  ;;  %v6193_v3 = vld [vmem:[#allocation22 + $0x448] sm:$0xff] }
0x13ec   :  { %5984 = vmatpush1.msra.mxu0 %v5392_v4  ;;  %6055 = vmatpush1.msra.mxu1 %v5394_v5  ;;  %v6195_v4 = vld [vmem:[#allocation22 + $0x458] sm:$0xff]  ;;  %v6192_v5 = vld [vmem:[#allocation22 + $0x440] sm:$0xff] }
0x13ed   :  { %5985 = vmatprep.subr.mxu0 %v5385_v14  ;;  %6056 = vmatprep.subr.mxu1 %v5387_v17  ;;  %v6194_v14 = vld [vmem:[#allocation22 + $0x450] sm:$0xff]  ;;  %v6185_v17 = vld [vmem:[#allocation22 + $0x408] sm:$0xff] }
0x13ee   :  { %5986 = vmatpush1.msra.mxu0 %v5384_v11  ;;  %6057 = vmatpush1.msra.mxu1 %v5386_v18  ;;  %v6187_v11 = vld [vmem:[#allocation22 + $0x418] sm:$0xff]  ;;  %v6184_v18 = vld [vmem:[#allocation22 + $0x400] sm:$0xff] }
0x13ef   :  { %5987 = vmatprep.subr.mxu0 %v5377_v15  ;;  %6058 = vmatprep.subr.mxu1 %v5379_v19  ;;  %v6186_v15 = vld [vmem:[#allocation22 + $0x410] sm:$0xff]  ;;  %v6245_v19 = vld [vmem:[#allocation22 + $0x5e8] sm:$0xff] }
0x13f0   :  { %5988 = vmatpush1.msra.mxu0 %v5376_v59  ;;  %6059 = vmatpush1.msra.mxu1 %v5378_v23  ;;  %v6247_v59 = vld [vmem:[#allocation22 + $0x5f8] sm:$0xff] }
0x13f1   :  { %5989 = vmatprep.subr.mxu0 %v5369_v25  ;;  %6060 = vmatprep.subr.mxu1 %v5371_v29 }
0x13f2   :  { %5990 = vmatpush1.msra.mxu0 %v5368_v31  ;;  %6061 = vmatpush1.msra.mxu1 %v5370_v32 }
0x13f3   :  { %5991 = vmatprep.subr.mxu0 %v5361_v33  ;;  %6062 = vmatprep.subr.mxu1 %v5363_v16 }
0x13f4   :  { %5992 = vmatpush1.msra.mxu0 %v5360_v34  ;;  %6063 = vmatpush1.msra.mxu1 %v5362_v37 }
0x13f5   :  { %5993 = vmatprep.subr.mxu0 %v5353_v20  ;;  %6064 = vmatprep.subr.mxu1 %v5355_v38 }
0x13f6   :  { %5994 = vmatpush1.msra.mxu0 %v5352_v35  ;;  %6065 = vmatpush1.msra.mxu1 %v5354_v39 }
0x13f7   :  { %5995 = vmatprep.subr.mxu0 %v5345_v40  ;;  %6066 = vmatprep.subr.mxu1 %v5347_v22 }
0x13f8   :  { %5996 = vmatpush1.msra.mxu0 %v5344_v30  ;;  %6067 = vmatpush1.msra.mxu1 %v5346_v63 }
0x13f9   :  { %5997 = vmatprep.subr.mxu0 %v5337_v60  ;;  %6068 = vmatprep.subr.mxu1 %v5339_v41 }
0x13fa   :  { %5998 = vmatpush1.msra.mxu0 %v5336_v42  ;;  %6031 = vmatprep.mubr.f32.mxu0 %v13691_v58 }
0x13fb   :  { %6069 = vmatpush1.msra.mxu1 %v5338_v45  ;;  %6102 = vmatprep.mubr.f32.mxu1 %v13691_v58 }
0x13fc   :  { %11462 = vmatmul.mubr.msk.f32.vlgmr.msra.gmra.mxu0 %vm370_vm0, %v14444_v55  ;;  %11463 = vmatmul.mubr.msk.f32.vlgmr.msra.gmra.mxu1 %vm370_vm0, %v14444_v55  ;;  %v6243_v55 = vld [vmem:[#allocation22 + $0x5d8] sm:$0xff] }
0x13fd   :  { %12653 = vmatprep.subr.mxu0 %v13691_v58  ;;  %12657 = vmatprep.mubr.msk.f32.mxu0 %vm13692_vm1, %v13691_v58 }
0x13fe   :  { %12654 = vmatpush3.msra.mxu0 %v14422_v7  ;;  %6315 = vmatprep.mubr.f32.mxu1 %v13691_v58 }
0x13ff   :  { %12655 = vmatprep.subr.mxu0 %v13691_v58  ;;  %6267 = vmatprep.subr.mxu1 %v6241_v36  ;;  %v6244_v36 = vld [vmem:[#allocation22 + $0x5e0] sm:$0xff] }
0x1400   :  { %12656 = vmatpush3.msra.mxu0 %v14427_v10  ;;  %6268 = vmatpush1.msra.mxu1 %v6240_v47 }
0x1401   :  { %12658 = vmatmul.mubr.msk.f32.vlgmr.msra.gmra.mxu0 %vm1819_vm3, %v6109_v46  ;;  %6338 = vmatprep.subr.mxu0 %v6243_v55  ;;  %v6246_v55 = vld [vmem:[#allocation22 + $0x5f0] sm:$0xff] }
0x1402   :  { %6386 = vmatprep.mubr.f32.mxu0 %v13691_v58  ;;  %6339 = vmatpush1.msra.mxu0 %v6242_v48  ;;  %v6237_v48 = vld [vmem:[#allocation22 + $0x5a8] sm:$0xff] }
0x1403   :  { %6269 = vmatprep.subr.mxu1 %v6233_v24  ;;  %6340 = vmatprep.subr.mxu0 %v6235_v49  ;;  %v6239_v24 = vld [vmem:[#allocation22 + $0x5b8] sm:$0xff]  ;;  %v6236_v49 = vld [vmem:[#allocation22 + $0x5a0] sm:$0xff] }
0x1404   :  { %6270 = vmatpush1.msra.mxu1 %v6232_v50  ;;  %6341 = vmatpush1.msra.mxu0 %v6234_v51  ;;  %v6238_v50 = vld [vmem:[#allocation22 + $0x5b0] sm:$0xff] }
0x1405   :  { %6271 = vmatprep.subr.mxu1 %v6225_v28  ;;  %6342 = vmatprep.subr.mxu0 %v6227_v52  ;;  %v6229_v28 = vld [vmem:[#allocation22 + $0x568] sm:$0xff]  ;;  %v6231_v52 = vld [vmem:[#allocation22 + $0x578] sm:$0xff] }
0x1406   :  { %6272 = vmatpush1.msra.mxu1 %v6224_v53  ;;  %6343 = vmatpush1.msra.mxu0 %v6226_v26  ;;  %v6228_v53 = vld [vmem:[#allocation22 + $0x560] sm:$0xff]  ;;  %v6230_v26 = vld [vmem:[#allocation22 + $0x570] sm:$0xff] }
0x1407   :  { %6273 = vmatprep.subr.mxu1 %v6217_v54  ;;  %6344 = vmatprep.subr.mxu0 %v6219_v57  ;;  %v6221_v54 = vld [vmem:[#allocation22 + $0x528] sm:$0xff]  ;;  %v6223_v57 = vld [vmem:[#allocation22 + $0x538] sm:$0xff] }
0x1408   :  { %6274 = vmatpush1.msra.mxu1 %v6216_v0  ;;  %6345 = vmatpush1.msra.mxu0 %v6218_v6  ;;  %v6220_v0 = vld [vmem:[#allocation22 + $0x520] sm:$0xff]  ;;  %v6222_v6 = vld [vmem:[#allocation22 + $0x530] sm:$0xff] }
0x1409   :  { %6275 = vmatprep.subr.mxu1 %v6209_v8  ;;  %6346 = vmatprep.subr.mxu0 %v6211_v9  ;;  %v6213_v8 = vld [vmem:[#allocation22 + $0x4e8] sm:$0xff]  ;;  %v6215_v9 = vld [vmem:[#allocation22 + $0x4f8] sm:$0xff] }
0x140a   :  { %6276 = vmatpush1.msra.mxu1 %v6208_v43  ;;  %6347 = vmatpush1.msra.mxu0 %v6210_v12  ;;  %v6212_v43 = vld [vmem:[#allocation22 + $0x4e0] sm:$0xff]  ;;  %v6214_v12 = vld [vmem:[#allocation22 + $0x4f0] sm:$0xff] }
0x140b   :  { %6277 = vmatprep.subr.mxu1 %v6201_v13  ;;  %6348 = vmatprep.subr.mxu0 %v6203_v56  ;;  %v6205_v13 = vld [vmem:[#allocation22 + $0x4a8] sm:$0xff]  ;;  %v6207_v56 = vld [vmem:[#allocation22 + $0x4b8] sm:$0xff] }
0x140c   :  { %6278 = vmatpush1.msra.mxu1 %v6200_v2  ;;  %6349 = vmatpush1.msra.mxu0 %v6202_v1  ;;  %v6204_v2 = vld [vmem:[#allocation22 + $0x4a0] sm:$0xff]  ;;  %v6206_v1 = vld [vmem:[#allocation22 + $0x4b0] sm:$0xff] }
0x140d   :  { %6279 = vmatprep.subr.mxu1 %v6193_v3  ;;  %6350 = vmatprep.subr.mxu0 %v6195_v4  ;;  %v6197_v3 = vld [vmem:[#allocation22 + $0x468] sm:$0xff]  ;;  %v6199_v4 = vld [vmem:[#allocation22 + $0x478] sm:$0xff] }
0x140e   :  { %6280 = vmatpush1.msra.mxu1 %v6192_v5  ;;  %6351 = vmatpush1.msra.mxu0 %v6194_v14  ;;  %v6196_v5 = vld [vmem:[#allocation22 + $0x460] sm:$0xff]  ;;  %v6198_v14 = vld [vmem:[#allocation22 + $0x470] sm:$0xff] }
0x140f   :  { %6281 = vmatprep.subr.mxu1 %v6185_v17  ;;  %6352 = vmatprep.subr.mxu0 %v6187_v11  ;;  %v6189_v17 = vld [vmem:[#allocation22 + $0x428] sm:$0xff]  ;;  %v6191_v11 = vld [vmem:[#allocation22 + $0x438] sm:$0xff] }
0x1410   :  { %6282 = vmatpush1.msra.mxu1 %v6184_v18  ;;  %6353 = vmatpush1.msra.mxu0 %v6186_v15  ;;  %v6188_v18 = vld [vmem:[#allocation22 + $0x420] sm:$0xff]  ;;  %v6190_v15 = vld [vmem:[#allocation22 + $0x430] sm:$0xff] }
0x1411   :  { %6409 = vmatprep.subr.mxu1 %v6245_v19  ;;  %6480 = vmatprep.subr.mxu0 %v6247_v59  ;;  %v6543_v19 = vld [vmem:[#allocation26 + $0x6] sm:$0x3]  ;;  %v6675_v59 = vld [vmem:[#allocation22 + $0x7c8] sm:$0xff] }
0x1487   :  { %v5604_v23 = vpop.f32.mrf.mxu0  ;;  %v5675_v25 = vpop.f32.mrf.mxu1 }
0x1489   :  { %v5606_v29 = vpop.f32.mrf.mxu0  ;;  %v5677_v31 = vpop.f32.mrf.mxu1 }
0x1498   :  { %v5746_v32 = vpop.f32.mrf.mxu0  ;;  %v5817_v33 = vpop.f32.mrf.mxu1 }
0x149a   :  { %v5748_v16 = vpop.f32.mrf.mxu0  ;;  %v14479_v34 = vpop.f32.mrf.mxu1 }
0x14aa   :  { %v5891_v37 = vpop.f32.mrf.mxu0  ;;  %v5962_v20 = vpop.f32.mrf.mxu1 }
0x14ab   :  { %v14481_v38 = vadd.f32 %v5891_v37, %v5604_v23  ;;  %v14483_v35 = vadd.f32 %v5962_v20, %v5675_v25  ;;  %v6677_v23 = vld [vmem:[#allocation22 + $0x7d8] sm:$0xff]  ;;  %v6674_v25 = vld [vmem:[#allocation22 + $0x7c0] sm:$0xff]  ;;  %v6659_v37 = vld [vmem:[#allocation22 + $0x748] sm:$0xff] }
0x14ac   :  { %v5893_v39 = vpop.f32.mrf.mxu0  ;;  %v5964_v40 = vpop.f32.mrf.mxu1  ;;  %v6661_v20 = vld [vmem:[#allocation22 + $0x758] sm:$0xff] }
0x14ad   :  { %v14485_v22 = vadd.f32 %v5893_v39, %v5606_v29  ;;  %v14487_v30 = vadd.f32 %v5964_v40, %v5677_v31  ;;  %v6676_v29 = vld [vmem:[#allocation22 + $0x7d0] sm:$0xff]  ;;  %v6667_v31 = vld [vmem:[#allocation22 + $0x788] sm:$0xff]  ;;  %v6658_v39 = vld [vmem:[#allocation22 + $0x740] sm:$0xff] }
0x14ae   :  { %v6660_v40 = vld [vmem:[#allocation22 + $0x750] sm:$0xff] }
0x14bc   :  { %v6033_v63 = vpop.f32.mrf.mxu0  ;;  %v6104_v60 = vpop.f32.mrf.mxu1 }
0x14bd   :  { %v14489_v41 = vadd.f32 %v6033_v63, %v5746_v32  ;;  %v14491_v42 = vadd.f32 %v6104_v60, %v5817_v33  ;;  %v6669_v32 = vld [vmem:[#allocation22 + $0x798] sm:$0xff]  ;;  %v6666_v33 = vld [vmem:[#allocation22 + $0x780] sm:$0xff]  ;;  %v6651_v63 = vld [vmem:[#allocation22 + $0x708] sm:$0xff] }
0x14be   :  { %v6035_v45 = vpop.f32.mrf.mxu0  ;;  %v6653_v60 = vld [vmem:[#allocation22 + $0x718] sm:$0xff] }
0x14bf   :  { %v14493_v46 = vadd.f32 %v6035_v45, %v5748_v16  ;;  %v6668_v16 = vld [vmem:[#allocation22 + $0x790] sm:$0xff]  ;;  %v6650_v45 = vld [vmem:[#allocation22 + $0x700] sm:$0xff] }
0x14c1   :  { %v14495_v47 = vpop.f32.mrf.mxu0 }
0x14c2   :  { %11465 = vmatmul.mubr.msk.f32.vlgmr.msra.gmra.mxu1 %vm370_vm0, %v14495_v47  ;;  %11466 = vmatmul.mubr.msk.f32.vlgmr.msra.gmra.mxu0 %vm370_vm0, %v14495_v47 }
0x14c3   :  { %6410 = vmatpush1.msra.mxu1 %v6244_v36  ;;  %6481 = vmatpush1.msra.mxu0 %v6246_v55  ;;  %v12659_v51 = vpop.f32.mrf.mxu0  ;;  %v6652_v36 = vld [vmem:[#allocation22 + $0x710] sm:$0xff]  ;;  %v6643_v55 = vld [vmem:[#allocation22 + $0x6c8] sm:$0xff] }
0x14c4   :  { %6411 = vmatprep.subr.mxu1 %v6237_v48  ;;  %6482 = vmatprep.subr.mxu0 %v6239_v24  ;;  %v6642_v48 = vld [vmem:[#allocation22 + $0x6c0] sm:$0xff]  ;;  %v6644_v24 = vld [vmem:[#allocation22 + $0x6d0] sm:$0xff] }
0x14c5   :  { %6412 = vmatpush1.msra.mxu1 %v6236_v49  ;;  %6483 = vmatpush1.msra.mxu0 %v6238_v50  ;;  %v6635_v49 = vld [vmem:[#allocation22 + $0x688] sm:$0xff]  ;;  %v6637_v50 = vld [vmem:[#allocation22 + $0x698] sm:$0xff]  ;;  %v6634_v51 = vld [vmem:[#allocation22 + $0x680] sm:$0xff] }
0x14c6   :  { %6413 = vmatprep.subr.mxu1 %v6229_v28  ;;  %6484 = vmatprep.subr.mxu0 %v6231_v52  ;;  %v6636_v28 = vld [vmem:[#allocation22 + $0x690] sm:$0xff]  ;;  %v6627_v52 = vld [vmem:[#allocation22 + $0x648] sm:$0xff] }
0x14c7   :  { %6414 = vmatpush1.msra.mxu1 %v6228_v53  ;;  %6485 = vmatpush1.msra.mxu0 %v6230_v26  ;;  %v6629_v53 = vld [vmem:[#allocation22 + $0x658] sm:$0xff]  ;;  %v6626_v26 = vld [vmem:[#allocation22 + $0x640] sm:$0xff] }
0x14c8   :  { %6415 = vmatprep.subr.mxu1 %v6221_v54  ;;  %6486 = vmatprep.subr.mxu0 %v6223_v57  ;;  %v6628_v54 = vld [vmem:[#allocation22 + $0x650] sm:$0xff]  ;;  %v6619_v57 = vld [vmem:[#allocation22 + $0x608] sm:$0xff] }
0x14c9   :  { %6416 = vmatpush1.msra.mxu1 %v6220_v0  ;;  %6487 = vmatpush1.msra.mxu0 %v6222_v6  ;;  %v6621_v0 = vld [vmem:[#allocation22 + $0x618] sm:$0xff]  ;;  %v6618_v6 = vld [vmem:[#allocation22 + $0x600] sm:$0xff] }
0x14ca   :  { %6417 = vmatprep.subr.mxu1 %v6213_v8  ;;  %6488 = vmatprep.subr.mxu0 %v6215_v9  ;;  %v6620_v8 = vld [vmem:[#allocation22 + $0x610] sm:$0xff]  ;;  %v6679_v9 = vld [vmem:[#allocation22 + $0x7e8] sm:$0xff] }
0x14cb   :  { %6418 = vmatpush1.msra.mxu1 %v6212_v43  ;;  %6489 = vmatpush1.msra.mxu0 %v6214_v12  ;;  %v6681_v43 = vld [vmem:[#allocation22 + $0x7f8] sm:$0xff]  ;;  %v14516_v12 = vpop.f32.mrf.mxu1 }
0x14cc   :  { %6419 = vmatprep.subr.mxu1 %v6205_v13  ;;  %6490 = vmatprep.subr.mxu0 %v6207_v56 }
0x14cd   :  { %6420 = vmatpush1.msra.mxu1 %v6204_v2  ;;  %6491 = vmatpush1.msra.mxu0 %v6206_v1 }
0x14ce   :  { %6421 = vmatprep.subr.mxu1 %v6197_v3  ;;  %6492 = vmatprep.subr.mxu0 %v6199_v4 }
0x14cf   :  { %6422 = vmatpush1.msra.mxu1 %v6196_v5  ;;  %6493 = vmatpush1.msra.mxu0 %v6198_v14 }
0x14d0   :  { %6423 = vmatprep.subr.mxu1 %v6189_v17  ;;  %6494 = vmatprep.subr.mxu0 %v6191_v11 }
0x14d1   :  { %6424 = vmatpush1.msra.mxu1 %v6188_v18  ;;  %6457 = vmatprep.mubr.f32.mxu1 %v13691_v58 }
0x14d2   :  { %6495 = vmatpush1.msra.mxu0 %v6190_v15  ;;  %6528 = vmatprep.mubr.f32.mxu0 %v13691_v58 }
0x14d3   :  { %11467 = vmatmul.mubr.msk.f32.vlgmr.msra.gmra.mxu1 %vm370_vm0, %v14495_v47  ;;  %11468 = vmatmul.mubr.msk.f32.vlgmr.msra.gmra.mxu0 %vm370_vm0, %v14495_v47  ;;  %v6645_v47 = vld [vmem:[#allocation22 + $0x6d8] sm:$0xff] }
0x14d4   :  { %12660 = vmatprep.subr.mxu1 %v13691_v58  ;;  %12664 = vmatprep.mubr.msk.f32.mxu1 %vm13692_vm1, %v13691_v58 }
0x14d5   :  { %12661 = vmatpush3.msra.mxu1 %v14422_v7  ;;  %6749 = vmatprep.mubr.f32.mxu0 %v13691_v58 }
0x14d6   :  { %12662 = vmatprep.subr.mxu1 %v13691_v58  ;;  %6701 = vmatprep.subr.mxu0 %v6675_v59  ;;  %v6680_v59 = vld [vmem:[#allocation22 + $0x7f0] sm:$0xff] }
0x14d7   :  { %12663 = vmatpush3.msra.mxu1 %v14427_v10  ;;  %6702 = vmatpush1.msra.mxu0 %v6674_v25  ;;  %v6673_v25 = vld [vmem:[#allocation22 + $0x7b8] sm:$0xff] }
0x14d8   :  { %12665 = vmatmul.mubr.msk.f32.vlgmr.msra.gmra.mxu1 %vm1819_vm3, %v6543_v19  ;;  %6772 = vmatprep.subr.mxu1 %v6677_v23  ;;  %v6678_v19 = vld [vmem:[#allocation22 + $0x7e0] sm:$0xff] }
0x14d9   :  { %6820 = vmatprep.mubr.f32.mxu1 %v13691_v58  ;;  %6773 = vmatpush1.msra.mxu1 %v6676_v29  ;;  %v6663_v29 = vld [vmem:[#allocation22 + $0x768] sm:$0xff] }
0x14da   :  { %6703 = vmatprep.subr.mxu0 %v6667_v31  ;;  %6774 = vmatprep.subr.mxu1 %v6669_v32  ;;  %v6662_v31 = vld [vmem:[#allocation22 + $0x760] sm:$0xff]  ;;  %v6664_v32 = vld [vmem:[#allocation22 + $0x770] sm:$0xff] }
0x14db   :  { %6704 = vmatpush1.msra.mxu0 %v6666_v33  ;;  %6775 = vmatpush1.msra.mxu1 %v6668_v16  ;;  %v6655_v33 = vld [vmem:[#allocation22 + $0x728] sm:$0xff]  ;;  %v6657_v16 = vld [vmem:[#allocation22 + $0x738] sm:$0xff] }
0x14dc   :  { %6705 = vmatprep.subr.mxu0 %v6659_v37  ;;  %6776 = vmatprep.subr.mxu1 %v6661_v20  ;;  %v6654_v37 = vld [vmem:[#allocation22 + $0x720] sm:$0xff]  ;;  %v6656_v20 = vld [vmem:[#allocation22 + $0x730] sm:$0xff] }
0x14dd   :  { %6706 = vmatpush1.msra.mxu0 %v6658_v39  ;;  %6777 = vmatpush1.msra.mxu1 %v6660_v40  ;;  %v6647_v39 = vld [vmem:[#allocation22 + $0x6e8] sm:$0xff]  ;;  %v6649_v40 = vld [vmem:[#allocation22 + $0x6f8] sm:$0xff] }
0x14de   :  { %6707 = vmatprep.subr.mxu0 %v6651_v63  ;;  %6778 = vmatprep.subr.mxu1 %v6653_v60  ;;  %v6646_v63 = vld [vmem:[#allocation22 + $0x6e0] sm:$0xff]  ;;  %v6648_v60 = vld [vmem:[#allocation22 + $0x6f0] sm:$0xff] }
0x14df   :  { %6708 = vmatpush1.msra.mxu0 %v6650_v45  ;;  %6779 = vmatpush1.msra.mxu1 %v6652_v36  ;;  %v6639_v45 = vld [vmem:[#allocation22 + $0x6a8] sm:$0xff]  ;;  %v6641_v36 = vld [vmem:[#allocation22 + $0x6b8] sm:$0xff] }
0x14e0   :  { %6709 = vmatprep.subr.mxu0 %v6643_v55  ;;  %6780 = vmatprep.subr.mxu1 %v6645_v47  ;;  %v6638_v55 = vld [vmem:[#allocation22 + $0x6a0] sm:$0xff]  ;;  %v6640_v47 = vld [vmem:[#allocation22 + $0x6b0] sm:$0xff] }
0x14e1   :  { %6710 = vmatpush1.msra.mxu0 %v6642_v48  ;;  %6781 = vmatpush1.msra.mxu1 %v6644_v24  ;;  %v6631_v48 = vld [vmem:[#allocation22 + $0x668] sm:$0xff]  ;;  %v6633_v24 = vld [vmem:[#allocation22 + $0x678] sm:$0xff] }
0x14e2   :  { %6711 = vmatprep.subr.mxu0 %v6635_v49  ;;  %6782 = vmatprep.subr.mxu1 %v6637_v50  ;;  %v6630_v49 = vld [vmem:[#allocation22 + $0x660] sm:$0xff]  ;;  %v6632_v50 = vld [vmem:[#allocation22 + $0x670] sm:$0xff] }
0x14e3   :  { %6712 = vmatpush1.msra.mxu0 %v6634_v51  ;;  %6783 = vmatpush1.msra.mxu1 %v6636_v28  ;;  %v6623_v51 = vld [vmem:[#allocation22 + $0x628] sm:$0xff]  ;;  %v6625_v28 = vld [vmem:[#allocation22 + $0x638] sm:$0xff] }
0x14e4   :  { %6713 = vmatprep.subr.mxu0 %v6627_v52  ;;  %6784 = vmatprep.subr.mxu1 %v6629_v53  ;;  %v6622_v52 = vld [vmem:[#allocation22 + $0x620] sm:$0xff]  ;;  %v6624_v53 = vld [vmem:[#allocation22 + $0x630] sm:$0xff] }
0x14e5   :  { %6714 = vmatpush1.msra.mxu0 %v6626_v26  ;;  %6785 = vmatpush1.msra.mxu1 %v6628_v54  ;;  %v6977_v26 = vld [vmem:[#allocation26 + $0x8] sm:$0x3]  ;;  %v7109_v54 = vld [vmem:[#allocation22 + $0x9c8] sm:$0xff] }
0x14e6   :  { %6715 = vmatprep.subr.mxu0 %v6619_v57  ;;  %6786 = vmatprep.subr.mxu1 %v6621_v0  ;;  %v7111_v57 = vld [vmem:[#allocation22 + $0x9d8] sm:$0xff]  ;;  %v7108_v0 = vld [vmem:[#allocation22 + $0x9c0] sm:$0xff] }
0x14e7   :  { %6716 = vmatpush1.msra.mxu0 %v6618_v6  ;;  %6787 = vmatpush1.msra.mxu1 %v6620_v8  ;;  %v7110_v6 = vld [vmem:[#allocation22 + $0x9d0] sm:$0xff]  ;;  %v7101_v8 = vld [vmem:[#allocation22 + $0x988] sm:$0xff] }
0x14e8   :  { %6843 = vmatprep.subr.mxu0 %v6679_v9  ;;  %6914 = vmatprep.subr.mxu1 %v6681_v43  ;;  %v7103_v9 = vld [vmem:[#allocation22 + $0x998] sm:$0xff]  ;;  %v7100_v43 = vld [vmem:[#allocation22 + $0x980] sm:$0xff] }
0x1582   :  { %v6317_v13 = vpop.f32.mrf.mxu1  ;;  %v6388_v56 = vpop.f32.mrf.mxu0 }
0x1583   :  { %v14519_v2 = vadd.f32 %v6317_v13, %v14481_v38  ;;  %v14522_v1 = vadd.f32 %v6388_v56, %v14483_v35  ;;  %v7102_v13 = vld [vmem:[#allocation22 + $0x990] sm:$0xff]  ;;  %v7093_v56 = vld [vmem:[#allocation22 + $0x948] sm:$0xff] }
0x1584   :  { %v6319_v3 = vpop.f32.mrf.mxu1  ;;  %v6390_v4 = vpop.f32.mrf.mxu0 }
0x1585   :  { %v14525_v5 = vadd.f32 %v6319_v3, %v14485_v22  ;;  %v14528_v14 = vadd.f32 %v6390_v4, %v14487_v30  ;;  %v6671_v22 = vld [vmem:[#allocation22 + $0x7a8] sm:$0xff]  ;;  %v6670_v30 = vld [vmem:[#allocation22 + $0x7a0] sm:$0xff]  ;;  %v7095_v3 = vld [vmem:[#allocation22 + $0x958] sm:$0xff] }
0x1586   :  { %v7092_v4 = vld [vmem:[#allocation22 + $0x940] sm:$0xff] }
0x1593   :  { %v6459_v17 = vpop.f32.mrf.mxu1  ;;  %v6530_v11 = vpop.f32.mrf.mxu0 }
0x1594   :  { %v14531_v18 = vadd.f32 %v6459_v17, %v14489_v41  ;;  %v14534_v15 = vadd.f32 %v6530_v11, %v14491_v42  ;;  %v6672_v41 = vld [vmem:[#allocation22 + $0x7b0] sm:$0xff]  ;;  %v7085_v11 = vld [vmem:[#allocation22 + $0x908] sm:$0xff] }
0x1595   :  { %v6461_v38 = vpop.f32.mrf.mxu1  ;;  %v7094_v17 = vld [vmem:[#allocation22 + $0x950] sm:$0xff] }
0x1596   :  { %v14537_v35 = vadd.f32 %v6461_v38, %v14493_v46  ;;  %v6665_v46 = vld [vmem:[#allocation22 + $0x778] sm:$0xff] }
0x1597   :  { %v7087_v38 = vld [vmem:[#allocation22 + $0x918] sm:$0xff] }
0x1598   :  { %v14539_v23 = vpop.f32.mrf.mxu1 }
0x1599   :  { %11470 = vmatmul.mubr.msk.f32.vlgmr.msra.gmra.mxu0 %vm370_vm0, %v14539_v23  ;;  %11471 = vmatmul.mubr.msk.f32.vlgmr.msra.gmra.mxu1 %vm370_vm0, %v14539_v23 }
0x159a   :  { %6844 = vmatpush1.msra.mxu0 %v6678_v19  ;;  %6915 = vmatpush1.msra.mxu1 %v6680_v59  ;;  %v12666_v42 = vpop.f32.mrf.mxu1  ;;  %v7084_v19 = vld [vmem:[#allocation22 + $0x900] sm:$0xff]  ;;  %v7086_v59 = vld [vmem:[#allocation22 + $0x910] sm:$0xff] }
0x159b   :  { %6845 = vmatprep.subr.mxu0 %v6671_v22  ;;  %6916 = vmatprep.subr.mxu1 %v6673_v25  ;;  %v7079_v22 = vld [vmem:[#allocation22 + $0x8d8] sm:$0xff]  ;;  %v7076_v25 = vld [vmem:[#allocation22 + $0x8c0] sm:$0xff] }
0x159c   :  { %6846 = vmatpush1.msra.mxu0 %v6670_v30  ;;  %6917 = vmatpush1.msra.mxu1 %v6672_v41  ;;  %v7078_v30 = vld [vmem:[#allocation22 + $0x8d0] sm:$0xff]  ;;  %v7069_v41 = vld [vmem:[#allocation22 + $0x888] sm:$0xff]  ;;  %v7071_v42 = vld [vmem:[#allocation22 + $0x898] sm:$0xff] }
0x159d   :  { %6847 = vmatprep.subr.mxu0 %v6663_v29  ;;  %6918 = vmatprep.subr.mxu1 %v6665_v46  ;;  %v7068_v29 = vld [vmem:[#allocation22 + $0x880] sm:$0xff]  ;;  %v7070_v46 = vld [vmem:[#allocation22 + $0x890] sm:$0xff] }
0x159e   :  { %6848 = vmatpush1.msra.mxu0 %v6662_v31  ;;  %6919 = vmatpush1.msra.mxu1 %v6664_v32  ;;  %v7061_v31 = vld [vmem:[#allocation22 + $0x848] sm:$0xff]  ;;  %v7063_v32 = vld [vmem:[#allocation22 + $0x858] sm:$0xff] }
0x159f   :  { %6849 = vmatprep.subr.mxu0 %v6655_v33  ;;  %6920 = vmatprep.subr.mxu1 %v6657_v16  ;;  %v7060_v33 = vld [vmem:[#allocation22 + $0x840] sm:$0xff]  ;;  %v7062_v16 = vld [vmem:[#allocation22 + $0x850] sm:$0xff] }
0x15a0   :  { %6850 = vmatpush1.msra.mxu0 %v6654_v37  ;;  %6921 = vmatpush1.msra.mxu1 %v6656_v20  ;;  %v7053_v37 = vld [vmem:[#allocation22 + $0x808] sm:$0xff]  ;;  %v7055_v20 = vld [vmem:[#allocation22 + $0x818] sm:$0xff] }
0x15a1   :  { %6851 = vmatprep.subr.mxu0 %v6647_v39  ;;  %6922 = vmatprep.subr.mxu1 %v6649_v40  ;;  %v7052_v39 = vld [vmem:[#allocation22 + $0x800] sm:$0xff]  ;;  %v7054_v40 = vld [vmem:[#allocation22 + $0x810] sm:$0xff] }
0x15a2   :  { %6852 = vmatpush1.msra.mxu0 %v6646_v63  ;;  %6923 = vmatpush1.msra.mxu1 %v6648_v60  ;;  %v7113_v63 = vld [vmem:[#allocation22 + $0x9e8] sm:$0xff]  ;;  %v7115_v60 = vld [vmem:[#allocation22 + $0x9f8] sm:$0xff] }
0x15a3   :  { %6853 = vmatprep.subr.mxu0 %v6639_v45  ;;  %6924 = vmatprep.subr.mxu1 %v6641_v36  ;;  %v14560_v45 = vpop.f32.mrf.mxu0 }
0x15a4   :  { %6854 = vmatpush1.msra.mxu0 %v6638_v55  ;;  %6925 = vmatpush1.msra.mxu1 %v6640_v47 }
0x15a5   :  { %6855 = vmatprep.subr.mxu0 %v6631_v48  ;;  %6926 = vmatprep.subr.mxu1 %v6633_v24 }
0x15a6   :  { %6856 = vmatpush1.msra.mxu0 %v6630_v49  ;;  %6927 = vmatpush1.msra.mxu1 %v6632_v50 }
0x15a7   :  { %6857 = vmatprep.subr.mxu0 %v6623_v51  ;;  %6928 = vmatprep.subr.mxu1 %v6625_v28 }
0x15a8   :  { %6858 = vmatpush1.msra.mxu0 %v6622_v52  ;;  %6891 = vmatprep.mubr.f32.mxu0 %v13691_v58 }
0x15a9   :  { %6929 = vmatpush1.msra.mxu1 %v6624_v53  ;;  %6962 = vmatprep.mubr.f32.mxu1 %v13691_v58 }
0x15aa   :  { %11472 = vmatmul.mubr.msk.f32.vlgmr.msra.gmra.mxu0 %vm370_vm0, %v14539_v23  ;;  %11473 = vmatmul.mubr.msk.f32.vlgmr.msra.gmra.mxu1 %vm370_vm0, %v14539_v23  ;;  %v7077_v23 = vld [vmem:[#allocation22 + $0x8c8] sm:$0xff] }
0x15ab   :  { %12667 = vmatprep.subr.mxu0 %v13691_v58  ;;  %12671 = vmatprep.mubr.msk.f32.mxu0 %vm13692_vm1, %v13691_v58 }
0x15ac   :  { %12668 = vmatpush3.msra.mxu0 %v14422_v7  ;;  %7183 = vmatprep.mubr.f32.mxu1 %v13691_v58 }
0x15ad   :  { %12669 = vmatprep.subr.mxu0 %v13691_v58  ;;  %7135 = vmatprep.subr.mxu1 %v7109_v54  ;;  %v7112_v54 = vld [vmem:[#allocation22 + $0x9e0] sm:$0xff] }
0x15ae   :  { %12670 = vmatpush3.msra.mxu0 %v14427_v10  ;;  %7136 = vmatpush1.msra.mxu1 %v7108_v0 }
0x15af   :  { %12672 = vmatmul.mubr.msk.f32.vlgmr.msra.gmra.mxu0 %vm1819_vm3, %v6977_v26  ;;  %7206 = vmatprep.subr.mxu0 %v7111_v57  ;;  %v7114_v57 = vld [vmem:[#allocation22 + $0x9f0] sm:$0xff] }
0x15b0   :  { %7254 = vmatprep.mubr.f32.mxu0 %v13691_v58  ;;  %7207 = vmatpush1.msra.mxu0 %v7110_v6  ;;  %v7107_v6 = vld [vmem:[#allocation22 + $0x9b8] sm:$0xff] }
0x15b1   :  { %7137 = vmatprep.subr.mxu1 %v7101_v8  ;;  %7208 = vmatprep.subr.mxu0 %v7103_v9  ;;  %v7097_v8 = vld [vmem:[#allocation22 + $0x968] sm:$0xff]  ;;  %v7096_v9 = vld [vmem:[#allocation22 + $0x960] sm:$0xff] }
0x15b2   :  { %7138 = vmatpush1.msra.mxu1 %v7100_v43  ;;  %7209 = vmatpush1.msra.mxu0 %v7102_v13  ;;  %v7098_v43 = vld [vmem:[#allocation22 + $0x970] sm:$0xff]  ;;  %v7089_v13 = vld [vmem:[#allocation22 + $0x928] sm:$0xff] }
0x15b3   :  { %7139 = vmatprep.subr.mxu1 %v7093_v56  ;;  %7210 = vmatprep.subr.mxu0 %v7095_v3  ;;  %v7091_v56 = vld [vmem:[#allocation22 + $0x938] sm:$0xff]  ;;  %v7088_v3 = vld [vmem:[#allocation22 + $0x920] sm:$0xff] }
0x15b4   :  { %7140 = vmatpush1.msra.mxu1 %v7092_v4  ;;  %7211 = vmatpush1.msra.mxu0 %v7094_v17  ;;  %v7090_v4 = vld [vmem:[#allocation22 + $0x930] sm:$0xff]  ;;  %v7081_v17 = vld [vmem:[#allocation22 + $0x8e8] sm:$0xff] }
0x15b5   :  { %7141 = vmatprep.subr.mxu1 %v7085_v11  ;;  %7212 = vmatprep.subr.mxu0 %v7087_v38  ;;  %v7083_v11 = vld [vmem:[#allocation22 + $0x8f8] sm:$0xff]  ;;  %v7080_v38 = vld [vmem:[#allocation22 + $0x8e0] sm:$0xff] }
0x15b6   :  { %7142 = vmatpush1.msra.mxu1 %v7084_v19  ;;  %7213 = vmatpush1.msra.mxu0 %v7086_v59  ;;  %v7082_v19 = vld [vmem:[#allocation22 + $0x8f0] sm:$0xff]  ;;  %v7073_v59 = vld [vmem:[#allocation22 + $0x8a8] sm:$0xff] }
0x15b7   :  { %7143 = vmatprep.subr.mxu1 %v7077_v23  ;;  %7214 = vmatprep.subr.mxu0 %v7079_v22  ;;  %v7075_v23 = vld [vmem:[#allocation22 + $0x8b8] sm:$0xff]  ;;  %v7072_v22 = vld [vmem:[#allocation22 + $0x8a0] sm:$0xff] }
0x15b8   :  { %7144 = vmatpush1.msra.mxu1 %v7076_v25  ;;  %7215 = vmatpush1.msra.mxu0 %v7078_v30  ;;  %v7074_v25 = vld [vmem:[#allocation22 + $0x8b0] sm:$0xff]  ;;  %v7065_v30 = vld [vmem:[#allocation22 + $0x868] sm:$0xff] }
0x15b9   :  { %7145 = vmatprep.subr.mxu1 %v7069_v41  ;;  %7216 = vmatprep.subr.mxu0 %v7071_v42  ;;  %v7067_v41 = vld [vmem:[#allocation22 + $0x878] sm:$0xff]  ;;  %v7064_v42 = vld [vmem:[#allocation22 + $0x860] sm:$0xff] }
0x15ba   :  { %7146 = vmatpush1.msra.mxu1 %v7068_v29  ;;  %7217 = vmatpush1.msra.mxu0 %v7070_v46  ;;  %v7066_v29 = vld [vmem:[#allocation22 + $0x870] sm:$0xff]  ;;  %v7057_v46 = vld [vmem:[#allocation22 + $0x828] sm:$0xff] }
0x15bb   :  { %7147 = vmatprep.subr.mxu1 %v7061_v31  ;;  %7218 = vmatprep.subr.mxu0 %v7063_v32  ;;  %v7059_v31 = vld [vmem:[#allocation22 + $0x838] sm:$0xff]  ;;  %v7056_v32 = vld [vmem:[#allocation22 + $0x820] sm:$0xff] }
0x15bc   :  { %7148 = vmatpush1.msra.mxu1 %v7060_v33  ;;  %7219 = vmatpush1.msra.mxu0 %v7062_v16  ;;  %v7058_v33 = vld [vmem:[#allocation22 + $0x830] sm:$0xff]  ;;  %v7411_v16 = vld [vmem:[#allocation26 + $0xa] sm:$0x3] }
0x15bd   :  { %7149 = vmatprep.subr.mxu1 %v7053_v37  ;;  %7220 = vmatprep.subr.mxu0 %v7055_v20  ;;  %v7543_v37 = vld [vmem:[#allocation22 + $0xbc8] sm:$0xff]  ;;  %v7545_v20 = vld [vmem:[#allocation22 + $0xbd8] sm:$0xff] }
0x15be   :  { %7150 = vmatpush1.msra.mxu1 %v7052_v39  ;;  %7221 = vmatpush1.msra.mxu0 %v7054_v40  ;;  %v7542_v39 = vld [vmem:[#allocation22 + $0xbc0] sm:$0xff]  ;;  %v7544_v40 = vld [vmem:[#allocation22 + $0xbd0] sm:$0xff] }
0x15bf   :  { %7277 = vmatprep.subr.mxu1 %v7113_v63  ;;  %7348 = vmatprep.subr.mxu0 %v7115_v60  ;;  %v7535_v63 = vld [vmem:[#allocation22 + $0xb88] sm:$0xff]  ;;  %v7537_v60 = vld [vmem:[#allocation22 + $0xb98] sm:$0xff] }
0x1659   :  { %v6751_v36 = vpop.f32.mrf.mxu0  ;;  %v6822_v55 = vpop.f32.mrf.mxu1 }
0x165a   :  { %v14563_v47 = vadd.f32 %v6751_v36, %v14519_v2  ;;  %v14566_v48 = vadd.f32 %v6822_v55, %v14522_v1  ;;  %v7534_v36 = vld [vmem:[#allocation22 + $0xb80] sm:$0xff]  ;;  %v7536_v55 = vld [vmem:[#allocation22 + $0xb90] sm:$0xff] }
0x165b   :  { %v6753_v24 = vpop.f32.mrf.mxu0  ;;  %v6824_v49 = vpop.f32.mrf.mxu1 }
0x165c   :  { %v14569_v50 = vadd.f32 %v6753_v24, %v14525_v5  ;;  %v14572_v51 = vadd.f32 %v6824_v49, %v14528_v14  ;;  %v7105_v5 = vld [vmem:[#allocation22 + $0x9a8] sm:$0xff]  ;;  %v7104_v14 = vld [vmem:[#allocation22 + $0x9a0] sm:$0xff]  ;;  %v7529_v49 = vld [vmem:[#allocation22 + $0xb58] sm:$0xff] }
0x165d   :  { %v7527_v24 = vld [vmem:[#allocation22 + $0xb48] sm:$0xff] }
0x166a   :  { %v6893_v28 = vpop.f32.mrf.mxu0  ;;  %v6964_v52 = vpop.f32.mrf.mxu1 }
0x166b   :  { %v14575_v53 = vadd.f32 %v6893_v28, %v14531_v18  ;;  %v14578_v26 = vadd.f32 %v6964_v52, %v14534_v15  ;;  %v7106_v18 = vld [vmem:[#allocation22 + $0x9b0] sm:$0xff]  ;;  %v7526_v28 = vld [vmem:[#allocation22 + $0xb40] sm:$0xff] }
0x166c   :  { %v6895_v2 = vpop.f32.mrf.mxu0  ;;  %v7528_v52 = vld [vmem:[#allocation22 + $0xb50] sm:$0xff] }
0x166d   :  { %v14581_v1 = vadd.f32 %v6895_v2, %v14537_v35  ;;  %v7099_v35 = vld [vmem:[#allocation22 + $0x978] sm:$0xff]  ;;  %v7519_v2 = vld [vmem:[#allocation22 + $0xb08] sm:$0xff] }
0x166f   :  { %v14583_v0 = vpop.f32.mrf.mxu0 }
0x1670   :  { %11475 = vmatmul.mubr.msk.f32.vlgmr.msra.gmra.mxu1 %vm370_vm0, %v14583_v0  ;;  %11476 = vmatmul.mubr.msk.f32.vlgmr.msra.gmra.mxu0 %vm370_vm0, %v14583_v0 }
0x1671   :  { %7278 = vmatpush1.msra.mxu1 %v7112_v54  ;;  %7349 = vmatpush1.msra.mxu0 %v7114_v57  ;;  %v12673_v15 = vpop.f32.mrf.mxu0  ;;  %v7521_v54 = vld [vmem:[#allocation22 + $0xb18] sm:$0xff]  ;;  %v7518_v57 = vld [vmem:[#allocation22 + $0xb00] sm:$0xff] }
0x1672   :  { %7279 = vmatprep.subr.mxu1 %v7105_v5  ;;  %7350 = vmatprep.subr.mxu0 %v7107_v6  ;;  %v7511_v5 = vld [vmem:[#allocation22 + $0xac8] sm:$0xff]  ;;  %v7513_v6 = vld [vmem:[#allocation22 + $0xad8] sm:$0xff] }
0x1673   :  { %7280 = vmatpush1.msra.mxu1 %v7104_v14  ;;  %7351 = vmatpush1.msra.mxu0 %v7106_v18  ;;  %v7510_v14 = vld [vmem:[#allocation22 + $0xac0] sm:$0xff]  ;;  %v7512_v18 = vld [vmem:[#allocation22 + $0xad0] sm:$0xff]  ;;  %v7503_v15 = vld [vmem:[#allocation22 + $0xa88] sm:$0xff] }
0x1674   :  { %7281 = vmatprep.subr.mxu1 %v7097_v8  ;;  %7352 = vmatprep.subr.mxu0 %v7099_v35  ;;  %v7505_v8 = vld [vmem:[#allocation22 + $0xa98] sm:$0xff]  ;;  %v7502_v35 = vld [vmem:[#allocation22 + $0xa80] sm:$0xff] }
0x1675   :  { %7282 = vmatpush1.msra.mxu1 %v7096_v9  ;;  %7353 = vmatpush1.msra.mxu0 %v7098_v43  ;;  %v7504_v9 = vld [vmem:[#allocation22 + $0xa90] sm:$0xff]  ;;  %v7495_v43 = vld [vmem:[#allocation22 + $0xa48] sm:$0xff] }
0x1676   :  { %7283 = vmatprep.subr.mxu1 %v7089_v13  ;;  %7354 = vmatprep.subr.mxu0 %v7091_v56  ;;  %v7497_v13 = vld [vmem:[#allocation22 + $0xa58] sm:$0xff]  ;;  %v7494_v56 = vld [vmem:[#allocation22 + $0xa40] sm:$0xff] }
0x1677   :  { %7284 = vmatpush1.msra.mxu1 %v7088_v3  ;;  %7355 = vmatpush1.msra.mxu0 %v7090_v4  ;;  %v7496_v3 = vld [vmem:[#allocation22 + $0xa50] sm:$0xff]  ;;  %v7487_v4 = vld [vmem:[#allocation22 + $0xa08] sm:$0xff] }
0x1678   :  { %7285 = vmatprep.subr.mxu1 %v7081_v17  ;;  %7356 = vmatprep.subr.mxu0 %v7083_v11  ;;  %v7489_v17 = vld [vmem:[#allocation22 + $0xa18] sm:$0xff]  ;;  %v7486_v11 = vld [vmem:[#allocation22 + $0xa00] sm:$0xff] }
0x1679   :  { %7286 = vmatpush1.msra.mxu1 %v7080_v38  ;;  %7357 = vmatpush1.msra.mxu0 %v7082_v19  ;;  %v7488_v38 = vld [vmem:[#allocation22 + $0xa10] sm:$0xff]  ;;  %v7547_v19 = vld [vmem:[#allocation22 + $0xbe8] sm:$0xff] }
0x167a   :  { %7287 = vmatprep.subr.mxu1 %v7073_v59  ;;  %7358 = vmatprep.subr.mxu0 %v7075_v23  ;;  %v7549_v59 = vld [vmem:[#allocation22 + $0xbf8] sm:$0xff]  ;;  %v14604_v23 = vpop.f32.mrf.mxu1 }
0x167b   :  { %7288 = vmatpush1.msra.mxu1 %v7072_v22  ;;  %7359 = vmatpush1.msra.mxu0 %v7074_v25 }
0x167c   :  { %7289 = vmatprep.subr.mxu1 %v7065_v30  ;;  %7360 = vmatprep.subr.mxu0 %v7067_v41 }
0x167d   :  { %7290 = vmatpush1.msra.mxu1 %v7064_v42  ;;  %7361 = vmatpush1.msra.mxu0 %v7066_v29 }
0x167e   :  { %7291 = vmatprep.subr.mxu1 %v7057_v46  ;;  %7362 = vmatprep.subr.mxu0 %v7059_v31 }
0x167f   :  { %7292 = vmatpush1.msra.mxu1 %v7056_v32  ;;  %7325 = vmatprep.mubr.f32.mxu1 %v13691_v58 }
0x1680   :  { %7363 = vmatpush1.msra.mxu0 %v7058_v33  ;;  %7396 = vmatprep.mubr.f32.mxu0 %v13691_v58 }
0x1681   :  { %11477 = vmatmul.mubr.msk.f32.vlgmr.msra.gmra.mxu1 %vm370_vm0, %v14583_v0  ;;  %11478 = vmatmul.mubr.msk.f32.vlgmr.msra.gmra.mxu0 %vm370_vm0, %v14583_v0  ;;  %v7520_v0 = vld [vmem:[#allocation22 + $0xb10] sm:$0xff] }
0x1682   :  { %12674 = vmatprep.subr.mxu1 %v13691_v58  ;;  %12678 = vmatprep.mubr.msk.f32.mxu1 %vm13692_vm1, %v13691_v58 }
0x1683   :  { %12675 = vmatpush3.msra.mxu1 %v14422_v7  ;;  %7617 = vmatprep.mubr.f32.mxu0 %v13691_v58 }
0x1684   :  { %12676 = vmatprep.subr.mxu1 %v13691_v58  ;;  %7569 = vmatprep.subr.mxu0 %v7543_v37 }
0x1685   :  { %12677 = vmatpush3.msra.mxu1 %v14427_v10  ;;  %7570 = vmatpush1.msra.mxu0 %v7542_v39  ;;  %v7548_v39 = vld [vmem:[#allocation22 + $0xbf0] sm:$0xff] }
0x1686   :  { %12679 = vmatmul.mubr.msk.f32.vlgmr.msra.gmra.mxu1 %vm1819_vm3, %v7411_v16  ;;  %7640 = vmatprep.subr.mxu1 %v7545_v20  ;;  %v7546_v20 = vld [vmem:[#allocation22 + $0xbe0] sm:$0xff] }
0x1687   :  { %7688 = vmatprep.mubr.f32.mxu1 %v13691_v58  ;;  %7641 = vmatpush1.msra.mxu1 %v7544_v40 }
0x1688   :  { %7571 = vmatprep.subr.mxu0 %v7535_v63  ;;  %7642 = vmatprep.subr.mxu1 %v7537_v60  ;;  %v7541_v63 = vld [vmem:[#allocation22 + $0xbb8] sm:$0xff]  ;;  %v7531_v60 = vld [vmem:[#allocation22 + $0xb68] sm:$0xff] }
0x1689   :  { %7572 = vmatpush1.msra.mxu0 %v7534_v36  ;;  %7643 = vmatpush1.msra.mxu1 %v7536_v55  ;;  %v7530_v36 = vld [vmem:[#allocation22 + $0xb60] sm:$0xff]  ;;  %v7532_v55 = vld [vmem:[#allocation22 + $0xb70] sm:$0xff] }
0x168a   :  { %7573 = vmatprep.subr.mxu0 %v7527_v24  ;;  %7644 = vmatprep.subr.mxu1 %v7529_v49  ;;  %v7523_v24 = vld [vmem:[#allocation22 + $0xb28] sm:$0xff]  ;;  %v7525_v49 = vld [vmem:[#allocation22 + $0xb38] sm:$0xff] }
0x168b   :  { %7574 = vmatpush1.msra.mxu0 %v7526_v28  ;;  %7645 = vmatpush1.msra.mxu1 %v7528_v52  ;;  %v7522_v28 = vld [vmem:[#allocation22 + $0xb20] sm:$0xff]  ;;  %v7524_v52 = vld [vmem:[#allocation22 + $0xb30] sm:$0xff] }
0x168c   :  { %7575 = vmatprep.subr.mxu0 %v7519_v2  ;;  %7646 = vmatprep.subr.mxu1 %v7521_v54  ;;  %v7515_v2 = vld [vmem:[#allocation22 + $0xae8] sm:$0xff]  ;;  %v7517_v54 = vld [vmem:[#allocation22 + $0xaf8] sm:$0xff] }
0x168d   :  { %7576 = vmatpush1.msra.mxu0 %v7518_v57  ;;  %7647 = vmatpush1.msra.mxu1 %v7520_v0  ;;  %v7514_v57 = vld [vmem:[#allocation22 + $0xae0] sm:$0xff]  ;;  %v7516_v0 = vld [vmem:[#allocation22 + $0xaf0] sm:$0xff] }
0x168e   :  { %7577 = vmatprep.subr.mxu0 %v7511_v5  ;;  %7648 = vmatprep.subr.mxu1 %v7513_v6  ;;  %v7507_v5 = vld [vmem:[#allocation22 + $0xaa8] sm:$0xff]  ;;  %v7509_v6 = vld [vmem:[#allocation22 + $0xab8] sm:$0xff] }
0x168f   :  { %7578 = vmatpush1.msra.mxu0 %v7510_v14  ;;  %7649 = vmatpush1.msra.mxu1 %v7512_v18  ;;  %v7506_v14 = vld [vmem:[#allocation22 + $0xaa0] sm:$0xff]  ;;  %v7508_v18 = vld [vmem:[#allocation22 + $0xab0] sm:$0xff] }
0x1690   :  { %7579 = vmatprep.subr.mxu0 %v7503_v15  ;;  %7650 = vmatprep.subr.mxu1 %v7505_v8  ;;  %v7499_v15 = vld [vmem:[#allocation22 + $0xa68] sm:$0xff]  ;;  %v7501_v8 = vld [vmem:[#allocation22 + $0xa78] sm:$0xff] }
0x1691   :  { %7580 = vmatpush1.msra.mxu0 %v7502_v35  ;;  %7651 = vmatpush1.msra.mxu1 %v7504_v9  ;;  %v7498_v35 = vld [vmem:[#allocation22 + $0xa60] sm:$0xff]  ;;  %v7500_v9 = vld [vmem:[#allocation22 + $0xa70] sm:$0xff] }
0x1692   :  { %7581 = vmatprep.subr.mxu0 %v7495_v43  ;;  %7652 = vmatprep.subr.mxu1 %v7497_v13  ;;  %v7491_v43 = vld [vmem:[#allocation22 + $0xa28] sm:$0xff]  ;;  %v7493_v13 = vld [vmem:[#allocation22 + $0xa38] sm:$0xff] }
0x1693   :  { %7582 = vmatpush1.msra.mxu0 %v7494_v56  ;;  %7653 = vmatpush1.msra.mxu1 %v7496_v3  ;;  %v7490_v56 = vld [vmem:[#allocation22 + $0xa20] sm:$0xff]  ;;  %v7492_v3 = vld [vmem:[#allocation22 + $0xa30] sm:$0xff] }
0x1694   :  { %7583 = vmatprep.subr.mxu0 %v7487_v4  ;;  %7654 = vmatprep.subr.mxu1 %v7489_v17  ;;  %v7845_v4 = vld [vmem:[#allocation26 + $0xc] sm:$0x3]  ;;  %v7977_v17 = vld [vmem:[#allocation22 + $0xdc8] sm:$0xff] }
0x1695   :  { %7584 = vmatpush1.msra.mxu0 %v7486_v11  ;;  %7655 = vmatpush1.msra.mxu1 %v7488_v38  ;;  %v7979_v11 = vld [vmem:[#allocation22 + $0xdd8] sm:$0xff]  ;;  %v7976_v38 = vld [vmem:[#allocation22 + $0xdc0] sm:$0xff] }
0x1696   :  { %7711 = vmatprep.subr.mxu0 %v7547_v19  ;;  %7782 = vmatprep.subr.mxu1 %v7549_v59  ;;  %v7978_v19 = vld [vmem:[#allocation22 + $0xdd0] sm:$0xff]  ;;  %v7969_v59 = vld [vmem:[#allocation22 + $0xd88] sm:$0xff] }
0x1730   :  { %v7185_v22 = vpop.f32.mrf.mxu1  ;;  %v7256_v25 = vpop.f32.mrf.mxu0 }
0x1731   :  { %v14607_v30 = vadd.f32 %v7185_v22, %v14563_v47  ;;  %v14610_v41 = vadd.f32 %v7256_v25, %v14566_v48  ;;  %v7971_v22 = vld [vmem:[#allocation22 + $0xd98] sm:$0xff]  ;;  %v7968_v25 = vld [vmem:[#allocation22 + $0xd80] sm:$0xff] }
0x1732   :  { %v7187_v42 = vpop.f32.mrf.mxu1  ;;  %v7258_v29 = vpop.f32.mrf.mxu0 }
0x1733   :  { %v14613_v46 = vadd.f32 %v7187_v42, %v14569_v50  ;;  %v14616_v31 = vadd.f32 %v7258_v29, %v14572_v51  ;;  %v7539_v50 = vld [vmem:[#allocation22 + $0xba8] sm:$0xff]  ;;  %v7538_v51 = vld [vmem:[#allocation22 + $0xba0] sm:$0xff]  ;;  %v7970_v42 = vld [vmem:[#allocation22 + $0xd90] sm:$0xff] }
0x1734   :  { %v7961_v29 = vld [vmem:[#allocation22 + $0xd48] sm:$0xff] }
0x1741   :  { %v7327_v32 = vpop.f32.mrf.mxu1  ;;  %v7398_v33 = vpop.f32.mrf.mxu0 }
0x1742   :  { %v14619_v16 = vadd.f32 %v7327_v32, %v14575_v53  ;;  %v14622_v37 = vadd.f32 %v7398_v33, %v14578_v26  ;;  %v7540_v53 = vld [vmem:[#allocation22 + $0xbb0] sm:$0xff]  ;;  %v7963_v32 = vld [vmem:[#allocation22 + $0xd58] sm:$0xff]  ;;  %v7960_v33 = vld [vmem:[#allocation22 + $0xd40] sm:$0xff] }
0x1743   :  { %v7329_v47 = vpop.f32.mrf.mxu1 }
0x1744   :  { %v14625_v48 = vadd.f32 %v7329_v47, %v14581_v1  ;;  %v7533_v1 = vld [vmem:[#allocation22 + $0xb78] sm:$0xff]  ;;  %v7962_v47 = vld [vmem:[#allocation22 + $0xd50] sm:$0xff] }
0x1746   :  { %v14627_v40 = vpop.f32.mrf.mxu1 }
0x1747   :  { %11480 = vmatmul.mubr.msk.f32.vlgmr.msra.gmra.mxu0 %vm370_vm0, %v14627_v40  ;;  %11481 = vmatmul.mubr.msk.f32.vlgmr.msra.gmra.mxu1 %vm370_vm0, %v14627_v40 }
0x1748   :  { %7712 = vmatpush1.msra.mxu0 %v7546_v20  ;;  %7783 = vmatpush1.msra.mxu1 %v7548_v39  ;;  %v12680_v26 = vpop.f32.mrf.mxu1  ;;  %v7953_v20 = vld [vmem:[#allocation22 + $0xd08] sm:$0xff]  ;;  %v7955_v39 = vld [vmem:[#allocation22 + $0xd18] sm:$0xff] }
0x1749   :  { %7713 = vmatprep.subr.mxu0 %v7539_v50  ;;  %7784 = vmatprep.subr.mxu1 %v7541_v63  ;;  %v7954_v50 = vld [vmem:[#allocation22 + $0xd10] sm:$0xff]  ;;  %v7945_v63 = vld [vmem:[#allocation22 + $0xcc8] sm:$0xff] }
0x174a   :  { %7714 = vmatpush1.msra.mxu0 %v7538_v51  ;;  %7785 = vmatpush1.msra.mxu1 %v7540_v53  ;;  %v7947_v51 = vld [vmem:[#allocation22 + $0xcd8] sm:$0xff]  ;;  %v7944_v53 = vld [vmem:[#allocation22 + $0xcc0] sm:$0xff]  ;;  %v7946_v26 = vld [vmem:[#allocation22 + $0xcd0] sm:$0xff] }
0x174b   :  { %7715 = vmatprep.subr.mxu0 %v7531_v60  ;;  %7786 = vmatprep.subr.mxu1 %v7533_v1  ;;  %v7937_v60 = vld [vmem:[#allocation22 + $0xc88] sm:$0xff]  ;;  %v7939_v1 = vld [vmem:[#allocation22 + $0xc98] sm:$0xff] }
0x174c   :  { %7716 = vmatpush1.msra.mxu0 %v7530_v36  ;;  %7787 = vmatpush1.msra.mxu1 %v7532_v55  ;;  %v7936_v36 = vld [vmem:[#allocation22 + $0xc80] sm:$0xff]  ;;  %v7938_v55 = vld [vmem:[#allocation22 + $0xc90] sm:$0xff] }
0x174d   :  { %7717 = vmatprep.subr.mxu0 %v7523_v24  ;;  %7788 = vmatprep.subr.mxu1 %v7525_v49  ;;  %v7929_v24 = vld [vmem:[#allocation22 + $0xc48] sm:$0xff]  ;;  %v7931_v49 = vld [vmem:[#allocation22 + $0xc58] sm:$0xff] }
0x174e   :  { %7718 = vmatpush1.msra.mxu0 %v7522_v28  ;;  %7789 = vmatpush1.msra.mxu1 %v7524_v52  ;;  %v7928_v28 = vld [vmem:[#allocation22 + $0xc40] sm:$0xff]  ;;  %v7930_v52 = vld [vmem:[#allocation22 + $0xc50] sm:$0xff] }
0x174f   :  { %7719 = vmatprep.subr.mxu0 %v7515_v2  ;;  %7790 = vmatprep.subr.mxu1 %v7517_v54  ;;  %v7921_v2 = vld [vmem:[#allocation22 + $0xc08] sm:$0xff]  ;;  %v7923_v54 = vld [vmem:[#allocation22 + $0xc18] sm:$0xff] }
0x1750   :  { %7720 = vmatpush1.msra.mxu0 %v7514_v57  ;;  %7791 = vmatpush1.msra.mxu1 %v7516_v0  ;;  %v7920_v57 = vld [vmem:[#allocation22 + $0xc00] sm:$0xff]  ;;  %v7922_v0 = vld [vmem:[#allocation22 + $0xc10] sm:$0xff] }
0x1751   :  { %7721 = vmatprep.subr.mxu0 %v7507_v5  ;;  %7792 = vmatprep.subr.mxu1 %v7509_v6  ;;  %v7981_v5 = vld [vmem:[#allocation22 + $0xde8] sm:$0xff]  ;;  %v7983_v6 = vld [vmem:[#allocation22 + $0xdf8] sm:$0xff] }
0x1752   :  { %7722 = vmatpush1.msra.mxu0 %v7506_v14  ;;  %7793 = vmatpush1.msra.mxu1 %v7508_v18  ;;  %v14648_v14 = vpop.f32.mrf.mxu0 }
0x1753   :  { %7723 = vmatprep.subr.mxu0 %v7499_v15  ;;  %7794 = vmatprep.subr.mxu1 %v7501_v8 }
0x1754   :  { %7724 = vmatpush1.msra.mxu0 %v7498_v35  ;;  %7795 = vmatpush1.msra.mxu1 %v7500_v9 }
0x1755   :  { %7725 = vmatprep.subr.mxu0 %v7491_v43  ;;  %7796 = vmatprep.subr.mxu1 %v7493_v13 }
0x1756   :  { %7726 = vmatpush1.msra.mxu0 %v7490_v56  ;;  %7759 = vmatprep.mubr.f32.mxu0 %v13691_v58 }
0x1757   :  { %7797 = vmatpush1.msra.mxu1 %v7492_v3  ;;  %7830 = vmatprep.mubr.f32.mxu1 %v13691_v58 }
0x1758   :  { %11482 = vmatmul.mubr.msk.f32.vlgmr.msra.gmra.mxu0 %vm370_vm0, %v14627_v40  ;;  %11483 = vmatmul.mubr.msk.f32.vlgmr.msra.gmra.mxu1 %vm370_vm0, %v14627_v40  ;;  %v7952_v40 = vld [vmem:[#allocation22 + $0xd00] sm:$0xff] }
0x1759   :  { %12681 = vmatprep.subr.mxu0 %v13691_v58  ;;  %12685 = vmatprep.mubr.msk.f32.mxu0 %vm13692_vm1, %v13691_v58 }
0x175a   :  { %12682 = vmatpush3.msra.mxu0 %v14422_v7  ;;  %8051 = vmatprep.mubr.f32.mxu1 %v13691_v58 }
0x175b   :  { %12683 = vmatprep.subr.mxu0 %v13691_v58  ;;  %8003 = vmatprep.subr.mxu1 %v7977_v17 }
0x175c   :  { %12684 = vmatpush3.msra.mxu0 %v14427_v10  ;;  %8004 = vmatpush1.msra.mxu1 %v7976_v38  ;;  %v7980_v38 = vld [vmem:[#allocation22 + $0xde0] sm:$0xff] }
0x175d   :  { %12686 = vmatmul.mubr.msk.f32.vlgmr.msra.gmra.mxu0 %vm1819_vm3, %v7845_v4  ;;  %8074 = vmatprep.subr.mxu0 %v7979_v11 }
0x175e   :  { %8122 = vmatprep.mubr.f32.mxu0 %v13691_v58  ;;  %8075 = vmatpush1.msra.mxu0 %v7978_v19  ;;  %v7982_v19 = vld [vmem:[#allocation22 + $0xdf0] sm:$0xff] }
0x175f   :  { %8005 = vmatprep.subr.mxu1 %v7969_v59  ;;  %8076 = vmatprep.subr.mxu0 %v7971_v22  ;;  %v7975_v22 = vld [vmem:[#allocation22 + $0xdb8] sm:$0xff] }
0x1760   :  { %8006 = vmatpush1.msra.mxu1 %v7968_v25  ;;  %8077 = vmatpush1.msra.mxu0 %v7970_v42  ;;  %v7965_v25 = vld [vmem:[#allocation22 + $0xd68] sm:$0xff]  ;;  %v7964_v42 = vld [vmem:[#allocation22 + $0xd60] sm:$0xff] }
0x1761   :  { %8007 = vmatprep.subr.mxu1 %v7961_v29  ;;  %8078 = vmatprep.subr.mxu0 %v7963_v32  ;;  %v7966_v29 = vld [vmem:[#allocation22 + $0xd70] sm:$0xff]  ;;  %v7957_v32 = vld [vmem:[#allocation22 + $0xd28] sm:$0xff] }
0x1762   :  { %8008 = vmatpush1.msra.mxu1 %v7960_v33  ;;  %8079 = vmatpush1.msra.mxu0 %v7962_v47  ;;  %v7959_v33 = vld [vmem:[#allocation22 + $0xd38] sm:$0xff]  ;;  %v7956_v47 = vld [vmem:[#allocation22 + $0xd20] sm:$0xff] }
0x1763   :  { %8009 = vmatprep.subr.mxu1 %v7953_v20  ;;  %8080 = vmatprep.subr.mxu0 %v7955_v39  ;;  %v7958_v20 = vld [vmem:[#allocation22 + $0xd30] sm:$0xff]  ;;  %v7949_v39 = vld [vmem:[#allocation22 + $0xce8] sm:$0xff] }
0x1764   :  { %8010 = vmatpush1.msra.mxu1 %v7952_v40  ;;  %8081 = vmatpush1.msra.mxu0 %v7954_v50  ;;  %v7951_v40 = vld [vmem:[#allocation22 + $0xcf8] sm:$0xff]  ;;  %v7948_v50 = vld [vmem:[#allocation22 + $0xce0] sm:$0xff] }
0x1765   :  { %8011 = vmatprep.subr.mxu1 %v7945_v63  ;;  %8082 = vmatprep.subr.mxu0 %v7947_v51  ;;  %v7950_v63 = vld [vmem:[#allocation22 + $0xcf0] sm:$0xff]  ;;  %v7941_v51 = vld [vmem:[#allocation22 + $0xca8] sm:$0xff] }
0x1766   :  { %8012 = vmatpush1.msra.mxu1 %v7944_v53  ;;  %8083 = vmatpush1.msra.mxu0 %v7946_v26  ;;  %v7943_v53 = vld [vmem:[#allocation22 + $0xcb8] sm:$0xff]  ;;  %v7940_v26 = vld [vmem:[#allocation22 + $0xca0] sm:$0xff] }
0x1767   :  { %8013 = vmatprep.subr.mxu1 %v7937_v60  ;;  %8084 = vmatprep.subr.mxu0 %v7939_v1  ;;  %v7942_v60 = vld [vmem:[#allocation22 + $0xcb0] sm:$0xff]  ;;  %v7933_v1 = vld [vmem:[#allocation22 + $0xc68] sm:$0xff] }
0x1768   :  { %8014 = vmatpush1.msra.mxu1 %v7936_v36  ;;  %8085 = vmatpush1.msra.mxu0 %v7938_v55  ;;  %v7935_v36 = vld [vmem:[#allocation22 + $0xc78] sm:$0xff]  ;;  %v7932_v55 = vld [vmem:[#allocation22 + $0xc60] sm:$0xff] }
0x1769   :  { %8015 = vmatprep.subr.mxu1 %v7929_v24  ;;  %8086 = vmatprep.subr.mxu0 %v7931_v49  ;;  %v7934_v24 = vld [vmem:[#allocation22 + $0xc70] sm:$0xff]  ;;  %v7925_v49 = vld [vmem:[#allocation22 + $0xc28] sm:$0xff] }
0x176a   :  { %8016 = vmatpush1.msra.mxu1 %v7928_v28  ;;  %8087 = vmatpush1.msra.mxu0 %v7930_v52  ;;  %v7927_v28 = vld [vmem:[#allocation22 + $0xc38] sm:$0xff]  ;;  %v7924_v52 = vld [vmem:[#allocation22 + $0xc20] sm:$0xff] }
0x176b   :  { %8017 = vmatprep.subr.mxu1 %v7921_v2  ;;  %8088 = vmatprep.subr.mxu0 %v7923_v54  ;;  %v7926_v2 = vld [vmem:[#allocation22 + $0xc30] sm:$0xff]  ;;  %v8279_v54 = vld [vmem:[#allocation26 + $0xe] sm:$0x3] }
0x176c   :  { %8018 = vmatpush1.msra.mxu1 %v7920_v57  ;;  %8089 = vmatpush1.msra.mxu0 %v7922_v0  ;;  %v8411_v57 = vld [vmem:[#allocation22 + $0xfc8] sm:$0xff]  ;;  %v8413_v0 = vld [vmem:[#allocation22 + $0xfd8] sm:$0xff] }
0x176d   :  { %8145 = vmatprep.subr.mxu1 %v7981_v5  ;;  %8216 = vmatprep.subr.mxu0 %v7983_v6  ;;  %v8410_v5 = vld [vmem:[#allocation22 + $0xfc0] sm:$0xff]  ;;  %v8412_v6 = vld [vmem:[#allocation22 + $0xfd0] sm:$0xff] }
0x1807   :  { %v7619_v18 = vpop.f32.mrf.mxu0  ;;  %v7690_v15 = vpop.f32.mrf.mxu1 }
0x1808   :  { %v14651_v8 = vadd.f32 %v7619_v18, %v14607_v30  ;;  %v14654_v35 = vadd.f32 %v7690_v15, %v14610_v41  ;;  %v8403_v18 = vld [vmem:[#allocation22 + $0xf88] sm:$0xff]  ;;  %v8405_v15 = vld [vmem:[#allocation22 + $0xf98] sm:$0xff] }
0x1809   :  { %v7621_v9 = vpop.f32.mrf.mxu0  ;;  %v7692_v43 = vpop.f32.mrf.mxu1 }
0x180a   :  { %v14657_v13 = vadd.f32 %v7621_v9, %v14613_v46  ;;  %v14660_v56 = vadd.f32 %v7692_v43, %v14616_v31  ;;  %v7973_v46 = vld [vmem:[#allocation22 + $0xda8] sm:$0xff]  ;;  %v7972_v31 = vld [vmem:[#allocation22 + $0xda0] sm:$0xff]  ;;  %v8404_v9 = vld [vmem:[#allocation22 + $0xf90] sm:$0xff] }
0x180b   :  { %v8395_v43 = vld [vmem:[#allocation22 + $0xf48] sm:$0xff] }
0x1818   :  { %v7761_v3 = vpop.f32.mrf.mxu0  ;;  %v7832_v4 = vpop.f32.mrf.mxu1 }
0x1819   :  { %v14663_v17 = vadd.f32 %v7761_v3, %v14619_v16  ;;  %v14666_v11 = vadd.f32 %v7832_v4, %v14622_v37  ;;  %v7974_v16 = vld [vmem:[#allocation22 + $0xdb0] sm:$0xff]  ;;  %v8394_v3 = vld [vmem:[#allocation22 + $0xf40] sm:$0xff] }
0x181a   :  { %v7763_v30 = vpop.f32.mrf.mxu0  ;;  %v8396_v4 = vld [vmem:[#allocation22 + $0xf50] sm:$0xff] }
0x181b   :  { %v14669_v41 = vadd.f32 %v7763_v30, %v14625_v48  ;;  %v7967_v48 = vld [vmem:[#allocation22 + $0xd78] sm:$0xff]  ;;  %v8387_v30 = vld [vmem:[#allocation22 + $0xf08] sm:$0xff] }
0x181d   :  { %v14671_v59 = vpop.f32.mrf.mxu0 }
0x181e   :  { %11485 = vmatmul.mubr.msk.f32.vlgmr.msra.gmra.mxu1 %vm370_vm0, %v14671_v59  ;;  %11486 = vmatmul.mubr.msk.f32.vlgmr.msra.gmra.mxu0 %vm370_vm0, %v14671_v59 }
0x181f   :  { %8146 = vmatpush1.msra.mxu1 %v7980_v38  ;;  %8217 = vmatpush1.msra.mxu0 %v7982_v19  ;;  %v12687_v37 = vpop.f32.mrf.mxu0  ;;  %v8389_v38 = vld [vmem:[#allocation22 + $0xf18] sm:$0xff]  ;;  %v8386_v19 = vld [vmem:[#allocation22 + $0xf00] sm:$0xff] }
0x1820   :  { %8147 = vmatprep.subr.mxu1 %v7973_v46  ;;  %8218 = vmatprep.subr.mxu0 %v7975_v22  ;;  %v8379_v46 = vld [vmem:[#allocation22 + $0xec8] sm:$0xff]  ;;  %v8381_v22 = vld [vmem:[#allocation22 + $0xed8] sm:$0xff] }
0x1821   :  { %8148 = vmatpush1.msra.mxu1 %v7972_v31  ;;  %8219 = vmatpush1.msra.mxu0 %v7974_v16  ;;  %v8378_v31 = vld [vmem:[#allocation22 + $0xec0] sm:$0xff]  ;;  %v8380_v16 = vld [vmem:[#allocation22 + $0xed0] sm:$0xff]  ;;  %v8371_v37 = vld [vmem:[#allocation22 + $0xe88] sm:$0xff] }
0x1822   :  { %8149 = vmatprep.subr.mxu1 %v7965_v25  ;;  %8220 = vmatprep.subr.mxu0 %v7967_v48  ;;  %v8373_v25 = vld [vmem:[#allocation22 + $0xe98] sm:$0xff]  ;;  %v8370_v48 = vld [vmem:[#allocation22 + $0xe80] sm:$0xff] }
0x1823   :  { %8150 = vmatpush1.msra.mxu1 %v7964_v42  ;;  %8221 = vmatpush1.msra.mxu0 %v7966_v29  ;;  %v8372_v42 = vld [vmem:[#allocation22 + $0xe90] sm:$0xff]  ;;  %v8363_v29 = vld [vmem:[#allocation22 + $0xe48] sm:$0xff] }
0x1824   :  { %8151 = vmatprep.subr.mxu1 %v7957_v32  ;;  %8222 = vmatprep.subr.mxu0 %v7959_v33  ;;  %v8365_v32 = vld [vmem:[#allocation22 + $0xe58] sm:$0xff]  ;;  %v8362_v33 = vld [vmem:[#allocation22 + $0xe40] sm:$0xff] }
0x1825   :  { %8152 = vmatpush1.msra.mxu1 %v7956_v47  ;;  %8223 = vmatpush1.msra.mxu0 %v7958_v20  ;;  %v8364_v47 = vld [vmem:[#allocation22 + $0xe50] sm:$0xff]  ;;  %v8355_v20 = vld [vmem:[#allocation22 + $0xe08] sm:$0xff] }
0x1826   :  { %8153 = vmatprep.subr.mxu1 %v7949_v39  ;;  %8224 = vmatprep.subr.mxu0 %v7951_v40  ;;  %v8357_v39 = vld [vmem:[#allocation22 + $0xe18] sm:$0xff]  ;;  %v8354_v40 = vld [vmem:[#allocation22 + $0xe00] sm:$0xff] }
0x1827   :  { %8154 = vmatpush1.msra.mxu1 %v7948_v50  ;;  %8225 = vmatpush1.msra.mxu0 %v7950_v63  ;;  %v8356_v50 = vld [vmem:[#allocation22 + $0xe10] sm:$0xff]  ;;  %v8415_v63 = vld [vmem:[#allocation22 + $0xfe8] sm:$0xff] }
0x1828   :  { %8155 = vmatprep.subr.mxu1 %v7941_v51  ;;  %8226 = vmatprep.subr.mxu0 %v7943_v53  ;;  %v8417_v51 = vld [vmem:[#allocation22 + $0xff8] sm:$0xff]  ;;  %v14692_v53 = vpop.f32.mrf.mxu1 }
0x1829   :  { %8156 = vmatpush1.msra.mxu1 %v7940_v26  ;;  %8227 = vmatpush1.msra.mxu0 %v7942_v60 }
0x182a   :  { %8157 = vmatprep.subr.mxu1 %v7933_v1  ;;  %8228 = vmatprep.subr.mxu0 %v7935_v36 }
0x182b   :  { %8158 = vmatpush1.msra.mxu1 %v7932_v55  ;;  %8229 = vmatpush1.msra.mxu0 %v7934_v24 }
0x182c   :  { %8159 = vmatprep.subr.mxu1 %v7925_v49  ;;  %8230 = vmatprep.subr.mxu0 %v7927_v28 }
0x182d   :  { %8160 = vmatpush1.msra.mxu1 %v7924_v52  ;;  %8193 = vmatprep.mubr.f32.mxu1 %v13691_v58  ;;  %v8414_v52 = vld [vmem:[#allocation22 + $0xfe0] sm:$0xff] }
0x182e   :  { %8231 = vmatpush1.msra.mxu0 %v7926_v2  ;;  %8264 = vmatprep.mubr.f32.mxu0 %v13691_v58  ;;  %v8416_v2 = vld [vmem:[#allocation22 + $0xff0] sm:$0xff] }
0x182f   :  { %11487 = vmatmul.mubr.msk.f32.vlgmr.msra.gmra.mxu1 %vm370_vm0, %v14671_v59  ;;  %11488 = vmatmul.mubr.msk.f32.vlgmr.msra.gmra.mxu0 %vm370_vm0, %v14671_v59  ;;  %v8388_v59 = vld [vmem:[#allocation22 + $0xf10] sm:$0xff] }
0x1830   :  { %12688 = vmatprep.subr.mxu1 %v13691_v58  ;;  %12692 = vmatprep.mubr.msk.f32.mxu1 %vm13692_vm1, %v13691_v58 }
0x1831   :  { %12689 = vmatpush3.msra.mxu1 %v14422_v7  ;;  %8485 = vmatprep.mubr.f32.mxu0 %v13691_v58  ;;  %v8402_v7 = vld [vmem:[#allocation22 + $0xf80] sm:$0xff] }
0x1832   :  { %12690 = vmatprep.subr.mxu1 %v13691_v58  ;;  %8437 = vmatprep.subr.mxu0 %v8411_v57  ;;  %v8407_v57 = vld [vmem:[#allocation22 + $0xfa8] sm:$0xff] }
0x1833   :  { %12691 = vmatpush3.msra.mxu1 %v14427_v10  ;;  %8438 = vmatpush1.msra.mxu0 %v8410_v5  ;;  %v8397_v10 = vld [vmem:[#allocation22 + $0xf58] sm:$0xff]  ;;  %v8399_v5 = vld [vmem:[#allocation22 + $0xf68] sm:$0xff] }
0x1834   :  { %12693 = vmatmul.mubr.msk.f32.vlgmr.msra.gmra.mxu1 %vm1819_vm3, %v8279_v54  ;;  %8508 = vmatprep.subr.mxu1 %v8413_v0  ;;  %v8409_v0 = vld [vmem:[#allocation22 + $0xfb8] sm:$0xff] }
0x1835   :  { %8556 = vmatprep.mubr.f32.mxu1 %v13691_v58  ;;  %8509 = vmatpush1.msra.mxu1 %v8412_v6  ;;  %v8398_v6 = vld [vmem:[#allocation22 + $0xf60] sm:$0xff] }
0x1836   :  { %8439 = vmatprep.subr.mxu0 %v8403_v18  ;;  %8510 = vmatprep.subr.mxu1 %v8405_v15  ;;  %v8400_v18 = vld [vmem:[#allocation22 + $0xf70] sm:$0xff]  ;;  %v8391_v15 = vld [vmem:[#allocation22 + $0xf28] sm:$0xff] }
0x1837   :  { %8440 = vmatpush1.msra.mxu0 %v8402_v7  ;;  %8511 = vmatpush1.msra.mxu1 %v8404_v9  ;;  %v8393_v7 = vld [vmem:[#allocation22 + $0xf38] sm:$0xff]  ;;  %v8390_v9 = vld [vmem:[#allocation22 + $0xf20] sm:$0xff] }
0x1838   :  { %8441 = vmatprep.subr.mxu0 %v8395_v43  ;;  %8512 = vmatprep.subr.mxu1 %v8397_v10  ;;  %v8392_v43 = vld [vmem:[#allocation22 + $0xf30] sm:$0xff]  ;;  %v8383_v10 = vld [vmem:[#allocation22 + $0xee8] sm:$0xff] }
0x1839   :  { %8442 = vmatpush1.msra.mxu0 %v8394_v3  ;;  %8513 = vmatpush1.msra.mxu1 %v8396_v4  ;;  %v8385_v3 = vld [vmem:[#allocation22 + $0xef8] sm:$0xff]  ;;  %v8382_v4 = vld [vmem:[#allocation22 + $0xee0] sm:$0xff] }
0x183a   :  { %8443 = vmatprep.subr.mxu0 %v8387_v30  ;;  %8514 = vmatprep.subr.mxu1 %v8389_v38  ;;  %v8384_v30 = vld [vmem:[#allocation22 + $0xef0] sm:$0xff]  ;;  %v8375_v38 = vld [vmem:[#allocation22 + $0xea8] sm:$0xff] }
0x183b   :  { %8444 = vmatpush1.msra.mxu0 %v8386_v19  ;;  %8515 = vmatpush1.msra.mxu1 %v8388_v59  ;;  %v8377_v19 = vld [vmem:[#allocation22 + $0xeb8] sm:$0xff]  ;;  %v8374_v59 = vld [vmem:[#allocation22 + $0xea0] sm:$0xff] }
0x183c   :  { %8445 = vmatprep.subr.mxu0 %v8379_v46  ;;  %8516 = vmatprep.subr.mxu1 %v8381_v22  ;;  %v8376_v46 = vld [vmem:[#allocation22 + $0xeb0] sm:$0xff]  ;;  %v8367_v22 = vld [vmem:[#allocation22 + $0xe68] sm:$0xff] }
0x183d   :  { %8446 = vmatpush1.msra.mxu0 %v8378_v31  ;;  %8517 = vmatpush1.msra.mxu1 %v8380_v16  ;;  %v8369_v31 = vld [vmem:[#allocation22 + $0xe78] sm:$0xff]  ;;  %v8366_v16 = vld [vmem:[#allocation22 + $0xe60] sm:$0xff] }
0x183e   :  { %8447 = vmatprep.subr.mxu0 %v8371_v37  ;;  %8518 = vmatprep.subr.mxu1 %v8373_v25  ;;  %v8368_v37 = vld [vmem:[#allocation22 + $0xe70] sm:$0xff]  ;;  %v8359_v25 = vld [vmem:[#allocation22 + $0xe28] sm:$0xff] }
0x183f   :  { %8448 = vmatpush1.msra.mxu0 %v8370_v48  ;;  %8519 = vmatpush1.msra.mxu1 %v8372_v42  ;;  %v8361_v48 = vld [vmem:[#allocation22 + $0xe38] sm:$0xff]  ;;  %v8358_v42 = vld [vmem:[#allocation22 + $0xe20] sm:$0xff] }
0x1840   :  { %8449 = vmatprep.subr.mxu0 %v8363_v29  ;;  %8520 = vmatprep.subr.mxu1 %v8365_v32  ;;  %v8360_v29 = vld [vmem:[#allocation22 + $0xe30] sm:$0xff]  ;;  %v9032_v32 = vld [vmem:[%s15368_s17] sm:$0xff] }
0x1841   :  { %8450 = vmatpush1.msra.mxu0 %v8362_v33  ;;  %8521 = vmatpush1.msra.mxu1 %v8364_v47  ;;  %v11494_v33 = vld [vmem:[%s15368_s17 + $0x10] sm:$0xff] }
0x1842   :  { %8451 = vmatprep.subr.mxu0 %v8355_v20  ;;  %8522 = vmatprep.subr.mxu1 %v8357_v39 }
0x1843   :  { %8452 = vmatpush1.msra.mxu0 %v8354_v40  ;;  %8523 = vmatpush1.msra.mxu1 %v8356_v50  ;;  %v14726_v40 = vld [vmem:[#allocation23] sm:$0xff] }
0x1844   :  { %8579 = vmatprep.subr.mxu0 %v8415_v63  ;;  %8650 = vmatprep.subr.mxu1 %v8417_v51  ;;  %v8718_v51 = vrot.slane %v14726_v40, %v14071_v62 }
0x18de   :  { %v8053_v26 = vpop.f32.mrf.mxu1  ;;  %v8124_v47 = vpop.f32.mrf.mxu0 }
0x18df   :  { %v14695_v60 = vadd.f32 %v8053_v26, %v14651_v8  ;;  %v8406_v8 = vld [vmem:[#allocation22 + $0xfa0] sm:$0xff]  ;;  %v8273_v63 = vadd.f32 %v8124_v47, %v14654_v35  ;;  %v8726_v26 = vrot.slane %v14726_v40, %v14233_v21  ;;  %v14760_v47 = vsub.s32 7, %v14068_v61 }
0x18e0   :  { %v8055_v1 = vpop.f32.mrf.mxu1  ;;  %v8126_v20 = vpop.f32.mrf.mxu0 }
0x18e1   :  { %v14698_v36 = vadd.f32 %v8055_v1, %v14657_v13  ;;  %v8408_v13 = vld [vmem:[#allocation22 + $0xfb0] sm:$0xff]  ;;  %v8274_v1 = vadd.f32 %v8126_v20, %v14660_v56 }
0x18ef   :  { %v8195_v55 = vpop.f32.mrf.mxu1  ;;  %v8266_v39 = vpop.f32.mrf.mxu0 }
0x18f0   :  { %v14701_v24 = vadd.f32 %v8195_v55, %v14663_v17 }
0x18f1   :  { %v8197_v49 = vpop.f32.mrf.mxu1  ;;  %v8268_v50 = vpop.f32.mrf.mxu0 }
0x18f2   :  { %v14704_v28 = vadd.f32 %v8197_v49, %v14669_v41  ;;  %v8401_v41 = vld [vmem:[#allocation22 + $0xf78] sm:$0xff] }
0x18f4   :  { %v14706_v54 = vpop.f32.mrf.mxu1 }
0x18f5   :  { %11490 = vmatmul.mubr.msk.f32.vlgmr.msra.gmra.mxu0 %vm370_vm0, %v14706_v54  ;;  %11491 = vmatmul.mubr.msk.f32.vlgmr.msra.gmra.mxu1 %vm370_vm0, %v14706_v54 }
0x18f6   :  { %8580 = vmatpush1.msra.mxu0 %v8414_v52  ;;  %8651 = vmatpush1.msra.mxu1 %v8416_v2  ;;  %v12694_v17 = vpop.f32.mrf.mxu1 }
0x18f7   :  { %8581 = vmatprep.subr.mxu0 %v8407_v57  ;;  %8652 = vmatprep.subr.mxu1 %v8409_v0  ;;  %v8730_v57 = vrot.slane %v14726_v40, %v14241_v44 }
0x18f8   :  { %8582 = vmatpush1.msra.mxu0 %v8406_v8  ;;  %8653 = vmatpush1.msra.mxu1 %v8408_v13 }
0x18f9   :  { %8583 = vmatprep.subr.mxu0 %v8399_v5  ;;  %8654 = vmatprep.subr.mxu1 %v8401_v41 }
0x18fa   :  { %8584 = vmatpush1.msra.mxu0 %v8398_v6  ;;  %8655 = vmatpush1.msra.mxu1 %v8400_v18 }
0x18fb   :  { %8585 = vmatprep.subr.mxu0 %v8391_v15  ;;  %8656 = vmatprep.subr.mxu1 %v8393_v7  ;;  %v6107_v7 = vadd.f32 %v14516_v12, %v14479_v34 }
0x18fc   :  { %8586 = vmatpush1.msra.mxu0 %v8390_v9  ;;  %8657 = vmatpush1.msra.mxu1 %v8392_v43 }
0x18fd   :  { %8587 = vmatprep.subr.mxu0 %v8383_v10  ;;  %8658 = vmatprep.subr.mxu1 %v8385_v3 }
0x18fe   :  { %8588 = vmatpush1.msra.mxu0 %v8382_v4  ;;  %8659 = vmatpush1.msra.mxu1 %v8384_v30  ;;  %v6542_v30 = vadd.f32 %v14560_v45, %v6107_v7 }
0x18ff   :  { %8589 = vmatprep.subr.mxu0 %v8375_v38  ;;  %8660 = vmatprep.subr.mxu1 %v8377_v19 }
0x1900   :  { %8590 = vmatpush1.msra.mxu0 %v8374_v59  ;;  %8661 = vmatpush1.msra.mxu1 %v8376_v46 }
0x1901   :  { %8591 = vmatprep.subr.mxu0 %v8367_v22  ;;  %8662 = vmatprep.subr.mxu1 %v8369_v31  ;;  %v6976_v22 = vadd.f32 %v14604_v23, %v6542_v30  ;;  %v14757_v23 = vsub.s32 5, %v14068_v61 }
0x1902   :  { %8592 = vmatpush1.msra.mxu0 %v8366_v16  ;;  %8663 = vmatpush1.msra.mxu1 %v8368_v37 }
0x1903   :  { %8593 = vmatprep.subr.mxu0 %v8359_v25  ;;  %8664 = vmatprep.subr.mxu1 %v8361_v48  ;;  %v7410_v12 = vadd.f32 %v14648_v14, %v6976_v22  ;;  %v14750_v25 = vsub.s32 4, %v14068_v61  ;;  %v14753_v48 = vsub.s32 6, %v14068_v61 }
0x1904   :  { %8594 = vmatpush1.msra.mxu0 %v8358_v42  ;;  %8627 = vmatprep.mubr.f32.mxu0 %v13691_v58 }
0x1905   :  { %8665 = vmatpush1.msra.mxu1 %v8360_v29  ;;  %8698 = vmatprep.mubr.f32.mxu1 %v13691_v58 }
0x1906   :  { %11492 = vmatmul.mubr.msk.f32.vlgmr.msra.gmra.mxu0 %vm370_vm0, %v14706_v54  ;;  %11493 = vmatmul.mubr.msk.f32.vlgmr.msra.gmra.mxu1 %vm370_vm0, %v14706_v54  ;;  %v8722_v54 = vrot.slane %v14726_v40, %v14238_v27 }
0x1907   :  { %12702 = vmatprep.mubr.msk.f32.mxu1 %vm4269_vm5, %v9032_v32  ;;  %12697 = vmatprep.mubr.msk.f32.mxu0 %vm4269_vm5, %v11494_v33  ;;  %v7844_v33 = vadd.f32 %v14692_v53, %v7410_v12  ;;  %v8742_v53 = vrot.slane %v14726_v40, %v14753_v48 }
0x19b5   :  { %v8487_v55 = vpop.f32.mrf.mxu0  ;;  %v8558_v49 = vpop.f32.mrf.mxu1 }
0x19b6   :  { %v8705_v52 = vadd.f32 %v8487_v55, %v14695_v60  ;;  %v8707_v2 = vadd.f32 %v8558_v49, %v8273_v63  ;;  %v8734_v49 = vrot.slane %v14726_v40, %v14750_v25 }
0x19b7   :  { %v8489_v35 = vpop.f32.mrf.mxu0  ;;  %v8560_v0 = vpop.f32.mrf.mxu1 }
0x19b8   :  { %v8755_v8 = vadd.f32 %v8718_v51, %v8705_v52  ;;  %v8757_v13 = vadd.f32 %v8726_v26, %v8707_v2  ;;  %v8706_v17 = vadd.f32 %v8489_v35, %v14698_v36  ;;  %v8708_v5 = vadd.f32 %v8560_v0, %v8274_v1 }
0x19b9   :  { %v8277_v26 = vadd.f32 %v8266_v39, %v14666_v11  ;;  %v8278_v1 = vadd.f32 %v8268_v50, %v7844_v33  ;;  %v8738_v11 = vrot.slane %v14726_v40, %v14757_v23  ;;  %v8746_v50 = vrot.slane %v14726_v40, %v14760_v47 }
0x19ba   :  { %v8766_v56 = vsel %vm4126_vm4, %v8755_v8, 0.0  ;;  %v8780_v41 = vsel %vm4126_vm4, %v8757_v13, 0.0  ;;  %v8756_v6 = vadd.f32 %v8722_v54, %v8706_v17  ;;  %v8758_v60 = vadd.f32 %v8730_v57, %v8708_v5 }
0x19bb   :  { %v8767_v18 = vrot.slane %v8766_v56, 4  ;;  %v8781_v15 = vrot.slane %v8780_v41, 4 }
0x19bc   :  { %v8773_v9 = vsel %vm4126_vm4, %v8756_v6, 0.0  ;;  %v8787_v43 = vsel %vm4126_vm4, %v8758_v60, 0.0 }
0x19bd   :  { %v8768_v10 = vadd.f32 %v8767_v18, %v8766_v56  ;;  %v8782_v3 = vadd.f32 %v8781_v15, %v8780_v41  ;;  %v8774_v4 = vrot.slane %v8773_v9, 4  ;;  %v8788_v36 = vrot.slane %v8787_v43, 4 }
0x19bf   :  { %v8769_v38 = vrot.slane %v8768_v10, 2  ;;  %v8783_v19 = vrot.slane %v8782_v3, 2  ;;  %v8775_v59 = vadd.f32 %v8774_v4, %v8773_v9  ;;  %v8789_v46 = vadd.f32 %v8788_v36, %v8787_v43 }
0x19c1   :  { %v8770_v31 = vadd.f32 %v8769_v38, %v8768_v10  ;;  %v8784_v16 = vadd.f32 %v8783_v19, %v8782_v3  ;;  %v8776_v37 = vrot.slane %v8775_v59, 2  ;;  %v8790_v34 = vrot.slane %v8789_v46, 2 }
0x19c3   :  { %v8771_v42 = vrot.slane %v8770_v31, 1  ;;  %v8785_v45 = vrot.slane %v8784_v16, 1  ;;  %v8777_v29 = vadd.f32 %v8776_v37, %v8775_v59  ;;  %v8791_v32 = vadd.f32 %v8790_v34, %v8789_v46 }
0x19c5   :  { %v8772_v20 = vadd.f32 %v8771_v42, %v8770_v31  ;;  %v8786_v14 = vadd.f32 %v8785_v45, %v8784_v16  ;;  %v8778_v63 = vrot.slane %v8777_v29, 1  ;;  %v8792_v51 = vrot.slane %v8791_v32, 1 }
0x19c6   :  { %v8629_v55 = vpop.f32.mrf.mxu0  ;;  %v8700_v52 = vpop.f32.mrf.mxu1 }
0x19c7   :  { %v8822_v2 = vmul.f32 0.5, %v8772_v20  ;;  %v8824_v54 = vmul.f32 0.5, %v8786_v14  ;;  %v8779_v57 = vadd.f32 %v8778_v63, %v8777_v29  ;;  %v8793_v61 = vadd.f32 %v8792_v51, %v8791_v32 }
0x19c8   :  { %v8709_v35 = vadd.f32 %v8629_v55, %v14701_v24  ;;  %v8711_v0 = vadd.f32 %v8700_v52, %v8277_v26  ;;  %v8631_v17 = vpop.f32.mrf.mxu0  ;;  %v8702_v39 = vpop.f32.mrf.mxu1 }
0x19c9   :  { %v14772_v5 = vsub.f32 %v8755_v8, %v8822_v2  ;;  %v14774_v56 = vsub.f32 %v8757_v13, %v8824_v54  ;;  %v8823_v41 = vmul.f32 0.5, %v8779_v57  ;;  %v8825_v18 = vmul.f32 0.5, %v8793_v61 }
0x19ca   :  { %v14776_v15 = vadd.f32 %v8734_v49, %v8709_v35  ;;  %v14778_v7 = vadd.f32 %v8742_v53, %v8711_v0  ;;  %v8710_v24 = vadd.f32 %v8631_v17, %v14704_v28  ;;  %v8712_v9 = vadd.f32 %v8702_v39, %v8278_v1 }
0x19cb   :  { %v8838_v43 = vmul.f32 %v14772_v5, %v14772_v5  ;;  %v8840_v10 = vmul.f32 %v14774_v56, %v14774_v56  ;;  %v14785_v40 = vsub.f32 %v8756_v6, %v8823_v41  ;;  %v14787_v8 = vsub.f32 %v8758_v60, %v8825_v18 }
0x19cc   :  { %v8794_v13 = vsel %vm4126_vm4, %v14776_v15, 0.0  ;;  %v8808_v3 = vsel %vm4126_vm4, %v14778_v7, 0.0  ;;  %v14793_v4 = vadd.f32 %v8738_v11, %v8710_v24  ;;  %v14795_v28 = vadd.f32 %v8746_v50, %v8712_v9 }
0x19cd   :  { %v8846_v36 = vsel %vm4126_vm4, %v8838_v43, 0.0  ;;  %v8860_v30 = vsel %vm4126_vm4, %v8840_v10, 0.0  ;;  %v8839_v6 = vmul.f32 %v14785_v40, %v14785_v40  ;;  %v8841_v60 = vmul.f32 %v14787_v8, %v14787_v8 }
0x19ce   :  { %v8847_v38 = vrot.slane %v8846_v36, 4  ;;  %v8861_v19 = vrot.slane %v8860_v30, 4  ;;  %v8795_v59 = vrot.slane %v8794_v13, 4  ;;  %v8809_v46 = vrot.slane %v8808_v3, 4 }
0x19cf   :  { %v8853_v22 = vsel %vm4126_vm4, %v8839_v6, 0.0  ;;  %v8867_v31 = vsel %vm4126_vm4, %v8841_v60, 0.0  ;;  %v8801_v16 = vsel %vm4126_vm4, %v14793_v4, 0.0  ;;  %v8815_v37 = vsel %vm4126_vm4, %v14795_v28, 0.0 }
0x19d0   :  { %v8848_v34 = vadd.f32 %v8847_v38, %v8846_v36  ;;  %v8862_v12 = vadd.f32 %v8861_v19, %v8860_v30  ;;  %v8854_v42 = vrot.slane %v8853_v22, 4  ;;  %v8868_v45 = vrot.slane %v8867_v31, 4 }
0x19d1   :  { %v8796_v29 = vadd.f32 %v8795_v59, %v8794_v13  ;;  %v8810_v32 = vadd.f32 %v8809_v46, %v8808_v3  ;;  %v8802_v33 = vrot.slane %v8801_v16, 4  ;;  %v8816_v20 = vrot.slane %v8815_v37, 4 }
0x19d2   :  { %v8849_v14 = vrot.slane %v8848_v34, 2  ;;  %v8863_v63 = vrot.slane %v8862_v12, 2  ;;  %v8855_v51 = vadd.f32 %v8854_v42, %v8853_v22  ;;  %v8869_v26 = vadd.f32 %v8868_v45, %v8867_v31 }
0x19d3   :  { %v8797_v1 = vrot.slane %v8796_v29, 2  ;;  %v8811_v55 = vrot.slane %v8810_v32, 2  ;;  %v8803_v49 = vadd.f32 %v8802_v33, %v8801_v16  ;;  %v8817_v52 = vadd.f32 %v8816_v20, %v8815_v37 }
0x19d4   :  { %v8850_v53 = vadd.f32 %v8849_v14, %v8848_v34  ;;  %v8864_v2 = vadd.f32 %v8863_v63, %v8862_v12  ;;  %v8856_v54 = vrot.slane %v8855_v51, 2  ;;  %v8870_v57 = vrot.slane %v8869_v26, 2 }
0x19d5   :  { %v8798_v61 = vadd.f32 %v8797_v1, %v8796_v29  ;;  %v8812_v35 = vadd.f32 %v8811_v55, %v8810_v32  ;;  %v8804_v0 = vrot.slane %v8803_v49, 2  ;;  %v8818_v17 = vrot.slane %v8817_v52, 2 }
0x19d6   :  { %v8851_v11 = vrot.slane %v8850_v53, 1  ;;  %v8865_v39 = vrot.slane %v8864_v2, 1  ;;  %v8857_v50 = vadd.f32 %v8856_v54, %v8855_v51  ;;  %v8871_v41 = vadd.f32 %v8870_v57, %v8869_v26 }
0x19d7   :  { %v8799_v18 = vrot.slane %v8798_v61, 1  ;;  %v8813_v24 = vrot.slane %v8812_v35, 1  ;;  %v8805_v9 = vadd.f32 %v8804_v0, %v8803_v49  ;;  %v8819_v43 = vadd.f32 %v8818_v17, %v8817_v52  ;;  %v14833_v17 = vld [vmem:[#allocation25] ss:$2 sm:$0xff] }
0x19d8   :  { %v8852_v10 = vadd.f32 %v8851_v11, %v8850_v53  ;;  %v8866_v13 = vadd.f32 %v8865_v39, %v8864_v2  ;;  %v8858_v3 = vrot.slane %v8857_v50, 1  ;;  %v8872_v36 = vrot.slane %v8871_v41, 1 }
0x19d9   :  { %v8800_v30 = vadd.f32 %v8799_v18, %v8798_v61  ;;  %v8814_v6 = vadd.f32 %v8813_v24, %v8812_v35  ;;  %v8806_v60 = vrot.slane %v8805_v9, 1  ;;  %v8820_v38 = vrot.slane %v8819_v43, 1 }
0x19da   :  { %v8902_v19 = vmul.f32 0.5, %v8852_v10  ;;  %v8904_v59 = vmul.f32 0.5, %v8866_v13  ;;  %v8859_v46 = vadd.f32 %v8858_v3, %v8857_v50  ;;  %v8873_v22 = vadd.f32 %v8872_v36, %v8871_v41 }
0x19db   :  { %v8826_v31 = vmul.f32 0.5, %v8800_v30  ;;  %v8828_v16 = vmul.f32 0.5, %v8814_v6  ;;  %v8807_v37 = vadd.f32 %v8806_v60, %v8805_v9  ;;  %v8821_v34 = vadd.f32 %v8820_v38, %v8819_v43  ;;  %v14835_v43 = vld [vmem:[#allocation25 + $0x1] ss:$2 sm:$0xff] }
0x19dc   :  { %v8910_v12 = vadd.f32 1e-05, %v8902_v19  ;;  %v8912_v42 = vadd.f32 1e-05, %v8904_v59  ;;  %v8903_v45 = vmul.f32 0.5, %v8859_v46  ;;  %v8905_v29 = vmul.f32 0.5, %v8873_v22 }
0x19dd   :  { %v14810_v32 = vsub.f32 %v14776_v15, %v8826_v31  ;;  %v14813_v33 = vsub.f32 %v14778_v7, %v8828_v16  ;;  %v8827_v20 = vmul.f32 0.5, %v8807_v37  ;;  %v8829_v14 = vmul.f32 0.5, %v8821_v34 }
0x19de   :  { %13154 = vrsqrt.f32 %v8910_v12  ;;  %v8911_v63 = vadd.f32 1e-05, %v8903_v45  ;;  %v8913_v51 = vadd.f32 1e-05, %v8905_v29  ;;  %v8938_v10 = vrot.slane %v14833_v17, %v14071_v62 }
0x19df   :  { %13156 = vrsqrt.f32 %v8912_v42  ;;  %v8842_v26 = vmul.f32 %v14810_v32, %v14810_v32  ;;  %v8844_v1 = vmul.f32 %v14813_v33, %v14813_v33  ;;  %v14820_v55 = vsub.f32 %v14793_v4, %v8827_v20 }
0x19e0   :  { %13158 = vrsqrt.f32 %v8911_v63  ;;  %v14823_v15 = vsub.f32 %v14795_v28, %v8829_v14  ;;  %v8946_v13 = vrot.slane %v14833_v17, %v14233_v21  ;;  %v8942_v36 = vrot.slane %v14833_v17, %v14238_v27 }
0x19e1   :  { %13160 = vrsqrt.f32 %v8913_v51  ;;  %v8874_v7 = vsel %vm4126_vm4, %v8842_v26, 0.0  ;;  %v8888_v49 = vsel %vm4126_vm4, %v8844_v1, 0.0  ;;  %v8843_v52 = vmul.f32 %v14820_v55, %v14820_v55 }
0x19e2   :  { %v8875_v53 = vrot.slane %v8874_v7, 4  ;;  %v8889_v2 = vrot.slane %v8888_v49, 4  ;;  %v8845_v54 = vmul.f32 %v14823_v15, %v14823_v15  ;;  %v8950_v19 = vrot.slane %v14833_v17, %v14241_v44 }
0x19e3   :  { %v8881_v4 = vsel %vm4126_vm4, %v8843_v52, 0.0  ;;  %v8987_v46 = vrot.slane %v14835_v43, %v14071_v62  ;;  %v8995_v22 = vrot.slane %v14835_v43, %v14233_v21  ;;  %v8991_v20 = vrot.slane %v14835_v43, %v14238_v27 }
0x19e4   :  { %v8876_v57 = vadd.f32 %v8875_v53, %v8874_v7  ;;  %v8890_v61 = vadd.f32 %v8889_v2, %v8888_v49  ;;  %v8882_v35 = vrot.slane %v8881_v4, 4  ;;  %v8895_v28 = vsel %vm4126_vm4, %v8845_v54, 0.0 }
0x19e5   :  { %v8896_v0 = vrot.slane %v8895_v28, 4  ;;  %v8999_v14 = vrot.slane %v14835_v43, %v14241_v44  ;;  %v9033_v44 = vld [vmem:[%s15368_s17 + $0x8] sm:$0xff] }
0x19e6   :  { %v8877_v11 = vrot.slane %v8876_v57, 2  ;;  %v8891_v39 = vrot.slane %v8890_v61, 2  ;;  %v8883_v50 = vadd.f32 %v8882_v35, %v8881_v4 }
0x19e7   :  { %v8897_v41 = vadd.f32 %v8896_v0, %v8895_v28  ;;  %v11495_v0 = vld [vmem:[%s15368_s17 + $0x18] sm:$0xff] }
0x19e8   :  { %v8878_v18 = vadd.f32 %v8877_v11, %v8876_v57  ;;  %v8892_v24 = vadd.f32 %v8891_v39, %v8890_v61  ;;  %v8884_v9 = vrot.slane %v8883_v50, 2  ;;  %v11507_v11 = vld [vmem:[%s15368_s17 + $0x30] sm:$0xff]  ;;  %v11502_v39 = vld [vmem:[%s15368_s17 + $0x20] sm:$0xff] }
0x19e9   :  { %v8898_v3 = vrot.slane %v8897_v41, 2 }
0x19ea   :  { %v8879_v30 = vrot.slane %v8878_v18, 1  ;;  %v8893_v6 = vrot.slane %v8892_v24, 1  ;;  %v8885_v60 = vadd.f32 %v8884_v9, %v8883_v50  ;;  %v11508_v50 = vld [vmem:[%s15368_s17 + $0x38] sm:$0xff]  ;;  %v8954_v9 = vrot.slane %v14833_v17, %v14750_v25 }
0x19eb   :  { %v13155_v38 = vpop.eup %13154  ;;  %v8899_v59 = vadd.f32 %v8898_v3, %v8897_v41  ;;  %v11517_v41 = vld [vmem:[%s15368_s17 + $0x50] sm:$0xff] }
0x19ec   :  { %v13157_v31 = vpop.eup %13156  ;;  %v8926_v16 = vmul.f32 %v13155_v38, %v14772_v5  ;;  %v8880_v37 = vadd.f32 %v8879_v30, %v8878_v18  ;;  %v8894_v34 = vadd.f32 %v8893_v6, %v8892_v24  ;;  %v8886_v12 = vrot.slane %v8885_v60, 1  ;;  %v11503_v18 = vld [vmem:[%s15368_s17 + $0x28] sm:$0xff]  ;;  %v11512_v24 = vld [vmem:[%s15368_s17 + $0x40] sm:$0xff] }
0x19ed   :  { %v13159_v42 = vpop.eup %13158  ;;  %v8928_v45 = vmul.f32 %v13157_v31, %v14774_v56  ;;  %v8900_v29 = vrot.slane %v8899_v59, 1  ;;  %v9003_v30 = vrot.slane %v14835_v43, %v14750_v25  ;;  %v9007_v25 = vrot.slane %v14835_v43, %v14757_v23 }
0x19ee   :  { %v13161_v63 = vpop.eup %13160  ;;  %v8975_v51 = vmul.f32 %v8938_v10, %v8926_v16  ;;  %v8927_v21 = vmul.f32 %v13159_v42, %v14785_v40  ;;  %v8906_v26 = vmul.f32 0.5, %v8880_v37  ;;  %v8908_v1 = vmul.f32 0.5, %v8894_v34  ;;  %v11513_v34 = vld [vmem:[%s15368_s17 + $0x48] sm:$0xff]  ;;  %v11527_v42 = vld [vmem:[%s15368_s17 + $0x70] sm:$0xff] }
0x19ef   :  { %v8977_v5 = vmul.f32 %v8946_v13, %v8928_v45  ;;  %v8929_v7 = vmul.f32 %v13161_v63, %v14787_v8  ;;  %v8887_v49 = vadd.f32 %v8886_v12, %v8885_v60  ;;  %v8901_v52 = vadd.f32 %v8900_v29, %v8899_v59  ;;  %v9748_v45 = vld [vmem:[#allocation28 + $0x78] sm:$0xff]  ;;  %v9843_v63 = vld [vmem:[#allocation28 + $0xf0] sm:$0xff] }
0x19f0   :  { %v8976_v53 = vmul.f32 %v8942_v36, %v8927_v21  ;;  %v8914_v56 = vadd.f32 1e-05, %v8906_v26  ;;  %v8916_v2 = vadd.f32 1e-05, %v8908_v1  ;;  %v9024_v54 = vadd.f32 %v8987_v46, %v8975_v51  ;;  %v9844_v29 = vld [vmem:[#allocation28 + $0xf8] sm:$0xff]  ;;  %v9746_v51 = vld [vmem:[#allocation28 + $0x68] sm:$0xff] }
0x19f1   :  { %v8978_v4 = vmul.f32 %v8950_v19, %v8929_v7  ;;  %v8907_v27 = vmul.f32 0.5, %v8887_v49  ;;  %v8909_v57 = vmul.f32 0.5, %v8901_v52  ;;  %v9026_v28 = vadd.f32 %v8995_v22, %v8977_v5  ;;  %v9842_v21 = vld [vmem:[#allocation28 + $0xe8] sm:$0xff]  ;;  %v9745_v26 = vld [vmem:[#allocation28 + $0x60] sm:$0xff]  ;;  %v9744_v5 = vld [vmem:[#allocation28 + $0x58] sm:$0xff] }
0x19f2   :  { %13162 = vrsqrt.f32 %v8914_v56  ;;  %12700 = vmatprep.subr.msk.mxu1 %vm4126_vm4, %v9024_v54  ;;  %v9025_v40 = vadd.f32 %v8991_v20, %v8976_v53  ;;  %v8962_v13 = vrot.slane %v14833_v17, %v14753_v48  ;;  %v8958_v60 = vrot.slane %v14833_v17, %v14757_v23  ;;  %v11522_v23 = vld [vmem:[%s15368_s17 + $0x60] sm:$0xff]  ;;  %v11528_v20 = vld [vmem:[%s15368_s17 + $0x78] sm:$0xff]  ;;  %v9841_v1 = vld [vmem:[#allocation28 + $0xe0] sm:$0xff] }
0x19f3   :  { %13164 = vrsqrt.f32 %v8916_v2  ;;  %v8915_v61 = vadd.f32 1e-05, %v8907_v27  ;;  %v8917_v8 = vadd.f32 1e-05, %v8909_v57  ;;  %12701 = vmatpush3.msk.msra.mxu1 %vm4126_vm4, %v9024_v54  ;;  %v9027_v35 = vadd.f32 %v8999_v14, %v8978_v4  ;;  %v9747_v14 = vld [vmem:[#allocation28 + $0x70] sm:$0xff]  ;;  %v9840_v7 = vld [vmem:[#allocation28 + $0xd8] sm:$0xff] }
0x19f4   :  { %12695 = vmatprep.subr.msk.mxu0 %vm4126_vm4, %v9025_v40  ;;  %12703 = vmatmul.mubr.msk.f32.vlgmr.msra.gmra.mxu1 %vm4269_vm5, %v9033_v44  ;;  %v8966_v59 = vrot.slane %v14833_v17, %v14760_v47  ;;  %v9011_v46 = vrot.slane %v14835_v43, %v14753_v48  ;;  %v9015_v17 = vrot.slane %v14835_v43, %v14760_v47  ;;  %v11523_v43 = vld [vmem:[%s15368_s17 + $0x68] sm:$0xff]  ;;  %v9743_v49 = vld [vmem:[#allocation28 + $0x50] sm:$0xff]  ;;  %v9742_v53 = vld [vmem:[#allocation28 + $0x48] sm:$0xff] }
0x19f5   :  { %13166 = vrsqrt.f32 %v8915_v61  ;;  %12710 = vmatprep.subr.msk.mxu1 %vm4126_vm4, %v9027_v35  ;;  %12696 = vmatpush3.msk.msra.mxu0 %vm4126_vm4, %v9025_v40  ;;  %v9839_v52 = vld [vmem:[#allocation28 + $0xd0] sm:$0xff]  ;;  %v9838_v56 = vld [vmem:[#allocation28 + $0xc8] sm:$0xff]  ;;  %v9741_v2 = vld [vmem:[#allocation28 + $0x40] sm:$0xff] }
0x19f6   :  { %13168 = vrsqrt.f32 %v8917_v8  ;;  %12711 = vmatpush3.msk.msra.mxu1 %vm4126_vm4, %v9027_v35  ;;  %12705 = vmatprep.subr.msk.mxu0 %vm4126_vm4, %v9026_v28  ;;  %v9837_v54 = vld [vmem:[#allocation28 + $0xc0] sm:$0xff]  ;;  %v9740_v4 = vld [vmem:[#allocation28 + $0x38] sm:$0xff]  ;;  %v9739_v57 = vld [vmem:[#allocation28 + $0x30] sm:$0xff] }
0x19f7   :  { %12698 = vmatmul.mubr.msk.f32.vlgmr.msra.gmra.mxu0 %vm4269_vm5, %v11495_v0  ;;  %12712 = vmatprep.mubr.msk.f32.mxu1 %vm4269_vm5, %v11507_v11  ;;  %v9836_v27 = vld [vmem:[#allocation28 + $0xb8] sm:$0xff]  ;;  %v9835_v44 = vld [vmem:[#allocation28 + $0xb0] sm:$0xff]  ;;  %v9738_v40 = vld [vmem:[#allocation28 + $0x28] sm:$0xff] }
0x19f8   :  { %12706 = vmatpush3.msk.msra.mxu0 %vm4126_vm4, %v9026_v28  ;;  %12707 = vmatprep.mubr.msk.f32.mxu0 %vm4269_vm5, %v11502_v39  ;;  %v9834_v61 = vld [vmem:[#allocation28 + $0xa8] sm:$0xff]  ;;  %v9737_v8 = vld [vmem:[#allocation28 + $0x20] sm:$0xff]  ;;  %v9736_v28 = vld [vmem:[#allocation28 + $0x18] sm:$0xff] }
0x19f9   :  { %12713 = vmatmul.mubr.msk.f32.vlgmr.msra.gmra.mxu1 %vm4269_vm5, %v11508_v50  ;;  %v9833_v35 = vld [vmem:[#allocation28 + $0xa0] sm:$0xff]  ;;  %v9832_v0 = vld [vmem:[#allocation28 + $0x98] sm:$0xff]  ;;  %v9735_v11 = vld [vmem:[#allocation28 + $0x10] sm:$0xff] }
0x19fa   :  { %12722 = vmatprep.mubr.msk.f32.mxu1 %vm4269_vm5, %v11517_v41  ;;  %v9831_v39 = vld [vmem:[#allocation28 + $0x90] sm:$0xff]  ;;  %v9734_v50 = vld [vmem:[#allocation28 + $0x8] sm:$0xff] }
0x19fb   :  { %12708 = vmatmul.mubr.msk.f32.vlgmr.msra.gmra.mxu0 %vm4269_vm5, %v11503_v18  ;;  %v9830_v41 = vld [vmem:[#allocation28 + $0x88] sm:$0xff]  ;;  %v9733_v18 = vld [vmem:[#allocation28] sm:$0xff] }
0x19fc   :  { %12717 = vmatprep.mubr.msk.f32.mxu0 %vm4269_vm5, %v11512_v24  ;;  %v9829_v24 = vld [vmem:[#allocation28 + $0x80] sm:$0xff] }
0x19ff   :  { %v13163_v10 = vpop.eup %13162 }
0x1a00   :  { %v13165_v3 = vpop.eup %13164  ;;  %v8930_v36 = vmul.f32 %v13163_v10, %v14810_v32 }
0x1a01   :  { %v8932_v6 = vmul.f32 %v13165_v3, %v14813_v33 }
0x1a02   :  { %v13167_v38 = vpop.eup %13166  ;;  %v8979_v19 = vmul.f32 %v8954_v9, %v8930_v36 }
0x1a03   :  { %v13169_v22 = vpop.eup %13168  ;;  %v8981_v31 = vmul.f32 %v8962_v13, %v8932_v6  ;;  %v8931_v32 = vmul.f32 %v13167_v38, %v14820_v55 }
0x1a04   :  { %v8933_v33 = vmul.f32 %v13169_v22, %v14823_v15  ;;  %v9028_v16 = vadd.f32 %v9003_v30, %v8979_v19  ;;  %v11518_v15 = vld [vmem:[%s15368_s17 + $0x58] sm:$0xff]  ;;  %s13620_s17 = scalar_lea.vmem %s11336_s12, 16 }
0x1a05   :  { %v8980_v37 = vmul.f32 %v8958_v60, %v8931_v32  ;;  %v9030_v48 = vadd.f32 %v9011_v46, %v8981_v31  ;;  %p13621_p2 = scmp.ne.s32.totalorder %s11336_s12, %s13620_s17  ;;  %p13626_p4 = scmp.lt.s32.totalorder %s13624_s0, %s13620_s17 }
0x1a06   :  { %v8982_v12 = vmul.f32 %v8966_v59, %v8933_v33  ;;  %12715 = vmatprep.subr.msk.mxu0 %vm4126_vm4, %v9028_v16 }
0x1a07   :  { %12716 = vmatpush3.msk.msra.mxu0 %vm4126_vm4, %v9028_v16  ;;  %v9029_v55 = vadd.f32 %v9007_v25, %v8980_v37  ;;  %p13627_p5 = por %p13626_p4, %p13625_p3 }
0x1a08   :  { %12718 = vmatmul.mubr.msk.f32.vlgmr.msra.gmra.mxu0 %vm4269_vm5, %v11513_v34  ;;  %12725 = vmatprep.subr.msk.mxu0 %vm4126_vm4, %v9030_v48  ;;  %v9031_v47 = vadd.f32 %v9015_v17, %v8982_v12 }
0x1a09   :  { %12720 = vmatprep.subr.msk.mxu1 %vm4126_vm4, %v9029_v55  ;;  %12726 = vmatpush3.msk.msra.mxu0 %vm4126_vm4, %v9030_v48  ;;  %p13628_p6 = pnand %p13627_p5, %p13621_p2 }
0x1a0a   :  { %12721 = vmatpush3.msk.msra.mxu1 %vm4126_vm4, %v9029_v55  ;;  %12727 = vmatprep.mubr.msk.f32.mxu0 %vm4269_vm5, %v11522_v23 }
0x1a0b   :  { %12723 = vmatmul.mubr.msk.f32.vlgmr.msra.gmra.mxu1 %vm4269_vm5, %v11518_v15  ;;  %12730 = vmatprep.subr.msk.mxu1 %vm4126_vm4, %v9031_v47 }
0x1a0c   :  { %12731 = vmatpush3.msk.msra.mxu1 %vm4126_vm4, %v9031_v47  ;;  %12728 = vmatmul.mubr.msk.f32.vlgmr.msra.gmra.mxu0 %vm4269_vm5, %v11523_v43 }
0x1a0d   :  { %12732 = vmatprep.mubr.msk.f32.mxu1 %vm4269_vm5, %v11527_v42  ;;  %12735 = vmatprep.subr.mxu0 %v9748_v45 }
0x1a0e   :  { %12770 = vmatprep.subr.mxu1 %v9844_v29  ;;  %12736 = vmatpush3.msra.mxu0 %v9748_v45 }
0x1a0f   :  { %12733 = vmatmul.mubr.msk.f32.vlgmr.msra.gmra.mxu1 %vm4269_vm5, %v11528_v20  ;;  %12737 = vmatprep.subr.mxu0 %v9747_v14  ;;  %v9824_v20 = vld [vmem:[%s15370_s19] sm:$0xff] }
0x1a10   :  { %12771 = vmatpush3.msra.mxu1 %v9844_v29  ;;  %12738 = vmatpush3.msra.mxu0 %v9747_v14  ;;  %v11532_v29 = vld [vmem:[%s15370_s19 + $0x20] sm:$0xff] }
0x1a11   :  { %12772 = vmatprep.subr.mxu1 %v9843_v63  ;;  %12739 = vmatprep.subr.mxu0 %v9746_v51 }
0x1a12   :  { %12773 = vmatpush3.msra.mxu1 %v9843_v63  ;;  %12740 = vmatpush3.msra.mxu0 %v9746_v51 }
0x1a13   :  { %12774 = vmatprep.subr.mxu1 %v9842_v21  ;;  %12741 = vmatprep.subr.mxu0 %v9745_v26 }
0x1a14   :  { %12775 = vmatpush3.msra.mxu1 %v9842_v21  ;;  %12742 = vmatpush3.msra.mxu0 %v9745_v26  ;;  %v11533_v26 = vld [vmem:[%s15370_s19 + $0x28] sm:$0xff] }
0x1a15   :  { %12776 = vmatprep.subr.mxu1 %v9841_v1  ;;  %12743 = vmatprep.subr.mxu0 %v9744_v5 }
0x1a16   :  { %12777 = vmatpush3.msra.mxu1 %v9841_v1  ;;  %12744 = vmatpush3.msra.mxu0 %v9744_v5  ;;  %v9825_v1 = vld [vmem:[%s15370_s19 + $0x8] sm:$0xff] }
0x1a17   :  { %12778 = vmatprep.subr.mxu1 %v9840_v7  ;;  %12745 = vmatprep.subr.mxu0 %v9743_v49  ;;  %v10135_v5 = vld [vmem:[#allocation28 + $0x178] sm:$0xff] }
0x1a18   :  { %12779 = vmatpush3.msra.mxu1 %v9840_v7  ;;  %12746 = vmatpush3.msra.mxu0 %v9743_v49  ;;  %v11534_v7 = vld [vmem:[%s15370_s19 + $0x30] sm:$0xff] }
0x1a19   :  { %12780 = vmatprep.subr.mxu1 %v9839_v52  ;;  %12747 = vmatprep.subr.mxu0 %v9742_v53  ;;  %v9826_v49 = vld [vmem:[%s15370_s19 + $0x10] sm:$0xff] }
0x1a1a   :  { %12781 = vmatpush3.msra.mxu1 %v9839_v52  ;;  %12748 = vmatpush3.msra.mxu0 %v9742_v53  ;;  %v10134_v52 = vld [vmem:[#allocation28 + $0x170] sm:$0xff] }
0x1a1b   :  { %12782 = vmatprep.subr.mxu1 %v9838_v56  ;;  %12749 = vmatprep.subr.mxu0 %v9741_v2  ;;  %v9827_v53 = vld [vmem:[%s15370_s19 + $0x18] sm:$0xff] }
0x1a1c   :  { %12783 = vmatpush3.msra.mxu1 %v9838_v56  ;;  %12750 = vmatpush3.msra.mxu0 %v9741_v2  ;;  %v11535_v56 = vld [vmem:[%s15370_s19 + $0x38] sm:$0xff] }
0x1a1d   :  { %12784 = vmatprep.subr.mxu1 %v9837_v54  ;;  %12751 = vmatprep.subr.mxu0 %v9740_v4  ;;  %v10133_v2 = vld [vmem:[#allocation28 + $0x168] sm:$0xff] }
0x1a1e   :  { %12785 = vmatpush3.msra.mxu1 %v9837_v54  ;;  %12752 = vmatpush3.msra.mxu0 %v9740_v4  ;;  %v10132_v54 = vld [vmem:[#allocation28 + $0x160] sm:$0xff]  ;;  %v10131_v4 = vld [vmem:[#allocation28 + $0x158] sm:$0xff] }
0x1a1f   :  { %12786 = vmatprep.subr.mxu1 %v9836_v27  ;;  %12753 = vmatprep.subr.mxu0 %v9739_v57 }
0x1a20   :  { %12787 = vmatpush3.msra.mxu1 %v9836_v27  ;;  %12754 = vmatpush3.msra.mxu0 %v9739_v57  ;;  %v10130_v27 = vld [vmem:[#allocation28 + $0x150] sm:$0xff]  ;;  %v10129_v57 = vld [vmem:[#allocation28 + $0x148] sm:$0xff] }
0x1a21   :  { %12788 = vmatprep.subr.mxu1 %v9835_v44  ;;  %12755 = vmatprep.subr.mxu0 %v9738_v40 }
0x1a22   :  { %12789 = vmatpush3.msra.mxu1 %v9835_v44  ;;  %12756 = vmatpush3.msra.mxu0 %v9738_v40  ;;  %v10128_v44 = vld [vmem:[#allocation28 + $0x140] sm:$0xff]  ;;  %v10127_v40 = vld [vmem:[#allocation28 + $0x138] sm:$0xff] }
0x1a23   :  { %12790 = vmatprep.subr.mxu1 %v9834_v61  ;;  %12757 = vmatprep.subr.mxu0 %v9737_v8 }
0x1a24   :  { %12791 = vmatpush3.msra.mxu1 %v9834_v61  ;;  %12758 = vmatpush3.msra.mxu0 %v9737_v8  ;;  %v10126_v61 = vld [vmem:[#allocation28 + $0x130] sm:$0xff]  ;;  %v10125_v8 = vld [vmem:[#allocation28 + $0x128] sm:$0xff] }
0x1a25   :  { %12792 = vmatprep.subr.mxu1 %v9833_v35  ;;  %12759 = vmatprep.subr.mxu0 %v9736_v28 }
0x1a26   :  { %12793 = vmatpush3.msra.mxu1 %v9833_v35  ;;  %12760 = vmatpush3.msra.mxu0 %v9736_v28  ;;  %v10124_v35 = vld [vmem:[#allocation28 + $0x120] sm:$0xff]  ;;  %v10123_v28 = vld [vmem:[#allocation28 + $0x118] sm:$0xff] }
0x1a27   :  { %12794 = vmatprep.subr.mxu1 %v9832_v0  ;;  %12761 = vmatprep.subr.mxu0 %v9735_v11 }
0x1a28   :  { %12795 = vmatpush3.msra.mxu1 %v9832_v0  ;;  %12762 = vmatpush3.msra.mxu0 %v9735_v11  ;;  %v10122_v0 = vld [vmem:[#allocation28 + $0x110] sm:$0xff]  ;;  %v10121_v11 = vld [vmem:[#allocation28 + $0x108] sm:$0xff] }
0x1a29   :  { %12796 = vmatprep.subr.mxu1 %v9831_v39  ;;  %12763 = vmatprep.subr.mxu0 %v9734_v50 }
0x1a2a   :  { %12797 = vmatpush3.msra.mxu1 %v9831_v39  ;;  %12764 = vmatpush3.msra.mxu0 %v9734_v50  ;;  %v10120_v39 = vld [vmem:[#allocation28 + $0x100] sm:$0xff]  ;;  %v14987_v50 = vld [vmem:[#allocation10 + $0x78] sm:$0xff] }
0x1a2b   :  { %12798 = vmatprep.subr.mxu1 %v9830_v41  ;;  %12765 = vmatprep.subr.mxu0 %v9733_v18 }
0x1a2c   :  { %12799 = vmatpush3.msra.mxu1 %v9830_v41  ;;  %12766 = vmatpush3.msra.mxu0 %v9733_v18  ;;  %v14993_v41 = vld [vmem:[#allocation10 + $0x70] sm:$0xff]  ;;  %v14997_v18 = vld [vmem:[#allocation10 + $0x68] sm:$0xff] }
0x1a2d   :  { %12800 = vmatprep.subr.mxu1 %v9829_v24 }
0x1a2e   :  { %12801 = vmatpush3.msra.mxu1 %v9829_v24  ;;  %v15001_v24 = vld [vmem:[#allocation10 + $0x60] sm:$0xff] }
0x1ab4   :  { %v12704_v13 = vpop.f32.mrf.mxu1 }
0x1ab6   :  { %v9195_v3 = vpop.f32.mrf.mxu1 }
0x1ab7   :  { %v12699_v9 = vpop.f32.mrf.mxu0 }
0x1ab8   :  { %v9201_v30 = vadd.f32 %v12704_v13, %v12699_v9  ;;  %v13208_v9 = vld [vmem:[#allocation10 + $0x58] sm:$0xff]  ;;  %v13210_v13 = vld [vmem:[#allocation10 + $0x48] sm:$0xff] }
0x1ab9   :  { %v9111_v10 = vpop.f32.mrf.mxu0  ;;  %v12714_v38 = vpop.f32.mrf.mxu1 }
0x1aba   :  { %v9196_v6 = vadd.f32 %v9195_v3, %v9111_v10  ;;  %v13209_v10 = vld [vmem:[#allocation10 + $0x50] sm:$0xff]  ;;  %v13211_v3 = vld [vmem:[#allocation10 + $0x40] sm:$0xff] }
0x1abb   :  { %v12709_v36 = vpop.f32.mrf.mxu0  ;;  %v9369_v46 = vpop.f32.mrf.mxu1 }
0x1abc   :  { %v9291_v19 = vadd.f32 %v12709_v36, %v9201_v30  ;;  %v13212_v36 = vld [vmem:[#allocation10 + $0x38] sm:$0xff]  ;;  %v13213_v30 = vld [vmem:[#allocation10 + $0x30] sm:$0xff] }
0x1abd   :  { %v9281_v60 = vpop.f32.mrf.mxu0 }
0x1abe   :  { %v9290_v59 = vadd.f32 %v9281_v60, %v9196_v6  ;;  %v9379_v22 = vadd.f32 %v12714_v38, %v9291_v19  ;;  %v13214_v6 = vld [vmem:[#allocation10 + $0x28] sm:$0xff]  ;;  %v13215_v60 = vld [vmem:[#allocation10 + $0x20] sm:$0xff]  ;;  %v13216_v38 = vld [vmem:[#allocation10 + $0x18] sm:$0xff] }
0x1abf   :  { %v13217_v19 = vld [vmem:[#allocation10 + $0x10] sm:$0xff] }
0x1ac0   :  { %v9378_v32 = vadd.f32 %v9369_v46, %v9290_v59  ;;  %v13218_v59 = vld [vmem:[#allocation10 + $0x8] sm:$0xff]  ;;  %v13219_v46 = vld [vmem:[#allocation10] sm:$0xff] }
0x1ac8   :  { %v12719_v31 = vpop.f32.mrf.mxu0 }
0x1ac9   :  { %v9467_v25 = vadd.f32 %v12719_v31, %v9379_v22  ;;  %v11544_v22 = vld [vmem:[%s15370_s19 + $0x40] sm:$0xff] }
0x1aca   :  { %v9457_v33 = vpop.f32.mrf.mxu0 }
0x1acb   :  { %v9466_v16 = vadd.f32 %v9457_v33, %v9378_v32  ;;  %v12724_v37 = vpop.f32.mrf.mxu1 }
0x1acc   :  { %v9555_v34 = vadd.f32 %v12724_v37, %v9467_v25  ;;  %v12729_v17 = vpop.f32.mrf.mxu0 }
0x1acd   :  { %v9545_v12 = vpop.f32.mrf.mxu1 }
0x1ace   :  { %v9554_v48 = vadd.f32 %v9545_v12, %v9466_v16  ;;  %v9633_v55 = vpop.f32.mrf.mxu0  ;;  %v9643_v23 = vadd.f32 %v12729_v17, %v9555_v34  ;;  %v11545_v34 = vld [vmem:[%s15370_s19 + $0x48] sm:$0xff]  ;;  %v11546_v17 = vld [vmem:[%s15370_s19 + $0x50] sm:$0xff]  ;;  %v11547_v12 = vld [vmem:[%s15370_s19 + $0x58] sm:$0xff] }
0x1acf   :  { %v12734_v15 = vpop.f32.mrf.mxu1 }
0x1ad0   :  { %v9642_v47 = vadd.f32 %v9633_v55, %v9554_v48  ;;  %v14949_v45 = vadd.f32 %v12734_v15, %v9643_v23 }
0x1ad1   :  { %v9721_v43 = vpop.f32.mrf.mxu1 }
0x1ad2   :  { %v9730_v42 = vadd.f32 %v9721_v43, %v9642_v47 }
0x1ad4   :  { %12767 = vmatprep.mubr.f32.mxu0 %v9730_v42  ;;  %12802 = vmatprep.mubr.f32.mxu1 %v9730_v42 }
0x1ad5   :  { %12768 = vmatmul.mubr.f32.vlgmr.msra.gmra.mxu0 %v14949_v45  ;;  %12803 = vmatmul.mubr.f32.vlgmr.msra.gmra.mxu1 %v14949_v45 }
0x1ad6   :  { %12809 = vmatprep.mubr.msk.f32.mxu0 %vm1819_vm3, %v11532_v29  ;;  %12819 = vmatprep.mubr.msk.f32.mxu1 %vm1819_vm3, %v9824_v20 }
0x1b95   :  { %v12769_v14 = vpop.f32.mrf.mxu0  ;;  %v12804_v63 = vpop.f32.mrf.mxu1 }
0x1b96   :  { %12805 = vmatprep.subr.mxu0 %v12804_v63  ;;  %12815 = vmatprep.subr.mxu1 %v12769_v14 }
0x1b97   :  { %v9815_v51 = vpop.f32.mrf.mxu0  ;;  %v9911_v21 = vpop.f32.mrf.mxu1  ;;  %12806 = vmatpush3.msra.mxu0 %v12804_v63  ;;  %12816 = vmatpush3.msra.mxu1 %v12769_v14  ;;  %v11552_v14 = vld [vmem:[#allocation29] ss:$0 sm:$0xff] }
0x1b98   :  { %12807 = vmatprep.subr.mxu0 %v9911_v21  ;;  %12817 = vmatprep.subr.mxu1 %v9815_v51 }
0x1b99   :  { %12808 = vmatpush3.msra.mxu0 %v9911_v21  ;;  %12818 = vmatpush3.msra.mxu1 %v9815_v51 }
0x1b9a   :  { %12810 = vmatmul.mubr.msk.f32.vlgmr.msra.gmra.mxu0 %vm1819_vm3, %v11533_v26  ;;  %12820 = vmatmul.mubr.msk.f32.vlgmr.msra.gmra.mxu1 %vm1819_vm3, %v9825_v1 }
0x1b9b   :  { %12825 = vmatprep.subr.mxu0 %v10135_v5  ;;  %12812 = vmatprep.mubr.msk.f32.mxu0 %vm1819_vm3, %v11534_v7 }
0x1b9c   :  { %12826 = vmatpush3.msra.mxu0 %v10135_v5  ;;  %12822 = vmatprep.mubr.msk.f32.mxu1 %vm1819_vm3, %v9826_v49 }
0x1b9d   :  { %12827 = vmatprep.subr.mxu0 %v10134_v52 }
0x1b9e   :  { %12828 = vmatpush3.msra.mxu0 %v10134_v52  ;;  %12823 = vmatmul.mubr.msk.f32.gmra.mxu1 %vm1819_vm3, %v9827_v53 }
0x1b9f   :  { %12813 = vmatmul.mubr.msk.f32.gmra.mxu0 %vm1819_vm3, %v11535_v56  ;;  %12829 = vmatprep.subr.mxu0 %v10133_v2 }
0x1ba0   :  { %12830 = vmatpush3.msra.mxu0 %v10133_v2  ;;  %12857 = vmatprep.mubr.f32.mxu0 %v9730_v42 }
0x1ba1   :  { %12831 = vmatprep.subr.mxu0 %v10132_v54  ;;  %12864 = vmatprep.mubr.msk.f32.mxu1 %vm1819_vm3, %v11544_v22 }
0x1ba2   :  { %12832 = vmatpush3.msra.mxu0 %v10132_v54 }
0x1ba3   :  { %12833 = vmatprep.subr.mxu0 %v10131_v4 }
0x1ba4   :  { %12834 = vmatpush3.msra.mxu0 %v10131_v4 }
0x1ba5   :  { %12835 = vmatprep.subr.mxu0 %v10130_v27 }
0x1ba6   :  { %12836 = vmatpush3.msra.mxu0 %v10130_v27 }
0x1ba7   :  { %12837 = vmatprep.subr.mxu0 %v10129_v57 }
0x1ba8   :  { %12838 = vmatpush3.msra.mxu0 %v10129_v57 }
0x1ba9   :  { %12839 = vmatprep.subr.mxu0 %v10128_v44 }
0x1baa   :  { %12840 = vmatpush3.msra.mxu0 %v10128_v44 }
0x1bab   :  { %12841 = vmatprep.subr.mxu0 %v10127_v40 }
0x1bac   :  { %12842 = vmatpush3.msra.mxu0 %v10127_v40 }
0x1bad   :  { %12843 = vmatprep.subr.mxu0 %v10126_v61 }
0x1bae   :  { %12844 = vmatpush3.msra.mxu0 %v10126_v61 }
0x1baf   :  { %12845 = vmatprep.subr.mxu0 %v10125_v8 }
0x1bb0   :  { %12846 = vmatpush3.msra.mxu0 %v10125_v8  ;;  %v11570_v8 = vld [vmem:[%s15375_s24 + $0xf8] sm:$0xff] }
0x1bb1   :  { %12847 = vmatprep.subr.mxu0 %v10124_v35 }
0x1bb2   :  { %12848 = vmatpush3.msra.mxu0 %v10124_v35  ;;  %v10546_v35 = vld [vmem:[%s15375_s24 + $0x78] sm:$0xff] }
0x1bb3   :  { %12849 = vmatprep.subr.mxu0 %v10123_v28 }
0x1bb4   :  { %12850 = vmatpush3.msra.mxu0 %v10123_v28  ;;  %v10545_v28 = vld [vmem:[%s15375_s24 + $0x70] sm:$0xff] }
0x1bb5   :  { %12851 = vmatprep.subr.mxu0 %v10122_v0 }
0x1bb6   :  { %12852 = vmatpush3.msra.mxu0 %v10122_v0 }
0x1bb7   :  { %12853 = vmatprep.subr.mxu0 %v10121_v11 }
0x1bb8   :  { %12854 = vmatpush3.msra.mxu0 %v10121_v11 }
0x1bb9   :  { %12855 = vmatprep.subr.mxu0 %v10120_v39 }
0x1bba   :  { %12856 = vmatpush3.msra.mxu0 %v10120_v39 }
0x1bbb   :  { %12858 = vmatmul.mubr.f32.vlgmr.msra.gmra.mxu0 %v14949_v45  ;;  %12905 = vmatprep.subr.mxu0 %v13691_v58 }
0x1bbc   :  { %12906 = vmatpush3.msra.mxu0 %v14987_v50  ;;  %12937 = vmatprep.mubr.msk.f32.mxu0 %vm13692_vm1, %v13691_v58 }
0x1bbd   :  { %12907 = vmatprep.subr.mxu0 %v13691_v58 }
0x1bbe   :  { %12908 = vmatpush3.msra.mxu0 %v14993_v41 }
0x1bbf   :  { %12909 = vmatprep.subr.mxu0 %v13691_v58 }
0x1bc0   :  { %12910 = vmatpush3.msra.mxu0 %v14997_v18 }
0x1bc1   :  { %12911 = vmatprep.subr.mxu0 %v13691_v58 }
0x1bc2   :  { %12912 = vmatpush3.msra.mxu0 %v15001_v24 }
0x1bc3   :  { %12913 = vmatprep.subr.mxu0 %v13691_v58 }
0x1bc4   :  { %12914 = vmatpush3.msra.mxu0 %v13208_v9 }
0x1bc5   :  { %12915 = vmatprep.subr.mxu0 %v13691_v58 }
0x1bc6   :  { %12916 = vmatpush3.msra.mxu0 %v13209_v10 }
0x1bc7   :  { %12917 = vmatprep.subr.mxu0 %v13691_v58 }
0x1bc8   :  { %12918 = vmatpush3.msra.mxu0 %v13210_v13 }
0x1bc9   :  { %12919 = vmatprep.subr.mxu0 %v13691_v58 }
0x1bca   :  { %12920 = vmatpush3.msra.mxu0 %v13211_v3 }
0x1bcb   :  { %12921 = vmatprep.subr.mxu0 %v13691_v58 }
0x1bcc   :  { %12922 = vmatpush3.msra.mxu0 %v13212_v36 }
0x1bcd   :  { %12923 = vmatprep.subr.mxu0 %v13691_v58 }
0x1bce   :  { %12924 = vmatpush3.msra.mxu0 %v13213_v30 }
0x1bcf   :  { %12925 = vmatprep.subr.mxu0 %v13691_v58 }
0x1bd0   :  { %12926 = vmatpush3.msra.mxu0 %v13214_v6 }
0x1bd1   :  { %12927 = vmatprep.subr.mxu0 %v13691_v58 }
0x1bd2   :  { %12928 = vmatpush3.msra.mxu0 %v13215_v60 }
0x1bd3   :  { %12929 = vmatprep.subr.mxu0 %v13691_v58 }
0x1bd4   :  { %12930 = vmatpush3.msra.mxu0 %v13216_v38 }
0x1bd5   :  { %12931 = vmatprep.subr.mxu0 %v13691_v58 }
0x1bd6   :  { %12932 = vmatpush3.msra.mxu0 %v13217_v19 }
0x1bd7   :  { %12933 = vmatprep.subr.mxu0 %v13691_v58 }
0x1bd8   :  { %12934 = vmatpush3.msra.mxu0 %v13218_v59 }
0x1bd9   :  { %12935 = vmatprep.subr.mxu0 %v13691_v58 }
0x1bda   :  { %12936 = vmatpush3.msra.mxu0 %v13219_v46 }
0x1bdb   :  { %12978 = vmatprep.subr.mxu0 %v11570_v8 }
0x1c5a   :  { %v12811_v31 = vpop.f32.mrf.mxu0  ;;  %v12821_v48 = vpop.f32.mrf.mxu1 }
0x1c5b   :  { %v10106_v43 = vadd.f32 %v12821_v48, %v12811_v31  ;;  %v10541_v48 = vld [vmem:[%s15375_s24 + $0x50] sm:$0xff] }
0x1c5c   :  { %v10003_v32 = vpop.f32.mrf.mxu0  ;;  %v10100_v55 = vpop.f32.mrf.mxu1 }
0x1c5d   :  { %v10101_v42 = vadd.f32 %v10100_v55, %v10003_v32  ;;  %v11569_v32 = vld [vmem:[%s15375_s24 + $0xf0] sm:$0xff]  ;;  %v11564_v55 = vld [vmem:[%s15375_s24 + $0xc8] sm:$0xff] }
0x1c5e   :  { %v12824_v23 = vpop.f32.mrf.mxu1 }
0x1c5f   :  { %v12814_v25 = vpop.f32.mrf.mxu0 }
0x1c60   :  { %v10110_v15 = vpop.f32.mrf.mxu1  ;;  %v10116_v51 = vadd.f32 %v12824_v23, %v12814_v25  ;;  %v11568_v25 = vld [vmem:[%s15375_s24 + $0xe8] sm:$0xff] }
0x1c61   :  { %v10013_v33 = vpop.f32.mrf.mxu0  ;;  %v10540_v23 = vld [vmem:[%s15375_s24 + $0x48] sm:$0xff] }
0x1c62   :  { %v10111_v21 = vadd.f32 %v10110_v15, %v10013_v33  ;;  %v10544_v33 = vld [vmem:[%s15375_s24 + $0x68] sm:$0xff]  ;;  %v11563_v15 = vld [vmem:[%s15375_s24 + $0xc0] sm:$0xff] }
0x1c7b   :  { %v12859_v16 = vpop.f32.mrf.mxu0 }
0x1c7c   :  { %12860 = vmatprep.subr.mxu1 %v12859_v16 }
0x1c7d   :  { %v10202_v37 = vpop.f32.mrf.mxu0  ;;  %12861 = vmatpush3.msra.mxu1 %v12859_v16  ;;  %v11567_v16 = vld [vmem:[%s15375_s24 + $0xe0] sm:$0xff] }
0x1c7e   :  { %12862 = vmatprep.subr.mxu1 %v10202_v37 }
0x1c7f   :  { %12863 = vmatpush3.msra.mxu1 %v10202_v37  ;;  %v10543_v37 = vld [vmem:[%s15375_s24 + $0x60] sm:$0xff] }
0x1c80   :  { %12865 = vmatmul.mubr.msk.f32.vlgmr.msra.gmra.mxu1 %vm1819_vm3, %v11545_v34  ;;  %12870 = vmatprep.subr.mxu1 %v13691_v58  ;;  %v11566_v34 = vld [vmem:[%s15375_s24 + $0xd8] sm:$0xff] }
0x1c81   :  { %12867 = vmatprep.mubr.msk.f32.mxu1 %vm1819_vm3, %v11546_v17  ;;  %12871 = vmatpush3.msra.mxu1 %v14987_v50  ;;  %v10542_v17 = vld [vmem:[%s15375_s24 + $0x58] sm:$0xff] }
0x1c82   :  { %12872 = vmatprep.subr.mxu1 %v13691_v58 }
0x1c83   :  { %12873 = vmatpush3.msra.mxu1 %v14993_v41 }
0x1c84   :  { %12868 = vmatmul.mubr.msk.f32.gmra.mxu1 %vm1819_vm3, %v11547_v12  ;;  %12874 = vmatprep.subr.mxu1 %v13691_v58  ;;  %v11565_v12 = vld [vmem:[%s15375_s24 + $0xd0] sm:$0xff] }
0x1c85   :  { %12875 = vmatpush3.msra.mxu1 %v14997_v18  ;;  %12902 = vmatprep.mubr.msk.f32.mxu1 %vm13692_vm1, %v13691_v58 }
0x1c86   :  { %12876 = vmatprep.subr.mxu1 %v13691_v58 }
0x1c87   :  { %12877 = vmatpush3.msra.mxu1 %v15001_v24 }
0x1c88   :  { %12878 = vmatprep.subr.mxu1 %v13691_v58 }
0x1c89   :  { %12879 = vmatpush3.msra.mxu1 %v13208_v9 }
0x1c8a   :  { %12880 = vmatprep.subr.mxu1 %v13691_v58 }
0x1c8b   :  { %12881 = vmatpush3.msra.mxu1 %v13209_v10 }
0x1c8c   :  { %12882 = vmatprep.subr.mxu1 %v13691_v58 }
0x1c8d   :  { %12883 = vmatpush3.msra.mxu1 %v13210_v13 }
0x1c8e   :  { %12884 = vmatprep.subr.mxu1 %v13691_v58 }
0x1c8f   :  { %12885 = vmatpush3.msra.mxu1 %v13211_v3 }
0x1c90   :  { %12886 = vmatprep.subr.mxu1 %v13691_v58 }
0x1c91   :  { %12887 = vmatpush3.msra.mxu1 %v13212_v36 }
0x1c92   :  { %12888 = vmatprep.subr.mxu1 %v13691_v58 }
0x1c93   :  { %12889 = vmatpush3.msra.mxu1 %v13213_v30 }
0x1c94   :  { %12890 = vmatprep.subr.mxu1 %v13691_v58 }
0x1c95   :  { %12891 = vmatpush3.msra.mxu1 %v13214_v6 }
0x1c96   :  { %12892 = vmatprep.subr.mxu1 %v13691_v58 }
0x1c97   :  { %12893 = vmatpush3.msra.mxu1 %v13215_v60 }
0x1c98   :  { %12894 = vmatprep.subr.mxu1 %v13691_v58 }
0x1c99   :  { %12895 = vmatpush3.msra.mxu1 %v13216_v38 }
0x1c9a   :  { %12896 = vmatprep.subr.mxu1 %v13691_v58 }
0x1c9b   :  { %12897 = vmatpush3.msra.mxu1 %v13217_v19 }
0x1c9c   :  { %12898 = vmatprep.subr.mxu1 %v13691_v58 }
0x1c9d   :  { %12899 = vmatpush3.msra.mxu1 %v13218_v59 }
0x1c9e   :  { %12900 = vmatprep.subr.mxu1 %v13691_v58 }
0x1c9f   :  { %12901 = vmatpush3.msra.mxu1 %v13219_v46 }
0x1ca0   :  { %12940 = vmatprep.subr.mxu1 %v10546_v35 }
0x1d40   :  { %v12866_v47 = vpop.f32.mrf.mxu1 }
0x1d41   :  { %v10314_v29 = vadd.f32 %v12866_v47, %v10106_v43  ;;  %v10539_v47 = vld [vmem:[%s15375_s24 + $0x40] sm:$0xff]  ;;  %v11562_v43 = vld [vmem:[%s15375_s24 + $0xb8] sm:$0xff] }
0x1d42   :  { %v10294_v45 = vpop.f32.mrf.mxu1 }
0x1d43   :  { %v10313_v20 = vadd.f32 %v10294_v45, %v10101_v42  ;;  %v10324_v5 = vadd.f32 %v11552_v14, %v10314_v29  ;;  %v10538_v42 = vld [vmem:[%s15375_s24 + $0x38] sm:$0xff]  ;;  %v11561_v45 = vld [vmem:[%s15375_s24 + $0xb0] sm:$0xff] }
0x1d44   :  { %v12869_v63 = vpop.f32.mrf.mxu1  ;;  %v10537_v29 = vld [vmem:[%s15375_s24 + $0x30] sm:$0xff] }
0x1d45   :  { %v10323_v26 = vadd.f32 %v11552_v14, %v10313_v20  ;;  %v10316_v7 = vadd.f32 %v12869_v63, %v10116_v51  ;;  %v11560_v20 = vld [vmem:[%s15375_s24 + $0xa8] sm:$0xff]  ;;  %v11559_v63 = vld [vmem:[%s15375_s24 + $0xa0] sm:$0xff] }
0x1d46   :  { %v10304_v1 = vpop.f32.mrf.mxu1  ;;  %v10535_v51 = vld [vmem:[%s15375_s24 + $0x20] sm:$0xff] }
0x1d47   :  { %v10315_v58 = vadd.f32 %v10304_v1, %v10111_v21  ;;  %v10329_v49 = vadd.f32 %v10324_v5, %v10323_v26  ;;  %v10326_v53 = vadd.f32 %v11552_v14, %v10316_v7  ;;  %v11558_v21 = vld [vmem:[%s15375_s24 + $0x98] sm:$0xff]  ;;  %v11557_v1 = vld [vmem:[%s15375_s24 + $0x90] sm:$0xff]  ;;  %v11556_v7 = vld [vmem:[%s15375_s24 + $0x88] sm:$0xff] }
0x1d49   :  { %v10325_v52 = vadd.f32 %v11552_v14, %v10315_v58  ;;  %v10536_v14 = vld [vmem:[%s15375_s24 + $0x28] sm:$0xff] }
0x1d4a   :  { %v10532_v58 = vld [vmem:[%s15375_s24 + $0x8] sm:$0xff] }
0x1d4b   :  { %v10330_v56 = vadd.f32 %v10329_v49, %v10325_v52  ;;  %v11555_v49 = vld [vmem:[%s15375_s24 + $0x80] sm:$0xff] }
0x1d4d   :  { %v10331_v2 = vadd.f32 %v10330_v56, %v10326_v53 }
0x1d4f   :  { %v10332_v54 = vrot.slane %v10331_v2, 4 }
0x1d51   :  { %v10333_v4 = vadd.f32 %v10332_v54, %v10331_v2 }
0x1d53   :  { %v10334_v27 = vrot.slane %v10333_v4, 2 }
0x1d55   :  { %v10335_v57 = vadd.f32 %v10334_v27, %v10333_v4 }
0x1d57   :  { %v10336_v44 = vrot.slane %v10335_v57, 1 }
0x1d59   :  { %v10337_v40 = vadd.f32 %v10336_v44, %v10335_v57  ;;  %v11553_v57 = vld [vmem:[#allocation31] ss:$0 sm:$0xff] }
0x1d5b   :  { %v10338_v61 = vmul.f32 0.03125, %v10337_v40 }
0x1d5d   :  { %12903 = vmatmul.mubr.f32.vlgmr.msra.gmra.mxu1 %v10338_v61 }
0x1d5e   :  { %12941 = vmatpush3.msra.mxu1 %v10546_v35  ;;  %v11554_v35 = vld [vmem:[#allocation31 + $0x1] ss:$0 sm:$0xff] }
0x1d5f   :  { %12942 = vmatprep.subr.mxu1 %v10545_v28 }
0x1d60   :  { %12943 = vmatpush3.msra.mxu1 %v10545_v28 }
0x1d61   :  { %12944 = vmatprep.subr.mxu1 %v10544_v33 }
0x1d62   :  { %12945 = vmatpush3.msra.mxu1 %v10544_v33  ;;  %v11596_v33 = vld [vmem:[%s15375_s24 + $0x108] sm:$0xff] }
0x1d63   :  { %12946 = vmatprep.subr.mxu1 %v10543_v37 }
0x1d64   :  { %12947 = vmatpush3.msra.mxu1 %v10543_v37  ;;  %v11571_v37 = vld [vmem:[%s15374_s23 + $0x40] sm:$0xff] }
0x1d65   :  { %12948 = vmatprep.subr.mxu1 %v10542_v17 }
0x1d66   :  { %12949 = vmatpush3.msra.mxu1 %v10542_v17 }
0x1d67   :  { %12950 = vmatprep.subr.mxu1 %v10541_v48 }
0x1d68   :  { %12951 = vmatpush3.msra.mxu1 %v10541_v48 }
0x1d69   :  { %12952 = vmatprep.subr.mxu1 %v10540_v23 }
0x1d6a   :  { %12953 = vmatpush3.msra.mxu1 %v10540_v23 }
0x1d6b   :  { %12954 = vmatprep.subr.mxu1 %v10539_v47 }
0x1d6c   :  { %12955 = vmatpush3.msra.mxu1 %v10539_v47  ;;  %v11572_v47 = vld [vmem:[%s15374_s23 + $0x48] sm:$0xff] }
0x1d6d   :  { %12956 = vmatprep.subr.mxu1 %v10538_v42 }
0x1d6e   :  { %12957 = vmatpush3.msra.mxu1 %v10538_v42 }
0x1d6f   :  { %12958 = vmatprep.subr.mxu1 %v10537_v29 }
0x1d70   :  { %12959 = vmatpush3.msra.mxu1 %v10537_v29  ;;  %v11575_v29 = vld [vmem:[%s15374_s23 + $0x60] sm:$0xff] }
0x1d71   :  { %12960 = vmatprep.subr.mxu1 %v10536_v14 }
0x1d72   :  { %12961 = vmatpush3.msra.mxu1 %v10536_v14  ;;  %v11577_v14 = vld [vmem:[%s15374_s23 + $0x70] sm:$0xff] }
0x1d73   :  { %12962 = vmatprep.subr.mxu1 %v10535_v51 }
0x1d74   :  { %12963 = vmatpush3.msra.mxu1 %v10535_v51  ;;  %v10632_v51 = vld [vmem:[%s15374_s23] sm:$0xff] }
0x1e1d   :  { %v10405_v0 = vpop.f32.mrf.mxu1 }
0x1e1e   :  { %v10412_v11 = vrot.slane %v10405_v0, %v14071_v62 }
0x1e1f   :  { %v12904_v39 = vpop.f32.mrf.mxu1 }
0x1e20   :  { %v15064_v50 = vsub.f32 %v10323_v26, %v10412_v11  ;;  %v15066_v41 = vsub.f32 %v10324_v5, %v10412_v11  ;;  %v15068_v18 = vsub.f32 %v10325_v52, %v10412_v11  ;;  %v15070_v24 = vsub.f32 %v10326_v53, %v10412_v11  ;;  %v10534_v26 = vld [vmem:[%s15375_s24 + $0x18] sm:$0xff]  ;;  %v10533_v5 = vld [vmem:[%s15375_s24 + $0x10] sm:$0xff]  ;;  %v10531_v52 = vld [vmem:[%s15375_s24] sm:$0xff] }
0x1e21   :  { %12964 = vmatprep.subr.mxu1 %v10534_v26  ;;  %v11610_v53 = vld [vmem:[%s15375_s24 + $0x178] sm:$0xff] }
0x1e22   :  { %v10417_v9 = vmul.f32 %v15064_v50, %v15064_v50  ;;  %v10418_v10 = vmul.f32 %v15066_v41, %v15066_v41  ;;  %v10419_v13 = vmul.f32 %v15068_v18, %v15068_v18  ;;  %v10420_v36 = vmul.f32 %v15070_v24, %v15070_v24  ;;  %12965 = vmatpush3.msra.mxu1 %v10534_v26  ;;  %v10634_v26 = vld [vmem:[%s15374_s23 + $0x10] sm:$0xff] }
0x1e23   :  { %12966 = vmatprep.subr.mxu1 %v10533_v5 }
0x1e24   :  { %v10421_v3 = vadd.f32 %v10418_v10, %v10417_v9  ;;  %12967 = vmatpush3.msra.mxu1 %v10533_v5  ;;  %v10636_v5 = vld [vmem:[%s15374_s23 + $0x20] sm:$0xff] }
0x1e25   :  { %12968 = vmatprep.subr.mxu1 %v10532_v58 }
0x1e26   :  { %v10422_v30 = vadd.f32 %v10421_v3, %v10419_v13  ;;  %12969 = vmatpush3.msra.mxu1 %v10532_v58 }
0x1e27   :  { %12970 = vmatprep.subr.mxu1 %v10531_v52 }
0x1e28   :  { %v10423_v6 = vadd.f32 %v10422_v30, %v10420_v36  ;;  %12971 = vmatpush3.msra.mxu1 %v10531_v52  ;;  %v11607_v30 = vld [vmem:[%s15375_s24 + $0x160] sm:$0xff]  ;;  %v10638_v52 = vld [vmem:[%s15374_s23 + $0x30] sm:$0xff] }
0x1e2a   :  { %v10424_v60 = vrot.slane %v10423_v6, 4 }
0x1e2c   :  { %v10425_v38 = vadd.f32 %v10424_v60, %v10423_v6  ;;  %v11606_v6 = vld [vmem:[%s15375_s24 + $0x158] sm:$0xff]  ;;  %v11605_v60 = vld [vmem:[%s15375_s24 + $0x150] sm:$0xff] }
0x1e2e   :  { %v10426_v19 = vrot.slane %v10425_v38, 2 }
0x1e30   :  { %v10427_v59 = vadd.f32 %v10426_v19, %v10425_v38  ;;  %v11604_v38 = vld [vmem:[%s15375_s24 + $0x148] sm:$0xff]  ;;  %v11603_v19 = vld [vmem:[%s15375_s24 + $0x140] sm:$0xff] }
0x1e32   :  { %v10428_v46 = vrot.slane %v10427_v59, 1 }
0x1e34   :  { %v10429_v22 = vadd.f32 %v10428_v46, %v10427_v59  ;;  %v11602_v59 = vld [vmem:[%s15375_s24 + $0x138] sm:$0xff]  ;;  %v11601_v46 = vld [vmem:[%s15375_s24 + $0x130] sm:$0xff] }
0x1e36   :  { %v10430_v31 = vmul.f32 0.03125, %v10429_v22  ;;  %v11600_v22 = vld [vmem:[%s15375_s24 + $0x128] sm:$0xff] }
0x1e38   :  { %12938 = vmatmul.mubr.f32.vlgmr.msra.gmra.mxu0 %v10430_v31  ;;  %v11599_v31 = vld [vmem:[%s15375_s24 + $0x120] sm:$0xff] }
0x1e39   :  { %12979 = vmatpush3.msra.mxu0 %v11570_v8 }
0x1e3a   :  { %12980 = vmatprep.subr.mxu0 %v11569_v32 }
0x1e3b   :  { %12981 = vmatpush3.msra.mxu0 %v11569_v32  ;;  %v11598_v32 = vld [vmem:[%s15375_s24 + $0x118] sm:$0xff] }
0x1e3c   :  { %12982 = vmatprep.subr.mxu0 %v11568_v25 }
0x1e3d   :  { %12983 = vmatpush3.msra.mxu0 %v11568_v25  ;;  %v11597_v25 = vld [vmem:[%s15375_s24 + $0x110] sm:$0xff] }
0x1e3e   :  { %12984 = vmatprep.subr.mxu0 %v11567_v16 }
0x1e3f   :  { %12985 = vmatpush3.msra.mxu0 %v11567_v16  ;;  %v11595_v16 = vld [vmem:[%s15375_s24 + $0x100] sm:$0xff] }
0x1e40   :  { %12986 = vmatprep.subr.mxu0 %v11566_v34 }
0x1e41   :  { %12987 = vmatpush3.msra.mxu0 %v11566_v34 }
0x1e42   :  { %12988 = vmatprep.subr.mxu0 %v11565_v12 }
0x1e43   :  { %12989 = vmatpush3.msra.mxu0 %v11565_v12 }
0x1e44   :  { %12990 = vmatprep.subr.mxu0 %v11564_v55 }
0x1e45   :  { %12991 = vmatpush3.msra.mxu0 %v11564_v55 }
0x1e46   :  { %12992 = vmatprep.subr.mxu0 %v11563_v15 }
0x1e47   :  { %12993 = vmatpush3.msra.mxu0 %v11563_v15 }
0x1e48   :  { %12994 = vmatprep.subr.mxu0 %v11562_v43 }
0x1e49   :  { %12995 = vmatpush3.msra.mxu0 %v11562_v43  ;;  %v11573_v43 = vld [vmem:[%s15374_s23 + $0x50] sm:$0xff] }
0x1e4a   :  { %12996 = vmatprep.subr.mxu0 %v11561_v45 }
0x1e4b   :  { %12997 = vmatpush3.msra.mxu0 %v11561_v45  ;;  %v11574_v45 = vld [vmem:[%s15374_s23 + $0x58] sm:$0xff] }
0x1e4c   :  { %12998 = vmatprep.subr.mxu0 %v11560_v20 }
0x1e4d   :  { %12999 = vmatpush3.msra.mxu0 %v11560_v20  ;;  %v11576_v20 = vld [vmem:[%s15374_s23 + $0x68] sm:$0xff] }
0x1e4e   :  { %13000 = vmatprep.subr.mxu0 %v11559_v63 }
0x1e4f   :  { %13001 = vmatpush3.msra.mxu0 %v11559_v63  ;;  %v11578_v63 = vld [vmem:[%s15374_s23 + $0x78] sm:$0xff] }
0x1e50   :  { %13002 = vmatprep.subr.mxu0 %v11558_v21 }
0x1e51   :  { %13003 = vmatpush3.msra.mxu0 %v11558_v21  ;;  %v10633_v21 = vld [vmem:[%s15374_s23 + $0x8] sm:$0xff] }
0x1e52   :  { %13004 = vmatprep.subr.mxu0 %v11557_v1 }
0x1e53   :  { %13005 = vmatpush3.msra.mxu0 %v11557_v1  ;;  %v10635_v1 = vld [vmem:[%s15374_s23 + $0x18] sm:$0xff] }
0x1e54   :  { %13006 = vmatprep.subr.mxu0 %v11556_v7 }
0x1e55   :  { %13007 = vmatpush3.msra.mxu0 %v11556_v7 }
0x1e56   :  { %13008 = vmatprep.subr.mxu0 %v11555_v49 }
0x1e57   :  { %13009 = vmatpush3.msra.mxu0 %v11555_v49  ;;  %v10637_v49 = vld [vmem:[%s15374_s23 + $0x28] sm:$0xff] }
0x1e58   :  { %13056 = vmatprep.subr.mxu0 %v11610_v53 }
0x1ef8   :  { %v10497_v56 = vpop.f32.mrf.mxu0 }
0x1ef9   :  { %v10498_v2 = vadd.f32 1e-05, %v10497_v56 }
0x1efa   :  { %v12939_v54 = vpop.f32.mrf.mxu0 }
0x1efb   :  { %13170 = vrsqrt.f32 %v10498_v2  ;;  %v10639_v2 = vld [vmem:[%s15374_s23 + $0x38] sm:$0xff]  ;;  %v11611_v54 = vld [vmem:[%s15374_s23 + $0x80] sm:$0xff] }
0x1f08   :  { %v13171_v4 = vpop.eup %13170 }
0x1f09   :  { %v10505_v27 = vrot.slane %v13171_v4, %v14071_v62  ;;  %v11612_v4 = vld [vmem:[%s15374_s23 + $0x88] sm:$0xff] }
0x1f0b   :  { %v10506_v44 = vmul.f32 %v10505_v27, %v15064_v50  ;;  %v10507_v40 = vmul.f32 %v10505_v27, %v15066_v41  ;;  %v10508_v61 = vmul.f32 %v10505_v27, %v15068_v18  ;;  %v10509_v8 = vmul.f32 %v10505_v27, %v15070_v24  ;;  %v11609_v41 = vld [vmem:[%s15375_s24 + $0x170] sm:$0xff]  ;;  %v11608_v18 = vld [vmem:[%s15375_s24 + $0x168] sm:$0xff] }
0x1f0c   :  { %v11613_v27 = vld [vmem:[%s15374_s23 + $0x90] sm:$0xff] }
0x1f0d   :  { %v10514_v28 = vmul.f32 %v11553_v57, %v10506_v44  ;;  %v10515_v0 = vmul.f32 %v11553_v57, %v10507_v40  ;;  %v10516_v11 = vmul.f32 %v11553_v57, %v10508_v61  ;;  %v10517_v39 = vmul.f32 %v11553_v57, %v10509_v8  ;;  %v11614_v57 = vld [vmem:[%s15374_s23 + $0x98] sm:$0xff]  ;;  %v11615_v44 = vld [vmem:[%s15374_s23 + $0xa0] sm:$0xff]  ;;  %v11616_v40 = vld [vmem:[%s15374_s23 + $0xa8] sm:$0xff] }
0x1f0e   :  { %v11617_v61 = vld [vmem:[%s15374_s23 + $0xb0] sm:$0xff]  ;;  %v11618_v8 = vld [vmem:[%s15374_s23 + $0xb8] sm:$0xff] }
0x1f0f   :  { %v10522_v9 = vadd.f32 %v11554_v35, %v10514_v28  ;;  %v10523_v10 = vadd.f32 %v11554_v35, %v10515_v0  ;;  %v10524_v13 = vadd.f32 %v11554_v35, %v10516_v11  ;;  %v10525_v62 = vadd.f32 %v11554_v35, %v10517_v39 }
0x1f11   :  { %v10526_v3 = vmax.f32 %v10522_v9, 0.0  ;;  %v10527_v36 = vmax.f32 %v10523_v10, 0.0  ;;  %v10528_v50 = vmax.f32 %v10524_v13, 0.0  ;;  %v10529_v24 = vmax.f32 %v10525_v62, 0.0 }
0x1f13   :  { %12972 = vmatprep.mubr.f32.mxu1 %v10526_v3  ;;  %13010 = vmatprep.mubr.f32.mxu0 %v10526_v3 }
0x1f14   :  { %12973 = vmatmul.mubr.f32.vlgmr.msra.gmra.mxu1 %v10527_v36  ;;  %13011 = vmatmul.mubr.f32.vlgmr.msra.gmra.mxu0 %v10527_v36 }
0x1f15   :  { %13057 = vmatpush3.msra.mxu0 %v11610_v53  ;;  %12975 = vmatprep.mubr.f32.mxu1 %v10528_v50 }
0x1f16   :  { %13013 = vmatprep.mubr.f32.mxu0 %v10528_v50  ;;  %13058 = vmatprep.subr.mxu0 %v11609_v41 }
0x1f17   :  { %13059 = vmatpush3.msra.mxu0 %v11609_v41 }
0x1f18   :  { %13060 = vmatprep.subr.mxu0 %v11608_v18  ;;  %12976 = vmatmul.mubr.f32.gmra.mxu1 %v10529_v24 }
0x1f19   :  { %13014 = vmatmul.mubr.f32.gmra.mxu0 %v10529_v24  ;;  %13024 = vmatprep.mubr.msk.f32.mxu1 %vm1459_vm2, %v11571_v37 }
0x1f1a   :  { %13061 = vmatpush3.msra.mxu0 %v11608_v18  ;;  %13088 = vmatprep.mubr.f32.mxu0 %v10526_v3 }
0x1f1b   :  { %13062 = vmatprep.subr.mxu0 %v11607_v30 }
0x1f1c   :  { %13063 = vmatpush3.msra.mxu0 %v11607_v30 }
0x1f1d   :  { %13064 = vmatprep.subr.mxu0 %v11606_v6 }
0x1f1e   :  { %13065 = vmatpush3.msra.mxu0 %v11606_v6 }
0x1f1f   :  { %13066 = vmatprep.subr.mxu0 %v11605_v60 }
0x1f20   :  { %13067 = vmatpush3.msra.mxu0 %v11605_v60 }
0x1f21   :  { %13068 = vmatprep.subr.mxu0 %v11604_v38 }
0x1f22   :  { %13069 = vmatpush3.msra.mxu0 %v11604_v38 }
0x1f23   :  { %13070 = vmatprep.subr.mxu0 %v11603_v19 }
0x1f24   :  { %13071 = vmatpush3.msra.mxu0 %v11603_v19 }
0x1f25   :  { %13072 = vmatprep.subr.mxu0 %v11602_v59 }
0x1f26   :  { %13073 = vmatpush3.msra.mxu0 %v11602_v59 }
0x1f27   :  { %13074 = vmatprep.subr.mxu0 %v11601_v46 }
0x1f28   :  { %13075 = vmatpush3.msra.mxu0 %v11601_v46 }
0x1f29   :  { %13076 = vmatprep.subr.mxu0 %v11600_v22 }
0x1f2a   :  { %13077 = vmatpush3.msra.mxu0 %v11600_v22 }
0x1f2b   :  { %13078 = vmatprep.subr.mxu0 %v11599_v31 }
0x1f2c   :  { %13079 = vmatpush3.msra.mxu0 %v11599_v31 }
0x1f2d   :  { %13080 = vmatprep.subr.mxu0 %v11598_v32 }
0x1f2e   :  { %13081 = vmatpush3.msra.mxu0 %v11598_v32 }
0x1f2f   :  { %13082 = vmatprep.subr.mxu0 %v11597_v25 }
0x1f30   :  { %13083 = vmatpush3.msra.mxu0 %v11597_v25 }
0x1f31   :  { %13084 = vmatprep.subr.mxu0 %v11596_v33 }
0x1f32   :  { %13085 = vmatpush3.msra.mxu0 %v11596_v33 }
0x1f33   :  { %13086 = vmatprep.subr.mxu0 %v11595_v16 }
0x1f34   :  { %13087 = vmatpush3.msra.mxu0 %v11595_v16 }
0x1f35   :  { %13089 = vmatmul.mubr.f32.vlgmr.msra.gmra.mxu0 %v10527_v36 }
0x1f36   :  { %13091 = vmatprep.mubr.f32.mxu0 %v10528_v50 }
0x1f39   :  { %13092 = vmatmul.mubr.f32.gmra.mxu0 %v10529_v24 }
0x1fd4   :  { %v13012_v34 = vpop.f32.mrf.mxu0  ;;  %v12974_v12 = vpop.f32.mrf.mxu1 }
0x1fd6   :  { %v10723_v17 = vpop.f32.mrf.mxu0  ;;  %v10613_v55 = vpop.f32.mrf.mxu1 }
0x1fd8   :  { %v12977_v15 = vpop.f32.mrf.mxu1 }
0x1fd9   :  { %v13015_v48 = vpop.f32.mrf.mxu0 }
0x1fda   :  { %13016 = vmatprep.subr.mxu1 %v13015_v48  ;;  %v10623_v42 = vpop.f32.mrf.mxu1 }
0x1fdb   :  { %v10733_v23 = vpop.f32.mrf.mxu0  ;;  %13017 = vmatpush3.msra.mxu1 %v13015_v48 }
0x1fdc   :  { %13018 = vmatprep.subr.mxu1 %v10733_v23 }
0x1fdd   :  { %13019 = vmatpush3.msra.mxu1 %v10733_v23 }
0x1fde   :  { %13020 = vmatprep.subr.mxu1 %v13012_v34 }
0x1fdf   :  { %13021 = vmatpush3.msra.mxu1 %v13012_v34 }
0x1fe0   :  { %13022 = vmatprep.subr.mxu1 %v10723_v17 }
0x1fe1   :  { %13023 = vmatpush3.msra.mxu1 %v10723_v17 }
0x1fe2   :  { %13025 = vmatmul.mubr.msk.f32.vlgmr.msra.gmra.mxu1 %vm1459_vm2, %v11572_v47  ;;  %13036 = vmatprep.subr.mxu1 %v12977_v15 }
0x1fe3   :  { %13037 = vmatpush3.msra.mxu1 %v12977_v15  ;;  %13027 = vmatprep.mubr.msk.f32.mxu1 %vm1459_vm2, %v11573_v43 }
0x1fe4   :  { %13038 = vmatprep.subr.mxu1 %v10623_v42 }
0x1fe5   :  { %13039 = vmatpush3.msra.mxu1 %v10623_v42 }
0x1fe6   :  { %13028 = vmatmul.mubr.msk.f32.gmra.mxu1 %vm1459_vm2, %v11574_v45  ;;  %13040 = vmatprep.subr.mxu1 %v12974_v12 }
0x1fe7   :  { %13041 = vmatpush3.msra.mxu1 %v12974_v12  ;;  %13030 = vmatprep.mubr.msk.f32.mxu1 %vm1459_vm2, %v11575_v29 }
0x1fe8   :  { %13042 = vmatprep.subr.mxu1 %v10613_v55 }
0x1fe9   :  { %13043 = vmatpush3.msra.mxu1 %v10613_v55 }
0x1fea   :  { %13031 = vmatmul.mubr.msk.f32.gmra.mxu1 %vm1459_vm2, %v11576_v20 }
0x1feb   :  { %13033 = vmatprep.mubr.msk.f32.mxu1 %vm1459_vm2, %v11577_v14 }
0x1fee   :  { %13034 = vmatmul.mubr.msk.f32.gmra.mxu1 %vm1459_vm2, %v11578_v63 }
0x1fef   :  { %13044 = vmatprep.mubr.msk.f32.mxu1 %vm1459_vm2, %v10632_v51 }
0x1ff2   :  { %13045 = vmatmul.mubr.msk.f32.vlgmr.msra.gmra.mxu1 %vm1459_vm2, %v10633_v21 }
0x1ff3   :  { %13047 = vmatprep.mubr.msk.f32.mxu1 %vm1459_vm2, %v10634_v26 }
0x1ff5   :  { %v13090_v7 = vpop.f32.mrf.mxu0 }
0x1ff6   :  { %13048 = vmatmul.mubr.msk.f32.gmra.mxu1 %vm1459_vm2, %v10635_v1 }
0x1ff7   :  { %v11092_v58 = vpop.f32.mrf.mxu0  ;;  %13050 = vmatprep.mubr.msk.f32.mxu1 %vm1459_vm2, %v10636_v5 }
0x1ff9   :  { %v13093_v53 = vpop.f32.mrf.mxu0 }
0x1ffa   :  { %13094 = vmatprep.subr.mxu1 %v13093_v53  ;;  %13051 = vmatmul.mubr.msk.f32.gmra.mxu1 %vm1459_vm2, %v10637_v49 }
0x1ffb   :  { %v11102_v56 = vpop.f32.mrf.mxu0  ;;  %13095 = vmatpush3.msra.mxu1 %v13093_v53  ;;  %13053 = vmatprep.mubr.msk.f32.mxu1 %vm1459_vm2, %v10638_v52 }
0x1ffc   :  { %13096 = vmatprep.subr.mxu1 %v11102_v56 }
0x1ffd   :  { %13097 = vmatpush3.msra.mxu1 %v11102_v56 }
0x1ffe   :  { %13098 = vmatprep.subr.mxu1 %v13090_v7  ;;  %13054 = vmatmul.mubr.msk.f32.gmra.mxu1 %vm1459_vm2, %v10639_v2 }
0x1fff   :  { %13099 = vmatpush3.msra.mxu1 %v13090_v7  ;;  %13102 = vmatprep.mubr.msk.f32.mxu1 %vm1459_vm2, %v11611_v54 }
0x2000   :  { %13100 = vmatprep.subr.mxu1 %v11092_v58 }
0x2001   :  { %13101 = vmatpush3.msra.mxu1 %v11092_v58 }
0x2002   :  { %13103 = vmatmul.mubr.msk.f32.vlgmr.msra.gmra.mxu1 %vm1459_vm2, %v11612_v4 }
0x2003   :  { %13105 = vmatprep.mubr.msk.f32.mxu1 %vm1459_vm2, %v11613_v27 }
0x2006   :  { %13106 = vmatmul.mubr.msk.f32.gmra.mxu1 %vm1459_vm2, %v11614_v57 }
0x2007   :  { %13108 = vmatprep.mubr.msk.f32.mxu1 %vm1459_vm2, %v11615_v44 }
0x200a   :  { %13109 = vmatmul.mubr.msk.f32.gmra.mxu1 %vm1459_vm2, %v11616_v40 }
0x200b   :  { %13111 = vmatprep.mubr.msk.f32.mxu1 %vm1459_vm2, %v11617_v61 }
0x200e   :  { %13112 = vmatmul.mubr.msk.f32.gmra.mxu1 %vm1459_vm2, %v11618_v8 }
0x200f   :  { %13631 = shalt.err (!%p13628_p6)
}
0x2010   :  { %11338 = dma.vmem_to_hbm [thread:$0]  %s11336_s12, 16, %s15378_s27, [#allocation4]   ;;  %v11627_v60 = vld [vmem:[#allocation32] ss:$0 sm:$0xff] }
0x2011   :  { %s15406_s28 = sld [smem:[#allocation59_spill]] }
0x20a2   :  { %v13026_v35 = vpop.f32.mrf.mxu1 }
0x20a4   :  { %v10841_v28 = vpop.f32.mrf.mxu1 }
0x20a6   :  { %v13029_v0 = vpop.f32.mrf.mxu1 }
0x20a8   :  { %v10851_v11 = vpop.f32.mrf.mxu1 }
0x20aa   :  { %v13032_v39 = vpop.f32.mrf.mxu1 }
0x20ac   :  { %v10861_v9 = vpop.f32.mrf.mxu1 }
0x20ae   :  { %v13035_v10 = vpop.f32.mrf.mxu1 }
0x20b0   :  { %v10871_v13 = vpop.f32.mrf.mxu1 }
0x20b2   :  { %v13046_v3 = vpop.f32.mrf.mxu1 }
0x20b3   :  { %v10976_v6 = vadd.f32 %v13046_v3, %v13026_v35 }
0x20b4   :  { %v10970_v36 = vpop.f32.mrf.mxu1 }
0x20b5   :  { %v10971_v19 = vadd.f32 %v10970_v36, %v10841_v28 }
0x20b6   :  { %v13049_v62 = vpop.f32.mrf.mxu1 }
0x20b7   :  { %v10986_v22 = vadd.f32 %v13049_v62, %v13029_v0 }
0x20b8   :  { %v10980_v50 = vpop.f32.mrf.mxu1 }
0x20b9   :  { %v10981_v33 = vadd.f32 %v10980_v50, %v10851_v11 }
0x20ba   :  { %v13052_v41 = vpop.f32.mrf.mxu1 }
0x20bb   :  { %v10996_v17 = vadd.f32 %v13052_v41, %v13032_v39 }
0x20bc   :  { %v10990_v18 = vpop.f32.mrf.mxu1 }
0x20bd   :  { %v10991_v15 = vadd.f32 %v10990_v18, %v10861_v9 }
0x20be   :  { %v13055_v24 = vpop.f32.mrf.mxu1 }
0x20bf   :  { %v11006_v29 = vadd.f32 %v13055_v24, %v13035_v10 }
0x20c0   :  { %v11000_v30 = vpop.f32.mrf.mxu1 }
0x20c1   :  { %v11001_v21 = vadd.f32 %v11000_v30, %v10871_v13 }
0x20c2   :  { %v13104_v38 = vpop.f32.mrf.mxu1 }
0x20c3   :  { %v11250_v59 = vadd.f32 %v13104_v38, %v10976_v6 }
0x20c4   :  { %v11210_v46 = vpop.f32.mrf.mxu1 }
0x20c5   :  { %v11264_v31 = vadd.f32 %v11627_v60, %v11250_v59  ;;  %v11249_v32 = vadd.f32 %v11210_v46, %v10971_v19 }
0x20c6   :  { %v13107_v25 = vpop.f32.mrf.mxu1 }
0x20c7   :  { %v11629_v16 = vmul.f32 -1.442695, %v11264_v31  ;;  %v11263_v37 = vadd.f32 %v11627_v60, %v11249_v32  ;;  %v11252_v34 = vadd.f32 %v13107_v25, %v10986_v22 }
0x20c8   :  { %v11220_v12 = vpop.f32.mrf.mxu1 }
0x20c9   :  { %13172 = vpow2.f32 %v11629_v16  ;;  %v11628_v48 = vmul.f32 -1.442695, %v11263_v37  ;;  %v11266_v55 = vadd.f32 %v11627_v60, %v11252_v34  ;;  %v11251_v23 = vadd.f32 %v11220_v12, %v10981_v33 }
0x20ca   :  { %v13110_v47 = vpop.f32.mrf.mxu1 }
0x20cb   :  { %13174 = vpow2.f32 %v11628_v48  ;;  %v11631_v43 = vmul.f32 -1.442695, %v11266_v55  ;;  %v11265_v42 = vadd.f32 %v11627_v60, %v11251_v23  ;;  %v11254_v45 = vadd.f32 %v13110_v47, %v10996_v17 }
0x20cc   :  { %v11230_v20 = vpop.f32.mrf.mxu1 }
0x20cd   :  { %13176 = vpow2.f32 %v11631_v43  ;;  %v11630_v14 = vmul.f32 -1.442695, %v11265_v42  ;;  %v11268_v63 = vadd.f32 %v11627_v60, %v11254_v45  ;;  %v11253_v51 = vadd.f32 %v11230_v20, %v10991_v15 }
0x20ce   :  { %v13113_v26 = vpop.f32.mrf.mxu1 }
0x20cf   :  { %13178 = vpow2.f32 %v11630_v14  ;;  %v11633_v1 = vmul.f32 -1.442695, %v11268_v63  ;;  %v11267_v5 = vadd.f32 %v11627_v60, %v11253_v51  ;;  %v11256_v7 = vadd.f32 %v13113_v26, %v11006_v29 }
0x20d0   :  { %v11240_v58 = vpop.f32.mrf.mxu1 }
0x20d1   :  { %13180 = vpow2.f32 %v11633_v1  ;;  %v11632_v49 = vmul.f32 -1.442695, %v11267_v5  ;;  %v11270_v52 = vadd.f32 %v11627_v60, %v11256_v7  ;;  %v11255_v53 = vadd.f32 %v11240_v58, %v11001_v21 }
0x20d3   :  { %13182 = vpow2.f32 %v11632_v49  ;;  %v11635_v56 = vmul.f32 -1.442695, %v11270_v52  ;;  %v11269_v2 = vadd.f32 %v11627_v60, %v11255_v53 }
0x20d5   :  { %13184 = vpow2.f32 %v11635_v56  ;;  %v11634_v54 = vmul.f32 -1.442695, %v11269_v2 }
0x20d6   :  { %v13173_v4 = vpop.eup %13172 }
0x20d7   :  { %v11296_v27 = vadd.f32 1.0, %v13173_v4  ;;  %13186 = vpow2.f32 %v11634_v54 }
0x20d8   :  { %v13175_v57 = vpop.eup %13174 }
0x20d9   :  { %13188 = vrcp.f32 %v11296_v27  ;;  %v11295_v44 = vadd.f32 1.0, %v13175_v57 }
0x20da   :  { %v13177_v40 = vpop.eup %13176 }
0x20db   :  { %13190 = vrcp.f32 %v11295_v44  ;;  %v11298_v61 = vadd.f32 1.0, %v13177_v40 }
0x20dc   :  { %v13179_v8 = vpop.eup %13178 }
0x20dd   :  { %13192 = vrcp.f32 %v11298_v61  ;;  %v11297_v35 = vadd.f32 1.0, %v13179_v8 }
0x20de   :  { %v13181_v28 = vpop.eup %13180 }
0x20df   :  { %13194 = vrcp.f32 %v11297_v35  ;;  %v11300_v0 = vadd.f32 1.0, %v13181_v28 }
0x20e0   :  { %v13183_v11 = vpop.eup %13182 }
0x20e1   :  { %13196 = vrcp.f32 %v11300_v0  ;;  %v11299_v39 = vadd.f32 1.0, %v13183_v11 }
0x20e2   :  { %v13185_v9 = vpop.eup %13184 }
0x20e3   :  { %13198 = vrcp.f32 %v11299_v39  ;;  %v11302_v10 = vadd.f32 1.0, %v13185_v9 }
0x20e4   :  { %v13187_v13 = vpop.eup %13186 }
0x20e5   :  { %13200 = vrcp.f32 %v11302_v10  ;;  %v11301_v3 = vadd.f32 1.0, %v13187_v13 }
0x20e6   :  { %v13189_v36 = vpop.eup %13188 }
0x20e7   :  { %11320 = vst.msk [vmem:[%s15406_s28 + $0x8] sm:$0xff] %vm370_vm0, %v13189_v36  ;;  %13202 = vrcp.f32 %v11301_v3 }
0x20e8   :  { %v13191_v62 = vpop.eup %13190 }
0x20e9   :  { %11319 = vst.msk [vmem:[%s15406_s28] sm:$0xff] %vm370_vm0, %v13191_v62 }
0x20ea   :  { %v13193_v50 = vpop.eup %13192 }
0x20eb   :  { %11322 = vst.msk [vmem:[%s15406_s28 + $0x18] sm:$0xff] %vm370_vm0, %v13193_v50 }
0x20ec   :  { %v13195_v41 = vpop.eup %13194 }
0x20ed   :  { %11321 = vst.msk [vmem:[%s15406_s28 + $0x10] sm:$0xff] %vm370_vm0, %v13195_v41 }
0x20ee   :  { %v13197_v18 = vpop.eup %13196 }
0x20ef   :  { %11324 = vst.msk [vmem:[%s15406_s28 + $0x28] sm:$0xff] %vm370_vm0, %v13197_v18 }
0x20f0   :  { %v13199_v24 = vpop.eup %13198 }
0x20f1   :  { %11323 = vst.msk [vmem:[%s15406_s28 + $0x20] sm:$0xff] %vm370_vm0, %v13199_v24 }
0x20f2   :  { %v13201_v30 = vpop.eup %13200 }
0x20f3   :  { %11326 = vst.msk [vmem:[%s15406_s28 + $0x38] sm:$0xff] %vm370_vm0, %v13201_v30 }
0x20f4   :  { %v13203_v6 = vpop.eup %13202 }
0x20f5   :  { %11325 = vst.msk [vmem:[%s15406_s28 + $0x30] sm:$0xff] %vm370_vm0, %v13203_v6 }
0x20f6   :  { %13662 = dma.done.wait [#allocation4], 16  }
0x20f7   :  { %13663 = vsyncadd [#allocation4], 4294967280 }
0x20f8   :  { %11344 = vsyncpa [#allocation3], 1 }
0x20f9   :  { %11345 = vsyncpa [#allocation6], 1 }
0x20fa   :  { %11346 = vsyncpa [#allocation9], 1 }
0x20fb   :  { %11347 = vsyncpa [#allocation12], 1 }
0x20fc   :  { %11348 = vsyncpa [#allocation15], 1 }
0x20fd   :  { %11349 = vsyncpa [#allocation18], 1 }
0x20fe   :  { %11350 = vsyncpa [#allocation21], 1 }
0x20ff   :  { %11351 = vsyncpa [#allocation24], 1 }
0x2100   :  { %11352 = vsyncpa [#allocation27], 1 }
0x2101   :  { %11353 = vsyncpa [#allocation30], 1 }
0x2102   :  { %11354 = vsyncpa [#allocation33], 1 }
0x2103   :  { %11355 = vsyncpa [#allocation4], 1 }

</bundles_post_ra>
